<compile_context>
chip_gen: v7x
topology: tpu7x:2x2x1
jax: 0.10.0
libtpu: 0.0.40
codegen_flags: <defaults>
</compile_context>

<pallas_src>
import jax
import jax.numpy as jnp
from jax.experimental import pallas as pl
from jax.experimental.pallas import tpu as pltpu


# ----------------------------------------------------------------------------
# Static geometry (fixed by fc1 = 64*7*7, i.e. 28x28 Fashion-MNIST inputs)
# ----------------------------------------------------------------------------
H1, W1 = 28, 28
WP1, HP1 = W1 + 2, H1 + 3          # padded width / height for the shift trick
N1 = H1 * WP1                       # 840 conv-1 output rows (padded-width grid)
H2, W2 = 14, 14
WP2, HP2 = W2 + 2, H2 + 3          # 16, 17
N2 = H2 * WP2                       # 224
H3, W3 = 7, 7
WP3, HP3 = W3 + 2, H3 + 3          # 9, 10
N3 = H3 * WP3                       # 63
C1, C2, C3 = 16, 32, 64
FC1, NCLS = 128, 10
OUT_PAD = 128                       # lane-dense final output (sliced to 10 outside)


# ----------------------------------------------------------------------------
# The single fused kernel: one image per grid step, everything in VMEM.
# ----------------------------------------------------------------------------
def _fused_cnn_kernel(xcols_ref, w1_ref, b1_ref, w2_ref, b2_ref, w3_ref, b3_ref,
                      wf1_ref, bf1_ref, wf2_ref, bf2_ref, o_ref,
                      pbuf1, buf2, pbuf2, buf3):
    f32 = jnp.float32

    # ---- layer 1: conv(1->16) + folded BN + ReLU, single K=9 matmul ---------
    y1 = jnp.dot(xcols_ref[0], w1_ref[...], preferred_element_type=f32)  # (840,16)
    y1 = jnp.maximum(y1 + b1_ref[...], 0.0)

    # ---- pool 1 (2x2 / stride 2), fused: window max + stride-2 row gathers
    #      written straight into layer 2's zero-padded input buffer.
    vm = jnp.maximum(y1[: (H1 - 1) * WP1, :], y1[WP1:, :])               # (810,16)
    hm = jnp.maximum(vm[:-1, :], vm[1:, :])                              # (809,16)
    pbuf1[...] = hm
    buf2[...] = jnp.zeros_like(buf2)                                     # pad borders
    for i in range(H2):
        row = pbuf1[pl.ds(2 * i * WP1, W2, stride=2), :]                 # (14,16)
        buf2[pl.ds((i + 1) * WP2 + 1, W2), :] = row

    # ---- layer 2: conv(16->32) + folded BN + ReLU (9 shifted-tap matmuls) ---
    acc2 = jnp.zeros((N2, C2), f32)
    for t in range(9):
        dy, dx = divmod(t, 3)
        xs = buf2[pl.ds(dy * WP2 + dx, N2), :]                           # (224,16)
        acc2 = acc2 + jnp.dot(xs, w2_ref[t], preferred_element_type=f32)
    y2 = jnp.maximum(acc2 + b2_ref[...], 0.0)                            # (224,32)

    # ---- pool 2, fused ------------------------------------------------------
    vm2 = jnp.maximum(y2[: (H2 - 1) * WP2, :], y2[WP2:, :])              # (208,32)
    hm2 = jnp.maximum(vm2[:-1, :], vm2[1:, :])                           # (207,32)
    pbuf2[...] = hm2
    buf3[...] = jnp.zeros_like(buf3)
    for i in range(H3):
        row = pbuf2[pl.ds(2 * i * WP2, W3, stride=2), :]                 # (7,32)
        buf3[pl.ds((i + 1) * WP3 + 1, W3), :] = row

    # ---- layer 3: conv(32->64) + folded BN + ReLU ---------------------------
    acc3 = jnp.zeros((N3, C3), f32)
    for t in range(9):
        dy, dx = divmod(t, 3)
        xs = buf3[pl.ds(dy * WP3 + dx, N3), :]                           # (63,32)
        acc3 = acc3 + jnp.dot(xs, w3_ref[t], preferred_element_type=f32)
    y3 = jnp.maximum(acc3 + b3_ref[...], 0.0)                            # (63,64)

    # ---- fc1 (PyTorch NCHW flatten folded into wf1) + fc2, lane-dense out ---
    h = bf1_ref[...]                                                     # (1,128)
    for p in range(H3 * W3):                                             # 49 valid px
        hh, ww = divmod(p, W3)
        q = hh * WP3 + ww                                                # row in y3
        h = h + jnp.dot(y3[q:q + 1, :], wf1_ref[p],
                        preferred_element_type=f32)
    out = jnp.dot(h, wf2_ref[...], preferred_element_type=f32) + bf2_ref[...]
    o_ref[0] = out                                                       # (1,128)


def fused_cnn_call(xcols, kp):
    B = xcols.shape[0]
    return pl.pallas_call(
        _fused_cnn_kernel,
        grid=(B,),
        in_specs=[
            pl.BlockSpec((1, N1, 9), lambda b: (b, 0, 0)),        # layer-1 im2col
            pl.BlockSpec((9, C1), lambda b: (0, 0)),              # w1 (9,16)
            pl.BlockSpec((1, C1), lambda b: (0, 0)),
            pl.BlockSpec((9, C1, C2), lambda b: (0, 0, 0)),       # w2 (9,16,32)
            pl.BlockSpec((1, C2), lambda b: (0, 0)),
            pl.BlockSpec((9, C2, C3), lambda b: (0, 0, 0)),       # w3 (9,32,64)
            pl.BlockSpec((1, C3), lambda b: (0, 0)),
            pl.BlockSpec((H3 * W3, C3, FC1), lambda b: (0, 0, 0)),  # fc1 (49,64,128)
            pl.BlockSpec((1, FC1), lambda b: (0, 0)),
            pl.BlockSpec((FC1, OUT_PAD), lambda b: (0, 0)),       # fc2 padded
            pl.BlockSpec((1, OUT_PAD), lambda b: (0, 0)),
        ],
        out_specs=pl.BlockSpec((1, 1, OUT_PAD), lambda b: (b, 0, 0)),
        out_shape=jax.ShapeDtypeStruct((B, 1, OUT_PAD), jnp.float32),
        scratch_shapes=[
            pltpu.VMEM(((H1 - 1) * WP1 - 1, C1), jnp.float32),    # pool-1 buffer
            pltpu.VMEM((HP2 * WP2, C1), jnp.float32),             # padded in layer 2
            pltpu.VMEM(((H2 - 1) * WP2 - 1, C2), jnp.float32),    # pool-2 buffer
            pltpu.VMEM((HP3 * WP3, C2), jnp.float32),             # padded in layer 3
        ],
        compiler_params=pltpu.CompilerParams(
            dimension_semantics=("parallel",),                    # v7x: 1 image / TC
            vmem_limit_bytes=32 * 1024 * 1024,
        ),
    )(xcols, kp["w1"], kp["b1"], kp["w2"], kp["b2"], kp["w3"], kp["b3"],
      kp["wf1"], kp["bf1"], kp["wf2"], kp["bf2"])


# ----------------------------------------------------------------------------
# Parameter setup (deterministic), BN folding, flatten folding, fc2 padding
# ----------------------------------------------------------------------------
def _init_conv_bn(key, cin, cout):
    k1, k2, k3, k4, k5, k6 = jax.random.split(key, 6)
    return dict(
        w=0.1 * jax.random.normal(k1, (cout, cin, 3, 3), jnp.float32),  # OIHW
        b=0.1 * jax.random.normal(k2, (cout,), jnp.float32),
        gamma=1.0 + 0.1 * jax.random.normal(k3, (cout,), jnp.float32),
        beta=0.1 * jax.random.normal(k4, (cout,), jnp.float32),
        mean=0.05 * jax.random.normal(k5, (cout,), jnp.float32),
        var=1.0 + 0.1 * jax.random.uniform(k6, (cout,), jnp.float32),
    )


def init_params(key):
    k1, k2, k3, k4, k5, k6, k7 = jax.random.split(key, 7)
    return dict(
        l1=_init_conv_bn(k1, 1, C1),
        l2=_init_conv_bn(k2, C1, C2),
        l3=_init_conv_bn(k3, C2, C3),
        fc1_w=0.03 * jax.random.normal(k4, (C3 * H3 * W3, FC1), jnp.float32),
        fc1_b=0.1 * jax.random.normal(k5, (FC1,), jnp.float32),
        fc2_w=0.1 * jax.random.normal(k6, (FC1, NCLS), jnp.float32),
        fc2_b=0.1 * jax.random.normal(k7, (NCLS,), jnp.float32),
    )


def _fold_conv_bn(p, eps=1e-5):
    # TODO(synk): BatchNorm folded with running-stats (inference) semantics;
    # train-mode batch statistics are not reproduced.
    scale = p["gamma"] / jnp.sqrt(p["var"] + eps)                  # (Cout,)
    w = jnp.transpose(p["w"], (2, 3, 1, 0))                        # (3,3,Cin,Cout)
    w9 = (w * scale).reshape(9, w.shape[2], w.shape[3])            # (9,Cin,Cout)
    b_eff = (p["b"] - p["mean"]) * scale + p["beta"]
    return w9.astype(jnp.float32), b_eff.astype(jnp.float32)


def prepare_kernel_params(params):
    w1_9, b1 = _fold_conv_bn(params["l1"])                         # (9,1,16)
    w2_9, b2 = _fold_conv_bn(params["l2"])                         # (9,16,32)
    w3_9, b3 = _fold_conv_bn(params["l3"])                         # (9,32,64)
    # Fold the PyTorch NCHW flatten (row index = c*49 + h*7 + w) into fc1:
    # wf1[p, c, k] with p = h*7 + w.
    wf1 = params["fc1_w"].reshape(C3, H3 * W3, FC1).transpose(1, 0, 2)
    # Pad fc2 to 128 output columns so the final store is lane-dense.
    wf2 = jnp.zeros((FC1, OUT_PAD), jnp.float32).at[:, :NCLS].set(params["fc2_w"])
    bf2 = jnp.zeros((1, OUT_PAD), jnp.float32).at[0, :NCLS].set(params["fc2_b"])
    return dict(
        w1=w1_9.reshape(9, C1), b1=b1.reshape(1, C1),
        w2=w2_9, b2=b2.reshape(1, C2),
        w3=w3_9, b3=b3.reshape(1, C3),
        wf1=wf1.astype(jnp.float32),
        bf1=params["fc1_b"].reshape(1, FC1).astype(jnp.float32),
        wf2=wf2, bf2=bf2,
    )


def build_layer1_im2col(x_nchw):
    """Tiny wrapper-side im2col of the (B,1,28,28) network input -> (B,840,9)."""
    B = x_nchw.shape[0]
    img = x_nchw.astype(jnp.float32).reshape(B, H1, W1)
    xpad = jnp.pad(img, ((0, 0), (1, 2), (1, 1)))                  # (B,31,30)
    xflat = xpad.reshape(B, HP1 * WP1)                             # (B,930)
    cols = [xflat[:, dy * WP1 + dx: dy * WP1 + dx + N1]
            for dy in range(3) for dx in range(3)]
    return jnp.stack(cols, axis=-1)                                # (B,840,9)


# ----------------------------------------------------------------------------
# Full forward pass (mirrors CNN_model.forward)
# ----------------------------------------------------------------------------
def cnn_forward(x_nchw, params):
    kp = prepare_kernel_params(params)
    xcols = build_layer1_im2col(x_nchw)
    out = fused_cnn_call(xcols, kp)                                # (B,1,128)
    return out[:, 0, :NCLS]


# ----------------------------------------------------------------------------
# Pure-JAX reference for a numerical sanity check
# ----------------------------------------------------------------------------
def reference_forward(x_nchw, params, eps=1e-5):
    x = x_nchw.astype(jnp.float32)

    def layer(x, p, pool):
        y = jax.lax.conv_general_dilated(
            x, p["w"], window_strides=(1, 1), padding=((1, 1), (1, 1)),
            dimension_numbers=("NCHW", "OIHW", "NCHW"))
        y = y + p["b"][None, :, None, None]
        scale = (p["gamma"] / jnp.sqrt(p["var"] + eps))[None, :, None, None]
        y = (y - p["mean"][None, :, None, None]) * scale
        y = y + p["beta"][None, :, None, None]
        y = jnp.maximum(y, 0.0)
        if pool:
            y = jax.lax.reduce_window(y, -jnp.inf, jax.lax.max,
                                      (1, 1, 2, 2), (1, 1, 2, 2), "VALID")
        return y

    x = layer(x, params["l1"], True)
    x = layer(x, params["l2"], True)
    x = layer(x, params["l3"], False)
    feat = x.reshape(x.shape[0], -1)
    h = feat @ params["fc1_w"] + params["fc1_b"]
    return h @ params["fc2_w"] + params["fc2_b"]


if __name__ == "__main__":
    key = jax.random.PRNGKey(0)
    kx, kparam = jax.random.split(key)
    params = init_params(kparam)
    x = jax.random.normal(kx, (2, 1, 28, 28), jnp.float32)  # NCHW, Fashion-MNIST sized

    out = jax.block_until_ready(jax.jit(cnn_forward)(x, params))
    assert out.shape == (2, NCLS), out.shape

    ref = reference_forward(x, params)
    rel_err = float(jnp.max(jnp.abs(out - ref)) / (jnp.max(jnp.abs(ref)) + 1e-6))
    if rel_err > 2e-2:
        raise AssertionError(f"kernel vs reference mismatch, rel_err={rel_err}")

    print("KERNEL_OK")
</pallas_src>

<mosaic_0001>
module attributes {stable_mosaic.version = 11 : i64} {
  func.func @_fused_cnn_kernel(%arg0: i32, %arg1: memref<1x840x9xf32, #tpu.memory_space<vmem>>, %arg2: memref<9x16xf32, #tpu.memory_space<vmem>>, %arg3: memref<1x16xf32, #tpu.memory_space<vmem>>, %arg4: memref<9x16x32xf32, #tpu.memory_space<vmem>>, %arg5: memref<1x32xf32, #tpu.memory_space<vmem>>, %arg6: memref<9x32x64xf32, #tpu.memory_space<vmem>>, %arg7: memref<1x64xf32, #tpu.memory_space<vmem>>, %arg8: memref<49x64x128xf32, #tpu.memory_space<vmem>>, %arg9: memref<1x128xf32, #tpu.memory_space<vmem>>, %arg10: memref<128x128xf32, #tpu.memory_space<vmem>>, %arg11: memref<1x128xf32, #tpu.memory_space<vmem>>, %arg12: memref<1x1x128xf32, #tpu.memory_space<vmem>>, %arg13: memref<809x16xf32, #tpu.memory_space<vmem>>, %arg14: memref<272x16xf32, #tpu.memory_space<vmem>>, %arg15: memref<207x32xf32, #tpu.memory_space<vmem>>, %arg16: memref<90x32xf32, #tpu.memory_space<vmem>>) attributes {dimension_semantics = [#tpu.dimension_semantics<parallel>], iteration_bounds = array<i64: 2>, scalar_prefetch = 0 : i64, scratch_operands = 4 : i64, tpu.core_type = #tpu.core_type<tc>, window_params = [{transform_indices = @transform_0, window_bounds = array<i64: 1, 840, 9>}, {pipeline_mode = #tpu.pipeline_mode<synchronous>, transform_indices = @transform_1, window_bounds = array<i64: 9, 16>}, {pipeline_mode = #tpu.pipeline_mode<synchronous>, transform_indices = @transform_2, window_bounds = array<i64: 1, 16>}, {pipeline_mode = #tpu.pipeline_mode<synchronous>, transform_indices = @transform_3, window_bounds = array<i64: 9, 16, 32>}, {pipeline_mode = #tpu.pipeline_mode<synchronous>, transform_indices = @transform_4, window_bounds = array<i64: 1, 32>}, {pipeline_mode = #tpu.pipeline_mode<synchronous>, transform_indices = @transform_5, window_bounds = array<i64: 9, 32, 64>}, {pipeline_mode = #tpu.pipeline_mode<synchronous>, transform_indices = @transform_6, window_bounds = array<i64: 1, 64>}, {pipeline_mode = #tpu.pipeline_mode<synchronous>, transform_indices = @transform_7, window_bounds = array<i64: 49, 64, 128>}, {pipeline_mode = #tpu.pipeline_mode<synchronous>, transform_indices = @transform_8, window_bounds = array<i64: 1, 128>}, {pipeline_mode = #tpu.pipeline_mode<synchronous>, transform_indices = @transform_9, window_bounds = array<i64: 128, 128>}, {pipeline_mode = #tpu.pipeline_mode<synchronous>, transform_indices = @transform_10, window_bounds = array<i64: 1, 128>}, {transform_indices = @transform_11, window_bounds = array<i64: 1, 1, 128>}]} {
    %c0 = arith.constant 0 : index
    %c0_0 = arith.constant 0 : index
    %c0_1 = arith.constant 0 : index
    %0 = vector.load %arg1[%c0, %c0_0, %c0_1] : memref<1x840x9xf32, #tpu.memory_space<vmem>>, vector<1x840x9xf32>
    %1 = vector.shape_cast %0 : vector<1x840x9xf32> to vector<840x9xf32>
    %c0_2 = arith.constant 0 : index
    %c0_3 = arith.constant 0 : index
    %2 = vector.load %arg2[%c0_2, %c0_3] : memref<9x16xf32, #tpu.memory_space<vmem>>, vector<9x16xf32>
    %cst = arith.constant dense<0.000000e+00> : vector<840x16xf32>
    %3 = tpu.matmul %1, %2, %cst {dimension_numbers = #tpu.dot_dimension_numbers<[1], [0], [0], [1], [0, 0, 1, 1], [], []>} : vector<840x9xf32>, vector<9x16xf32>, vector<840x16xf32> -> vector<840x16xf32>
    %c0_4 = arith.constant 0 : index
    %c0_5 = arith.constant 0 : index
    %4 = vector.load %arg3[%c0_4, %c0_5] : memref<1x16xf32, #tpu.memory_space<vmem>>, vector<1x16xf32>
    %5 = vector.broadcast %4 : vector<1x16xf32> to vector<840x16xf32>
    %6 = arith.addf %3, %5 : vector<840x16xf32>
    %cst_6 = arith.constant 0.000000e+00 : f32
    %7 = vector.broadcast %cst_6 : f32 to vector<840x16xf32>
    %8 = arith.maximumf %6, %7 : vector<840x16xf32>
    %9 = vector.extract_strided_slice %8 {offsets = [0, 0], sizes = [810, 16], strides = [1, 1]} : vector<840x16xf32> to vector<810x16xf32>
    %10 = vector.extract_strided_slice %8 {offsets = [30, 0], sizes = [810, 16], strides = [1, 1]} : vector<840x16xf32> to vector<810x16xf32>
    %11 = arith.maximumf %9, %10 : vector<810x16xf32>
    %12 = vector.extract_strided_slice %11 {offsets = [0, 0], sizes = [809, 16], strides = [1, 1]} : vector<810x16xf32> to vector<809x16xf32>
    %13 = vector.extract_strided_slice %11 {offsets = [1, 0], sizes = [809, 16], strides = [1, 1]} : vector<810x16xf32> to vector<809x16xf32>
    %14 = arith.maximumf %12, %13 : vector<809x16xf32>
    %c0_7 = arith.constant 0 : index
    %c0_8 = arith.constant 0 : index
    %15 = vector.load %arg13[%c0_7, %c0_8] : memref<809x16xf32, #tpu.memory_space<vmem>>, vector<809x16xf32>
    tpu.vector_store %arg13[%c0_7, %c0_8], %14 {strides = array<i32>} : memref<809x16xf32, #tpu.memory_space<vmem>>, vector<809x16xf32>,
    %cst_9 = arith.constant 0.000000e+00 : f32
    %16 = vector.broadcast %cst_9 : f32 to vector<272x16xf32>
    %c0_10 = arith.constant 0 : index
    %c0_11 = arith.constant 0 : index
    %17 = vector.load %arg14[%c0_10, %c0_11] : memref<272x16xf32, #tpu.memory_space<vmem>>, vector<272x16xf32>
    tpu.vector_store %arg14[%c0_10, %c0_11], %16 {strides = array<i32>} : memref<272x16xf32, #tpu.memory_space<vmem>>, vector<272x16xf32>,
    %c0_12 = arith.constant 0 : index
    %c0_13 = arith.constant 0 : index
    %18 = tpu.strided_load %arg13[%c0_12, %c0_13] {strides = array<i32: 2, 1>} : memref<809x16xf32, #tpu.memory_space<vmem>>, vector<14x16xf32>
    %c17 = arith.constant 17 : index
    %c0_14 = arith.constant 0 : index
    %19 = vector.load %arg14[%c17, %c0_14] : memref<272x16xf32, #tpu.memory_space<vmem>>, vector<14x16xf32>
    tpu.vector_store %arg14[%c17, %c0_14], %18 {strides = array<i32>} : memref<272x16xf32, #tpu.memory_space<vmem>>, vector<14x16xf32>,
    %c60 = arith.constant 60 : index
    %c0_15 = arith.constant 0 : index
    %20 = tpu.strided_load %arg13[%c60, %c0_15] {strides = array<i32: 2, 1>} : memref<809x16xf32, #tpu.memory_space<vmem>>, vector<14x16xf32>
    %c33 = arith.constant 33 : index
    %c0_16 = arith.constant 0 : index
    %21 = vector.load %arg14[%c33, %c0_16] : memref<272x16xf32, #tpu.memory_space<vmem>>, vector<14x16xf32>
    tpu.vector_store %arg14[%c33, %c0_16], %20 {strides = array<i32>} : memref<272x16xf32, #tpu.memory_space<vmem>>, vector<14x16xf32>,
    %c120 = arith.constant 120 : index
    %c0_17 = arith.constant 0 : index
    %22 = tpu.strided_load %arg13[%c120, %c0_17] {strides = array<i32: 2, 1>} : memref<809x16xf32, #tpu.memory_space<vmem>>, vector<14x16xf32>
    %c49 = arith.constant 49 : index
    %c0_18 = arith.constant 0 : index
    %23 = vector.load %arg14[%c49, %c0_18] : memref<272x16xf32, #tpu.memory_space<vmem>>, vector<14x16xf32>
    tpu.vector_store %arg14[%c49, %c0_18], %22 {strides = array<i32>} : memref<272x16xf32, #tpu.memory_space<vmem>>, vector<14x16xf32>,
    %c180 = arith.constant 180 : index
    %c0_19 = arith.constant 0 : index
    %24 = tpu.strided_load %arg13[%c180, %c0_19] {strides = array<i32: 2, 1>} : memref<809x16xf32, #tpu.memory_space<vmem>>, vector<14x16xf32>
    %c65 = arith.constant 65 : index
    %c0_20 = arith.constant 0 : index
    %25 = vector.load %arg14[%c65, %c0_20] : memref<272x16xf32, #tpu.memory_space<vmem>>, vector<14x16xf32>
    tpu.vector_store %arg14[%c65, %c0_20], %24 {strides = array<i32>} : memref<272x16xf32, #tpu.memory_space<vmem>>, vector<14x16xf32>,
    %c240 = arith.constant 240 : index
    %c0_21 = arith.constant 0 : index
    %26 = tpu.strided_load %arg13[%c240, %c0_21] {strides = array<i32: 2, 1>} : memref<809x16xf32, #tpu.memory_space<vmem>>, vector<14x16xf32>
    %c81 = arith.constant 81 : index
    %c0_22 = arith.constant 0 : index
    %27 = vector.load %arg14[%c81, %c0_22] : memref<272x16xf32, #tpu.memory_space<vmem>>, vector<14x16xf32>
    tpu.vector_store %arg14[%c81, %c0_22], %26 {strides = array<i32>} : memref<272x16xf32, #tpu.memory_space<vmem>>, vector<14x16xf32>,
    %c300 = arith.constant 300 : index
    %c0_23 = arith.constant 0 : index
    %28 = tpu.strided_load %arg13[%c300, %c0_23] {strides = array<i32: 2, 1>} : memref<809x16xf32, #tpu.memory_space<vmem>>, vector<14x16xf32>
    %c97 = arith.constant 97 : index
    %c0_24 = arith.constant 0 : index
    %29 = vector.load %arg14[%c97, %c0_24] : memref<272x16xf32, #tpu.memory_space<vmem>>, vector<14x16xf32>
    tpu.vector_store %arg14[%c97, %c0_24], %28 {strides = array<i32>} : memref<272x16xf32, #tpu.memory_space<vmem>>, vector<14x16xf32>,
    %c360 = arith.constant 360 : index
    %c0_25 = arith.constant 0 : index
    %30 = tpu.strided_load %arg13[%c360, %c0_25] {strides = array<i32: 2, 1>} : memref<809x16xf32, #tpu.memory_space<vmem>>, vector<14x16xf32>
    %c113 = arith.constant 113 : index
    %c0_26 = arith.constant 0 : index
    %31 = vector.load %arg14[%c113, %c0_26] : memref<272x16xf32, #tpu.memory_space<vmem>>, vector<14x16xf32>
    tpu.vector_store %arg14[%c113, %c0_26], %30 {strides = array<i32>} : memref<272x16xf32, #tpu.memory_space<vmem>>, vector<14x16xf32>,
    %c420 = arith.constant 420 : index
    %c0_27 = arith.constant 0 : index
    %32 = tpu.strided_load %arg13[%c420, %c0_27] {strides = array<i32: 2, 1>} : memref<809x16xf32, #tpu.memory_space<vmem>>, vector<14x16xf32>
    %c129 = arith.constant 129 : index
    %c0_28 = arith.constant 0 : index
    %33 = vector.load %arg14[%c129, %c0_28] : memref<272x16xf32, #tpu.memory_space<vmem>>, vector<14x16xf32>
    tpu.vector_store %arg14[%c129, %c0_28], %32 {strides = array<i32>} : memref<272x16xf32, #tpu.memory_space<vmem>>, vector<14x16xf32>,
    %c480 = arith.constant 480 : index
    %c0_29 = arith.constant 0 : index
    %34 = tpu.strided_load %arg13[%c480, %c0_29] {strides = array<i32: 2, 1>} : memref<809x16xf32, #tpu.memory_space<vmem>>, vector<14x16xf32>
    %c145 = arith.constant 145 : index
    %c0_30 = arith.constant 0 : index
    %35 = vector.load %arg14[%c145, %c0_30] : memref<272x16xf32, #tpu.memory_space<vmem>>, vector<14x16xf32>
    tpu.vector_store %arg14[%c145, %c0_30], %34 {strides = array<i32>} : memref<272x16xf32, #tpu.memory_space<vmem>>, vector<14x16xf32>,
    %c540 = arith.constant 540 : index
    %c0_31 = arith.constant 0 : index
    %36 = tpu.strided_load %arg13[%c540, %c0_31] {strides = array<i32: 2, 1>} : memref<809x16xf32, #tpu.memory_space<vmem>>, vector<14x16xf32>
    %c161 = arith.constant 161 : index
    %c0_32 = arith.constant 0 : index
    %37 = vector.load %arg14[%c161, %c0_32] : memref<272x16xf32, #tpu.memory_space<vmem>>, vector<14x16xf32>
    tpu.vector_store %arg14[%c161, %c0_32], %36 {strides = array<i32>} : memref<272x16xf32, #tpu.memory_space<vmem>>, vector<14x16xf32>,
    %c600 = arith.constant 600 : index
    %c0_33 = arith.constant 0 : index
    %38 = tpu.strided_load %arg13[%c600, %c0_33] {strides = array<i32: 2, 1>} : memref<809x16xf32, #tpu.memory_space<vmem>>, vector<14x16xf32>
    %c177 = arith.constant 177 : index
    %c0_34 = arith.constant 0 : index
    %39 = vector.load %arg14[%c177, %c0_34] : memref<272x16xf32, #tpu.memory_space<vmem>>, vector<14x16xf32>
    tpu.vector_store %arg14[%c177, %c0_34], %38 {strides = array<i32>} : memref<272x16xf32, #tpu.memory_space<vmem>>, vector<14x16xf32>,
    %c660 = arith.constant 660 : index
    %c0_35 = arith.constant 0 : index
    %40 = tpu.strided_load %arg13[%c660, %c0_35] {strides = array<i32: 2, 1>} : memref<809x16xf32, #tpu.memory_space<vmem>>, vector<14x16xf32>
    %c193 = arith.constant 193 : index
    %c0_36 = arith.constant 0 : index
    %41 = vector.load %arg14[%c193, %c0_36] : memref<272x16xf32, #tpu.memory_space<vmem>>, vector<14x16xf32>
    tpu.vector_store %arg14[%c193, %c0_36], %40 {strides = array<i32>} : memref<272x16xf32, #tpu.memory_space<vmem>>, vector<14x16xf32>,
    %c720 = arith.constant 720 : index
    %c0_37 = arith.constant 0 : index
    %42 = tpu.strided_load %arg13[%c720, %c0_37] {strides = array<i32: 2, 1>} : memref<809x16xf32, #tpu.memory_space<vmem>>, vector<14x16xf32>
    %c209 = arith.constant 209 : index
    %c0_38 = arith.constant 0 : index
    %43 = vector.load %arg14[%c209, %c0_38] : memref<272x16xf32, #tpu.memory_space<vmem>>, vector<14x16xf32>
    tpu.vector_store %arg14[%c209, %c0_38], %42 {strides = array<i32>} : memref<272x16xf32, #tpu.memory_space<vmem>>, vector<14x16xf32>,
    %c780 = arith.constant 780 : index
    %c0_39 = arith.constant 0 : index
    %44 = tpu.strided_load %arg13[%c780, %c0_39] {strides = array<i32: 2, 1>} : memref<809x16xf32, #tpu.memory_space<vmem>>, vector<14x16xf32>
    %c225 = arith.constant 225 : index
    %c0_40 = arith.constant 0 : index
    %45 = vector.load %arg14[%c225, %c0_40] : memref<272x16xf32, #tpu.memory_space<vmem>>, vector<14x16xf32>
    tpu.vector_store %arg14[%c225, %c0_40], %44 {strides = array<i32>} : memref<272x16xf32, #tpu.memory_space<vmem>>, vector<14x16xf32>,
    %cst_41 = arith.constant 0.000000e+00 : f32
    %46 = vector.broadcast %cst_41 : f32 to vector<224x32xf32>
    %c0_42 = arith.constant 0 : index
    %c0_43 = arith.constant 0 : index
    %47 = vector.load %arg14[%c0_42, %c0_43] : memref<272x16xf32, #tpu.memory_space<vmem>>, vector<224x16xf32>
    %c0_44 = arith.constant 0 : index
    %c0_45 = arith.constant 0 : index
    %c0_46 = arith.constant 0 : index
    %48 = vector.load %arg4[%c0_44, %c0_45, %c0_46] : memref<9x16x32xf32, #tpu.memory_space<vmem>>, vector<1x16x32xf32>
    %49 = vector.shape_cast %48 : vector<1x16x32xf32> to vector<16x32xf32>
    %cst_47 = arith.constant dense<0.000000e+00> : vector<224x32xf32>
    %50 = tpu.matmul %47, %49, %cst_47 {dimension_numbers = #tpu.dot_dimension_numbers<[1], [0], [0], [1], [0, 0, 1, 1], [], []>} : vector<224x16xf32>, vector<16x32xf32>, vector<224x32xf32> -> vector<224x32xf32>
    %51 = arith.addf %46, %50 : vector<224x32xf32>
    %c1 = arith.constant 1 : index
    %c0_48 = arith.constant 0 : index
    %52 = vector.load %arg14[%c1, %c0_48] : memref<272x16xf32, #tpu.memory_space<vmem>>, vector<224x16xf32>
    %c1_49 = arith.constant 1 : index
    %c0_50 = arith.constant 0 : index
    %c0_51 = arith.constant 0 : index
    %53 = vector.load %arg4[%c1_49, %c0_50, %c0_51] : memref<9x16x32xf32, #tpu.memory_space<vmem>>, vector<1x16x32xf32>
    %54 = vector.shape_cast %53 : vector<1x16x32xf32> to vector<16x32xf32>
    %cst_52 = arith.constant dense<0.000000e+00> : vector<224x32xf32>
    %55 = tpu.matmul %52, %54, %cst_52 {dimension_numbers = #tpu.dot_dimension_numbers<[1], [0], [0], [1], [0, 0, 1, 1], [], []>} : vector<224x16xf32>, vector<16x32xf32>, vector<224x32xf32> -> vector<224x32xf32>
    %56 = arith.addf %51, %55 : vector<224x32xf32>
    %c2 = arith.constant 2 : index
    %c0_53 = arith.constant 0 : index
    %57 = vector.load %arg14[%c2, %c0_53] : memref<272x16xf32, #tpu.memory_space<vmem>>, vector<224x16xf32>
    %c2_54 = arith.constant 2 : index
    %c0_55 = arith.constant 0 : index
    %c0_56 = arith.constant 0 : index
    %58 = vector.load %arg4[%c2_54, %c0_55, %c0_56] : memref<9x16x32xf32, #tpu.memory_space<vmem>>, vector<1x16x32xf32>
    %59 = vector.shape_cast %58 : vector<1x16x32xf32> to vector<16x32xf32>
    %cst_57 = arith.constant dense<0.000000e+00> : vector<224x32xf32>
    %60 = tpu.matmul %57, %59, %cst_57 {dimension_numbers = #tpu.dot_dimension_numbers<[1], [0], [0], [1], [0, 0, 1, 1], [], []>} : vector<224x16xf32>, vector<16x32xf32>, vector<224x32xf32> -> vector<224x32xf32>
    %61 = arith.addf %56, %60 : vector<224x32xf32>
    %c16 = arith.constant 16 : index
    %c0_58 = arith.constant 0 : index
    %62 = vector.load %arg14[%c16, %c0_58] : memref<272x16xf32, #tpu.memory_space<vmem>>, vector<224x16xf32>
    %c3 = arith.constant 3 : index
    %c0_59 = arith.constant 0 : index
    %c0_60 = arith.constant 0 : index
    %63 = vector.load %arg4[%c3, %c0_59, %c0_60] : memref<9x16x32xf32, #tpu.memory_space<vmem>>, vector<1x16x32xf32>
    %64 = vector.shape_cast %63 : vector<1x16x32xf32> to vector<16x32xf32>
    %cst_61 = arith.constant dense<0.000000e+00> : vector<224x32xf32>
    %65 = tpu.matmul %62, %64, %cst_61 {dimension_numbers = #tpu.dot_dimension_numbers<[1], [0], [0], [1], [0, 0, 1, 1], [], []>} : vector<224x16xf32>, vector<16x32xf32>, vector<224x32xf32> -> vector<224x32xf32>
    %66 = arith.addf %61, %65 : vector<224x32xf32>
    %c17_62 = arith.constant 17 : index
    %c0_63 = arith.constant 0 : index
    %67 = vector.load %arg14[%c17_62, %c0_63] : memref<272x16xf32, #tpu.memory_space<vmem>>, vector<224x16xf32>
    %c4 = arith.constant 4 : index
    %c0_64 = arith.constant 0 : index
    %c0_65 = arith.constant 0 : index
    %68 = vector.load %arg4[%c4, %c0_64, %c0_65] : memref<9x16x32xf32, #tpu.memory_space<vmem>>, vector<1x16x32xf32>
    %69 = vector.shape_cast %68 : vector<1x16x32xf32> to vector<16x32xf32>
    %cst_66 = arith.constant dense<0.000000e+00> : vector<224x32xf32>
    %70 = tpu.matmul %67, %69, %cst_66 {dimension_numbers = #tpu.dot_dimension_numbers<[1], [0], [0], [1], [0, 0, 1, 1], [], []>} : vector<224x16xf32>, vector<16x32xf32>, vector<224x32xf32> -> vector<224x32xf32>
    %71 = arith.addf %66, %70 : vector<224x32xf32>
    %c18 = arith.constant 18 : index
    %c0_67 = arith.constant 0 : index
    %72 = vector.load %arg14[%c18, %c0_67] : memref<272x16xf32, #tpu.memory_space<vmem>>, vector<224x16xf32>
    %c5 = arith.constant 5 : index
    %c0_68 = arith.constant 0 : index
    %c0_69 = arith.constant 0 : index
    %73 = vector.load %arg4[%c5, %c0_68, %c0_69] : memref<9x16x32xf32, #tpu.memory_space<vmem>>, vector<1x16x32xf32>
    %74 = vector.shape_cast %73 : vector<1x16x32xf32> to vector<16x32xf32>
    %cst_70 = arith.constant dense<0.000000e+00> : vector<224x32xf32>
    %75 = tpu.matmul %72, %74, %cst_70 {dimension_numbers = #tpu.dot_dimension_numbers<[1], [0], [0], [1], [0, 0, 1, 1], [], []>} : vector<224x16xf32>, vector<16x32xf32>, vector<224x32xf32> -> vector<224x32xf32>
    %76 = arith.addf %71, %75 : vector<224x32xf32>
    %c32 = arith.constant 32 : index
    %c0_71 = arith.constant 0 : index
    %77 = vector.load %arg14[%c32, %c0_71] : memref<272x16xf32, #tpu.memory_space<vmem>>, vector<224x16xf32>
    %c6 = arith.constant 6 : index
    %c0_72 = arith.constant 0 : index
    %c0_73 = arith.constant 0 : index
    %78 = vector.load %arg4[%c6, %c0_72, %c0_73] : memref<9x16x32xf32, #tpu.memory_space<vmem>>, vector<1x16x32xf32>
    %79 = vector.shape_cast %78 : vector<1x16x32xf32> to vector<16x32xf32>
    %cst_74 = arith.constant dense<0.000000e+00> : vector<224x32xf32>
    %80 = tpu.matmul %77, %79, %cst_74 {dimension_numbers = #tpu.dot_dimension_numbers<[1], [0], [0], [1], [0, 0, 1, 1], [], []>} : vector<224x16xf32>, vector<16x32xf32>, vector<224x32xf32> -> vector<224x32xf32>
    %81 = arith.addf %76, %80 : vector<224x32xf32>
    %c33_75 = arith.constant 33 : index
    %c0_76 = arith.constant 0 : index
    %82 = vector.load %arg14[%c33_75, %c0_76] : memref<272x16xf32, #tpu.memory_space<vmem>>, vector<224x16xf32>
    %c7 = arith.constant 7 : index
    %c0_77 = arith.constant 0 : index
    %c0_78 = arith.constant 0 : index
    %83 = vector.load %arg4[%c7, %c0_77, %c0_78] : memref<9x16x32xf32, #tpu.memory_space<vmem>>, vector<1x16x32xf32>
    %84 = vector.shape_cast %83 : vector<1x16x32xf32> to vector<16x32xf32>
    %cst_79 = arith.constant dense<0.000000e+00> : vector<224x32xf32>
    %85 = tpu.matmul %82, %84, %cst_79 {dimension_numbers = #tpu.dot_dimension_numbers<[1], [0], [0], [1], [0, 0, 1, 1], [], []>} : vector<224x16xf32>, vector<16x32xf32>, vector<224x32xf32> -> vector<224x32xf32>
    %86 = arith.addf %81, %85 : vector<224x32xf32>
    %c34 = arith.constant 34 : index
    %c0_80 = arith.constant 0 : index
    %87 = vector.load %arg14[%c34, %c0_80] : memref<272x16xf32, #tpu.memory_space<vmem>>, vector<224x16xf32>
    %c8 = arith.constant 8 : index
    %c0_81 = arith.constant 0 : index
    %c0_82 = arith.constant 0 : index
    %88 = vector.load %arg4[%c8, %c0_81, %c0_82] : memref<9x16x32xf32, #tpu.memory_space<vmem>>, vector<1x16x32xf32>
    %89 = vector.shape_cast %88 : vector<1x16x32xf32> to vector<16x32xf32>
    %cst_83 = arith.constant dense<0.000000e+00> : vector<224x32xf32>
    %90 = tpu.matmul %87, %89, %cst_83 {dimension_numbers = #tpu.dot_dimension_numbers<[1], [0], [0], [1], [0, 0, 1, 1], [], []>} : vector<224x16xf32>, vector<16x32xf32>, vector<224x32xf32> -> vector<224x32xf32>
    %91 = arith.addf %86, %90 : vector<224x32xf32>
    %c0_84 = arith.constant 0 : index
    %c0_85 = arith.constant 0 : index
    %92 = vector.load %arg5[%c0_84, %c0_85] : memref<1x32xf32, #tpu.memory_space<vmem>>, vector<1x32xf32>
    %93 = vector.broadcast %92 : vector<1x32xf32> to vector<224x32xf32>
    %94 = arith.addf %91, %93 : vector<224x32xf32>
    %cst_86 = arith.constant 0.000000e+00 : f32
    %95 = vector.broadcast %cst_86 : f32 to vector<224x32xf32>
    %96 = arith.maximumf %94, %95 : vector<224x32xf32>
    %97 = vector.extract_strided_slice %96 {offsets = [0, 0], sizes = [208, 32], strides = [1, 1]} : vector<224x32xf32> to vector<208x32xf32>
    %98 = vector.extract_strided_slice %96 {offsets = [16, 0], sizes = [208, 32], strides = [1, 1]} : vector<224x32xf32> to vector<208x32xf32>
    %99 = arith.maximumf %97, %98 : vector<208x32xf32>
    %100 = vector.extract_strided_slice %99 {offsets = [0, 0], sizes = [207, 32], strides = [1, 1]} : vector<208x32xf32> to vector<207x32xf32>
    %101 = vector.extract_strided_slice %99 {offsets = [1, 0], sizes = [207, 32], strides = [1, 1]} : vector<208x32xf32> to vector<207x32xf32>
    %102 = arith.maximumf %100, %101 : vector<207x32xf32>
    %c0_87 = arith.constant 0 : index
    %c0_88 = arith.constant 0 : index
    %103 = vector.load %arg15[%c0_87, %c0_88] : memref<207x32xf32, #tpu.memory_space<vmem>>, vector<207x32xf32>
    tpu.vector_store %arg15[%c0_87, %c0_88], %102 {strides = array<i32>} : memref<207x32xf32, #tpu.memory_space<vmem>>, vector<207x32xf32>,
    %cst_89 = arith.constant 0.000000e+00 : f32
    %104 = vector.broadcast %cst_89 : f32 to vector<90x32xf32>
    %c0_90 = arith.constant 0 : index
    %c0_91 = arith.constant 0 : index
    %105 = vector.load %arg16[%c0_90, %c0_91] : memref<90x32xf32, #tpu.memory_space<vmem>>, vector<90x32xf32>
    tpu.vector_store %arg16[%c0_90, %c0_91], %104 {strides = array<i32>} : memref<90x32xf32, #tpu.memory_space<vmem>>, vector<90x32xf32>,
    %c0_92 = arith.constant 0 : index
    %c0_93 = arith.constant 0 : index
    %106 = tpu.strided_load %arg15[%c0_92, %c0_93] {strides = array<i32: 2, 1>} : memref<207x32xf32, #tpu.memory_space<vmem>>, vector<7x32xf32>
    %c10 = arith.constant 10 : index
    %c0_94 = arith.constant 0 : index
    %107 = vector.load %arg16[%c10, %c0_94] : memref<90x32xf32, #tpu.memory_space<vmem>>, vector<7x32xf32>
    tpu.vector_store %arg16[%c10, %c0_94], %106 {strides = array<i32>} : memref<90x32xf32, #tpu.memory_space<vmem>>, vector<7x32xf32>,
    %c32_95 = arith.constant 32 : index
    %c0_96 = arith.constant 0 : index
    %108 = tpu.strided_load %arg15[%c32_95, %c0_96] {strides = array<i32: 2, 1>} : memref<207x32xf32, #tpu.memory_space<vmem>>, vector<7x32xf32>
    %c19 = arith.constant 19 : index
    %c0_97 = arith.constant 0 : index
    %109 = vector.load %arg16[%c19, %c0_97] : memref<90x32xf32, #tpu.memory_space<vmem>>, vector<7x32xf32>
    tpu.vector_store %arg16[%c19, %c0_97], %108 {strides = array<i32>} : memref<90x32xf32, #tpu.memory_space<vmem>>, vector<7x32xf32>,
    %c64 = arith.constant 64 : index
    %c0_98 = arith.constant 0 : index
    %110 = tpu.strided_load %arg15[%c64, %c0_98] {strides = array<i32: 2, 1>} : memref<207x32xf32, #tpu.memory_space<vmem>>, vector<7x32xf32>
    %c28 = arith.constant 28 : index
    %c0_99 = arith.constant 0 : index
    %111 = vector.load %arg16[%c28, %c0_99] : memref<90x32xf32, #tpu.memory_space<vmem>>, vector<7x32xf32>
    tpu.vector_store %arg16[%c28, %c0_99], %110 {strides = array<i32>} : memref<90x32xf32, #tpu.memory_space<vmem>>, vector<7x32xf32>,
    %c96 = arith.constant 96 : index
    %c0_100 = arith.constant 0 : index
    %112 = tpu.strided_load %arg15[%c96, %c0_100] {strides = array<i32: 2, 1>} : memref<207x32xf32, #tpu.memory_space<vmem>>, vector<7x32xf32>
    %c37 = arith.constant 37 : index
    %c0_101 = arith.constant 0 : index
    %113 = vector.load %arg16[%c37, %c0_101] : memref<90x32xf32, #tpu.memory_space<vmem>>, vector<7x32xf32>
    tpu.vector_store %arg16[%c37, %c0_101], %112 {strides = array<i32>} : memref<90x32xf32, #tpu.memory_space<vmem>>, vector<7x32xf32>,
    %c128 = arith.constant 128 : index
    %c0_102 = arith.constant 0 : index
    %114 = tpu.strided_load %arg15[%c128, %c0_102] {strides = array<i32: 2, 1>} : memref<207x32xf32, #tpu.memory_space<vmem>>, vector<7x32xf32>
    %c46 = arith.constant 46 : index
    %c0_103 = arith.constant 0 : index
    %115 = vector.load %arg16[%c46, %c0_103] : memref<90x32xf32, #tpu.memory_space<vmem>>, vector<7x32xf32>
    tpu.vector_store %arg16[%c46, %c0_103], %114 {strides = array<i32>} : memref<90x32xf32, #tpu.memory_space<vmem>>, vector<7x32xf32>,
    %c160 = arith.constant 160 : index
    %c0_104 = arith.constant 0 : index
    %116 = tpu.strided_load %arg15[%c160, %c0_104] {strides = array<i32: 2, 1>} : memref<207x32xf32, #tpu.memory_space<vmem>>, vector<7x32xf32>
    %c55 = arith.constant 55 : index
    %c0_105 = arith.constant 0 : index
    %117 = vector.load %arg16[%c55, %c0_105] : memref<90x32xf32, #tpu.memory_space<vmem>>, vector<7x32xf32>
    tpu.vector_store %arg16[%c55, %c0_105], %116 {strides = array<i32>} : memref<90x32xf32, #tpu.memory_space<vmem>>, vector<7x32xf32>,
    %c192 = arith.constant 192 : index
    %c0_106 = arith.constant 0 : index
    %118 = tpu.strided_load %arg15[%c192, %c0_106] {strides = array<i32: 2, 1>} : memref<207x32xf32, #tpu.memory_space<vmem>>, vector<7x32xf32>
    %c64_107 = arith.constant 64 : index
    %c0_108 = arith.constant 0 : index
    %119 = vector.load %arg16[%c64_107, %c0_108] : memref<90x32xf32, #tpu.memory_space<vmem>>, vector<7x32xf32>
    tpu.vector_store %arg16[%c64_107, %c0_108], %118 {strides = array<i32>} : memref<90x32xf32, #tpu.memory_space<vmem>>, vector<7x32xf32>,
    %cst_109 = arith.constant 0.000000e+00 : f32
    %120 = vector.broadcast %cst_109 : f32 to vector<63x64xf32>
    %c0_110 = arith.constant 0 : index
    %c0_111 = arith.constant 0 : index
    %121 = vector.load %arg16[%c0_110, %c0_111] : memref<90x32xf32, #tpu.memory_space<vmem>>, vector<63x32xf32>
    %c0_112 = arith.constant 0 : index
    %c0_113 = arith.constant 0 : index
    %c0_114 = arith.constant 0 : index
    %122 = vector.load %arg6[%c0_112, %c0_113, %c0_114] : memref<9x32x64xf32, #tpu.memory_space<vmem>>, vector<1x32x64xf32>
    %123 = vector.shape_cast %122 : vector<1x32x64xf32> to vector<32x64xf32>
    %cst_115 = arith.constant dense<0.000000e+00> : vector<63x64xf32>
    %124 = tpu.matmul %121, %123, %cst_115 {dimension_numbers = #tpu.dot_dimension_numbers<[1], [0], [0], [1], [0, 0, 1, 1], [], []>} : vector<63x32xf32>, vector<32x64xf32>, vector<63x64xf32> -> vector<63x64xf32>
    %125 = arith.addf %120, %124 : vector<63x64xf32>
    %c1_116 = arith.constant 1 : index
    %c0_117 = arith.constant 0 : index
    %126 = vector.load %arg16[%c1_116, %c0_117] : memref<90x32xf32, #tpu.memory_space<vmem>>, vector<63x32xf32>
    %c1_118 = arith.constant 1 : index
    %c0_119 = arith.constant 0 : index
    %c0_120 = arith.constant 0 : index
    %127 = vector.load %arg6[%c1_118, %c0_119, %c0_120] : memref<9x32x64xf32, #tpu.memory_space<vmem>>, vector<1x32x64xf32>
    %128 = vector.shape_cast %127 : vector<1x32x64xf32> to vector<32x64xf32>
    %cst_121 = arith.constant dense<0.000000e+00> : vector<63x64xf32>
    %129 = tpu.matmul %126, %128, %cst_121 {dimension_numbers = #tpu.dot_dimension_numbers<[1], [0], [0], [1], [0, 0, 1, 1], [], []>} : vector<63x32xf32>, vector<32x64xf32>, vector<63x64xf32> -> vector<63x64xf32>
    %130 = arith.addf %125, %129 : vector<63x64xf32>
    %c2_122 = arith.constant 2 : index
    %c0_123 = arith.constant 0 : index
    %131 = vector.load %arg16[%c2_122, %c0_123] : memref<90x32xf32, #tpu.memory_space<vmem>>, vector<63x32xf32>
    %c2_124 = arith.constant 2 : index
    %c0_125 = arith.constant 0 : index
    %c0_126 = arith.constant 0 : index
    %132 = vector.load %arg6[%c2_124, %c0_125, %c0_126] : memref<9x32x64xf32, #tpu.memory_space<vmem>>, vector<1x32x64xf32>
    %133 = vector.shape_cast %132 : vector<1x32x64xf32> to vector<32x64xf32>
    %cst_127 = arith.constant dense<0.000000e+00> : vector<63x64xf32>
    %134 = tpu.matmul %131, %133, %cst_127 {dimension_numbers = #tpu.dot_dimension_numbers<[1], [0], [0], [1], [0, 0, 1, 1], [], []>} : vector<63x32xf32>, vector<32x64xf32>, vector<63x64xf32> -> vector<63x64xf32>
    %135 = arith.addf %130, %134 : vector<63x64xf32>
    %c9 = arith.constant 9 : index
    %c0_128 = arith.constant 0 : index
    %136 = vector.load %arg16[%c9, %c0_128] : memref<90x32xf32, #tpu.memory_space<vmem>>, vector<63x32xf32>
    %c3_129 = arith.constant 3 : index
    %c0_130 = arith.constant 0 : index
    %c0_131 = arith.constant 0 : index
    %137 = vector.load %arg6[%c3_129, %c0_130, %c0_131] : memref<9x32x64xf32, #tpu.memory_space<vmem>>, vector<1x32x64xf32>
    %138 = vector.shape_cast %137 : vector<1x32x64xf32> to vector<32x64xf32>
    %cst_132 = arith.constant dense<0.000000e+00> : vector<63x64xf32>
    %139 = tpu.matmul %136, %138, %cst_132 {dimension_numbers = #tpu.dot_dimension_numbers<[1], [0], [0], [1], [0, 0, 1, 1], [], []>} : vector<63x32xf32>, vector<32x64xf32>, vector<63x64xf32> -> vector<63x64xf32>
    %140 = arith.addf %135, %139 : vector<63x64xf32>
    %c10_133 = arith.constant 10 : index
    %c0_134 = arith.constant 0 : index
    %141 = vector.load %arg16[%c10_133, %c0_134] : memref<90x32xf32, #tpu.memory_space<vmem>>, vector<63x32xf32>
    %c4_135 = arith.constant 4 : index
    %c0_136 = arith.constant 0 : index
    %c0_137 = arith.constant 0 : index
    %142 = vector.load %arg6[%c4_135, %c0_136, %c0_137] : memref<9x32x64xf32, #tpu.memory_space<vmem>>, vector<1x32x64xf32>
    %143 = vector.shape_cast %142 : vector<1x32x64xf32> to vector<32x64xf32>
    %cst_138 = arith.constant dense<0.000000e+00> : vector<63x64xf32>
    %144 = tpu.matmul %141, %143, %cst_138 {dimension_numbers = #tpu.dot_dimension_numbers<[1], [0], [0], [1], [0, 0, 1, 1], [], []>} : vector<63x32xf32>, vector<32x64xf32>, vector<63x64xf32> -> vector<63x64xf32>
    %145 = arith.addf %140, %144 : vector<63x64xf32>
    %c11 = arith.constant 11 : index
    %c0_139 = arith.constant 0 : index
    %146 = vector.load %arg16[%c11, %c0_139] : memref<90x32xf32, #tpu.memory_space<vmem>>, vector<63x32xf32>
    %c5_140 = arith.constant 5 : index
    %c0_141 = arith.constant 0 : index
    %c0_142 = arith.constant 0 : index
    %147 = vector.load %arg6[%c5_140, %c0_141, %c0_142] : memref<9x32x64xf32, #tpu.memory_space<vmem>>, vector<1x32x64xf32>
    %148 = vector.shape_cast %147 : vector<1x32x64xf32> to vector<32x64xf32>
    %cst_143 = arith.constant dense<0.000000e+00> : vector<63x64xf32>
    %149 = tpu.matmul %146, %148, %cst_143 {dimension_numbers = #tpu.dot_dimension_numbers<[1], [0], [0], [1], [0, 0, 1, 1], [], []>} : vector<63x32xf32>, vector<32x64xf32>, vector<63x64xf32> -> vector<63x64xf32>
    %150 = arith.addf %145, %149 : vector<63x64xf32>
    %c18_144 = arith.constant 18 : index
    %c0_145 = arith.constant 0 : index
    %151 = vector.load %arg16[%c18_144, %c0_145] : memref<90x32xf32, #tpu.memory_space<vmem>>, vector<63x32xf32>
    %c6_146 = arith.constant 6 : index
    %c0_147 = arith.constant 0 : index
    %c0_148 = arith.constant 0 : index
    %152 = vector.load %arg6[%c6_146, %c0_147, %c0_148] : memref<9x32x64xf32, #tpu.memory_space<vmem>>, vector<1x32x64xf32>
    %153 = vector.shape_cast %152 : vector<1x32x64xf32> to vector<32x64xf32>
    %cst_149 = arith.constant dense<0.000000e+00> : vector<63x64xf32>
    %154 = tpu.matmul %151, %153, %cst_149 {dimension_numbers = #tpu.dot_dimension_numbers<[1], [0], [0], [1], [0, 0, 1, 1], [], []>} : vector<63x32xf32>, vector<32x64xf32>, vector<63x64xf32> -> vector<63x64xf32>
    %155 = arith.addf %150, %154 : vector<63x64xf32>
    %c19_150 = arith.constant 19 : index
    %c0_151 = arith.constant 0 : index
    %156 = vector.load %arg16[%c19_150, %c0_151] : memref<90x32xf32, #tpu.memory_space<vmem>>, vector<63x32xf32>
    %c7_152 = arith.constant 7 : index
    %c0_153 = arith.constant 0 : index
    %c0_154 = arith.constant 0 : index
    %157 = vector.load %arg6[%c7_152, %c0_153, %c0_154] : memref<9x32x64xf32, #tpu.memory_space<vmem>>, vector<1x32x64xf32>
    %158 = vector.shape_cast %157 : vector<1x32x64xf32> to vector<32x64xf32>
    %cst_155 = arith.constant dense<0.000000e+00> : vector<63x64xf32>
    %159 = tpu.matmul %156, %158, %cst_155 {dimension_numbers = #tpu.dot_dimension_numbers<[1], [0], [0], [1], [0, 0, 1, 1], [], []>} : vector<63x32xf32>, vector<32x64xf32>, vector<63x64xf32> -> vector<63x64xf32>
    %160 = arith.addf %155, %159 : vector<63x64xf32>
    %c20 = arith.constant 20 : index
    %c0_156 = arith.constant 0 : index
    %161 = vector.load %arg16[%c20, %c0_156] : memref<90x32xf32, #tpu.memory_space<vmem>>, vector<63x32xf32>
    %c8_157 = arith.constant 8 : index
    %c0_158 = arith.constant 0 : index
    %c0_159 = arith.constant 0 : index
    %162 = vector.load %arg6[%c8_157, %c0_158, %c0_159] : memref<9x32x64xf32, #tpu.memory_space<vmem>>, vector<1x32x64xf32>
    %163 = vector.shape_cast %162 : vector<1x32x64xf32> to vector<32x64xf32>
    %cst_160 = arith.constant dense<0.000000e+00> : vector<63x64xf32>
    %164 = tpu.matmul %161, %163, %cst_160 {dimension_numbers = #tpu.dot_dimension_numbers<[1], [0], [0], [1], [0, 0, 1, 1], [], []>} : vector<63x32xf32>, vector<32x64xf32>, vector<63x64xf32> -> vector<63x64xf32>
    %165 = arith.addf %160, %164 : vector<63x64xf32>
    %c0_161 = arith.constant 0 : index
    %c0_162 = arith.constant 0 : index
    %166 = vector.load %arg7[%c0_161, %c0_162] : memref<1x64xf32, #tpu.memory_space<vmem>>, vector<1x64xf32>
    %167 = vector.broadcast %166 : vector<1x64xf32> to vector<63x64xf32>
    %168 = arith.addf %165, %167 : vector<63x64xf32>
    %cst_163 = arith.constant 0.000000e+00 : f32
    %169 = vector.broadcast %cst_163 : f32 to vector<63x64xf32>
    %170 = arith.maximumf %168, %169 : vector<63x64xf32>
    %c0_164 = arith.constant 0 : index
    %c0_165 = arith.constant 0 : index
    %171 = vector.load %arg9[%c0_164, %c0_165] : memref<1x128xf32, #tpu.memory_space<vmem>>, vector<1x128xf32>
    %172 = vector.extract_strided_slice %170 {offsets = [0, 0], sizes = [1, 64], strides = [1, 1]} : vector<63x64xf32> to vector<1x64xf32>
    %c0_166 = arith.constant 0 : index
    %c0_167 = arith.constant 0 : index
    %c0_168 = arith.constant 0 : index
    %173 = vector.load %arg8[%c0_166, %c0_167, %c0_168] : memref<49x64x128xf32, #tpu.memory_space<vmem>>, vector<1x64x128xf32>
    %174 = vector.shape_cast %173 : vector<1x64x128xf32> to vector<64x128xf32>
    %cst_169 = arith.constant dense<0.000000e+00> : vector<1x128xf32>
    %175 = tpu.matmul %172, %174, %cst_169 {dimension_numbers = #tpu.dot_dimension_numbers<[1], [0], [0], [1], [0, 0, 1, 1], [], []>} : vector<1x64xf32>, vector<64x128xf32>, vector<1x128xf32> -> vector<1x128xf32>
    %176 = arith.addf %171, %175 : vector<1x128xf32>
    %177 = vector.extract_strided_slice %170 {offsets = [1, 0], sizes = [1, 64], strides = [1, 1]} : vector<63x64xf32> to vector<1x64xf32>
    %c1_170 = arith.constant 1 : index
    %c0_171 = arith.constant 0 : index
    %c0_172 = arith.constant 0 : index
    %178 = vector.load %arg8[%c1_170, %c0_171, %c0_172] : memref<49x64x128xf32, #tpu.memory_space<vmem>>, vector<1x64x128xf32>
    %179 = vector.shape_cast %178 : vector<1x64x128xf32> to vector<64x128xf32>
    %cst_173 = arith.constant dense<0.000000e+00> : vector<1x128xf32>
    %180 = tpu.matmul %177, %179, %cst_173 {dimension_numbers = #tpu.dot_dimension_numbers<[1], [0], [0], [1], [0, 0, 1, 1], [], []>} : vector<1x64xf32>, vector<64x128xf32>, vector<1x128xf32> -> vector<1x128xf32>
    %181 = arith.addf %176, %180 : vector<1x128xf32>
    %182 = vector.extract_strided_slice %170 {offsets = [2, 0], sizes = [1, 64], strides = [1, 1]} : vector<63x64xf32> to vector<1x64xf32>
    %c2_174 = arith.constant 2 : index
    %c0_175 = arith.constant 0 : index
    %c0_176 = arith.constant 0 : index
    %183 = vector.load %arg8[%c2_174, %c0_175, %c0_176] : memref<49x64x128xf32, #tpu.memory_space<vmem>>, vector<1x64x128xf32>
    %184 = vector.shape_cast %183 : vector<1x64x128xf32> to vector<64x128xf32>
    %cst_177 = arith.constant dense<0.000000e+00> : vector<1x128xf32>
    %185 = tpu.matmul %182, %184, %cst_177 {dimension_numbers = #tpu.dot_dimension_numbers<[1], [0], [0], [1], [0, 0, 1, 1], [], []>} : vector<1x64xf32>, vector<64x128xf32>, vector<1x128xf32> -> vector<1x128xf32>
    %186 = arith.addf %181, %185 : vector<1x128xf32>
    %187 = vector.extract_strided_slice %170 {offsets = [3, 0], sizes = [1, 64], strides = [1, 1]} : vector<63x64xf32> to vector<1x64xf32>
    %c3_178 = arith.constant 3 : index
    %c0_179 = arith.constant 0 : index
    %c0_180 = arith.constant 0 : index
    %188 = vector.load %arg8[%c3_178, %c0_179, %c0_180] : memref<49x64x128xf32, #tpu.memory_space<vmem>>, vector<1x64x128xf32>
    %189 = vector.shape_cast %188 : vector<1x64x128xf32> to vector<64x128xf32>
    %cst_181 = arith.constant dense<0.000000e+00> : vector<1x128xf32>
    %190 = tpu.matmul %187, %189, %cst_181 {dimension_numbers = #tpu.dot_dimension_numbers<[1], [0], [0], [1], [0, 0, 1, 1], [], []>} : vector<1x64xf32>, vector<64x128xf32>, vector<1x128xf32> -> vector<1x128xf32>
    %191 = arith.addf %186, %190 : vector<1x128xf32>
    %192 = vector.extract_strided_slice %170 {offsets = [4, 0], sizes = [1, 64], strides = [1, 1]} : vector<63x64xf32> to vector<1x64xf32>
    %c4_182 = arith.constant 4 : index
    %c0_183 = arith.constant 0 : index
    %c0_184 = arith.constant 0 : index
    %193 = vector.load %arg8[%c4_182, %c0_183, %c0_184] : memref<49x64x128xf32, #tpu.memory_space<vmem>>, vector<1x64x128xf32>
    %194 = vector.shape_cast %193 : vector<1x64x128xf32> to vector<64x128xf32>
    %cst_185 = arith.constant dense<0.000000e+00> : vector<1x128xf32>
    %195 = tpu.matmul %192, %194, %cst_185 {dimension_numbers = #tpu.dot_dimension_numbers<[1], [0], [0], [1], [0, 0, 1, 1], [], []>} : vector<1x64xf32>, vector<64x128xf32>, vector<1x128xf32> -> vector<1x128xf32>
    %196 = arith.addf %191, %195 : vector<1x128xf32>
    %197 = vector.extract_strided_slice %170 {offsets = [5, 0], sizes = [1, 64], strides = [1, 1]} : vector<63x64xf32> to vector<1x64xf32>
    %c5_186 = arith.constant 5 : index
    %c0_187 = arith.constant 0 : index
    %c0_188 = arith.constant 0 : index
    %198 = vector.load %arg8[%c5_186, %c0_187, %c0_188] : memref<49x64x128xf32, #tpu.memory_space<vmem>>, vector<1x64x128xf32>
    %199 = vector.shape_cast %198 : vector<1x64x128xf32> to vector<64x128xf32>
    %cst_189 = arith.constant dense<0.000000e+00> : vector<1x128xf32>
    %200 = tpu.matmul %197, %199, %cst_189 {dimension_numbers = #tpu.dot_dimension_numbers<[1], [0], [0], [1], [0, 0, 1, 1], [], []>} : vector<1x64xf32>, vector<64x128xf32>, vector<1x128xf32> -> vector<1x128xf32>
    %201 = arith.addf %196, %200 : vector<1x128xf32>
    %202 = vector.extract_strided_slice %170 {offsets = [6, 0], sizes = [1, 64], strides = [1, 1]} : vector<63x64xf32> to vector<1x64xf32>
    %c6_190 = arith.constant 6 : index
    %c0_191 = arith.constant 0 : index
    %c0_192 = arith.constant 0 : index
    %203 = vector.load %arg8[%c6_190, %c0_191, %c0_192] : memref<49x64x128xf32, #tpu.memory_space<vmem>>, vector<1x64x128xf32>
    %204 = vector.shape_cast %203 : vector<1x64x128xf32> to vector<64x128xf32>
    %cst_193 = arith.constant dense<0.000000e+00> : vector<1x128xf32>
    %205 = tpu.matmul %202, %204, %cst_193 {dimension_numbers = #tpu.dot_dimension_numbers<[1], [0], [0], [1], [0, 0, 1, 1], [], []>} : vector<1x64xf32>, vector<64x128xf32>, vector<1x128xf32> -> vector<1x128xf32>
    %206 = arith.addf %201, %205 : vector<1x128xf32>
    %207 = vector.extract_strided_slice %170 {offsets = [9, 0], sizes = [1, 64], strides = [1, 1]} : vector<63x64xf32> to vector<1x64xf32>
    %c7_194 = arith.constant 7 : index
    %c0_195 = arith.constant 0 : index
    %c0_196 = arith.constant 0 : index
    %208 = vector.load %arg8[%c7_194, %c0_195, %c0_196] : memref<49x64x128xf32, #tpu.memory_space<vmem>>, vector<1x64x128xf32>
    %209 = vector.shape_cast %208 : vector<1x64x128xf32> to vector<64x128xf32>
    %cst_197 = arith.constant dense<0.000000e+00> : vector<1x128xf32>
    %210 = tpu.matmul %207, %209, %cst_197 {dimension_numbers = #tpu.dot_dimension_numbers<[1], [0], [0], [1], [0, 0, 1, 1], [], []>} : vector<1x64xf32>, vector<64x128xf32>, vector<1x128xf32> -> vector<1x128xf32>
    %211 = arith.addf %206, %210 : vector<1x128xf32>
    %212 = vector.extract_strided_slice %170 {offsets = [10, 0], sizes = [1, 64], strides = [1, 1]} : vector<63x64xf32> to vector<1x64xf32>
    %c8_198 = arith.constant 8 : index
    %c0_199 = arith.constant 0 : index
    %c0_200 = arith.constant 0 : index
    %213 = vector.load %arg8[%c8_198, %c0_199, %c0_200] : memref<49x64x128xf32, #tpu.memory_space<vmem>>, vector<1x64x128xf32>
    %214 = vector.shape_cast %213 : vector<1x64x128xf32> to vector<64x128xf32>
    %cst_201 = arith.constant dense<0.000000e+00> : vector<1x128xf32>
    %215 = tpu.matmul %212, %214, %cst_201 {dimension_numbers = #tpu.dot_dimension_numbers<[1], [0], [0], [1], [0, 0, 1, 1], [], []>} : vector<1x64xf32>, vector<64x128xf32>, vector<1x128xf32> -> vector<1x128xf32>
    %216 = arith.addf %211, %215 : vector<1x128xf32>
    %217 = vector.extract_strided_slice %170 {offsets = [11, 0], sizes = [1, 64], strides = [1, 1]} : vector<63x64xf32> to vector<1x64xf32>
    %c9_202 = arith.constant 9 : index
    %c0_203 = arith.constant 0 : index
    %c0_204 = arith.constant 0 : index
    %218 = vector.load %arg8[%c9_202, %c0_203, %c0_204] : memref<49x64x128xf32, #tpu.memory_space<vmem>>, vector<1x64x128xf32>
    %219 = vector.shape_cast %218 : vector<1x64x128xf32> to vector<64x128xf32>
    %cst_205 = arith.constant dense<0.000000e+00> : vector<1x128xf32>
    %220 = tpu.matmul %217, %219, %cst_205 {dimension_numbers = #tpu.dot_dimension_numbers<[1], [0], [0], [1], [0, 0, 1, 1], [], []>} : vector<1x64xf32>, vector<64x128xf32>, vector<1x128xf32> -> vector<1x128xf32>
    %221 = arith.addf %216, %220 : vector<1x128xf32>
    %222 = vector.extract_strided_slice %170 {offsets = [12, 0], sizes = [1, 64], strides = [1, 1]} : vector<63x64xf32> to vector<1x64xf32>
    %c10_206 = arith.constant 10 : index
    %c0_207 = arith.constant 0 : index
    %c0_208 = arith.constant 0 : index
    %223 = vector.load %arg8[%c10_206, %c0_207, %c0_208] : memref<49x64x128xf32, #tpu.memory_space<vmem>>, vector<1x64x128xf32>
    %224 = vector.shape_cast %223 : vector<1x64x128xf32> to vector<64x128xf32>
    %cst_209 = arith.constant dense<0.000000e+00> : vector<1x128xf32>
    %225 = tpu.matmul %222, %224, %cst_209 {dimension_numbers = #tpu.dot_dimension_numbers<[1], [0], [0], [1], [0, 0, 1, 1], [], []>} : vector<1x64xf32>, vector<64x128xf32>, vector<1x128xf32> -> vector<1x128xf32>
    %226 = arith.addf %221, %225 : vector<1x128xf32>
    %227 = vector.extract_strided_slice %170 {offsets = [13, 0], sizes = [1, 64], strides = [1, 1]} : vector<63x64xf32> to vector<1x64xf32>
    %c11_210 = arith.constant 11 : index
    %c0_211 = arith.constant 0 : index
    %c0_212 = arith.constant 0 : index
    %228 = vector.load %arg8[%c11_210, %c0_211, %c0_212] : memref<49x64x128xf32, #tpu.memory_space<vmem>>, vector<1x64x128xf32>
    %229 = vector.shape_cast %228 : vector<1x64x128xf32> to vector<64x128xf32>
    %cst_213 = arith.constant dense<0.000000e+00> : vector<1x128xf32>
    %230 = tpu.matmul %227, %229, %cst_213 {dimension_numbers = #tpu.dot_dimension_numbers<[1], [0], [0], [1], [0, 0, 1, 1], [], []>} : vector<1x64xf32>, vector<64x128xf32>, vector<1x128xf32> -> vector<1x128xf32>
    %231 = arith.addf %226, %230 : vector<1x128xf32>
    %232 = vector.extract_strided_slice %170 {offsets = [14, 0], sizes = [1, 64], strides = [1, 1]} : vector<63x64xf32> to vector<1x64xf32>
    %c12 = arith.constant 12 : index
    %c0_214 = arith.constant 0 : index
    %c0_215 = arith.constant 0 : index
    %233 = vector.load %arg8[%c12, %c0_214, %c0_215] : memref<49x64x128xf32, #tpu.memory_space<vmem>>, vector<1x64x128xf32>
    %234 = vector.shape_cast %233 : vector<1x64x128xf32> to vector<64x128xf32>
    %cst_216 = arith.constant dense<0.000000e+00> : vector<1x128xf32>
    %235 = tpu.matmul %232, %234, %cst_216 {dimension_numbers = #tpu.dot_dimension_numbers<[1], [0], [0], [1], [0, 0, 1, 1], [], []>} : vector<1x64xf32>, vector<64x128xf32>, vector<1x128xf32> -> vector<1x128xf32>
    %236 = arith.addf %231, %235 : vector<1x128xf32>
    %237 = vector.extract_strided_slice %170 {offsets = [15, 0], sizes = [1, 64], strides = [1, 1]} : vector<63x64xf32> to vector<1x64xf32>
    %c13 = arith.constant 13 : index
    %c0_217 = arith.constant 0 : index
    %c0_218 = arith.constant 0 : index
    %238 = vector.load %arg8[%c13, %c0_217, %c0_218] : memref<49x64x128xf32, #tpu.memory_space<vmem>>, vector<1x64x128xf32>
    %239 = vector.shape_cast %238 : vector<1x64x128xf32> to vector<64x128xf32>
    %cst_219 = arith.constant dense<0.000000e+00> : vector<1x128xf32>
    %240 = tpu.matmul %237, %239, %cst_219 {dimension_numbers = #tpu.dot_dimension_numbers<[1], [0], [0], [1], [0, 0, 1, 1], [], []>} : vector<1x64xf32>, vector<64x128xf32>, vector<1x128xf32> -> vector<1x128xf32>
    %241 = arith.addf %236, %240 : vector<1x128xf32>
    %242 = vector.extract_strided_slice %170 {offsets = [18, 0], sizes = [1, 64], strides = [1, 1]} : vector<63x64xf32> to vector<1x64xf32>
    %c14 = arith.constant 14 : index
    %c0_220 = arith.constant 0 : index
    %c0_221 = arith.constant 0 : index
    %243 = vector.load %arg8[%c14, %c0_220, %c0_221] : memref<49x64x128xf32, #tpu.memory_space<vmem>>, vector<1x64x128xf32>
    %244 = vector.shape_cast %243 : vector<1x64x128xf32> to vector<64x128xf32>
    %cst_222 = arith.constant dense<0.000000e+00> : vector<1x128xf32>
    %245 = tpu.matmul %242, %244, %cst_222 {dimension_numbers = #tpu.dot_dimension_numbers<[1], [0], [0], [1], [0, 0, 1, 1], [], []>} : vector<1x64xf32>, vector<64x128xf32>, vector<1x128xf32> -> vector<1x128xf32>
    %246 = arith.addf %241, %245 : vector<1x128xf32>
    %247 = vector.extract_strided_slice %170 {offsets = [19, 0], sizes = [1, 64], strides = [1, 1]} : vector<63x64xf32> to vector<1x64xf32>
    %c15 = arith.constant 15 : index
    %c0_223 = arith.constant 0 : index
    %c0_224 = arith.constant 0 : index
    %248 = vector.load %arg8[%c15, %c0_223, %c0_224] : memref<49x64x128xf32, #tpu.memory_space<vmem>>, vector<1x64x128xf32>
    %249 = vector.shape_cast %248 : vector<1x64x128xf32> to vector<64x128xf32>
    %cst_225 = arith.constant dense<0.000000e+00> : vector<1x128xf32>
    %250 = tpu.matmul %247, %249, %cst_225 {dimension_numbers = #tpu.dot_dimension_numbers<[1], [0], [0], [1], [0, 0, 1, 1], [], []>} : vector<1x64xf32>, vector<64x128xf32>, vector<1x128xf32> -> vector<1x128xf32>
    %251 = arith.addf %246, %250 : vector<1x128xf32>
    %252 = vector.extract_strided_slice %170 {offsets = [20, 0], sizes = [1, 64], strides = [1, 1]} : vector<63x64xf32> to vector<1x64xf32>
    %c16_226 = arith.constant 16 : index
    %c0_227 = arith.constant 0 : index
    %c0_228 = arith.constant 0 : index
    %253 = vector.load %arg8[%c16_226, %c0_227, %c0_228] : memref<49x64x128xf32, #tpu.memory_space<vmem>>, vector<1x64x128xf32>
    %254 = vector.shape_cast %253 : vector<1x64x128xf32> to vector<64x128xf32>
    %cst_229 = arith.constant dense<0.000000e+00> : vector<1x128xf32>
    %255 = tpu.matmul %252, %254, %cst_229 {dimension_numbers = #tpu.dot_dimension_numbers<[1], [0], [0], [1], [0, 0, 1, 1], [], []>} : vector<1x64xf32>, vector<64x128xf32>, vector<1x128xf32> -> vector<1x128xf32>
    %256 = arith.addf %251, %255 : vector<1x128xf32>
    %257 = vector.extract_strided_slice %170 {offsets = [21, 0], sizes = [1, 64], strides = [1, 1]} : vector<63x64xf32> to vector<1x64xf32>
    %c17_230 = arith.constant 17 : index
    %c0_231 = arith.constant 0 : index
    %c0_232 = arith.constant 0 : index
    %258 = vector.load %arg8[%c17_230, %c0_231, %c0_232] : memref<49x64x128xf32, #tpu.memory_space<vmem>>, vector<1x64x128xf32>
    %259 = vector.shape_cast %258 : vector<1x64x128xf32> to vector<64x128xf32>
    %cst_233 = arith.constant dense<0.000000e+00> : vector<1x128xf32>
    %260 = tpu.matmul %257, %259, %cst_233 {dimension_numbers = #tpu.dot_dimension_numbers<[1], [0], [0], [1], [0, 0, 1, 1], [], []>} : vector<1x64xf32>, vector<64x128xf32>, vector<1x128xf32> -> vector<1x128xf32>
    %261 = arith.addf %256, %260 : vector<1x128xf32>
    %262 = vector.extract_strided_slice %170 {offsets = [22, 0], sizes = [1, 64], strides = [1, 1]} : vector<63x64xf32> to vector<1x64xf32>
    %c18_234 = arith.constant 18 : index
    %c0_235 = arith.constant 0 : index
    %c0_236 = arith.constant 0 : index
    %263 = vector.load %arg8[%c18_234, %c0_235, %c0_236] : memref<49x64x128xf32, #tpu.memory_space<vmem>>, vector<1x64x128xf32>
    %264 = vector.shape_cast %263 : vector<1x64x128xf32> to vector<64x128xf32>
    %cst_237 = arith.constant dense<0.000000e+00> : vector<1x128xf32>
    %265 = tpu.matmul %262, %264, %cst_237 {dimension_numbers = #tpu.dot_dimension_numbers<[1], [0], [0], [1], [0, 0, 1, 1], [], []>} : vector<1x64xf32>, vector<64x128xf32>, vector<1x128xf32> -> vector<1x128xf32>
    %266 = arith.addf %261, %265 : vector<1x128xf32>
    %267 = vector.extract_strided_slice %170 {offsets = [23, 0], sizes = [1, 64], strides = [1, 1]} : vector<63x64xf32> to vector<1x64xf32>
    %c19_238 = arith.constant 19 : index
    %c0_239 = arith.constant 0 : index
    %c0_240 = arith.constant 0 : index
    %268 = vector.load %arg8[%c19_238, %c0_239, %c0_240] : memref<49x64x128xf32, #tpu.memory_space<vmem>>, vector<1x64x128xf32>
    %269 = vector.shape_cast %268 : vector<1x64x128xf32> to vector<64x128xf32>
    %cst_241 = arith.constant dense<0.000000e+00> : vector<1x128xf32>
    %270 = tpu.matmul %267, %269, %cst_241 {dimension_numbers = #tpu.dot_dimension_numbers<[1], [0], [0], [1], [0, 0, 1, 1], [], []>} : vector<1x64xf32>, vector<64x128xf32>, vector<1x128xf32> -> vector<1x128xf32>
    %271 = arith.addf %266, %270 : vector<1x128xf32>
    %272 = vector.extract_strided_slice %170 {offsets = [24, 0], sizes = [1, 64], strides = [1, 1]} : vector<63x64xf32> to vector<1x64xf32>
    %c20_242 = arith.constant 20 : index
    %c0_243 = arith.constant 0 : index
    %c0_244 = arith.constant 0 : index
    %273 = vector.load %arg8[%c20_242, %c0_243, %c0_244] : memref<49x64x128xf32, #tpu.memory_space<vmem>>, vector<1x64x128xf32>
    %274 = vector.shape_cast %273 : vector<1x64x128xf32> to vector<64x128xf32>
    %cst_245 = arith.constant dense<0.000000e+00> : vector<1x128xf32>
    %275 = tpu.matmul %272, %274, %cst_245 {dimension_numbers = #tpu.dot_dimension_numbers<[1], [0], [0], [1], [0, 0, 1, 1], [], []>} : vector<1x64xf32>, vector<64x128xf32>, vector<1x128xf32> -> vector<1x128xf32>
    %276 = arith.addf %271, %275 : vector<1x128xf32>
    %277 = vector.extract_strided_slice %170 {offsets = [27, 0], sizes = [1, 64], strides = [1, 1]} : vector<63x64xf32> to vector<1x64xf32>
    %c21 = arith.constant 21 : index
    %c0_246 = arith.constant 0 : index
    %c0_247 = arith.constant 0 : index
    %278 = vector.load %arg8[%c21, %c0_246, %c0_247] : memref<49x64x128xf32, #tpu.memory_space<vmem>>, vector<1x64x128xf32>
    %279 = vector.shape_cast %278 : vector<1x64x128xf32> to vector<64x128xf32>
    %cst_248 = arith.constant dense<0.000000e+00> : vector<1x128xf32>
    %280 = tpu.matmul %277, %279, %cst_248 {dimension_numbers = #tpu.dot_dimension_numbers<[1], [0], [0], [1], [0, 0, 1, 1], [], []>} : vector<1x64xf32>, vector<64x128xf32>, vector<1x128xf32> -> vector<1x128xf32>
    %281 = arith.addf %276, %280 : vector<1x128xf32>
    %282 = vector.extract_strided_slice %170 {offsets = [28, 0], sizes = [1, 64], strides = [1, 1]} : vector<63x64xf32> to vector<1x64xf32>
    %c22 = arith.constant 22 : index
    %c0_249 = arith.constant 0 : index
    %c0_250 = arith.constant 0 : index
    %283 = vector.load %arg8[%c22, %c0_249, %c0_250] : memref<49x64x128xf32, #tpu.memory_space<vmem>>, vector<1x64x128xf32>
    %284 = vector.shape_cast %283 : vector<1x64x128xf32> to vector<64x128xf32>
    %cst_251 = arith.constant dense<0.000000e+00> : vector<1x128xf32>
    %285 = tpu.matmul %282, %284, %cst_251 {dimension_numbers = #tpu.dot_dimension_numbers<[1], [0], [0], [1], [0, 0, 1, 1], [], []>} : vector<1x64xf32>, vector<64x128xf32>, vector<1x128xf32> -> vector<1x128xf32>
    %286 = arith.addf %281, %285 : vector<1x128xf32>
    %287 = vector.extract_strided_slice %170 {offsets = [29, 0], sizes = [1, 64], strides = [1, 1]} : vector<63x64xf32> to vector<1x64xf32>
    %c23 = arith.constant 23 : index
    %c0_252 = arith.constant 0 : index
    %c0_253 = arith.constant 0 : index
    %288 = vector.load %arg8[%c23, %c0_252, %c0_253] : memref<49x64x128xf32, #tpu.memory_space<vmem>>, vector<1x64x128xf32>
    %289 = vector.shape_cast %288 : vector<1x64x128xf32> to vector<64x128xf32>
    %cst_254 = arith.constant dense<0.000000e+00> : vector<1x128xf32>
    %290 = tpu.matmul %287, %289, %cst_254 {dimension_numbers = #tpu.dot_dimension_numbers<[1], [0], [0], [1], [0, 0, 1, 1], [], []>} : vector<1x64xf32>, vector<64x128xf32>, vector<1x128xf32> -> vector<1x128xf32>
    %291 = arith.addf %286, %290 : vector<1x128xf32>
    %292 = vector.extract_strided_slice %170 {offsets = [30, 0], sizes = [1, 64], strides = [1, 1]} : vector<63x64xf32> to vector<1x64xf32>
    %c24 = arith.constant 24 : index
    %c0_255 = arith.constant 0 : index
    %c0_256 = arith.constant 0 : index
    %293 = vector.load %arg8[%c24, %c0_255, %c0_256] : memref<49x64x128xf32, #tpu.memory_space<vmem>>, vector<1x64x128xf32>
    %294 = vector.shape_cast %293 : vector<1x64x128xf32> to vector<64x128xf32>
    %cst_257 = arith.constant dense<0.000000e+00> : vector<1x128xf32>
    %295 = tpu.matmul %292, %294, %cst_257 {dimension_numbers = #tpu.dot_dimension_numbers<[1], [0], [0], [1], [0, 0, 1, 1], [], []>} : vector<1x64xf32>, vector<64x128xf32>, vector<1x128xf32> -> vector<1x128xf32>
    %296 = arith.addf %291, %295 : vector<1x128xf32>
    %297 = vector.extract_strided_slice %170 {offsets = [31, 0], sizes = [1, 64], strides = [1, 1]} : vector<63x64xf32> to vector<1x64xf32>
    %c25 = arith.constant 25 : index
    %c0_258 = arith.constant 0 : index
    %c0_259 = arith.constant 0 : index
    %298 = vector.load %arg8[%c25, %c0_258, %c0_259] : memref<49x64x128xf32, #tpu.memory_space<vmem>>, vector<1x64x128xf32>
    %299 = vector.shape_cast %298 : vector<1x64x128xf32> to vector<64x128xf32>
    %cst_260 = arith.constant dense<0.000000e+00> : vector<1x128xf32>
    %300 = tpu.matmul %297, %299, %cst_260 {dimension_numbers = #tpu.dot_dimension_numbers<[1], [0], [0], [1], [0, 0, 1, 1], [], []>} : vector<1x64xf32>, vector<64x128xf32>, vector<1x128xf32> -> vector<1x128xf32>
    %301 = arith.addf %296, %300 : vector<1x128xf32>
    %302 = vector.extract_strided_slice %170 {offsets = [32, 0], sizes = [1, 64], strides = [1, 1]} : vector<63x64xf32> to vector<1x64xf32>
    %c26 = arith.constant 26 : index
    %c0_261 = arith.constant 0 : index
    %c0_262 = arith.constant 0 : index
    %303 = vector.load %arg8[%c26, %c0_261, %c0_262] : memref<49x64x128xf32, #tpu.memory_space<vmem>>, vector<1x64x128xf32>
    %304 = vector.shape_cast %303 : vector<1x64x128xf32> to vector<64x128xf32>
    %cst_263 = arith.constant dense<0.000000e+00> : vector<1x128xf32>
    %305 = tpu.matmul %302, %304, %cst_263 {dimension_numbers = #tpu.dot_dimension_numbers<[1], [0], [0], [1], [0, 0, 1, 1], [], []>} : vector<1x64xf32>, vector<64x128xf32>, vector<1x128xf32> -> vector<1x128xf32>
    %306 = arith.addf %301, %305 : vector<1x128xf32>
    %307 = vector.extract_strided_slice %170 {offsets = [33, 0], sizes = [1, 64], strides = [1, 1]} : vector<63x64xf32> to vector<1x64xf32>
    %c27 = arith.constant 27 : index
    %c0_264 = arith.constant 0 : index
    %c0_265 = arith.constant 0 : index
    %308 = vector.load %arg8[%c27, %c0_264, %c0_265] : memref<49x64x128xf32, #tpu.memory_space<vmem>>, vector<1x64x128xf32>
    %309 = vector.shape_cast %308 : vector<1x64x128xf32> to vector<64x128xf32>
    %cst_266 = arith.constant dense<0.000000e+00> : vector<1x128xf32>
    %310 = tpu.matmul %307, %309, %cst_266 {dimension_numbers = #tpu.dot_dimension_numbers<[1], [0], [0], [1], [0, 0, 1, 1], [], []>} : vector<1x64xf32>, vector<64x128xf32>, vector<1x128xf32> -> vector<1x128xf32>
    %311 = arith.addf %306, %310 : vector<1x128xf32>
    %312 = vector.extract_strided_slice %170 {offsets = [36, 0], sizes = [1, 64], strides = [1, 1]} : vector<63x64xf32> to vector<1x64xf32>
    %c28_267 = arith.constant 28 : index
    %c0_268 = arith.constant 0 : index
    %c0_269 = arith.constant 0 : index
    %313 = vector.load %arg8[%c28_267, %c0_268, %c0_269] : memref<49x64x128xf32, #tpu.memory_space<vmem>>, vector<1x64x128xf32>
    %314 = vector.shape_cast %313 : vector<1x64x128xf32> to vector<64x128xf32>
    %cst_270 = arith.constant dense<0.000000e+00> : vector<1x128xf32>
    %315 = tpu.matmul %312, %314, %cst_270 {dimension_numbers = #tpu.dot_dimension_numbers<[1], [0], [0], [1], [0, 0, 1, 1], [], []>} : vector<1x64xf32>, vector<64x128xf32>, vector<1x128xf32> -> vector<1x128xf32>
    %316 = arith.addf %311, %315 : vector<1x128xf32>
    %317 = vector.extract_strided_slice %170 {offsets = [37, 0], sizes = [1, 64], strides = [1, 1]} : vector<63x64xf32> to vector<1x64xf32>
    %c29 = arith.constant 29 : index
    %c0_271 = arith.constant 0 : index
    %c0_272 = arith.constant 0 : index
    %318 = vector.load %arg8[%c29, %c0_271, %c0_272] : memref<49x64x128xf32, #tpu.memory_space<vmem>>, vector<1x64x128xf32>
    %319 = vector.shape_cast %318 : vector<1x64x128xf32> to vector<64x128xf32>
    %cst_273 = arith.constant dense<0.000000e+00> : vector<1x128xf32>
    %320 = tpu.matmul %317, %319, %cst_273 {dimension_numbers = #tpu.dot_dimension_numbers<[1], [0], [0], [1], [0, 0, 1, 1], [], []>} : vector<1x64xf32>, vector<64x128xf32>, vector<1x128xf32> -> vector<1x128xf32>
    %321 = arith.addf %316, %320 : vector<1x128xf32>
    %322 = vector.extract_strided_slice %170 {offsets = [38, 0], sizes = [1, 64], strides = [1, 1]} : vector<63x64xf32> to vector<1x64xf32>
    %c30 = arith.constant 30 : index
    %c0_274 = arith.constant 0 : index
    %c0_275 = arith.constant 0 : index
    %323 = vector.load %arg8[%c30, %c0_274, %c0_275] : memref<49x64x128xf32, #tpu.memory_space<vmem>>, vector<1x64x128xf32>
    %324 = vector.shape_cast %323 : vector<1x64x128xf32> to vector<64x128xf32>
    %cst_276 = arith.constant dense<0.000000e+00> : vector<1x128xf32>
    %325 = tpu.matmul %322, %324, %cst_276 {dimension_numbers = #tpu.dot_dimension_numbers<[1], [0], [0], [1], [0, 0, 1, 1], [], []>} : vector<1x64xf32>, vector<64x128xf32>, vector<1x128xf32> -> vector<1x128xf32>
    %326 = arith.addf %321, %325 : vector<1x128xf32>
    %327 = vector.extract_strided_slice %170 {offsets = [39, 0], sizes = [1, 64], strides = [1, 1]} : vector<63x64xf32> to vector<1x64xf32>
    %c31 = arith.constant 31 : index
    %c0_277 = arith.constant 0 : index
    %c0_278 = arith.constant 0 : index
    %328 = vector.load %arg8[%c31, %c0_277, %c0_278] : memref<49x64x128xf32, #tpu.memory_space<vmem>>, vector<1x64x128xf32>
    %329 = vector.shape_cast %328 : vector<1x64x128xf32> to vector<64x128xf32>
    %cst_279 = arith.constant dense<0.000000e+00> : vector<1x128xf32>
    %330 = tpu.matmul %327, %329, %cst_279 {dimension_numbers = #tpu.dot_dimension_numbers<[1], [0], [0], [1], [0, 0, 1, 1], [], []>} : vector<1x64xf32>, vector<64x128xf32>, vector<1x128xf32> -> vector<1x128xf32>
    %331 = arith.addf %326, %330 : vector<1x128xf32>
    %332 = vector.extract_strided_slice %170 {offsets = [40, 0], sizes = [1, 64], strides = [1, 1]} : vector<63x64xf32> to vector<1x64xf32>
    %c32_280 = arith.constant 32 : index
    %c0_281 = arith.constant 0 : index
    %c0_282 = arith.constant 0 : index
    %333 = vector.load %arg8[%c32_280, %c0_281, %c0_282] : memref<49x64x128xf32, #tpu.memory_space<vmem>>, vector<1x64x128xf32>
    %334 = vector.shape_cast %333 : vector<1x64x128xf32> to vector<64x128xf32>
    %cst_283 = arith.constant dense<0.000000e+00> : vector<1x128xf32>
    %335 = tpu.matmul %332, %334, %cst_283 {dimension_numbers = #tpu.dot_dimension_numbers<[1], [0], [0], [1], [0, 0, 1, 1], [], []>} : vector<1x64xf32>, vector<64x128xf32>, vector<1x128xf32> -> vector<1x128xf32>
    %336 = arith.addf %331, %335 : vector<1x128xf32>
    %337 = vector.extract_strided_slice %170 {offsets = [41, 0], sizes = [1, 64], strides = [1, 1]} : vector<63x64xf32> to vector<1x64xf32>
    %c33_284 = arith.constant 33 : index
    %c0_285 = arith.constant 0 : index
    %c0_286 = arith.constant 0 : index
    %338 = vector.load %arg8[%c33_284, %c0_285, %c0_286] : memref<49x64x128xf32, #tpu.memory_space<vmem>>, vector<1x64x128xf32>
    %339 = vector.shape_cast %338 : vector<1x64x128xf32> to vector<64x128xf32>
    %cst_287 = arith.constant dense<0.000000e+00> : vector<1x128xf32>
    %340 = tpu.matmul %337, %339, %cst_287 {dimension_numbers = #tpu.dot_dimension_numbers<[1], [0], [0], [1], [0, 0, 1, 1], [], []>} : vector<1x64xf32>, vector<64x128xf32>, vector<1x128xf32> -> vector<1x128xf32>
    %341 = arith.addf %336, %340 : vector<1x128xf32>
    %342 = vector.extract_strided_slice %170 {offsets = [42, 0], sizes = [1, 64], strides = [1, 1]} : vector<63x64xf32> to vector<1x64xf32>
    %c34_288 = arith.constant 34 : index
    %c0_289 = arith.constant 0 : index
    %c0_290 = arith.constant 0 : index
    %343 = vector.load %arg8[%c34_288, %c0_289, %c0_290] : memref<49x64x128xf32, #tpu.memory_space<vmem>>, vector<1x64x128xf32>
    %344 = vector.shape_cast %343 : vector<1x64x128xf32> to vector<64x128xf32>
    %cst_291 = arith.constant dense<0.000000e+00> : vector<1x128xf32>
    %345 = tpu.matmul %342, %344, %cst_291 {dimension_numbers = #tpu.dot_dimension_numbers<[1], [0], [0], [1], [0, 0, 1, 1], [], []>} : vector<1x64xf32>, vector<64x128xf32>, vector<1x128xf32> -> vector<1x128xf32>
    %346 = arith.addf %341, %345 : vector<1x128xf32>
    %347 = vector.extract_strided_slice %170 {offsets = [45, 0], sizes = [1, 64], strides = [1, 1]} : vector<63x64xf32> to vector<1x64xf32>
    %c35 = arith.constant 35 : index
    %c0_292 = arith.constant 0 : index
    %c0_293 = arith.constant 0 : index
    %348 = vector.load %arg8[%c35, %c0_292, %c0_293] : memref<49x64x128xf32, #tpu.memory_space<vmem>>, vector<1x64x128xf32>
    %349 = vector.shape_cast %348 : vector<1x64x128xf32> to vector<64x128xf32>
    %cst_294 = arith.constant dense<0.000000e+00> : vector<1x128xf32>
    %350 = tpu.matmul %347, %349, %cst_294 {dimension_numbers = #tpu.dot_dimension_numbers<[1], [0], [0], [1], [0, 0, 1, 1], [], []>} : vector<1x64xf32>, vector<64x128xf32>, vector<1x128xf32> -> vector<1x128xf32>
    %351 = arith.addf %346, %350 : vector<1x128xf32>
    %352 = vector.extract_strided_slice %170 {offsets = [46, 0], sizes = [1, 64], strides = [1, 1]} : vector<63x64xf32> to vector<1x64xf32>
    %c36 = arith.constant 36 : index
    %c0_295 = arith.constant 0 : index
    %c0_296 = arith.constant 0 : index
    %353 = vector.load %arg8[%c36, %c0_295, %c0_296] : memref<49x64x128xf32, #tpu.memory_space<vmem>>, vector<1x64x128xf32>
    %354 = vector.shape_cast %353 : vector<1x64x128xf32> to vector<64x128xf32>
    %cst_297 = arith.constant dense<0.000000e+00> : vector<1x128xf32>
    %355 = tpu.matmul %352, %354, %cst_297 {dimension_numbers = #tpu.dot_dimension_numbers<[1], [0], [0], [1], [0, 0, 1, 1], [], []>} : vector<1x64xf32>, vector<64x128xf32>, vector<1x128xf32> -> vector<1x128xf32>
    %356 = arith.addf %351, %355 : vector<1x128xf32>
    %357 = vector.extract_strided_slice %170 {offsets = [47, 0], sizes = [1, 64], strides = [1, 1]} : vector<63x64xf32> to vector<1x64xf32>
    %c37_298 = arith.constant 37 : index
    %c0_299 = arith.constant 0 : index
    %c0_300 = arith.constant 0 : index
    %358 = vector.load %arg8[%c37_298, %c0_299, %c0_300] : memref<49x64x128xf32, #tpu.memory_space<vmem>>, vector<1x64x128xf32>
    %359 = vector.shape_cast %358 : vector<1x64x128xf32> to vector<64x128xf32>
    %cst_301 = arith.constant dense<0.000000e+00> : vector<1x128xf32>
    %360 = tpu.matmul %357, %359, %cst_301 {dimension_numbers = #tpu.dot_dimension_numbers<[1], [0], [0], [1], [0, 0, 1, 1], [], []>} : vector<1x64xf32>, vector<64x128xf32>, vector<1x128xf32> -> vector<1x128xf32>
    %361 = arith.addf %356, %360 : vector<1x128xf32>
    %362 = vector.extract_strided_slice %170 {offsets = [48, 0], sizes = [1, 64], strides = [1, 1]} : vector<63x64xf32> to vector<1x64xf32>
    %c38 = arith.constant 38 : index
    %c0_302 = arith.constant 0 : index
    %c0_303 = arith.constant 0 : index
    %363 = vector.load %arg8[%c38, %c0_302, %c0_303] : memref<49x64x128xf32, #tpu.memory_space<vmem>>, vector<1x64x128xf32>
    %364 = vector.shape_cast %363 : vector<1x64x128xf32> to vector<64x128xf32>
    %cst_304 = arith.constant dense<0.000000e+00> : vector<1x128xf32>
    %365 = tpu.matmul %362, %364, %cst_304 {dimension_numbers = #tpu.dot_dimension_numbers<[1], [0], [0], [1], [0, 0, 1, 1], [], []>} : vector<1x64xf32>, vector<64x128xf32>, vector<1x128xf32> -> vector<1x128xf32>
    %366 = arith.addf %361, %365 : vector<1x128xf32>
    %367 = vector.extract_strided_slice %170 {offsets = [49, 0], sizes = [1, 64], strides = [1, 1]} : vector<63x64xf32> to vector<1x64xf32>
    %c39 = arith.constant 39 : index
    %c0_305 = arith.constant 0 : index
    %c0_306 = arith.constant 0 : index
    %368 = vector.load %arg8[%c39, %c0_305, %c0_306] : memref<49x64x128xf32, #tpu.memory_space<vmem>>, vector<1x64x128xf32>
    %369 = vector.shape_cast %368 : vector<1x64x128xf32> to vector<64x128xf32>
    %cst_307 = arith.constant dense<0.000000e+00> : vector<1x128xf32>
    %370 = tpu.matmul %367, %369, %cst_307 {dimension_numbers = #tpu.dot_dimension_numbers<[1], [0], [0], [1], [0, 0, 1, 1], [], []>} : vector<1x64xf32>, vector<64x128xf32>, vector<1x128xf32> -> vector<1x128xf32>
    %371 = arith.addf %366, %370 : vector<1x128xf32>
    %372 = vector.extract_strided_slice %170 {offsets = [50, 0], sizes = [1, 64], strides = [1, 1]} : vector<63x64xf32> to vector<1x64xf32>
    %c40 = arith.constant 40 : index
    %c0_308 = arith.constant 0 : index
    %c0_309 = arith.constant 0 : index
    %373 = vector.load %arg8[%c40, %c0_308, %c0_309] : memref<49x64x128xf32, #tpu.memory_space<vmem>>, vector<1x64x128xf32>
    %374 = vector.shape_cast %373 : vector<1x64x128xf32> to vector<64x128xf32>
    %cst_310 = arith.constant dense<0.000000e+00> : vector<1x128xf32>
    %375 = tpu.matmul %372, %374, %cst_310 {dimension_numbers = #tpu.dot_dimension_numbers<[1], [0], [0], [1], [0, 0, 1, 1], [], []>} : vector<1x64xf32>, vector<64x128xf32>, vector<1x128xf32> -> vector<1x128xf32>
    %376 = arith.addf %371, %375 : vector<1x128xf32>
    %377 = vector.extract_strided_slice %170 {offsets = [51, 0], sizes = [1, 64], strides = [1, 1]} : vector<63x64xf32> to vector<1x64xf32>
    %c41 = arith.constant 41 : index
    %c0_311 = arith.constant 0 : index
    %c0_312 = arith.constant 0 : index
    %378 = vector.load %arg8[%c41, %c0_311, %c0_312] : memref<49x64x128xf32, #tpu.memory_space<vmem>>, vector<1x64x128xf32>
    %379 = vector.shape_cast %378 : vector<1x64x128xf32> to vector<64x128xf32>
    %cst_313 = arith.constant dense<0.000000e+00> : vector<1x128xf32>
    %380 = tpu.matmul %377, %379, %cst_313 {dimension_numbers = #tpu.dot_dimension_numbers<[1], [0], [0], [1], [0, 0, 1, 1], [], []>} : vector<1x64xf32>, vector<64x128xf32>, vector<1x128xf32> -> vector<1x128xf32>
    %381 = arith.addf %376, %380 : vector<1x128xf32>
    %382 = vector.extract_strided_slice %170 {offsets = [54, 0], sizes = [1, 64], strides = [1, 1]} : vector<63x64xf32> to vector<1x64xf32>
    %c42 = arith.constant 42 : index
    %c0_314 = arith.constant 0 : index
    %c0_315 = arith.constant 0 : index
    %383 = vector.load %arg8[%c42, %c0_314, %c0_315] : memref<49x64x128xf32, #tpu.memory_space<vmem>>, vector<1x64x128xf32>
    %384 = vector.shape_cast %383 : vector<1x64x128xf32> to vector<64x128xf32>
    %cst_316 = arith.constant dense<0.000000e+00> : vector<1x128xf32>
    %385 = tpu.matmul %382, %384, %cst_316 {dimension_numbers = #tpu.dot_dimension_numbers<[1], [0], [0], [1], [0, 0, 1, 1], [], []>} : vector<1x64xf32>, vector<64x128xf32>, vector<1x128xf32> -> vector<1x128xf32>
    %386 = arith.addf %381, %385 : vector<1x128xf32>
    %387 = vector.extract_strided_slice %170 {offsets = [55, 0], sizes = [1, 64], strides = [1, 1]} : vector<63x64xf32> to vector<1x64xf32>
    %c43 = arith.constant 43 : index
    %c0_317 = arith.constant 0 : index
    %c0_318 = arith.constant 0 : index
    %388 = vector.load %arg8[%c43, %c0_317, %c0_318] : memref<49x64x128xf32, #tpu.memory_space<vmem>>, vector<1x64x128xf32>
    %389 = vector.shape_cast %388 : vector<1x64x128xf32> to vector<64x128xf32>
    %cst_319 = arith.constant dense<0.000000e+00> : vector<1x128xf32>
    %390 = tpu.matmul %387, %389, %cst_319 {dimension_numbers = #tpu.dot_dimension_numbers<[1], [0], [0], [1], [0, 0, 1, 1], [], []>} : vector<1x64xf32>, vector<64x128xf32>, vector<1x128xf32> -> vector<1x128xf32>
    %391 = arith.addf %386, %390 : vector<1x128xf32>
    %392 = vector.extract_strided_slice %170 {offsets = [56, 0], sizes = [1, 64], strides = [1, 1]} : vector<63x64xf32> to vector<1x64xf32>
    %c44 = arith.constant 44 : index
    %c0_320 = arith.constant 0 : index
    %c0_321 = arith.constant 0 : index
    %393 = vector.load %arg8[%c44, %c0_320, %c0_321] : memref<49x64x128xf32, #tpu.memory_space<vmem>>, vector<1x64x128xf32>
    %394 = vector.shape_cast %393 : vector<1x64x128xf32> to vector<64x128xf32>
    %cst_322 = arith.constant dense<0.000000e+00> : vector<1x128xf32>
    %395 = tpu.matmul %392, %394, %cst_322 {dimension_numbers = #tpu.dot_dimension_numbers<[1], [0], [0], [1], [0, 0, 1, 1], [], []>} : vector<1x64xf32>, vector<64x128xf32>, vector<1x128xf32> -> vector<1x128xf32>
    %396 = arith.addf %391, %395 : vector<1x128xf32>
    %397 = vector.extract_strided_slice %170 {offsets = [57, 0], sizes = [1, 64], strides = [1, 1]} : vector<63x64xf32> to vector<1x64xf32>
    %c45 = arith.constant 45 : index
    %c0_323 = arith.constant 0 : index
    %c0_324 = arith.constant 0 : index
    %398 = vector.load %arg8[%c45, %c0_323, %c0_324] : memref<49x64x128xf32, #tpu.memory_space<vmem>>, vector<1x64x128xf32>
    %399 = vector.shape_cast %398 : vector<1x64x128xf32> to vector<64x128xf32>
    %cst_325 = arith.constant dense<0.000000e+00> : vector<1x128xf32>
    %400 = tpu.matmul %397, %399, %cst_325 {dimension_numbers = #tpu.dot_dimension_numbers<[1], [0], [0], [1], [0, 0, 1, 1], [], []>} : vector<1x64xf32>, vector<64x128xf32>, vector<1x128xf32> -> vector<1x128xf32>
    %401 = arith.addf %396, %400 : vector<1x128xf32>
    %402 = vector.extract_strided_slice %170 {offsets = [58, 0], sizes = [1, 64], strides = [1, 1]} : vector<63x64xf32> to vector<1x64xf32>
    %c46_326 = arith.constant 46 : index
    %c0_327 = arith.constant 0 : index
    %c0_328 = arith.constant 0 : index
    %403 = vector.load %arg8[%c46_326, %c0_327, %c0_328] : memref<49x64x128xf32, #tpu.memory_space<vmem>>, vector<1x64x128xf32>
    %404 = vector.shape_cast %403 : vector<1x64x128xf32> to vector<64x128xf32>
    %cst_329 = arith.constant dense<0.000000e+00> : vector<1x128xf32>
    %405 = tpu.matmul %402, %404, %cst_329 {dimension_numbers = #tpu.dot_dimension_numbers<[1], [0], [0], [1], [0, 0, 1, 1], [], []>} : vector<1x64xf32>, vector<64x128xf32>, vector<1x128xf32> -> vector<1x128xf32>
    %406 = arith.addf %401, %405 : vector<1x128xf32>
    %407 = vector.extract_strided_slice %170 {offsets = [59, 0], sizes = [1, 64], strides = [1, 1]} : vector<63x64xf32> to vector<1x64xf32>
    %c47 = arith.constant 47 : index
    %c0_330 = arith.constant 0 : index
    %c0_331 = arith.constant 0 : index
    %408 = vector.load %arg8[%c47, %c0_330, %c0_331] : memref<49x64x128xf32, #tpu.memory_space<vmem>>, vector<1x64x128xf32>
    %409 = vector.shape_cast %408 : vector<1x64x128xf32> to vector<64x128xf32>
    %cst_332 = arith.constant dense<0.000000e+00> : vector<1x128xf32>
    %410 = tpu.matmul %407, %409, %cst_332 {dimension_numbers = #tpu.dot_dimension_numbers<[1], [0], [0], [1], [0, 0, 1, 1], [], []>} : vector<1x64xf32>, vector<64x128xf32>, vector<1x128xf32> -> vector<1x128xf32>
    %411 = arith.addf %406, %410 : vector<1x128xf32>
    %412 = vector.extract_strided_slice %170 {offsets = [60, 0], sizes = [1, 64], strides = [1, 1]} : vector<63x64xf32> to vector<1x64xf32>
    %c48 = arith.constant 48 : index
    %c0_333 = arith.constant 0 : index
    %c0_334 = arith.constant 0 : index
    %413 = vector.load %arg8[%c48, %c0_333, %c0_334] : memref<49x64x128xf32, #tpu.memory_space<vmem>>, vector<1x64x128xf32>
    %414 = vector.shape_cast %413 : vector<1x64x128xf32> to vector<64x128xf32>
    %cst_335 = arith.constant dense<0.000000e+00> : vector<1x128xf32>
    %415 = tpu.matmul %412, %414, %cst_335 {dimension_numbers = #tpu.dot_dimension_numbers<[1], [0], [0], [1], [0, 0, 1, 1], [], []>} : vector<1x64xf32>, vector<64x128xf32>, vector<1x128xf32> -> vector<1x128xf32>
    %416 = arith.addf %411, %415 : vector<1x128xf32>
    %c0_336 = arith.constant 0 : index
    %c0_337 = arith.constant 0 : index
    %417 = vector.load %arg10[%c0_336, %c0_337] : memref<128x128xf32, #tpu.memory_space<vmem>>, vector<128x128xf32>
    %cst_338 = arith.constant dense<0.000000e+00> : vector<1x128xf32>
    %418 = tpu.matmul %416, %417, %cst_338 {dimension_numbers = #tpu.dot_dimension_numbers<[1], [0], [0], [1], [0, 0, 1, 1], [], []>} : vector<1x128xf32>, vector<128x128xf32>, vector<1x128xf32> -> vector<1x128xf32>
    %c0_339 = arith.constant 0 : index
    %c0_340 = arith.constant 0 : index
    %419 = vector.load %arg11[%c0_339, %c0_340] : memref<1x128xf32, #tpu.memory_space<vmem>>, vector<1x128xf32>
    %420 = arith.addf %418, %419 : vector<1x128xf32>
    %c0_341 = arith.constant 0 : index
    %c0_342 = arith.constant 0 : index
    %c0_343 = arith.constant 0 : index
    %421 = vector.load %arg12[%c0_341, %c0_342, %c0_343] : memref<1x1x128xf32, #tpu.memory_space<vmem>>, vector<1x1x128xf32>
    %422 = vector.shape_cast %421 : vector<1x1x128xf32> to vector<1x128xf32>
    %423 = vector.shape_cast %420 : vector<1x128xf32> to vector<1x1x128xf32>
    tpu.vector_store %arg12[%c0_341, %c0_342, %c0_343], %423 {strides = array<i32>} : memref<1x1x128xf32, #tpu.memory_space<vmem>>, vector<1x1x128xf32>,
    return
  }
  func.func @transform_0(%arg0: i32) -> (i32, i32, i32) {
    %c0_i32 = arith.constant 0 : i32
    %c0_i32_0 = arith.constant 0 : i32
    %c0_i32_1 = arith.constant 0 : i32
    return %arg0, %c0_i32, %c0_i32_0 : i32, i32, i32
  }
  func.func @transform_1(%arg0: i32) -> (i32, i32) {
    %c0_i32 = arith.constant 0 : i32
    %c0_i32_0 = arith.constant 0 : i32
    %c0_i32_1 = arith.constant 0 : i32
    return %c0_i32, %c0_i32_0 : i32, i32
  }
  func.func @transform_2(%arg0: i32) -> (i32, i32) {
    %c0_i32 = arith.constant 0 : i32
    %c0_i32_0 = arith.constant 0 : i32
    %c0_i32_1 = arith.constant 0 : i32
    return %c0_i32, %c0_i32_0 : i32, i32
  }
  func.func @transform_3(%arg0: i32) -> (i32, i32, i32) {
    %c0_i32 = arith.constant 0 : i32
    %c0_i32_0 = arith.constant 0 : i32
    %c0_i32_1 = arith.constant 0 : i32
    %c0_i32_2 = arith.constant 0 : i32
    return %c0_i32, %c0_i32_0, %c0_i32_1 : i32, i32, i32
  }
  func.func @transform_4(%arg0: i32) -> (i32, i32) {
    %c0_i32 = arith.constant 0 : i32
    %c0_i32_0 = arith.constant 0 : i32
    %c0_i32_1 = arith.constant 0 : i32
    return %c0_i32, %c0_i32_0 : i32, i32
  }
  func.func @transform_5(%arg0: i32) -> (i32, i32, i32) {
    %c0_i32 = arith.constant 0 : i32
    %c0_i32_0 = arith.constant 0 : i32
    %c0_i32_1 = arith.constant 0 : i32
    %c0_i32_2 = arith.constant 0 : i32
    return %c0_i32, %c0_i32_0, %c0_i32_1 : i32, i32, i32
  }
  func.func @transform_6(%arg0: i32) -> (i32, i32) {
    %c0_i32 = arith.constant 0 : i32
    %c0_i32_0 = arith.constant 0 : i32
    %c0_i32_1 = arith.constant 0 : i32
    return %c0_i32, %c0_i32_0 : i32, i32
  }
  func.func @transform_7(%arg0: i32) -> (i32, i32, i32) {
    %c0_i32 = arith.constant 0 : i32
    %c0_i32_0 = arith.constant 0 : i32
    %c0_i32_1 = arith.constant 0 : i32
    %c0_i32_2 = arith.constant 0 : i32
    return %c0_i32, %c0_i32_0, %c0_i32_1 : i32, i32, i32
  }
  func.func @transform_8(%arg0: i32) -> (i32, i32) {
    %c0_i32 = arith.constant 0 : i32
    %c0_i32_0 = arith.constant 0 : i32
    %c0_i32_1 = arith.constant 0 : i32
    return %c0_i32, %c0_i32_0 : i32, i32
  }
  func.func @transform_9(%arg0: i32) -> (i32, i32) {
    %c0_i32 = arith.constant 0 : i32
    %c0_i32_0 = arith.constant 0 : i32
    %c0_i32_1 = arith.constant 0 : i32
    return %c0_i32, %c0_i32_0 : i32, i32
  }
  func.func @transform_10(%arg0: i32) -> (i32, i32) {
    %c0_i32 = arith.constant 0 : i32
    %c0_i32_0 = arith.constant 0 : i32
    %c0_i32_1 = arith.constant 0 : i32
    return %c0_i32, %c0_i32_0 : i32, i32
  }
  func.func @transform_11(%arg0: i32) -> (i32, i32, i32) {
    %c0_i32 = arith.constant 0 : i32
    %c0_i32_0 = arith.constant 0 : i32
    %c0_i32_1 = arith.constant 0 : i32
    return %arg0, %c0_i32, %c0_i32_0 : i32, i32, i32
  }
}

</mosaic_0001>

<bundles_post_ra>
// kernel: cnn_forward.1
= control target key start
LH: loop header
LB: loop body
LE: loop exit
PB: predicated region body
PF: predicated region fallthrough
CT: control target
= control target key end

     0   :  { %s20634_s0 = inlined_call_operand.vmem [shape: f32[2,840,9], index: 0, kind: input, shape index: {}]   ;;  %s20635_s1 = inlined_call_operand.vmem [shape: f32[9,16], index: 1, kind: input, shape index: {}]   ;;  %s20636_s2 = inlined_call_operand.vmem [shape: f32[1,16], index: 2, kind: input, shape index: {}]   ;;  %s20637_s3 = inlined_call_operand.vmem [shape: f32[9,16,32], index: 3, kind: input, shape index: {}]   ;;  %s20638_s4 = inlined_call_operand.vmem [shape: f32[1,32], index: 4, kind: input, shape index: {}]   ;;  %s20639_s5 = inlined_call_operand.vmem [shape: f32[9,32,64], index: 5, kind: input, shape index: {}]   ;;  %s20640_s6 = inlined_call_operand.vmem [shape: f32[1,64], index: 6, kind: input, shape index: {}]   ;;  %s20641_s7 = inlined_call_operand.vmem [shape: f32[49,64,128], index: 7, kind: input, shape index: {}]   ;;  %s20642_s8 = inlined_call_operand.vmem [shape: f32[1,128], index: 8, kind: input, shape index: {}]   ;;  %s20643_s9 = inlined_call_operand.vmem [shape: f32[128,128], index: 9, kind: input, shape index: {}]   ;;  %s20644_s10 = inlined_call_operand.vmem [shape: f32[1,128], index: 10, kind: input, shape index: {}]   ;;  %s20645_s11 = inlined_call_operand.hbm [shape: f32[2,1,128], index: 11, kind: output, shape index: {}]  }
   0x1   :  { %20661 = sst [smem:[#allocation20_spill]] %s20634_s0 }
   0x2   :  { %16 = vsyncpa [#allocation7], 0 }
   0x3   :  { %18 = vsyncpa [#allocation7 + $0x1], 0  ;;  %s16722_s17 = smov 0   ;;  %s16724_s18 = smov 0  }
   0x4   :  { %s16726_s19 = smov 0   ;;  %s16728_s20 = smov 0  }
   0x5 LB: > { %s16743_s21 = sadd.s32 4294967295, %s16655_s20   ;;  %s11691_s22 = sadd.s32 4294967294, %s16655_s20   ;;  %s16655_s20 = sphi %s16728_s20, %s20692_s20   ;;  %s16651_s19 = sphi %s16726_s19, %s20691_s19   ;;  %s16647_s18 = sphi %s16724_s18, %s20690_s18   ;;  %s16643_s17 = sphi %s16722_s17, %s20689_s17  }
   0x6   : > { %s16747_s23 = sadd.s32 1, %s16655_s20   ;;  %s267_s24 = sadd.s32 1, %s16651_s19 }
   0x7   : > { %s264_s25 = ssub.s32 %s16655_s20, %s16747_s23  ;;  %p277_p0 = scmp.ne.s32.totalorder %s16651_s19, %s16647_s18 }
   0x8   : > { %p265_p1 = scmp.eq.s32.totalorder %s264_s25, 0  ;;  %p278_p2 = scmp.eq.s32.totalorder %s16743_s21, 1 }
   0x9   : > { %p283_p3 = scmp.ne.s32.totalorder %s16647_s18, %s16643_s17  ;;  %p284_p4 = scmp.eq.s32.totalorder %s11691_s22, 1 }
   0xa   : > { %s16758_s26 = scalar_select %p265_p1, %s16651_s19, %s267_s24  }
   0xb   : > { %p16760_p5 = por %p278_p2, %p277_p0  ;;  %p16764_p6 = por %p284_p4, %p283_p3 }
   0xc   : > { %p11694_p7 = scmp.ge.s32.totalorder %s16655_s20, 1  ;;  %p340_p8 = scmp.lt.s32.totalorder %s16655_s20, 3 }
   0xe   : > { %p341_p9 = pnand %p11694_p7, %p340_p8 }
  0x10   : > { %344 = sbr.rel (%p341_p9) target bundleno = 2754 (0xac2), region = 64 }
  0x17   : > { %v489_v0 = vld [vmem:[%s20635_s1] sm:$0xff]  ;;  %v490_v1 = vld [vmem:[%s20635_s1 + $0x8] sm:$0x1]  ;;  %vm814_vm0 = vcmask 1040384   ;;  %v20646_v2 = vmov 0.0|0.0   ;;  %vm16658_vm1 = vmmov 1  }
  0x18   : > { %15435 = vmatprep.subr.bf16.mxu0 %v20646_v2  ;;  %v15436_v3 = vpack.c.bf16 %v490_v1, %v489_v0  ;;  %vm15437_vm2 = vmpackc.low %vm814_vm0, %vm16658_vm1  ;;  %p379_p10 = scmp.lt.s32.totalorder %s16743_s21, 1  ;;  %vm16659_vm3 = vmmov 0   ;;  %v20648_v4 = vmov 0.0   ;;  %vm498_vm4 = vcmask 72704   ;;  %s20664_s0 = sld [smem:[#allocation20_spill]]  ;;  %v11803_v14 = vld [vmem:[%s20637_s3 + $0x10] sm:$0xff] }
  0x19   : > { %13560 = vmatprep.mubr.msk.f32.mxu0 %vm16659_vm3, %v20648_v4  ;;  %v11804_v15 = vld [vmem:[%s20637_s3 + $0x18] sm:$0xff]  ;;  %vm2533_vm5 = vcmask 130048   ;;  %vm1615_vm6 = vcmask 1041408   ;;  %vm2125_vm7 = vcmask 1046528   ;;  %vm2675_vm8 = vcmask 128000   ;;  %s12610_s25 = sshll.u32 %s16743_s21, 4 }
  0x1a   : > { %15438 = vmatpush3.bf16.msk.msra.mxu0 %vm15437_vm2, %v15436_v3  ;;  %s380_s14 = scalar_select %p379_p10, %s16743_s21, 1  ;;  %v15439_v17 = vpack.c.bf16 %v11804_v15, %v11803_v14  ;;  %2637 = vst.msk [vmem:[#allocation3] sm:$0xff] %vm2533_vm5, %v20648_v4  ;;  %2638 = vst.msk [vmem:[#allocation3 + $0x8] sm:$0xff] %vm2533_vm5, %v20648_v4  ;;  %v11981_v15 = vld [vmem:[%s20637_s3 + $0x60] sm:$0xff]  ;;  %vm6048_vm9 = vcmask 261120   ;;  %vm6074_vm10 = vcmask 260096  }
  0x1b   : > { %2639 = vst.msk [vmem:[#allocation3 + $0x10] sm:$0xff] %vm2533_vm5, %v20648_v4  ;;  %2640 = vst.msk [vmem:[#allocation3 + $0x18] sm:$0xff] %vm2533_vm5, %v20648_v4  ;;  %vm7474_vm11 = vcmask 523264   ;;  %s20592_s13 = scalar_lea.hbm %s20645_s11, %s12610_s25  ;;  %s16661_s21 = smov [#allocation6]  }
  0x1c   : > { %s16546_s15 = smul.u32 840, %s380_s14  ;;  %15440 = vmatprep.subr.bf16.mxu0 %v15439_v17  ;;  %2641 = vst.msk [vmem:[#allocation3 + $0x20] sm:$0xff] %vm2533_vm5, %v20648_v4  ;;  %2642 = vst.msk [vmem:[#allocation3 + $0x28] sm:$0xff] %vm2533_vm5, %v20648_v4  ;;  %s16597_s22 = sshll.u32 %s16661_s21, 4  ;;  %s16598_s22 = int_to_ptr.vmem [resolvable:$false] %s16597_s22 }
  0x1d   : > { %2643 = vst.msk [vmem:[#allocation3 + $0x30] sm:$0xff] %vm2533_vm5, %v20648_v4  ;;  %2644 = vst.msk [vmem:[#allocation3 + $0x38] sm:$0xff] %vm2533_vm5, %v20648_v4 }
  0x1e   : > { %s16784_s24 = scalar_lea.vmem %s20664_s0, %s16546_s15  ;;  %2645 = vst.msk [vmem:[#allocation3 + $0x40] sm:$0xff] %vm2533_vm5, %v20648_v4  ;;  %2646 = vst.msk [vmem:[#allocation3 + $0x48] sm:$0xff] %vm2533_vm5, %v20648_v4  ;;  %s377_s15 = sand.u32 1, %s16647_s18  }
  0x1f   : > { %v384_v5 = vld [vmem:[%s16784_s24] sm:$0xff]  ;;  %v385_v6 = vld [vmem:[%s16784_s24 + $0x8] sm:$0xff]  ;;  %v386_v7 = vld [vmem:[%s16784_s24 + $0x10] sm:$0xff]  ;;  %2647 = vst.msk [vmem:[#allocation3 + $0x50] sm:$0xff] %vm2533_vm5, %v20648_v4  ;;  %s378_s29 = scalar_lea.vmem [#allocation6], %s377_s15  ;;  %s11624_s14 = scalar_lea.sflag [#allocation7], %s377_s15 }
  0x20   : > { %13561 = vmatmul.mubr.msk.f32.vlgmr.msra.gmra.mrb[0].mxu0 %vm498_vm4, %v384_v5  ;;  %v387_v8 = vld [vmem:[%s16784_s24 + $0x18] sm:$0xff]  ;;  %v388_v9 = vld [vmem:[%s16784_s24 + $0x20] sm:$0xff]  ;;  %v389_v10 = vld [vmem:[%s16784_s24 + $0x28] sm:$0xff]  ;;  %2648 = vst.msk [vmem:[#allocation3 + $0x58] sm:$0xff] %vm2533_vm5, %v20648_v4  ;;  %s11636_s30 = sshll.u32 %s378_s29, 4  ;;  %s16599_s0 = scalar_lea.vmem %s16598_s22, 32  ;;  %s20594_s30 = int_to_ptr.vmem [resolvable:$true] %s11636_s30 }
  0x21   : > { %13563 = vmatprep.mubr.msk.f32.mxu0 %vm16659_vm3, %v20648_v4  ;;  %v390_v11 = vld [vmem:[%s16784_s24 + $0x30] sm:$0xff]  ;;  %v391_v12 = vld [vmem:[%s16784_s24 + $0x38] sm:$0xff]  ;;  %v392_v13 = vld [vmem:[%s16784_s24 + $0x40] sm:$0xff]  ;;  %15442 = vmatpush3.bf16.msra.mxu0 %v15439_v17  ;;  %2649 = vst.msk [vmem:[#allocation3 + $0x60] sm:$0xff] %vm2533_vm5, %v20648_v4  ;;  %s16593_s16 = scalar_lea.vmem %s20594_s30, 16  ;;  %p16600_p0 = scmp.lt.s32.totalorder %s20594_s30, %s16598_s22 }
  0x22   : > { %v393_v16 = vld [vmem:[%s16784_s24 + $0x48] sm:$0xff]  ;;  %v394_v18 = vld [vmem:[%s16784_s24 + $0x50] sm:$0xff]  ;;  %v395_v19 = vld [vmem:[%s16784_s24 + $0x58] sm:$0xff]  ;;  %2650 = vst.msk [vmem:[#allocation3 + $0x68] sm:$0xff] %vm2533_vm5, %v20648_v4  ;;  %p16594_p11 = scmp.ne.s32.totalorder %s20594_s30, %s16593_s16  ;;  %p16601_p1 = scmp.lt.s32.totalorder %s16599_s0, %s16593_s16 }
  0x23   : > { %v396_v20 = vld [vmem:[%s16784_s24 + $0x60] sm:$0xff]  ;;  %v397_v21 = vld [vmem:[%s16784_s24 + $0x68] sm:$0xff]  ;;  %v398_v22 = vld [vmem:[%s16784_s24 + $0x70] sm:$0xff]  ;;  %2651 = vst.msk [vmem:[#allocation3 + $0x70] sm:$0xff] %vm2533_vm5, %v20648_v4 }
  0x24   : > { %13564 = vmatmul.mubr.msk.f32.gmra.mrb[2].mxu0 %vm498_vm4, %v385_v6  ;;  %v399_v23 = vld [vmem:[%s16784_s24 + $0x78] sm:$0xff]  ;;  %v400_v24 = vld [vmem:[%s16784_s24 + $0x80] sm:$0xff]  ;;  %v401_v25 = vld [vmem:[%s16784_s24 + $0x88] sm:$0xff]  ;;  %2652 = vst.msk [vmem:[#allocation3 + $0x78] sm:$0xff] %vm2533_vm5, %v20648_v4  ;;  %p16595_p12 = pnand %p16594_p11, %p16760_p5  ;;  %p16602_p2 = por %p16601_p1, %p16600_p0 }
  0x25   : > { %13566 = vmatprep.mubr.msk.f32.mxu0 %vm16659_vm3, %v20648_v4  ;;  %v402_v26 = vld [vmem:[%s16784_s24 + $0x90] sm:$0xff]  ;;  %v403_v27 = vld [vmem:[%s16784_s24 + $0x98] sm:$0xff]  ;;  %v404_v28 = vld [vmem:[%s16784_s24 + $0xa0] sm:$0xff]  ;;  %2653 = vst.msk [vmem:[#allocation3 + $0x80] sm:$0xff] %vm2533_vm5, %v20648_v4 }
  0x26   : > { %v405_v29 = vld [vmem:[%s16784_s24 + $0xa8] sm:$0xff]  ;;  %v406_v30 = vld [vmem:[%s16784_s24 + $0xb0] sm:$0xff]  ;;  %v407_v31 = vld [vmem:[%s16784_s24 + $0xb8] sm:$0xff]  ;;  %2654 = vst.msk [vmem:[#allocation3 + $0x88] sm:$0xff] %vm2533_vm5, %v20648_v4  ;;  %p16596_p13 = pneg %p16595_p12 }
  0x27   : > { %v408_v32 = vld [vmem:[%s16784_s24 + $0xc0] sm:$0xff]  ;;  %v409_v33 = vld [vmem:[%s16784_s24 + $0xc8] sm:$0xff]  ;;  %v410_v34 = vld [vmem:[%s16784_s24 + $0xd0] sm:$0xff]  ;;  %2655 = vst.msk [vmem:[#allocation3 + $0x90] sm:$0xff] %vm2533_vm5, %v20648_v4 }
  0x28   : > { %13567 = vmatmul.mubr.msk.f32.gmra.mrb[4].mxu0 %vm498_vm4, %v386_v7  ;;  %v411_v35 = vld [vmem:[%s16784_s24 + $0xd8] sm:$0xff]  ;;  %v412_v36 = vld [vmem:[%s16784_s24 + $0xe0] sm:$0xff]  ;;  %v413_v37 = vld [vmem:[%s16784_s24 + $0xe8] sm:$0xff]  ;;  %2656 = vst.msk [vmem:[#allocation3 + $0x98] sm:$0xff] %vm2533_vm5, %v20648_v4  ;;  %p16603_p3 = pnand %p16602_p2, %p16596_p13 }
  0x29   : > { %13569 = vmatprep.mubr.msk.f32.mxu0 %vm16659_vm3, %v20648_v4  ;;  %v414_v38 = vld [vmem:[%s16784_s24 + $0xf0] sm:$0xff]  ;;  %2657 = vst.msk [vmem:[#allocation3 + $0xa0] sm:$0xff] %vm2533_vm5, %v20648_v4  ;;  %2658 = vst.msk [vmem:[#allocation3 + $0xa8] sm:$0xff] %vm2533_vm5, %v20648_v4  ;;  %v415_v39 = vld [vmem:[%s16784_s24 + $0xf8] sm:$0xff] }
  0x2a   : > { %2659 = vst.msk [vmem:[#allocation3 + $0xb0] sm:$0xff] %vm2533_vm5, %v20648_v4  ;;  %2660 = vst.msk [vmem:[#allocation3 + $0xb8] sm:$0xff] %vm2533_vm5, %v20648_v4  ;;  %v416_v40 = vld [vmem:[%s16784_s24 + $0x100] sm:$0xff]  ;;  %v417_v41 = vld [vmem:[%s16784_s24 + $0x108] sm:$0xff] }
  0x2b   : > { %2661 = vst.msk [vmem:[#allocation3 + $0xc0] sm:$0xff] %vm2533_vm5, %v20648_v4  ;;  %2662 = vst.msk [vmem:[#allocation3 + $0xc8] sm:$0xff] %vm2533_vm5, %v20648_v4  ;;  %v418_v42 = vld [vmem:[%s16784_s24 + $0x110] sm:$0xff]  ;;  %v419_v43 = vld [vmem:[%s16784_s24 + $0x118] sm:$0xff] }
  0x2c   : > { %13570 = vmatmul.mubr.msk.f32.gmra.mrb[6].mxu0 %vm498_vm4, %v387_v8  ;;  %2663 = vst.msk [vmem:[#allocation3 + $0xd0] sm:$0xff] %vm2533_vm5, %v20648_v4  ;;  %2664 = vst.msk [vmem:[#allocation3 + $0xd8] sm:$0xff] %vm2533_vm5, %v20648_v4  ;;  %v420_v44 = vld [vmem:[%s16784_s24 + $0x120] sm:$0xff]  ;;  %v421_v45 = vld [vmem:[%s16784_s24 + $0x128] sm:$0xff] }
  0x2d   : > { %13572 = vmatprep.mubr.msk.f32.mxu0 %vm16659_vm3, %v20648_v4  ;;  %2665 = vst.msk [vmem:[#allocation3 + $0xe0] sm:$0xff] %vm2533_vm5, %v20648_v4  ;;  %2666 = vst.msk [vmem:[#allocation3 + $0xe8] sm:$0xff] %vm2533_vm5, %v20648_v4  ;;  %v422_v46 = vld [vmem:[%s16784_s24 + $0x130] sm:$0xff]  ;;  %v423_v47 = vld [vmem:[%s16784_s24 + $0x138] sm:$0xff] }
  0x2e   : > { %2667 = vst.msk [vmem:[#allocation3 + $0xf0] sm:$0xff] %vm2533_vm5, %v20648_v4  ;;  %2668 = vst.msk [vmem:[#allocation3 + $0xf8] sm:$0xff] %vm2533_vm5, %v20648_v4  ;;  %v424_v48 = vld [vmem:[%s16784_s24 + $0x140] sm:$0xff]  ;;  %v425_v49 = vld [vmem:[%s16784_s24 + $0x148] sm:$0xff] }
  0x2f   : > { %2669 = vst.msk [vmem:[#allocation3 + $0x100] sm:$0xff] %vm2533_vm5, %v20648_v4  ;;  %v426_v50 = vld [vmem:[%s16784_s24 + $0x150] sm:$0xff]  ;;  %v427_v51 = vld [vmem:[%s16784_s24 + $0x158] sm:$0xff]  ;;  %v428_v52 = vld [vmem:[%s16784_s24 + $0x160] sm:$0xff] }
  0x30   : > { %13573 = vmatmul.mubr.msk.f32.gmra.mrb[8].mxu0 %vm498_vm4, %v388_v9  ;;  %v429_v53 = vld [vmem:[%s16784_s24 + $0x168] sm:$0xff]  ;;  %v430_v54 = vld [vmem:[%s16784_s24 + $0x170] sm:$0xff]  ;;  %v431_v55 = vld [vmem:[%s16784_s24 + $0x178] sm:$0xff] }
  0x31   : > { %13575 = vmatprep.mubr.msk.f32.mxu0 %vm16659_vm3, %v20648_v4  ;;  %v432_v56 = vld [vmem:[%s16784_s24 + $0x180] sm:$0xff]  ;;  %v433_v57 = vld [vmem:[%s16784_s24 + $0x188] sm:$0xff]  ;;  %v434_v58 = vld [vmem:[%s16784_s24 + $0x190] sm:$0xff] }
  0x32   : > { %v435_v59 = vld [vmem:[%s16784_s24 + $0x198] sm:$0xff]  ;;  %v436_v60 = vld [vmem:[%s16784_s24 + $0x1a0] sm:$0xff]  ;;  %v437_v61 = vld [vmem:[%s16784_s24 + $0x1a8] sm:$0xff] }
  0x33   : > { %v438_v0 = vld [vmem:[%s16784_s24 + $0x1b0] sm:$0xff]  ;;  %v439_v5 = vld [vmem:[%s16784_s24 + $0x1b8] sm:$0xff]  ;;  %v440_v8 = vld [vmem:[%s16784_s24 + $0x1c0] sm:$0xff] }
  0x34   : > { %13576 = vmatmul.mubr.msk.f32.gmra.mrb[10].mxu0 %vm498_vm4, %v389_v10  ;;  %v17086_v9 = vld [vmem:[%s20636_s2] ss:$0 sm:$0xff] }
  0x35   : > { %13578 = vmatprep.mubr.msk.f32.mxu0 %vm16659_vm3, %v20648_v4 }
  0x38   : > { %13579 = vmatmul.mubr.msk.f32.gmra.mrb[12].mxu0 %vm498_vm4, %v390_v11 }
  0x39   : > { %13581 = vmatprep.mubr.msk.f32.mxu0 %vm16659_vm3, %v20648_v4 }
  0x3c   : > { %13582 = vmatmul.mubr.msk.f32.gmra.mrb[14].mxu0 %vm498_vm4, %v391_v12 }
  0x3d   : > { %13584 = vmatprep.mubr.msk.f32.mxu0 %vm16659_vm3, %v20648_v4 }
  0x40   : > { %13585 = vmatmul.mubr.msk.f32.gmra.mrb[16].mxu0 %vm498_vm4, %v392_v13  ;;  %v441_v13 = vld [vmem:[%s16784_s24 + $0x1c8] sm:$0xff] }
  0x41   : > { %13587 = vmatprep.mubr.msk.f32.mxu0 %vm16659_vm3, %v20648_v4 }
  0x44   : > { %13588 = vmatmul.mubr.msk.f32.gmra.mrb[18].mxu0 %vm498_vm4, %v393_v16  ;;  %v11982_v16 = vld [vmem:[%s20637_s3 + $0x68] sm:$0xff] }
  0x45   : > { %13590 = vmatprep.mubr.msk.f32.mxu0 %vm16659_vm3, %v20648_v4 }
  0x48   : > { %13591 = vmatmul.mubr.msk.f32.gmra.mrb[20].mxu0 %vm498_vm4, %v394_v18 }
  0x49   : > { %13593 = vmatprep.mubr.msk.f32.mxu0 %vm16659_vm3, %v20648_v4 }
  0x4c   : > { %13594 = vmatmul.mubr.msk.f32.gmra.mrb[22].mxu0 %vm498_vm4, %v395_v19 }
  0x4d   : > { %13596 = vmatprep.mubr.msk.f32.mxu0 %vm16659_vm3, %v20648_v4 }
  0x50   : > { %13597 = vmatmul.mubr.msk.f32.gmra.mrb[24].mxu0 %vm498_vm4, %v396_v20  ;;  %v17106_v20 = vpack.c.bf16 %v11982_v16, %v11981_v15 }
  0x51   : > { %13599 = vmatprep.mubr.msk.f32.mxu0 %vm16659_vm3, %v20648_v4 }
  0x52   : > { %16159 = vmatprep.subr.bf16.mxu1 %v17106_v20 }
  0x53   : > { %16160 = vmatpush3.bf16.msra.mxu1 %v17106_v20 }
  0x54   : > { %13600 = vmatmul.mubr.msk.f32.gmra.mrb[26].mxu0 %vm498_vm4, %v397_v21 }
  0x55   : > { %13602 = vmatprep.mubr.msk.f32.mxu0 %vm16659_vm3, %v20648_v4 }
  0x58   : > { %13603 = vmatmul.mubr.msk.f32.gmra.mrb[28].mxu0 %vm498_vm4, %v398_v22  ;;  %v442_v22 = vld [vmem:[%s16784_s24 + $0x1d0] sm:$0xff] }
  0x59   : > { %13605 = vmatprep.mubr.msk.f32.mxu0 %vm16659_vm3, %v20648_v4 }
  0x5c   : > { %13606 = vmatmul.mubr.msk.f32.gmra.mrb[30].mxu0 %vm498_vm4, %v399_v23 }
  0x5d   : > { %13608 = vmatprep.mubr.msk.f32.mxu0 %vm16659_vm3, %v20648_v4 }
  0x60   : > { %13609 = vmatmul.mubr.msk.f32.gmra.mrb[32].mxu0 %vm498_vm4, %v400_v24 }
  0x61   : > { %13611 = vmatprep.mubr.msk.f32.mxu0 %vm16659_vm3, %v20648_v4 }
  0x64   : > { %13612 = vmatmul.mubr.msk.f32.gmra.mrb[34].mxu0 %vm498_vm4, %v401_v25 }
  0x65   : > { %13614 = vmatprep.mubr.msk.f32.mxu0 %vm16659_vm3, %v20648_v4 }
  0x68   : > { %13615 = vmatmul.mubr.msk.f32.gmra.mrb[36].mxu0 %vm498_vm4, %v402_v26 }
  0x69   : > { %13617 = vmatprep.mubr.msk.f32.mxu0 %vm16659_vm3, %v20648_v4 }
  0x6c   : > { %13618 = vmatmul.mubr.msk.f32.gmra.mrb[38].mxu0 %vm498_vm4, %v403_v27 }
  0x6d   : > { %13620 = vmatprep.mubr.msk.f32.mxu0 %vm16659_vm3, %v20648_v4 }
  0x70   : > { %13621 = vmatmul.mubr.msk.f32.gmra.mrb[40].mxu0 %vm498_vm4, %v404_v28 }
  0x71   : > { %13623 = vmatprep.mubr.msk.f32.mxu0 %vm16659_vm3, %v20648_v4 }
  0x74   : > { %13624 = vmatmul.mubr.msk.f32.gmra.mrb[42].mxu0 %vm498_vm4, %v405_v29 }
  0x75   : > { %13626 = vmatprep.mubr.msk.f32.mxu0 %vm16659_vm3, %v20648_v4 }
  0x78   : > { %13627 = vmatmul.mubr.msk.f32.gmra.mrb[44].mxu0 %vm498_vm4, %v406_v30 }
  0x79   : > { %13629 = vmatprep.mubr.msk.f32.mxu0 %vm16659_vm3, %v20648_v4 }
  0x7c   : > { %13630 = vmatmul.mubr.msk.f32.gmra.mrb[46].mxu0 %vm498_vm4, %v407_v31  ;;  %v443_v31 = vld [vmem:[%s16784_s24 + $0x1d8] sm:$0xff] }
  0x7d   : > { %13632 = vmatprep.mubr.msk.f32.mxu0 %vm16659_vm3, %v20648_v4 }
  0x80   : > { %13633 = vmatmul.mubr.msk.f32.gmra.mrb[48].mxu0 %vm498_vm4, %v408_v32 }
  0x81   : > { %13635 = vmatprep.mubr.msk.f32.mxu0 %vm16659_vm3, %v20648_v4 }
  0x84   : > { %13636 = vmatmul.mubr.msk.f32.gmra.mrb[50].mxu0 %vm498_vm4, %v409_v33 }
  0x85   : > { %13638 = vmatprep.mubr.msk.f32.mxu0 %vm16659_vm3, %v20648_v4 }
  0x88   : > { %13639 = vmatmul.mubr.msk.f32.gmra.mrb[52].mxu0 %vm498_vm4, %v410_v34 }
  0x89   : > { %13641 = vmatprep.mubr.msk.f32.mxu0 %vm16659_vm3, %v20648_v4 }
  0x8c   : > { %13642 = vmatmul.mubr.msk.f32.gmra.mrb[54].mxu0 %vm498_vm4, %v411_v35 }
  0x8d   : > { %13644 = vmatprep.mubr.msk.f32.mxu0 %vm16659_vm3, %v20648_v4 }
  0x90   : > { %13645 = vmatmul.mubr.msk.f32.gmra.mrb[56].mxu0 %vm498_vm4, %v412_v36 }
  0x91   : > { %13647 = vmatprep.mubr.msk.f32.mxu0 %vm16659_vm3, %v20648_v4 }
  0x94   : > { %13648 = vmatmul.mubr.msk.f32.gmra.mrb[58].mxu0 %vm498_vm4, %v413_v37 }
  0x95   : > { %13650 = vmatprep.mubr.msk.f32.mxu0 %vm16659_vm3, %v20648_v4 }
  0x98   : > { %13651 = vmatmul.mubr.msk.f32.gmra.mrb[60].mxu0 %vm498_vm4, %v414_v38 }
  0x99   : > { %13653 = vmatprep.mubr.msk.f32.mxu0 %vm16659_vm3, %v20648_v4 }
  0x9c   : > { %13654 = vmatmul.mubr.msk.f32.gmra.mrb[62].mxu0 %vm498_vm4, %v415_v39 }
  0x9d   : > { %13656 = vmatprep.mubr.msk.f32.mxu0 %vm16659_vm3, %v20648_v4 }
  0xa0   : > { %13657 = vmatmul.mubr.msk.f32.gmra.mrb[64].mxu0 %vm498_vm4, %v416_v40 }
  0xa1   : > { %13659 = vmatprep.mubr.msk.f32.mxu0 %vm16659_vm3, %v20648_v4 }
  0xa4   : > { %13660 = vmatmul.mubr.msk.f32.gmra.mrb[66].mxu0 %vm498_vm4, %v417_v41  ;;  %v444_v41 = vld [vmem:[%s16784_s24 + $0x1e0] sm:$0xff] }
  0xa5   : > { %13662 = vmatprep.mubr.msk.f32.mxu0 %vm16659_vm3, %v20648_v4 }
  0xa8   : > { %13663 = vmatmul.mubr.msk.f32.gmra.mrb[68].mxu0 %vm498_vm4, %v418_v42 }
  0xa9   : > { %13665 = vmatprep.mubr.msk.f32.mxu0 %vm16659_vm3, %v20648_v4 }
  0xac   : > { %13666 = vmatmul.mubr.msk.f32.gmra.mrb[70].mxu0 %vm498_vm4, %v419_v43 }
  0xad   : > { %13668 = vmatprep.mubr.msk.f32.mxu0 %vm16659_vm3, %v20648_v4 }
  0xb0   : > { %13669 = vmatmul.mubr.msk.f32.gmra.mrb[72].mxu0 %vm498_vm4, %v420_v44 }
  0xb1   : > { %13671 = vmatprep.mubr.msk.f32.mxu0 %vm16659_vm3, %v20648_v4 }
  0xb4   : > { %13672 = vmatmul.mubr.msk.f32.gmra.mrb[74].mxu0 %vm498_vm4, %v421_v45 }
  0xb5   : > { %13674 = vmatprep.mubr.msk.f32.mxu0 %vm16659_vm3, %v20648_v4 }
  0xb8   : > { %13675 = vmatmul.mubr.msk.f32.gmra.mrb[76].mxu0 %vm498_vm4, %v422_v46 }
  0xb9   : > { %13677 = vmatprep.mubr.msk.f32.mxu0 %vm16659_vm3, %v20648_v4 }
  0xbc   : > { %13678 = vmatmul.mubr.msk.f32.gmra.mrb[78].mxu0 %vm498_vm4, %v423_v47 }
  0xbd   : > { %13680 = vmatprep.mubr.msk.f32.mxu0 %vm16659_vm3, %v20648_v4 }
  0xc0   : > { %13681 = vmatmul.mubr.msk.f32.gmra.mrb[80].mxu0 %vm498_vm4, %v424_v48 }
  0xc1   : > { %13683 = vmatprep.mubr.msk.f32.mxu0 %vm16659_vm3, %v20648_v4 }
  0xc4   : > { %13684 = vmatmul.mubr.msk.f32.gmra.mrb[82].mxu0 %vm498_vm4, %v425_v49 }
  0xc5   : > { %13686 = vmatprep.mubr.msk.f32.mxu0 %vm16659_vm3, %v20648_v4 }
  0xc8   : > { %13687 = vmatmul.mubr.msk.f32.gmra.mrb[84].mxu0 %vm498_vm4, %v426_v50 }
  0xc9   : > { %13689 = vmatprep.mubr.msk.f32.mxu0 %vm16659_vm3, %v20648_v4 }
  0xcc   : > { %13690 = vmatmul.mubr.msk.f32.gmra.mrb[86].mxu0 %vm498_vm4, %v427_v51 }
  0xcd   : > { %13692 = vmatprep.mubr.msk.f32.mxu0 %vm16659_vm3, %v20648_v4 }
  0xd0   : > { %13693 = vmatmul.mubr.msk.f32.gmra.mrb[88].mxu0 %vm498_vm4, %v428_v52  ;;  %v445_v52 = vld [vmem:[%s16784_s24 + $0x1e8] sm:$0xff] }
  0xd1   : > { %13695 = vmatprep.mubr.msk.f32.mxu0 %vm16659_vm3, %v20648_v4 }
  0xd4   : > { %13696 = vmatmul.mubr.msk.f32.gmra.mrb[90].mxu0 %vm498_vm4, %v429_v53 }
  0xd5   : > { %13698 = vmatprep.mubr.msk.f32.mxu0 %vm16659_vm3, %v20648_v4 }
  0xd8   : > { %13699 = vmatmul.mubr.msk.f32.gmra.mrb[92].mxu0 %vm498_vm4, %v430_v54 }
  0xd9   : > { %13701 = vmatprep.mubr.msk.f32.mxu0 %vm16659_vm3, %v20648_v4 }
  0xdc   : > { %13702 = vmatmul.mubr.msk.f32.gmra.mrb[94].mxu0 %vm498_vm4, %v431_v55 }
  0xdd   : > { %13704 = vmatprep.mubr.msk.f32.mxu0 %vm16659_vm3, %v20648_v4 }
  0xe0   : > { %13705 = vmatmul.mubr.msk.f32.gmra.mrb[96].mxu0 %vm498_vm4, %v432_v56 }
  0xe1   : > { %13707 = vmatprep.mubr.msk.f32.mxu0 %vm16659_vm3, %v20648_v4 }
  0xe4   : > { %13708 = vmatmul.mubr.msk.f32.gmra.mrb[98].mxu0 %vm498_vm4, %v433_v57 }
  0xe5   : > { %13710 = vmatprep.mubr.msk.f32.mxu0 %vm16659_vm3, %v20648_v4 }
  0xe8   : > { %13711 = vmatmul.mubr.msk.f32.gmra.mrb[100].mxu0 %vm498_vm4, %v434_v58 }
  0xe9   : > { %13713 = vmatprep.mubr.msk.f32.mxu0 %vm16659_vm3, %v20648_v4 }
  0xec   : > { %13714 = vmatmul.mubr.msk.f32.gmra.mrb[102].mxu0 %vm498_vm4, %v435_v59 }
  0xed   : > { %13716 = vmatprep.mubr.msk.f32.mxu0 %vm16659_vm3, %v20648_v4 }
  0xf0   : > { %13717 = vmatmul.mubr.msk.f32.gmra.mrb[104].mxu0 %vm498_vm4, %v436_v60 }
  0xf1   : > { %13719 = vmatprep.mubr.msk.f32.mxu0 %vm16659_vm3, %v20648_v4 }
  0xf3   : > { %v884_v62 = vpop.f32.mrb[0].mxu0 }
  0xf4   : > { %v13562_v63 = vpop.f32.mrb[1].mxu0  ;;  %13720 = vmatmul.mubr.msk.f32.gmra.mrb[106].mxu0 %vm498_vm4, %v437_v61  ;;  %v885_v21 = vadd.f32 %v17086_v9, %v884_v62 }
  0xf5   : > { %13722 = vmatprep.mubr.msk.f32.mxu0 %vm16659_vm3, %v20648_v4  ;;  %v446_v63 = vld [vmem:[%s16784_s24 + $0x1f0] sm:$0xff] }
  0xf6   : > { %v1408_v29 = vmax.f32 %v885_v21, 0.0 }
  0xf7   : > { %v889_v1 = vpop.f32.mrb[2].mxu0 }
  0xf8   : > { %v13565_v3 = vpop.f32.mrb[3].mxu0  ;;  %13723 = vmatmul.mubr.msk.f32.gmra.mrb[108].mxu0 %vm498_vm4, %v438_v0  ;;  %v890_v30 = vadd.f32 %v17086_v9, %v889_v1 }
  0xf9   : > { %13725 = vmatprep.mubr.msk.f32.mxu0 %vm16659_vm3, %v20648_v4 }
  0xfa   : > { %v1409_v39 = vmax.f32 %v890_v30, 0.0 }
  0xfb   : > { %v894_v6 = vpop.f32.mrb[4].mxu0 }
  0xfc   : > { %v13568_v7 = vpop.f32.mrb[5].mxu0  ;;  %13726 = vmatmul.mubr.msk.f32.gmra.mrb[110].mxu0 %vm498_vm4, %v439_v5  ;;  %v895_v40 = vadd.f32 %v17086_v9, %v894_v6 }
  0xfd   : > { %13728 = vmatprep.mubr.msk.f32.mxu0 %vm16659_vm3, %v20648_v4 }
  0xfe   : > { %v1410_v49 = vmax.f32 %v895_v40, 0.0 }
  0xff   : > { %v899_v10 = vpop.f32.mrb[6].mxu0 }
 0x100   : > { %v17089_v11 = vadd.f32 %v17086_v9, %v899_v10  ;;  %v13571_v12 = vpop.f32.mrb[7].mxu0  ;;  %13729 = vmatmul.mubr.msk.f32.gmra.mrb[112].mxu0 %vm498_vm4, %v440_v8 }
 0x101   : > { %13731 = vmatprep.mubr.msk.f32.mxu0 %vm16659_vm3, %v20648_v4 }
 0x102   : > { %v1411_v17 = vmax.f32 %v17089_v11, 0.0 }
 0x103   : > { %v904_v14 = vpop.f32.mrb[8].mxu0 }
 0x104   : > { %v17103_v18 = vadd.f32 %v17086_v9, %v904_v14  ;;  %v13574_v19 = vpop.f32.mrb[9].mxu0  ;;  %13732 = vmatmul.mubr.msk.f32.gmra.mrb[114].mxu0 %vm498_vm4, %v441_v13  ;;  %v1616_v25 = vrot.slane %v1411_v17, 6  ;;  %v447_v14 = vld [vmem:[%s16784_s24 + $0x1f8] sm:$0xff] }
 0x105   : > { %13734 = vmatprep.mubr.msk.f32.mxu0 %vm16659_vm3, %v20648_v4 }
 0x106   : > { %v1412_v23 = vmax.f32 %v17103_v18, 0.0 }
 0x107   : > { %v909_v24 = vpop.f32.mrb[10].mxu0 }
 0x108   : > { %v1617_v26 = vrot.slane %v1412_v23, 6  ;;  %v910_v27 = vadd.f32 %v17086_v9, %v909_v24  ;;  %v13577_v28 = vpop.f32.mrb[11].mxu0  ;;  %13735 = vmatmul.mubr.msk.f32.gmra.mrb[116].mxu0 %vm498_vm4, %v442_v22 }
 0x109   : > { %13737 = vmatprep.mubr.msk.f32.mxu0 %vm16659_vm3, %v20648_v4 }
 0x10a   : > { %v1618_v32 = vsel %vm1615_vm6, %v1616_v25, %v1617_v26  ;;  %v1413_v33 = vmax.f32 %v910_v27, 0.0 }
 0x10b   : > { %v1921_v34 = vmax.f32 %v1408_v29, %v1618_v32  ;;  %v914_v35 = vpop.f32.mrb[12].mxu0  ;;  %v449_v32 = vld [vmem:[%s16784_s24 + $0x208] sm:$0xff] }
 0x10c   : > { %v1619_v36 = vrot.slane %v1413_v33, 6  ;;  %v915_v37 = vadd.f32 %v17086_v9, %v914_v35  ;;  %v13580_v38 = vpop.f32.mrb[13].mxu0  ;;  %13738 = vmatmul.mubr.msk.f32.gmra.mrb[118].mxu0 %vm498_vm4, %v443_v31 }
 0x10d   : > { %13740 = vmatprep.mubr.msk.f32.mxu0 %vm16659_vm3, %v20648_v4  ;;  %v2126_v50 = vrot.slane %v1921_v34, 1 }
 0x10e   : > { %v1620_v42 = vsel %vm1615_vm6, %v1617_v26, %v1619_v36  ;;  %v1414_v43 = vmax.f32 %v915_v37, 0.0  ;;  %v448_v26 = vld [vmem:[%s16784_s24 + $0x200] sm:$0xff] }
 0x10f   : > { %v1922_v44 = vmax.f32 %v1409_v39, %v1620_v42  ;;  %v919_v45 = vpop.f32.mrb[14].mxu0  ;;  %v450_v39 = vld [vmem:[%s16784_s24 + $0x210] sm:$0xff] }
 0x110   : > { %v1621_v46 = vrot.slane %v1414_v43, 6  ;;  %v17134_v47 = vadd.f32 %v17086_v9, %v919_v45  ;;  %v13583_v48 = vpop.f32.mrb[15].mxu0  ;;  %13741 = vmatmul.mubr.msk.f32.gmra.mrb[120].mxu0 %vm498_vm4, %v444_v41 }
 0x111   : > { %v2127_v51 = vrot.slane %v1922_v44, 1  ;;  %13743 = vmatprep.mubr.msk.f32.mxu0 %vm16659_vm3, %v20648_v4 }
 0x112   : > { %v1622_v53 = vsel %vm1615_vm6, %v1619_v36, %v1621_v46  ;;  %v1415_v54 = vmax.f32 %v17134_v47, 0.0 }
 0x113   : > { %v2128_v55 = vsel %vm2125_vm7, %v2126_v50, %v2127_v51  ;;  %v1923_v56 = vmax.f32 %v1410_v49, %v1622_v53  ;;  %v924_v57 = vpop.f32.mrb[16].mxu0  ;;  %v451_v49 = vld [vmem:[%s16784_s24 + $0x218] sm:$0xff] }
 0x114   : > { %v2431_v58 = vmax.f32 %v1921_v34, %v2128_v55  ;;  %v1623_v59 = vrot.slane %v1415_v54, 6  ;;  %v17146_v60 = vadd.f32 %v17086_v9, %v924_v57  ;;  %v13586_v61 = vpop.f32.mrb[17].mxu0  ;;  %13744 = vmatmul.mubr.msk.f32.gmra.mrb[122].mxu0 %vm498_vm4, %v445_v52 }
 0x115   : > { %v2129_v62 = vrot.slane %v1923_v56, 1  ;;  %13746 = vmatprep.mubr.msk.f32.mxu0 %vm16659_vm3, %v20648_v4 }
 0x116   : > { %2534 = vst.msk [vmem:[#allocation2] sm:$0xff] %vm2533_vm5, %v2431_v58  ;;  %v1624_v0 = vsel %vm1615_vm6, %v1621_v46, %v1623_v59  ;;  %v1416_v1 = vmax.f32 %v17146_v60, 0.0  ;;  %v452_v58 = vld [vmem:[%s16784_s24 + $0x220] sm:$0xff] }
 0x117   : > { %v2130_v3 = vsel %vm2125_vm7, %v2127_v51, %v2129_v62  ;;  %v1924_v5 = vmax.f32 %v1411_v17, %v1624_v0  ;;  %v929_v6 = vpop.f32.mrb[18].mxu0 }
 0x118   : > { %v2432_v7 = vmax.f32 %v1922_v44, %v2130_v3  ;;  %v1625_v8 = vrot.slane %v1416_v1, 6  ;;  %v17161_v10 = vadd.f32 %v17086_v9, %v929_v6  ;;  %v13589_v12 = vpop.f32.mrb[19].mxu0  ;;  %13747 = vmatmul.mubr.msk.f32.gmra.mrb[124].mxu0 %vm498_vm4, %v446_v63 }
 0x119   : > { %v2131_v13 = vrot.slane %v1924_v5, 1  ;;  %13749 = vmatprep.mubr.msk.f32.mxu0 %vm16659_vm3, %v20648_v4 }
 0x11a   : > { %2535 = vst.msk [vmem:[#allocation2 + $0x8] sm:$0xff] %vm2533_vm5, %v2432_v7  ;;  %v1626_v11 = vsel %vm1615_vm6, %v1623_v59, %v1625_v8  ;;  %v1417_v15 = vmax.f32 %v17161_v10, 0.0  ;;  %v453_v7 = vld [vmem:[%s16784_s24 + $0x228] sm:$0xff] }
 0x11b   : > { %v2132_v16 = vsel %vm2125_vm7, %v2129_v62, %v2131_v13  ;;  %v1925_v17 = vmax.f32 %v1412_v23, %v1626_v11  ;;  %v934_v19 = vpop.f32.mrb[20].mxu0 }
 0x11c   : > { %v2433_v21 = vmax.f32 %v1923_v56, %v2132_v16  ;;  %v17174_v22 = vadd.f32 %v17086_v9, %v934_v19  ;;  %v13592_v24 = vpop.f32.mrb[21].mxu0  ;;  %13750 = vmatmul.mubr.msk.f32.gmra.mrb[126].mxu0 %vm498_vm4, %v447_v14 }
 0x11d   : > { %v2133_v25 = vrot.slane %v1925_v17, 1  ;;  %13752 = vmatprep.mubr.msk.f32.mxu0 %vm16659_vm3, %v20648_v4 }
 0x11e   : > { %2536 = vst.msk [vmem:[#allocation2 + $0x10] sm:$0xff] %vm2533_vm5, %v2433_v21  ;;  %v1418_v27 = vmax.f32 %v17174_v22, 0.0  ;;  %v454_v21 = vld [vmem:[%s16784_s24 + $0x230] sm:$0xff] }
 0x11f   : > { %v2134_v18 = vsel %vm2125_vm7, %v2131_v13, %v2133_v25  ;;  %v939_v23 = vpop.f32.mrb[22].mxu0 }
 0x120   : > { %v2434_v28 = vmax.f32 %v1924_v5, %v2134_v18  ;;  %v1629_v29 = vrot.slane %v1418_v27, 6  ;;  %v17186_v30 = vadd.f32 %v17086_v9, %v939_v23  ;;  %v13595_v31 = vpop.f32.mrb[23].mxu0  ;;  %13753 = vmatmul.mubr.msk.f32.gmra.mrb[128].mxu0 %vm498_vm4, %v448_v26 }
 0x121   : > { %13755 = vmatprep.mubr.msk.f32.mxu0 %vm16659_vm3, %v20648_v4  ;;  %v2671_v33 = vld [vmem:[#allocation2] ss:$2 sm:$0xff]  ;;  %v455_v31 = vld [vmem:[%s16784_s24 + $0x238] sm:$0xff] }
 0x122   : > { %2537 = vst.msk [vmem:[#allocation2 + $0x18] sm:$0xff] %vm2533_vm5, %v2434_v28  ;;  %v1419_v34 = vmax.f32 %v17186_v30, 0.0  ;;  %2674 = vst.msk [vmem:[#allocation3 + $0x11] sm:$0xff] %vm2533_vm5, %v2671_v33 }
 0x123   : > { %v944_v35 = vpop.f32.mrb[24].mxu0 }
 0x124   : > { %v1631_v36 = vrot.slane %v1419_v34, 6  ;;  %v945_v37 = vadd.f32 %v17086_v9, %v944_v35  ;;  %v13598_v38 = vpop.f32.mrb[25].mxu0  ;;  %13756 = vmatmul.mubr.msk.f32.gmra.mrb[130].mxu0 %vm498_vm4, %v449_v32 }
 0x125   : > { %13758 = vmatprep.mubr.msk.f32.mxu0 %vm16659_vm3, %v20648_v4 }
 0x126   : > { %v1632_v40 = vsel %vm1615_vm6, %v1629_v29, %v1631_v36  ;;  %v1420_v41 = vmax.f32 %v945_v37, 0.0  ;;  %v456_v37 = vld [vmem:[%s16784_s24 + $0x240] sm:$0xff] }
 0x127   : > { %v1928_v42 = vmax.f32 %v1415_v54, %v1632_v40  ;;  %v949_v43 = vpop.f32.mrb[26].mxu0 }
 0x128   : > { %v1633_v44 = vrot.slane %v1420_v41, 6  ;;  %v950_v45 = vadd.f32 %v17086_v9, %v949_v43  ;;  %v13601_v46 = vpop.f32.mrb[27].mxu0  ;;  %13759 = vmatmul.mubr.msk.f32.gmra.mrb[132].mxu0 %vm498_vm4, %v450_v39  ;;  %v457_v43 = vld [vmem:[%s16784_s24 + $0x248] sm:$0xff] }
 0x129   : > { %v2139_v48 = vrot.slane %v1928_v42, 1  ;;  %13761 = vmatprep.mubr.msk.f32.mxu0 %vm16659_vm3, %v20648_v4  ;;  %v2673_v50 = vld [vmem:[#allocation2 + $0x10] ss:$2 sm:$0x3f] }
 0x12a   : > { %v1634_v51 = vsel %vm1615_vm6, %v1631_v36, %v1633_v44  ;;  %v1421_v52 = vmax.f32 %v950_v45, 0.0  ;;  %2676 = vst.msk [vmem:[#allocation3 + $0x19] sm:$0x3f] %vm2675_vm8, %v2673_v50 }
 0x12b   : > { %v1929_v47 = vmax.f32 %v1416_v1, %v1634_v51  ;;  %v954_v53 = vpop.f32.mrb[28].mxu0  ;;  %v458_v51 = vld [vmem:[%s16784_s24 + $0x250] sm:$0xff] }
 0x12c   : > { %v1635_v54 = vrot.slane %v1421_v52, 6  ;;  %v955_v55 = vadd.f32 %v17086_v9, %v954_v53  ;;  %v13604_v56 = vpop.f32.mrb[29].mxu0  ;;  %13762 = vmatmul.mubr.msk.f32.gmra.mrb[134].mxu0 %vm498_vm4, %v451_v49 }
 0x12d   : > { %v2141_v57 = vrot.slane %v1929_v47, 1  ;;  %13764 = vmatprep.mubr.msk.f32.mxu0 %vm16659_vm3, %v20648_v4 }
 0x12e   : > { %v1636_v59 = vsel %vm1615_vm6, %v1633_v44, %v1635_v54  ;;  %v1422_v61 = vmax.f32 %v955_v55, 0.0 }
 0x12f   : > { %v2142_v62 = vsel %vm2125_vm7, %v2139_v48, %v2141_v57  ;;  %v1930_v60 = vmax.f32 %v1417_v15, %v1636_v59  ;;  %v959_v63 = vpop.f32.mrb[30].mxu0 }
 0x130   : > { %v2438_v0 = vmax.f32 %v1928_v42, %v2142_v62  ;;  %v1637_v1 = vrot.slane %v1422_v61, 6  ;;  %v17222_v3 = vadd.f32 %v17086_v9, %v959_v63  ;;  %v13607_v5 = vpop.f32.mrb[31].mxu0  ;;  %13765 = vmatmul.mubr.msk.f32.gmra.mrb[136].mxu0 %vm498_vm4, %v452_v58  ;;  %v459_v61 = vld [vmem:[%s16784_s24 + $0x258] sm:$0xff] }
 0x131   : > { %v2143_v6 = vrot.slane %v1930_v60, 1  ;;  %13767 = vmatprep.mubr.msk.f32.mxu0 %vm16659_vm3, %v20648_v4 }
 0x132   : > { %2541 = vst.msk [vmem:[#allocation2 + $0x38] sm:$0xff] %vm2533_vm5, %v2438_v0  ;;  %v1638_v8 = vsel %vm1615_vm6, %v1635_v54, %v1637_v1  ;;  %v1423_v10 = vmax.f32 %v17222_v3, 0.0 }
 0x133   : > { %v2144_v12 = vsel %vm2125_vm7, %v2141_v57, %v2143_v6  ;;  %v1931_v13 = vmax.f32 %v1418_v27, %v1638_v8  ;;  %v964_v14 = vpop.f32.mrb[32].mxu0 }
 0x134   : > { %v2439_v11 = vmax.f32 %v1929_v47, %v2144_v12  ;;  %v1639_v15 = vrot.slane %v1423_v10, 6  ;;  %v17235_v16 = vadd.f32 %v17086_v9, %v964_v14  ;;  %v13610_v17 = vpop.f32.mrb[33].mxu0  ;;  %13768 = vmatmul.mubr.msk.f32.gmra.mrb[138].mxu0 %vm498_vm4, %v453_v7  ;;  %v460_v7 = vld [vmem:[%s16784_s24 + $0x260] sm:$0xff] }
 0x135   : > { %v2145_v19 = vrot.slane %v1931_v13, 1  ;;  %13770 = vmatprep.mubr.msk.f32.mxu0 %vm16659_vm3, %v20648_v4 }
 0x136   : > { %2542 = vst.msk [vmem:[#allocation2 + $0x40] sm:$0xff] %vm2533_vm5, %v2439_v11  ;;  %v1640_v22 = vsel %vm1615_vm6, %v1637_v1, %v1639_v15  ;;  %v1424_v24 = vmax.f32 %v17235_v16, 0.0 }
 0x137   : > { %v2146_v25 = vsel %vm2125_vm7, %v2143_v6, %v2145_v19  ;;  %v1932_v26 = vmax.f32 %v1419_v34, %v1640_v22  ;;  %v969_v27 = vpop.f32.mrb[34].mxu0 }
 0x138   : > { %v2440_v18 = vmax.f32 %v1930_v60, %v2146_v25  ;;  %v17248_v23 = vadd.f32 %v17086_v9, %v969_v27  ;;  %v13613_v28 = vpop.f32.mrb[35].mxu0  ;;  %13771 = vmatmul.mubr.msk.f32.gmra.mrb[140].mxu0 %vm498_vm4, %v454_v21  ;;  %v461_v21 = vld [vmem:[%s16784_s24 + $0x268] sm:$0xff] }
 0x139   : > { %v2147_v29 = vrot.slane %v1932_v26, 1  ;;  %13773 = vmatprep.mubr.msk.f32.mxu0 %vm16659_vm3, %v20648_v4 }
 0x13a   : > { %2543 = vst.msk [vmem:[#allocation2 + $0x48] sm:$0xff] %vm2533_vm5, %v2440_v18  ;;  %v1425_v32 = vmax.f32 %v17248_v23, 0.0 }
 0x13b   : > { %v2148_v30 = vsel %vm2125_vm7, %v2145_v19, %v2147_v29  ;;  %v974_v33 = vpop.f32.mrb[36].mxu0 }
 0x13c   : > { %v2441_v34 = vmax.f32 %v1931_v13, %v2148_v30  ;;  %v17258_v35 = vadd.f32 %v17086_v9, %v974_v33  ;;  %v13616_v36 = vpop.f32.mrb[37].mxu0  ;;  %13774 = vmatmul.mubr.msk.f32.gmra.mrb[142].mxu0 %vm498_vm4, %v455_v31 }
 0x13d   : > { %13776 = vmatprep.mubr.msk.f32.mxu0 %vm16659_vm3, %v20648_v4 }
 0x13e   : > { %2544 = vst.msk [vmem:[#allocation2 + $0x50] sm:$0xff] %vm2533_vm5, %v2441_v34  ;;  %v1426_v38 = vmax.f32 %v17258_v35, 0.0 }
 0x13f   : > { %v979_v39 = vpop.f32.mrb[38].mxu0 }
 0x140   : > { %v1645_v40 = vrot.slane %v1426_v38, 6  ;;  %v17267_v41 = vadd.f32 %v17086_v9, %v979_v39  ;;  %v13619_v42 = vpop.f32.mrb[39].mxu0  ;;  %13777 = vmatmul.mubr.msk.f32.gmra.mrb[144].mxu0 %vm498_vm4, %v456_v37 }
 0x141   : > { %13779 = vmatprep.mubr.msk.f32.mxu0 %vm16659_vm3, %v20648_v4  ;;  %v2678_v44 = vld [vmem:[#allocation2 + $0x3c] ss:$2 sm:$0xff] }
 0x142   : > { %v1427_v45 = vmax.f32 %v17267_v41, 0.0  ;;  %2681 = vst.msk [vmem:[#allocation3 + $0x21] sm:$0xff] %vm2533_vm5, %v2678_v44  ;;  %v463_v42 = vld [vmem:[%s16784_s24 + $0x278] sm:$0xff] }
 0x143   : > { %v984_v46 = vpop.f32.mrb[40].mxu0 }
 0x144   : > { %v1647_v48 = vrot.slane %v1427_v45, 6  ;;  %v985_v49 = vadd.f32 %v17086_v9, %v984_v46  ;;  %v13622_v50 = vpop.f32.mrb[41].mxu0  ;;  %13780 = vmatmul.mubr.msk.f32.gmra.mrb[146].mxu0 %vm498_vm4, %v457_v43 }
 0x145   : > { %13782 = vmatprep.mubr.msk.f32.mxu0 %vm16659_vm3, %v20648_v4  ;;  %v2680_v52 = vld [vmem:[#allocation2 + $0x4c] ss:$2 sm:$0x3f]  ;;  %v464_v50 = vld [vmem:[%s16784_s24 + $0x280] sm:$0xff] }
 0x146   : > { %v1648_v47 = vsel %vm1615_vm6, %v1645_v40, %v1647_v48  ;;  %v1428_v53 = vmax.f32 %v985_v49, 0.0  ;;  %2682 = vst.msk [vmem:[#allocation3 + $0x29] sm:$0x3f] %vm2675_vm8, %v2680_v52 }
 0x147   : > { %v1936_v54 = vmax.f32 %v1423_v10, %v1648_v47  ;;  %v989_v55 = vpop.f32.mrb[42].mxu0 }
 0x148   : > { %v1649_v56 = vrot.slane %v1428_v53, 6  ;;  %v990_v57 = vadd.f32 %v17086_v9, %v989_v55  ;;  %v13625_v58 = vpop.f32.mrb[43].mxu0  ;;  %13783 = vmatmul.mubr.msk.f32.gmra.mrb[148].mxu0 %vm498_vm4, %v458_v51 }
 0x149   : > { %v2155_v59 = vrot.slane %v1936_v54, 1  ;;  %13785 = vmatprep.mubr.msk.f32.mxu0 %vm16659_vm3, %v20648_v4 }
 0x14a   : > { %v1650_v62 = vsel %vm1615_vm6, %v1647_v48, %v1649_v56  ;;  %v1429_v60 = vmax.f32 %v990_v57, 0.0 }
 0x14b   : > { %v1937_v63 = vmax.f32 %v1424_v24, %v1650_v62  ;;  %v994_v0 = vpop.f32.mrb[44].mxu0 }
 0x14c   : > { %v1651_v1 = vrot.slane %v1429_v60, 6  ;;  %v17291_v3 = vadd.f32 %v17086_v9, %v994_v0  ;;  %v13628_v5 = vpop.f32.mrb[45].mxu0  ;;  %13786 = vmatmul.mubr.msk.f32.gmra.mrb[150].mxu0 %vm498_vm4, %v459_v61 }
 0x14d   : > { %v2157_v6 = vrot.slane %v1937_v63, 1  ;;  %13788 = vmatprep.mubr.msk.f32.mxu0 %vm16659_vm3, %v20648_v4 }
 0x14e   : > { %v1652_v8 = vsel %vm1615_vm6, %v1649_v56, %v1651_v1  ;;  %v1430_v10 = vmax.f32 %v17291_v3, 0.0  ;;  %v465_v56 = vld [vmem:[%s16784_s24 + $0x288] sm:$0xff] }
 0x14f   : > { %v2158_v12 = vsel %vm2125_vm7, %v2155_v59, %v2157_v6  ;;  %v1938_v13 = vmax.f32 %v1425_v32, %v1652_v8  ;;  %v999_v14 = vpop.f32.mrb[46].mxu0  ;;  %v462_v32 = vld [vmem:[%s16784_s24 + $0x270] sm:$0xff] }
 0x150   : > { %v2446_v11 = vmax.f32 %v1936_v54, %v2158_v12  ;;  %v1653_v15 = vrot.slane %v1430_v10, 6  ;;  %v17303_v16 = vadd.f32 %v17086_v9, %v999_v14  ;;  %v13631_v17 = vpop.f32.mrb[47].mxu0  ;;  %13789 = vmatmul.mubr.msk.f32.gmra.mrb[152].mxu0 %vm498_vm4, %v460_v7 }
 0x151   : > { %v2159_v19 = vrot.slane %v1938_v13, 1  ;;  %13791 = vmatprep.mubr.msk.f32.mxu0 %vm16659_vm3, %v20648_v4 }
 0x152   : > { %2549 = vst.msk [vmem:[#allocation2 + $0x78] sm:$0xff] %vm2533_vm5, %v2446_v11  ;;  %v1654_v22 = vsel %vm1615_vm6, %v1651_v1, %v1653_v15  ;;  %v1431_v24 = vmax.f32 %v17303_v16, 0.0  ;;  %v466_v1 = vld [vmem:[%s16784_s24 + $0x290] sm:$0xff]  ;;  %v467_v11 = vld [vmem:[%s16784_s24 + $0x298] sm:$0xff] }
 0x153   : > { %v2160_v25 = vsel %vm2125_vm7, %v2157_v6, %v2159_v19  ;;  %v1939_v26 = vmax.f32 %v1426_v38, %v1654_v22  ;;  %v1004_v27 = vpop.f32.mrb[48].mxu0 }
 0x154   : > { %v2447_v18 = vmax.f32 %v1937_v63, %v2160_v25  ;;  %v1655_v23 = vrot.slane %v1431_v24, 6  ;;  %v17314_v28 = vadd.f32 %v17086_v9, %v1004_v27  ;;  %v13634_v29 = vpop.f32.mrb[49].mxu0  ;;  %13792 = vmatmul.mubr.msk.f32.gmra.mrb[154].mxu0 %vm498_vm4, %v461_v21 }
 0x155   : > { %v2161_v31 = vrot.slane %v1939_v26, 1  ;;  %13794 = vmatprep.mubr.msk.f32.mxu0 %vm16659_vm3, %v20648_v4 }
 0x156   : > { %2550 = vst.msk [vmem:[#allocation2 + $0x80] sm:$0xff] %vm2533_vm5, %v2447_v18  ;;  %v1656_v30 = vsel %vm1615_vm6, %v1653_v15, %v1655_v23  ;;  %v1432_v33 = vmax.f32 %v17314_v28, 0.0  ;;  %v468_v18 = vld [vmem:[%s16784_s24 + $0x2a0] sm:$0xff] }
 0x157   : > { %v2162_v34 = vsel %vm2125_vm7, %v2159_v19, %v2161_v31  ;;  %v1940_v35 = vmax.f32 %v1427_v45, %v1656_v30  ;;  %v1009_v36 = vpop.f32.mrb[50].mxu0 }
 0x158   : > { %v2448_v37 = vmax.f32 %v1938_v13, %v2162_v34  ;;  %v17327_v38 = vadd.f32 %v17086_v9, %v1009_v36  ;;  %v13637_v39 = vpop.f32.mrb[51].mxu0  ;;  %13795 = vmatmul.mubr.msk.f32.gmra.mrb[156].mxu0 %vm498_vm4, %v462_v32 }
 0x159   : > { %v2163_v40 = vrot.slane %v1940_v35, 1  ;;  %13797 = vmatprep.mubr.msk.f32.mxu0 %vm16659_vm3, %v20648_v4 }
 0x15a   : > { %2551 = vst.msk [vmem:[#allocation2 + $0x88] sm:$0xff] %vm2533_vm5, %v2448_v37  ;;  %v1433_v43 = vmax.f32 %v17327_v38, 0.0  ;;  %v469_v37 = vld [vmem:[%s16784_s24 + $0x2a8] sm:$0xff] }
 0x15b   : > { %v2164_v41 = vsel %vm2125_vm7, %v2161_v31, %v2163_v40  ;;  %v1014_v44 = vpop.f32.mrb[52].mxu0 }
 0x15c   : > { %v2449_v45 = vmax.f32 %v1939_v26, %v2164_v41  ;;  %v1659_v46 = vrot.slane %v1433_v43, 6  ;;  %v17339_v48 = vadd.f32 %v17086_v9, %v1014_v44  ;;  %v13640_v49 = vpop.f32.mrb[53].mxu0  ;;  %13798 = vmatmul.mubr.msk.f32.gmra.mrb[158].mxu0 %vm498_vm4, %v463_v42 }
 0x15d   : > { %13800 = vmatprep.mubr.msk.f32.mxu0 %vm16659_vm3, %v20648_v4  ;;  %v2684_v51 = vld [vmem:[#allocation2 + $0x78] ss:$2 sm:$0xff]  ;;  %v470_v49 = vld [vmem:[%s16784_s24 + $0x2b0] sm:$0xff] }
 0x15e   : > { %2552 = vst.msk [vmem:[#allocation2 + $0x90] sm:$0xff] %vm2533_vm5, %v2449_v45  ;;  %v1434_v52 = vmax.f32 %v17339_v48, 0.0  ;;  %2687 = vst.msk [vmem:[#allocation3 + $0x31] sm:$0xff] %vm2533_vm5, %v2684_v51 }
 0x15f   : > { %v1019_v47 = vpop.f32.mrb[54].mxu0 }
 0x160   : > { %v1661_v53 = vrot.slane %v1434_v52, 6  ;;  %v1020_v54 = vadd.f32 %v17086_v9, %v1019_v47  ;;  %v13643_v55 = vpop.f32.mrb[55].mxu0  ;;  %13801 = vmatmul.mubr.msk.f32.gmra.mrb[160].mxu0 %vm498_vm4, %v464_v50 }
 0x161   : > { %13803 = vmatprep.mubr.msk.f32.mxu0 %vm16659_vm3, %v20648_v4 }
 0x162   : > { %v1662_v57 = vsel %vm1615_vm6, %v1659_v46, %v1661_v53  ;;  %v1435_v58 = vmax.f32 %v1020_v54, 0.0  ;;  %v471_v54 = vld [vmem:[%s16784_s24 + $0x2b8] sm:$0xff] }
 0x163   : > { %v1943_v59 = vmax.f32 %v1430_v10, %v1662_v57  ;;  %v1024_v61 = vpop.f32.mrb[56].mxu0 }
 0x164   : > { %v1663_v62 = vrot.slane %v1435_v58, 6  ;;  %v1025_v60 = vadd.f32 %v17086_v9, %v1024_v61  ;;  %v13646_v63 = vpop.f32.mrb[57].mxu0  ;;  %13804 = vmatmul.mubr.msk.f32.gmra.mrb[162].mxu0 %vm498_vm4, %v465_v56  ;;  %v472_v61 = vld [vmem:[%s16784_s24 + $0x2c0] sm:$0xff] }
 0x165   : > { %v2169_v0 = vrot.slane %v1943_v59, 1  ;;  %13806 = vmatprep.mubr.msk.f32.mxu0 %vm16659_vm3, %v20648_v4  ;;  %v2686_v5 = vld [vmem:[#allocation2 + $0x88] ss:$2 sm:$0x3f] }
 0x166   : > { %v1664_v6 = vsel %vm1615_vm6, %v1661_v53, %v1663_v62  ;;  %v1436_v7 = vmax.f32 %v1025_v60, 0.0  ;;  %2688 = vst.msk [vmem:[#allocation3 + $0x39] sm:$0x3f] %vm2675_vm8, %v2686_v5 }
 0x167   : > { %v1944_v3 = vmax.f32 %v1431_v24, %v1664_v6  ;;  %v1029_v8 = vpop.f32.mrb[58].mxu0  ;;  %v473_v6 = vld [vmem:[%s16784_s24 + $0x2c8] sm:$0xff] }
 0x168   : > { %v1665_v10 = vrot.slane %v1436_v7, 6  ;;  %v1030_v12 = vadd.f32 %v17086_v9, %v1029_v8  ;;  %v13649_v13 = vpop.f32.mrb[59].mxu0  ;;  %13807 = vmatmul.mubr.msk.f32.gmra.mrb[164].mxu0 %vm498_vm4, %v466_v1 }
 0x169   : > { %v2171_v14 = vrot.slane %v1944_v3, 1  ;;  %13809 = vmatprep.mubr.msk.f32.mxu0 %vm16659_vm3, %v20648_v4 }
 0x16a   : > { %v1666_v15 = vsel %vm1615_vm6, %v1663_v62, %v1665_v10  ;;  %v1437_v16 = vmax.f32 %v1030_v12, 0.0 }
 0x16b   : > { %v2172_v17 = vsel %vm2125_vm7, %v2169_v0, %v2171_v14  ;;  %v1945_v19 = vmax.f32 %v1432_v33, %v1666_v15  ;;  %v1034_v21 = vpop.f32.mrb[60].mxu0 }
 0x16c   : > { %v2453_v22 = vmax.f32 %v1943_v59, %v2172_v17  ;;  %v1667_v24 = vrot.slane %v1437_v16, 6  ;;  %v17373_v25 = vadd.f32 %v17086_v9, %v1034_v21  ;;  %v13652_v26 = vpop.f32.mrb[61].mxu0  ;;  %13810 = vmatmul.mubr.msk.f32.gmra.mrb[166].mxu0 %vm498_vm4, %v467_v11  ;;  %v474_v17 = vld [vmem:[%s16784_s24 + $0x2d0] sm:$0xff] }
 0x16d   : > { %v2173_v27 = vrot.slane %v1945_v19, 1  ;;  %13812 = vmatprep.mubr.msk.f32.mxu0 %vm16659_vm3, %v20648_v4 }
 0x16e   : > { %2556 = vst.msk [vmem:[#allocation2 + $0xb0] sm:$0xff] %vm2533_vm5, %v2453_v22  ;;  %v1668_v23 = vsel %vm1615_vm6, %v1665_v10, %v1667_v24  ;;  %v1438_v28 = vmax.f32 %v17373_v25, 0.0 }
 0x16f   : > { %v2174_v29 = vsel %vm2125_vm7, %v2171_v14, %v2173_v27  ;;  %v1946_v31 = vmax.f32 %v1433_v43, %v1668_v23  ;;  %v1039_v32 = vpop.f32.mrb[62].mxu0 }
 0x170   : > { %v2454_v30 = vmax.f32 %v1944_v3, %v2174_v29  ;;  %v1669_v33 = vrot.slane %v1438_v28, 6  ;;  %v17386_v34 = vadd.f32 %v17086_v9, %v1039_v32  ;;  %v13655_v35 = vpop.f32.mrb[63].mxu0  ;;  %13813 = vmatmul.mubr.msk.f32.gmra.mrb[168].mxu0 %vm498_vm4, %v468_v18 }
 0x171   : > { %v2175_v36 = vrot.slane %v1946_v31, 1  ;;  %13815 = vmatprep.mubr.msk.f32.mxu0 %vm16659_vm3, %v20648_v4 }
 0x172   : > { %2557 = vst.msk [vmem:[#allocation2 + $0xb8] sm:$0xff] %vm2533_vm5, %v2454_v30  ;;  %v1670_v38 = vsel %vm1615_vm6, %v1667_v24, %v1669_v33  ;;  %v1439_v39 = vmax.f32 %v17386_v34, 0.0 }
 0x173   : > { %v2176_v40 = vsel %vm2125_vm7, %v2173_v27, %v2175_v36  ;;  %v1947_v42 = vmax.f32 %v1434_v52, %v1670_v38  ;;  %v1044_v43 = vpop.f32.mrb[64].mxu0 }
 0x174   : > { %v2455_v41 = vmax.f32 %v1945_v19, %v2176_v40  ;;  %v17399_v44 = vadd.f32 %v17086_v9, %v1044_v43  ;;  %v13658_v45 = vpop.f32.mrb[65].mxu0  ;;  %13816 = vmatmul.mubr.msk.f32.gmra.mrb[170].mxu0 %vm498_vm4, %v469_v37 }
 0x175   : > { %v2177_v46 = vrot.slane %v1947_v42, 1  ;;  %13818 = vmatprep.mubr.msk.f32.mxu0 %vm16659_vm3, %v20648_v4 }
 0x176   : > { %2558 = vst.msk [vmem:[#allocation2 + $0xc0] sm:$0xff] %vm2533_vm5, %v2455_v41  ;;  %v1440_v50 = vmax.f32 %v17399_v44, 0.0 }
 0x177   : > { %v2178_v48 = vsel %vm2125_vm7, %v2175_v36, %v2177_v46  ;;  %v1049_v51 = vpop.f32.mrb[66].mxu0  ;;  %v17475_v46 = vld [vmem:[%s20636_s2] ss:$0 sm:$0xff] }
 0x178   : > { %v2456_v52 = vmax.f32 %v1946_v31, %v2178_v48  ;;  %v17409_v47 = vadd.f32 %v17086_v9, %v1049_v51  ;;  %v13661_v53 = vpop.f32.mrb[67].mxu0  ;;  %13819 = vmatmul.mubr.msk.f32.gmra.mrb[172].mxu0 %vm498_vm4, %v470_v49  ;;  %v477_v51 = vld [vmem:[%s16784_s24 + $0x2e8] sm:$0xff] }
 0x179   : > { %13821 = vmatprep.mubr.msk.f32.mxu0 %vm16659_vm3, %v20648_v4 }
 0x17a   : > { %2559 = vst.msk [vmem:[#allocation2 + $0xc8] sm:$0xff] %vm2533_vm5, %v2456_v52  ;;  %v1441_v55 = vmax.f32 %v17409_v47, 0.0 }
 0x17b   : > { %v1054_v56 = vpop.f32.mrb[68].mxu0 }
 0x17c   : > { %v1675_v57 = vrot.slane %v1441_v55, 6  ;;  %v17420_v58 = vadd.f32 %v17086_v9, %v1054_v56  ;;  %v13664_v59 = vpop.f32.mrb[69].mxu0  ;;  %13822 = vmatmul.mubr.msk.f32.gmra.mrb[174].mxu0 %vm498_vm4, %v471_v54 }
 0x17d   : > { %13824 = vmatprep.mubr.msk.f32.mxu0 %vm16659_vm3, %v20648_v4  ;;  %v2690_v62 = vld [vmem:[#allocation2 + $0xb4] ss:$2 sm:$0xff] }
 0x17e   : > { %v1442_v60 = vmax.f32 %v17420_v58, 0.0  ;;  %2693 = vst.msk [vmem:[#allocation3 + $0x41] sm:$0xff] %vm2533_vm5, %v2690_v62  ;;  %v478_v62 = vld [vmem:[%s16784_s24 + $0x2f0] sm:$0xff] }
 0x17f   : > { %v1059_v63 = vpop.f32.mrb[70].mxu0 }
 0x180   : > { %v1677_v0 = vrot.slane %v1442_v60, 6  ;;  %v1060_v1 = vadd.f32 %v17086_v9, %v1059_v63  ;;  %v13667_v5 = vpop.f32.mrb[71].mxu0  ;;  %13825 = vmatmul.mubr.msk.f32.gmra.mrb[176].mxu0 %vm498_vm4, %v472_v61 }
 0x181   : > { %13827 = vmatprep.mubr.msk.f32.mxu0 %vm16659_vm3, %v20648_v4  ;;  %v2692_v7 = vld [vmem:[#allocation2 + $0xc4] ss:$2 sm:$0x3f] }
 0x182   : > { %v1678_v3 = vsel %vm1615_vm6, %v1675_v57, %v1677_v0  ;;  %v1443_v8 = vmax.f32 %v1060_v1, 0.0  ;;  %2694 = vst.msk [vmem:[#allocation3 + $0x49] sm:$0x3f] %vm2675_vm8, %v2692_v7  ;;  %v479_v7 = vld [vmem:[%s16784_s24 + $0x2f8] sm:$0xff] }
 0x183   : > { %v1951_v10 = vmax.f32 %v1438_v28, %v1678_v3  ;;  %v1064_v12 = vpop.f32.mrb[72].mxu0  ;;  %v475_v28 = vld [vmem:[%s16784_s24 + $0x2d8] sm:$0xff] }
 0x184   : > { %v1679_v13 = vrot.slane %v1443_v8, 6  ;;  %v1065_v14 = vadd.f32 %v17086_v9, %v1064_v12  ;;  %v13670_v11 = vpop.f32.mrb[73].mxu0  ;;  %13828 = vmatmul.mubr.msk.f32.gmra.mrb[178].mxu0 %vm498_vm4, %v473_v6 }
 0x185   : > { %v2185_v15 = vrot.slane %v1951_v10, 1  ;;  %v4790_v16 = vld [vmem:[#allocation3 + $0x40] sm:$0xff]  ;;  %13830 = vmatprep.mubr.msk.f32.mxu0 %vm16659_vm3, %v20648_v4  ;;  %v480_v11 = vld [vmem:[%s16784_s24 + $0x300] sm:$0xff] }
 0x186   : > { %v1680_v19 = vsel %vm1615_vm6, %v1677_v0, %v1679_v13  ;;  %v1444_v21 = vmax.f32 %v1065_v14, 0.0  ;;  %14161 = vmatprep.mubr.msk.f32.mxu1 %vm2533_vm5, %v4790_v16 }
 0x187   : > { %v1952_v22 = vmax.f32 %v1439_v39, %v1680_v19  ;;  %v1069_v24 = vpop.f32.mrb[74].mxu0  ;;  %v476_v39 = vld [vmem:[%s16784_s24 + $0x2e0] sm:$0xff] }
 0x188   : > { %v1681_v25 = vrot.slane %v1444_v21, 6  ;;  %v17445_v26 = vadd.f32 %v17086_v9, %v1069_v24  ;;  %v13673_v27 = vpop.f32.mrb[75].mxu0  ;;  %13831 = vmatmul.mubr.msk.f32.gmra.mrb[180].mxu0 %vm498_vm4, %v474_v17 }
 0x189   : > { %v2187_v18 = vrot.slane %v1952_v22, 1  ;;  %v4791_v23 = vld [vmem:[#allocation3 + $0x48] sm:$0xff]  ;;  %13833 = vmatprep.mubr.msk.f32.mxu0 %vm16659_vm3, %v20648_v4 }
 0x18a   : > { %v1682_v29 = vsel %vm1615_vm6, %v1679_v13, %v1681_v25  ;;  %v1445_v31 = vmax.f32 %v17445_v26, 0.0  ;;  %14162 = vmatmul.mubr.msk.f32.vlgmr.msra.gmra.mrb[0].mxu1 %vm2533_vm5, %v4791_v23 }
 0x18b   : > { %v2188_v32 = vsel %vm2125_vm7, %v2185_v15, %v2187_v18  ;;  %v1953_v30 = vmax.f32 %v1440_v50, %v1682_v29  ;;  %v1074_v33 = vpop.f32.mrb[76].mxu0 }
 0x18c   : > { %v2461_v34 = vmax.f32 %v1951_v10, %v2188_v32  ;;  %v1683_v35 = vrot.slane %v1445_v31, 6  ;;  %v17458_v36 = vadd.f32 %v17086_v9, %v1074_v33  ;;  %v13676_v37 = vpop.f32.mrb[77].mxu0  ;;  %13834 = vmatmul.mubr.msk.f32.gmra.mrb[182].mxu0 %vm498_vm4, %v475_v28 }
 0x18d   : > { %v2189_v38 = vrot.slane %v1953_v30, 1  ;;  %13836 = vmatprep.mubr.msk.f32.mxu0 %vm16659_vm3, %v20648_v4 }
 0x18e   : > { %2564 = vst.msk [vmem:[#allocation2 + $0xf0] sm:$0xff] %vm2533_vm5, %v2461_v34  ;;  %v1684_v40 = vsel %vm1615_vm6, %v1681_v25, %v1683_v35  ;;  %v1446_v42 = vmax.f32 %v17458_v36, 0.0 }
 0x18f   : > { %v2190_v43 = vsel %vm2125_vm7, %v2187_v18, %v2189_v38  ;;  %v1954_v9 = vmax.f32 %v1441_v55, %v1684_v40  ;;  %v1079_v41 = vpop.f32.mrb[78].mxu0  ;;  %v481_v18 = vld [vmem:[%s16784_s24 + $0x308] sm:$0xff] }
 0x190   : > { %v2462_v44 = vmax.f32 %v1952_v22, %v2190_v43  ;;  %v1685_v45 = vrot.slane %v1446_v42, 6  ;;  %v17478_v49 = vadd.f32 %v17475_v46, %v1079_v41  ;;  %v13679_v50 = vpop.f32.mrb[79].mxu0  ;;  %13837 = vmatmul.mubr.msk.f32.gmra.mrb[184].mxu0 %vm498_vm4, %v476_v39 }
 0x191   : > { %v2191_v48 = vrot.slane %v1954_v9, 1  ;;  %13839 = vmatprep.mubr.msk.f32.mxu0 %vm16659_vm3, %v20648_v4  ;;  %v483_v50 = vld [vmem:[%s16784_s24 + $0x318] sm:$0xff] }
 0x192   : > { %2565 = vst.msk [vmem:[#allocation2 + $0xf8] sm:$0xff] %vm2533_vm5, %v2462_v44  ;;  %v1686_v52 = vsel %vm1615_vm6, %v1683_v35, %v1685_v45  ;;  %v1447_v47 = vmax.f32 %v17478_v49, 0.0  ;;  %v482_v35 = vld [vmem:[%s16784_s24 + $0x310] sm:$0xff] }
 0x193   : > { %v2192_v53 = vsel %vm2125_vm7, %v2189_v38, %v2191_v48  ;;  %v1955_v54 = vmax.f32 %v1442_v60, %v1686_v52  ;;  %v1084_v55 = vpop.f32.mrb[80].mxu0 }
 0x194   : > { %v2463_v56 = vmax.f32 %v1953_v30, %v2192_v53  ;;  %v17491_v57 = vadd.f32 %v17475_v46, %v1084_v55  ;;  %v13682_v59 = vpop.f32.mrb[81].mxu0  ;;  %13840 = vmatmul.mubr.msk.f32.gmra.mrb[186].mxu0 %vm498_vm4, %v477_v51 }
 0x195   : > { %v2193_v61 = vrot.slane %v1955_v54, 1  ;;  %13842 = vmatprep.mubr.msk.f32.mxu0 %vm16659_vm3, %v20648_v4 }
 0x196   : > { %2566 = vst.msk [vmem:[#allocation2 + $0x100] sm:$0xff] %vm2533_vm5, %v2463_v56  ;;  %v1448_v63 = vmax.f32 %v17491_v57, 0.0 }
 0x197   : > { %v2194_v58 = vsel %vm2125_vm7, %v2191_v48, %v2193_v61  ;;  %v1089_v60 = vpop.f32.mrb[82].mxu0  ;;  %v484_v61 = vld [vmem:[%s16784_s24 + $0x320] sm:$0xff] }
 0x198   : > { %v2464_v0 = vmax.f32 %v1954_v9, %v2194_v58  ;;  %v1689_v1 = vrot.slane %v1448_v63, 6  ;;  %v17503_v5 = vadd.f32 %v17475_v46, %v1089_v60  ;;  %v13685_v6 = vpop.f32.mrb[83].mxu0  ;;  %13843 = vmatmul.mubr.msk.f32.gmra.mrb[188].mxu0 %vm498_vm4, %v478_v62 }
 0x199   : > { %13845 = vmatprep.mubr.msk.f32.mxu0 %vm16659_vm3, %v20648_v4  ;;  %v2696_v3 = vld [vmem:[#allocation2 + $0xf0] ss:$2 sm:$0xff] }
 0x19a   : > { %2567 = vst.msk [vmem:[#allocation2 + $0x108] sm:$0xff] %vm2533_vm5, %v2464_v0  ;;  %v1449_v8 = vmax.f32 %v17503_v5, 0.0  ;;  %2699 = vst.msk [vmem:[#allocation3 + $0x51] sm:$0xff] %vm2533_vm5, %v2696_v3  ;;  %v485_v3 = vld [vmem:[%s16784_s24 + $0x328] sm:$0xff] }
 0x19b   : > { %v1094_v10 = vpop.f32.mrb[84].mxu0 }
 0x19c   : > { %v1691_v12 = vrot.slane %v1449_v8, 6  ;;  %v1095_v13 = vadd.f32 %v17475_v46, %v1094_v10  ;;  %v13688_v14 = vpop.f32.mrb[85].mxu0  ;;  %13846 = vmatmul.mubr.msk.f32.gmra.mrb[190].mxu0 %vm498_vm4, %v479_v7 }
 0x19d   : > { %13848 = vmatprep.mubr.msk.f32.mxu0 %vm16659_vm3, %v20648_v4 }
 0x19e   : > { %v1692_v15 = vsel %vm1615_vm6, %v1689_v1, %v1691_v12  ;;  %v1450_v16 = vmax.f32 %v1095_v13, 0.0 }
 0x19f   : > { %v1958_v17 = vmax.f32 %v1445_v31, %v1692_v15  ;;  %v1099_v19 = vpop.f32.mrb[86].mxu0 }
 0x1a0   : > { %v1693_v21 = vrot.slane %v1450_v16, 6  ;;  %v1100_v22 = vadd.f32 %v17475_v46, %v1099_v19  ;;  %v13691_v24 = vpop.f32.mrb[87].mxu0  ;;  %13849 = vmatmul.mubr.msk.f32.gmra.mrb[192].mxu0 %vm498_vm4, %v480_v11  ;;  %v486_v11 = vld [vmem:[%s16784_s24 + $0x330] sm:$0xff] }
 0x1a1   : > { %v2199_v25 = vrot.slane %v1958_v17, 1  ;;  %v4792_v27 = vld [vmem:[#allocation3 + $0x50] sm:$0xff]  ;;  %13851 = vmatprep.mubr.msk.f32.mxu0 %vm16659_vm3, %v20648_v4 }
 0x1a2   : > { %v2698_v23 = vld [vmem:[#allocation2 + $0x100] ss:$2 sm:$0x3f]  ;;  %v1694_v28 = vsel %vm1615_vm6, %v1691_v12, %v1693_v21  ;;  %v1451_v29 = vmax.f32 %v1100_v22, 0.0  ;;  %14164 = vmatprep.mubr.msk.f32.mxu1 %vm2533_vm5, %v4792_v27  ;;  %v487_v22 = vld [vmem:[%s16784_s24 + $0x338] sm:$0xff] }
 0x1a3   : > { %2700 = vst.msk [vmem:[#allocation3 + $0x59] sm:$0x3f] %vm2675_vm8, %v2698_v23  ;;  %v1959_v26 = vmax.f32 %v1446_v42, %v1694_v28  ;;  %v1104_v31 = vpop.f32.mrb[88].mxu0 }
 0x1a4   : > { %v1695_v32 = vrot.slane %v1451_v29, 6  ;;  %v1105_v30 = vadd.f32 %v17475_v46, %v1104_v31  ;;  %v13694_v33 = vpop.f32.mrb[89].mxu0  ;;  %13852 = vmatmul.mubr.msk.f32.gmra.mrb[194].mxu0 %vm498_vm4, %v481_v18  ;;  %v488_v29 = vld [vmem:[%s16784_s24 + $0x340] sm:$0xff] }
 0x1a5   : > { %v2201_v34 = vrot.slane %v1959_v26, 1  ;;  %13854 = vmatprep.mubr.msk.f32.mxu0 %vm16659_vm3, %v20648_v4 }
 0x1a6   : > { %v1696_v37 = vsel %vm1615_vm6, %v1693_v21, %v1695_v32  ;;  %v1452_v38 = vmax.f32 %v1105_v30, 0.0  ;;  %v2785_v30 = vld [vmem:[#allocation3 + $0x1] sm:$0xff] }
 0x1a7   : > { %v2202_v39 = vsel %vm2125_vm7, %v2199_v25, %v2201_v34  ;;  %v1960_v36 = vmax.f32 %v1447_v47, %v1696_v37  ;;  %v1109_v40 = vpop.f32.mrb[90].mxu0 }
 0x1a8   : > { %v2468_v42 = vmax.f32 %v1958_v17, %v2202_v39  ;;  %v1697_v43 = vrot.slane %v1452_v38, 6  ;;  %v17542_v9 = vadd.f32 %v17475_v46, %v1109_v40  ;;  %v13697_v41 = vpop.f32.mrb[91].mxu0  ;;  %13855 = vmatmul.mubr.msk.f32.gmra.mrb[196].mxu0 %vm498_vm4, %v482_v35  ;;  %v2786_v40 = vld [vmem:[#allocation3 + $0x9] sm:$0xff] }
 0x1a9   : > { %v2203_v44 = vrot.slane %v1960_v36, 1  ;;  %13857 = vmatprep.mubr.msk.f32.mxu0 %vm16659_vm3, %v20648_v4 }
 0x1aa   : > { %v4793_v45 = vld [vmem:[#allocation3 + $0x58] sm:$0xff]  ;;  %2571 = vst.msk [vmem:[#allocation2 + $0x128] sm:$0xff] %vm2533_vm5, %v2468_v42  ;;  %v1698_v49 = vsel %vm1615_vm6, %v1695_v32, %v1697_v43  ;;  %v1453_v48 = vmax.f32 %v17542_v9, 0.0 }
 0x1ab   : > { %14165 = vmatmul.mubr.msk.f32.gmra.mrb[2].mxu1 %vm2533_vm5, %v4793_v45  ;;  %v2204_v51 = vsel %vm2125_vm7, %v2201_v34, %v2203_v44  ;;  %v1961_v52 = vmax.f32 %v1448_v63, %v1698_v49  ;;  %v1114_v47 = vpop.f32.mrb[92].mxu0  ;;  %v2787_v49 = vld [vmem:[#allocation3 + $0x11] sm:$0xff] }
 0x1ac   : > { %v2469_v53 = vmax.f32 %v1959_v26, %v2204_v51  ;;  %v1699_v54 = vrot.slane %v1453_v48, 6  ;;  %v17556_v55 = vadd.f32 %v17475_v46, %v1114_v47  ;;  %v13700_v56 = vpop.f32.mrb[93].mxu0  ;;  %13858 = vmatmul.mubr.msk.f32.gmra.mrb[198].mxu0 %vm498_vm4, %v483_v50 }
 0x1ad   : > { %v2205_v59 = vrot.slane %v1961_v52, 1  ;;  %13860 = vmatprep.mubr.msk.f32.mxu0 %vm16659_vm3, %v20648_v4  ;;  %v2788_v56 = vld [vmem:[#allocation3 + $0x19] sm:$0xff] }
 0x1ae   : > { %2572 = vst.msk [vmem:[#allocation2 + $0x130] sm:$0xff] %vm2533_vm5, %v2469_v53  ;;  %v1700_v57 = vsel %vm1615_vm6, %v1697_v43, %v1699_v54  ;;  %v1454_v62 = vmax.f32 %v17556_v55, 0.0 }
 0x1af   : > { %v2206_v63 = vsel %vm2125_vm7, %v2203_v44, %v2205_v59  ;;  %v1962_v58 = vmax.f32 %v1449_v8, %v1700_v57  ;;  %v1119_v60 = vpop.f32.mrb[94].mxu0 }
 0x1b0   : > { %v2470_v0 = vmax.f32 %v1960_v36, %v2206_v63  ;;  %v17569_v1 = vadd.f32 %v17475_v46, %v1119_v60  ;;  %v13703_v6 = vpop.f32.mrb[95].mxu0  ;;  %13861 = vmatmul.mubr.msk.f32.gmra.mrb[200].mxu0 %vm498_vm4, %v484_v61  ;;  %v2789_v63 = vld [vmem:[#allocation3 + $0x21] sm:$0xff] }
 0x1b1   : > { %v2207_v7 = vrot.slane %v1962_v58, 1  ;;  %13863 = vmatprep.mubr.msk.f32.mxu0 %vm16659_vm3, %v20648_v4 }
 0x1b2   : > { %2573 = vst.msk [vmem:[#allocation2 + $0x138] sm:$0xff] %vm2533_vm5, %v2470_v0  ;;  %v1455_v10 = vmax.f32 %v17569_v1, 0.0 }
 0x1b3   : > { %v2208_v5 = vsel %vm2125_vm7, %v2205_v59, %v2207_v7  ;;  %v1124_v8 = vpop.f32.mrb[96].mxu0 }
 0x1b4   : > { %v2471_v12 = vmax.f32 %v1961_v52, %v2208_v5  ;;  %v17579_v13 = vadd.f32 %v17475_v46, %v1124_v8  ;;  %v13706_v14 = vpop.f32.mrb[97].mxu0  ;;  %13864 = vmatmul.mubr.msk.f32.gmra.mrb[202].mxu0 %vm498_vm4, %v485_v3  ;;  %v2790_v3 = vld [vmem:[#allocation3 + $0x29] sm:$0xff] }
 0x1b5   : > { %13866 = vmatprep.mubr.msk.f32.mxu0 %vm16659_vm3, %v20648_v4  ;;  %v2791_v14 = vld [vmem:[#allocation3 + $0x31] sm:$0xff] }
 0x1b6   : > { %2574 = vst.msk [vmem:[#allocation2 + $0x140] sm:$0xff] %vm2533_vm5, %v2471_v12  ;;  %v1456_v15 = vmax.f32 %v17579_v13, 0.0 }
 0x1b7   : > { %v1129_v16 = vpop.f32.mrb[98].mxu0 }
 0x1b8   : > { %v1705_v17 = vrot.slane %v1456_v15, 6  ;;  %v17590_v19 = vadd.f32 %v17475_v46, %v1129_v16  ;;  %v13709_v21 = vpop.f32.mrb[99].mxu0  ;;  %13867 = vmatmul.mubr.msk.f32.gmra.mrb[204].mxu0 %vm498_vm4, %v486_v11 }
 0x1b9   : > { %13869 = vmatprep.mubr.msk.f32.mxu0 %vm16659_vm3, %v20648_v4  ;;  %v2702_v24 = vld [vmem:[#allocation2 + $0x12c] ss:$2 sm:$0xff] }
 0x1ba   : > { %v1457_v25 = vmax.f32 %v17590_v19, 0.0  ;;  %2705 = vst.msk [vmem:[#allocation3 + $0x61] sm:$0xff] %vm2533_vm5, %v2702_v24 }
 0x1bb   : > { %v1134_v27 = vpop.f32.mrb[100].mxu0 }
 0x1bc   : > { %v1707_v18 = vrot.slane %v1457_v25, 6  ;;  %v1135_v23 = vadd.f32 %v17475_v46, %v1134_v27  ;;  %v13712_v28 = vpop.f32.mrb[101].mxu0  ;;  %13870 = vmatmul.mubr.msk.f32.gmra.mrb[206].mxu0 %vm498_vm4, %v487_v22  ;;  %v2792_v22 = vld [vmem:[#allocation3 + $0x39] sm:$0xff] }
 0x1bd   : > { %13872 = vmatprep.mubr.msk.f32.mxu0 %vm16659_vm3, %v20648_v4  ;;  %v2704_v26 = vld [vmem:[#allocation2 + $0x13c] ss:$2 sm:$0x3f] }
 0x1be   : > { %v1708_v31 = vsel %vm1615_vm6, %v1705_v17, %v1707_v18  ;;  %v1458_v32 = vmax.f32 %v1135_v23, 0.0  ;;  %2706 = vst.msk [vmem:[#allocation3 + $0x69] sm:$0x3f] %vm2675_vm8, %v2704_v26  ;;  %v2793_v23 = vld [vmem:[#allocation3 + $0x41] sm:$0xff]  ;;  %v2794_v26 = vld [vmem:[#allocation3 + $0x49] sm:$0xff] }
 0x1bf   : > { %v1966_v33 = vmax.f32 %v1453_v48, %v1708_v31  ;;  %v1139_v34 = vpop.f32.mrb[102].mxu0 }
 0x1c0   : > { %v1709_v35 = vrot.slane %v1458_v32, 6  ;;  %v1140_v37 = vadd.f32 %v17475_v46, %v1139_v34  ;;  %v13715_v38 = vpop.f32.mrb[103].mxu0  ;;  %13873 = vmatmul.mubr.msk.f32.gmra.mrb[208].mxu0 %vm498_vm4, %v488_v29  ;;  %v2795_v34 = vld [vmem:[#allocation3 + $0x51] sm:$0xff] }
 0x1c1   : > { %v2215_v39 = vrot.slane %v1966_v33, 1  ;;  %v4794_v36 = vld [vmem:[#allocation3 + $0x60] sm:$0xff]  ;;  %13879 = vmatprep.mubr.msk.f32.mxu0 %vm2533_vm5, %v2785_v30 }
 0x1c2   : > { %v1710_v42 = vsel %vm1615_vm6, %v1707_v18, %v1709_v35  ;;  %v1459_v43 = vmax.f32 %v1140_v37, 0.0  ;;  %14167 = vmatprep.mubr.msk.f32.mxu1 %vm2533_vm5, %v4794_v36 }
 0x1c3   : > { %v1967_v9 = vmax.f32 %v1454_v62, %v1710_v42  ;;  %v1144_v41 = vpop.f32.mrb[104].mxu0 }
 0x1c4   : > { %v1711_v44 = vrot.slane %v1459_v43, 6  ;;  %v17613_v45 = vadd.f32 %v17475_v46, %v1144_v41  ;;  %v13718_v50 = vpop.f32.mrb[105].mxu0  ;;  %13880 = vmatmul.mubr.msk.f32.vlgmr.msra.gmra.mrb[210].mxu0 %vm2533_vm5, %v2786_v40  ;;  %v2797_v43 = vld [vmem:[#allocation3 + $0x61] sm:$0xff] }
 0x1c5   : > { %v2217_v48 = vrot.slane %v1967_v9, 1  ;;  %13882 = vmatprep.mubr.msk.f32.mxu0 %vm2533_vm5, %v2787_v49  ;;  %v4795_v51 = vld [vmem:[#allocation3 + $0x68] sm:$0xff] }
 0x1c6   : > { %v1712_v52 = vsel %vm1615_vm6, %v1709_v35, %v1711_v44  ;;  %v1460_v47 = vmax.f32 %v17613_v45, 0.0  ;;  %14168 = vmatmul.mubr.msk.f32.gmra.mrb[4].mxu1 %vm2533_vm5, %v4795_v51  ;;  %v2798_v49 = vld [vmem:[#allocation3 + $0x69] sm:$0xff] }
 0x1c7   : > { %v2218_v53 = vsel %vm2125_vm7, %v2215_v39, %v2217_v48  ;;  %v1968_v54 = vmax.f32 %v1455_v10, %v1712_v52  ;;  %v1149_v55 = vpop.f32.mrb[106].mxu0  ;;  %v2796_v39 = vld [vmem:[#allocation3 + $0x59] sm:$0xff] }
 0x1c8   : > { %v2476_v59 = vmax.f32 %v1966_v33, %v2218_v53  ;;  %v1713_v61 = vrot.slane %v1460_v47, 6  ;;  %v17624_v57 = vadd.f32 %v17475_v46, %v1149_v55  ;;  %v13721_v62 = vpop.f32.mrb[107].mxu0  ;;  %13883 = vmatmul.mubr.msk.f32.gmra.mrb[212].mxu0 %vm2533_vm5, %v2788_v56 }
 0x1c9   : > { %v2219_v58 = vrot.slane %v1968_v54, 1  ;;  %13885 = vmatprep.mubr.msk.f32.mxu0 %vm2533_vm5, %v2789_v63 }
 0x1ca   : > { %2579 = vst.msk [vmem:[#allocation2 + $0x168] sm:$0xff] %vm2533_vm5, %v2476_v59  ;;  %v1714_v60 = vsel %vm1615_vm6, %v1711_v44, %v1713_v61  ;;  %v1461_v0 = vmax.f32 %v17624_v57, 0.0 }
 0x1cb   : > { %v2220_v1 = vsel %vm2125_vm7, %v2217_v48, %v2219_v58  ;;  %v1969_v6 = vmax.f32 %v1456_v15, %v1714_v60  ;;  %v1154_v7 = vpop.f32.mrb[108].mxu0 }
 0x1cc   : > { %v2477_v10 = vmax.f32 %v1967_v9, %v2220_v1  ;;  %v1715_v5 = vrot.slane %v1461_v0, 6  ;;  %v17637_v8 = vadd.f32 %v17475_v46, %v1154_v7  ;;  %v13724_v12 = vpop.f32.mrb[109].mxu0  ;;  %13886 = vmatmul.mubr.msk.f32.gmra.mrb[214].mxu0 %vm2533_vm5, %v2790_v3 }
 0x1cd   : > { %v2221_v11 = vrot.slane %v1969_v6, 1  ;;  %13888 = vmatprep.mubr.msk.f32.mxu0 %vm2533_vm5, %v2791_v14 }
 0x1ce   : > { %2580 = vst.msk [vmem:[#allocation2 + $0x170] sm:$0xff] %vm2533_vm5, %v2477_v10  ;;  %v1716_v13 = vsel %vm1615_vm6, %v1713_v61, %v1715_v5  ;;  %v1462_v15 = vmax.f32 %v17637_v8, 0.0 }
 0x1cf   : > { %v2222_v16 = vsel %vm2125_vm7, %v2219_v58, %v2221_v11  ;;  %v1970_v17 = vmax.f32 %v1457_v25, %v1716_v13  ;;  %v1159_v21 = vpop.f32.mrb[110].mxu0 }
 0x1d0   : > { %v2478_v24 = vmax.f32 %v1968_v54, %v2222_v16  ;;  %v17648_v27 = vadd.f32 %v17475_v46, %v1159_v21  ;;  %v13727_v18 = vpop.f32.mrb[111].mxu0  ;;  %13889 = vmatmul.mubr.msk.f32.gmra.mrb[216].mxu0 %vm2533_vm5, %v2792_v22 }
 0x1d1   : > { %v2223_v28 = vrot.slane %v1970_v17, 1  ;;  %13891 = vmatprep.mubr.msk.f32.mxu0 %vm2533_vm5, %v2793_v23 }
 0x1d2   : > { %2581 = vst.msk [vmem:[#allocation2 + $0x178] sm:$0xff] %vm2533_vm5, %v2478_v24  ;;  %v1463_v29 = vmax.f32 %v17648_v27, 0.0 }
 0x1d3   : > { %v2224_v19 = vsel %vm2125_vm7, %v2221_v11, %v2223_v28  ;;  %v1164_v25 = vpop.f32.mrb[112].mxu0 }
 0x1d4   : > { %v2479_v31 = vmax.f32 %v1969_v6, %v2224_v19  ;;  %v1719_v32 = vrot.slane %v1463_v29, 6  ;;  %v17658_v30 = vadd.f32 %v17475_v46, %v1164_v25  ;;  %v13730_v33 = vpop.f32.mrb[113].mxu0  ;;  %13892 = vmatmul.mubr.msk.f32.gmra.mrb[218].mxu0 %vm2533_vm5, %v2794_v26 }
 0x1d5   : > { %13894 = vmatprep.mubr.msk.f32.mxu0 %vm2533_vm5, %v2795_v34  ;;  %v2708_v35 = vld [vmem:[#allocation2 + $0x168] ss:$2 sm:$0xff] }
 0x1d6   : > { %2582 = vst.msk [vmem:[#allocation2 + $0x180] sm:$0xff] %vm2533_vm5, %v2479_v31  ;;  %v1464_v37 = vmax.f32 %v17658_v30, 0.0  ;;  %2711 = vst.msk [vmem:[#allocation3 + $0x71] sm:$0xff] %vm2533_vm5, %v2708_v35 }
 0x1d7   : > { %v1169_v38 = vpop.f32.mrb[114].mxu0 }
 0x1d8   : > { %v1721_v36 = vrot.slane %v1464_v37, 6  ;;  %v1170_v40 = vadd.f32 %v17475_v46, %v1169_v38  ;;  %v13733_v42 = vpop.f32.mrb[115].mxu0  ;;  %13895 = vmatmul.mubr.msk.f32.gmra.mrb[220].mxu0 %vm2533_vm5, %v2796_v39 }
 0x1d9   : > { %13897 = vmatprep.mubr.msk.f32.mxu0 %vm2533_vm5, %v2797_v43  ;;  %v2784_v43 = vld [vmem:[%s20637_s3 + $0x8] sm:$0xff] }
 0x1da   : > { %v1722_v9 = vsel %vm1615_vm6, %v1719_v32, %v1721_v36  ;;  %v1465_v41 = vmax.f32 %v1170_v40, 0.0 }
 0x1db   : > { %v1973_v44 = vmax.f32 %v1460_v47, %v1722_v9  ;;  %v1174_v50 = vpop.f32.mrb[116].mxu0 }
 0x1dc   : > { %v1723_v48 = vrot.slane %v1465_v41, 6  ;;  %v1175_v51 = vadd.f32 %v17475_v46, %v1174_v50  ;;  %v13736_v52 = vpop.f32.mrb[117].mxu0  ;;  %13898 = vmatmul.mubr.msk.f32.gmra.mrb[222].mxu0 %vm2533_vm5, %v2798_v49 }
 0x1dd   : > { %v2229_v53 = vrot.slane %v1973_v44, 1  ;;  %v2799_v54 = vld [vmem:[#allocation3 + $0x71] sm:$0xff] }
 0x1de   : > { %v4796_v55 = vld [vmem:[#allocation3 + $0x70] sm:$0xff]  ;;  %v1724_v59 = vsel %vm1615_vm6, %v1721_v36, %v1723_v48  ;;  %v1466_v61 = vmax.f32 %v1175_v51, 0.0  ;;  %13900 = vmatprep.mubr.msk.f32.mxu0 %vm2533_vm5, %v2799_v54 }
 0x1df   : > { %v2710_v56 = vld [vmem:[#allocation2 + $0x178] ss:$2 sm:$0x3f]  ;;  %14170 = vmatprep.mubr.msk.f32.mxu1 %vm2533_vm5, %v4796_v55  ;;  %v1974_v45 = vmax.f32 %v1461_v0, %v1724_v59  ;;  %v1179_v47 = vpop.f32.mrb[118].mxu0 }
 0x1e0   : > { %2712 = vst.msk [vmem:[#allocation3 + $0x79] sm:$0x3f] %vm2675_vm8, %v2710_v56  ;;  %v1725_v62 = vrot.slane %v1466_v61, 6  ;;  %v1180_v63 = vadd.f32 %v17475_v46, %v1179_v47  ;;  %v13739_v58 = vpop.f32.mrb[119].mxu0 }
 0x1e1   : > { %v2231_v60 = vrot.slane %v1974_v45, 1 }
 0x1e2   : > { %v1726_v1 = vsel %vm1615_vm6, %v1723_v48, %v1725_v62  ;;  %v1467_v6 = vmax.f32 %v1180_v63, 0.0 }
 0x1e3   : > { %v2232_v7 = vsel %vm2125_vm7, %v2229_v53, %v2231_v60  ;;  %v1975_v3 = vmax.f32 %v1462_v15, %v1726_v1  ;;  %v1184_v10 = vpop.f32.mrb[120].mxu0 }
 0x1e4   : > { %v2483_v5 = vmax.f32 %v1973_v44, %v2232_v7  ;;  %v1727_v12 = vrot.slane %v1467_v6, 6  ;;  %v1185_v57 = vadd.f32 %v17475_v46, %v1184_v10  ;;  %v13742_v0 = vpop.f32.mrb[121].mxu0 }
 0x1e5   : > { %v2233_v14 = vrot.slane %v1975_v3, 1 }
 0x1e6   : > { %2586 = vst.msk [vmem:[#allocation2 + $0x1a0] sm:$0xff] %vm2533_vm5, %v2483_v5  ;;  %v1728_v16 = vsel %vm1615_vm6, %v1725_v62, %v1727_v12  ;;  %v1468_v17 = vmax.f32 %v1185_v57, 0.0 }
 0x1e7   : > { %v2800_v11 = vld [vmem:[#allocation3 + $0x79] sm:$0xff]  ;;  %v2234_v8 = vsel %vm2125_vm7, %v2231_v60, %v2233_v14  ;;  %v1976_v15 = vmax.f32 %v1463_v29, %v1728_v16  ;;  %v1189_v21 = vpop.f32.mrb[122].mxu0 }
 0x1e8   : > { %v4797_v13 = vld [vmem:[#allocation3 + $0x78] sm:$0xff]  ;;  %13901 = vmatmul.mubr.msk.f32.gmra.mrb[224].mxu0 %vm2533_vm5, %v2800_v11  ;;  %v2484_v22 = vmax.f32 %v1974_v45, %v2234_v8  ;;  %v1729_v24 = vrot.slane %v1468_v17, 6  ;;  %v1190_v18 = vadd.f32 %v17475_v46, %v1189_v21  ;;  %v13745_v23 = vpop.f32.mrb[123].mxu0 }
 0x1e9   : > { %14171 = vmatmul.mubr.msk.f32.gmra.mrb[6].mxu1 %vm2533_vm5, %v4797_v13  ;;  %v2235_v28 = vrot.slane %v1976_v15, 1 }
 0x1ea   : > { %2587 = vst.msk [vmem:[#allocation2 + $0x1a8] sm:$0xff] %vm2533_vm5, %v2484_v22  ;;  %v1730_v19 = vsel %vm1615_vm6, %v1727_v12, %v1729_v24  ;;  %v1469_v25 = vmax.f32 %v1190_v18, 0.0 }
 0x1eb   : > { %v2236_v26 = vsel %vm2125_vm7, %v2233_v14, %v2235_v28  ;;  %v1977_v31 = vmax.f32 %v1464_v37, %v1730_v19  ;;  %v1194_v32 = vpop.f32.mrb[124].mxu0  ;;  %v2783_v37 = vld [vmem:[%s20637_s3] sm:$0xff] }
 0x1ec   : > { %v2485_v27 = vmax.f32 %v1975_v3, %v2236_v26  ;;  %v1195_v29 = vadd.f32 %v17475_v46, %v1194_v32  ;;  %v13748_v33 = vpop.f32.mrb[125].mxu0  ;;  %v15443_v41 = vpack.c.bf16 %v2784_v43, %v2783_v37 }
 0x1ed   : > { %v2237_v34 = vrot.slane %v1977_v31, 1 }
 0x1ee   : > { %2588 = vst.msk [vmem:[#allocation2 + $0x1b0] sm:$0xff] %vm2533_vm5, %v2485_v27  ;;  %v1470_v35 = vmax.f32 %v1195_v29, 0.0  ;;  %15444 = vmatprep.subr.bf16.mxu0 %v15443_v41 }
 0x1ef   : > { %v2238_v38 = vsel %vm2125_vm7, %v2235_v28, %v2237_v34  ;;  %v1199_v39 = vpop.f32.mrb[126].mxu0  ;;  %15446 = vmatpush3.bf16.msra.mxu0 %v15443_v41 }
 0x1f0   : > { %v2486_v36 = vmax.f32 %v1976_v15, %v2238_v38  ;;  %v1200_v40 = vadd.f32 %v17475_v46, %v1199_v39  ;;  %v13751_v42 = vpop.f32.mrb[127].mxu0 }
 0x1f2   : > { %2589 = vst.msk [vmem:[#allocation2 + $0x1b8] sm:$0xff] %vm2533_vm5, %v2486_v36  ;;  %v1471_v30 = vmax.f32 %v1200_v40, 0.0 }
 0x1f3   : > { %v1204_v9 = vpop.f32.mrb[128].mxu0 }
 0x1f4   : > { %v1735_v44 = vrot.slane %v1471_v30, 6  ;;  %v17712_v50 = vadd.f32 %v17475_v46, %v1204_v9  ;;  %v13754_v49 = vpop.f32.mrb[129].mxu0 }
 0x1f5   : > { %v2714_v48 = vld [vmem:[#allocation2 + $0x1a4] ss:$2 sm:$0xff] }
 0x1f6   : > { %v1472_v51 = vmax.f32 %v17712_v50, 0.0  ;;  %2717 = vst.msk [vmem:[#allocation3 + $0x81] sm:$0xff] %vm2533_vm5, %v2714_v48 }
 0x1f7   : > { %v1209_v52 = vpop.f32.mrb[130].mxu0 }
 0x1f8   : > { %v1737_v53 = vrot.slane %v1472_v51, 6  ;;  %v1210_v54 = vadd.f32 %v17475_v46, %v1209_v52  ;;  %v13757_v55 = vpop.f32.mrb[131].mxu0 }
 0x1f9   : > { %v2716_v56 = vld [vmem:[#allocation2 + $0x1b4] ss:$2 sm:$0x3f] }
 0x1fa   : > { %v1738_v59 = vsel %vm1615_vm6, %v1735_v44, %v1737_v53  ;;  %v1473_v61 = vmax.f32 %v1210_v54, 0.0  ;;  %2718 = vst.msk [vmem:[#allocation3 + $0x89] sm:$0x3f] %vm2675_vm8, %v2716_v56 }
 0x1fb   : > { %v1981_v45 = vmax.f32 %v1468_v17, %v1738_v59  ;;  %v1214_v47 = vpop.f32.mrb[132].mxu0 }
 0x1fc   : > { %v1739_v62 = vrot.slane %v1473_v61, 6  ;;  %v1215_v63 = vadd.f32 %v17475_v46, %v1214_v47  ;;  %v13760_v58 = vpop.f32.mrb[133].mxu0 }
 0x1fd   : > { %v2245_v60 = vrot.slane %v1981_v45, 1  ;;  %v2801_v1 = vld [vmem:[#allocation3 + $0x81] sm:$0xff] }
 0x1fe   : > { %v4798_v6 = vld [vmem:[#allocation3 + $0x80] sm:$0xff]  ;;  %v1740_v7 = vsel %vm1615_vm6, %v1737_v53, %v1739_v62  ;;  %v1474_v3 = vmax.f32 %v1215_v63, 0.0  ;;  %13903 = vmatprep.mubr.msk.f32.mxu0 %vm2533_vm5, %v2801_v1 }
 0x1ff   : > { %14173 = vmatprep.mubr.msk.f32.mxu1 %vm2533_vm5, %v4798_v6  ;;  %v1982_v10 = vmax.f32 %v1469_v25, %v1740_v7  ;;  %v1219_v5 = vpop.f32.mrb[134].mxu0 }
 0x200   : > { %v1741_v12 = vrot.slane %v1474_v3, 6  ;;  %v1220_v57 = vadd.f32 %v17475_v46, %v1219_v5  ;;  %v13763_v0 = vpop.f32.mrb[135].mxu0 }
 0x201   : > { %v2247_v14 = vrot.slane %v1982_v10, 1  ;;  %v2802_v11 = vld [vmem:[#allocation3 + $0x89] sm:$0xff] }
 0x202   : > { %v4799_v13 = vld [vmem:[#allocation3 + $0x88] sm:$0xff]  ;;  %v1742_v16 = vsel %vm1615_vm6, %v1739_v62, %v1741_v12  ;;  %v1475_v17 = vmax.f32 %v1220_v57, 0.0  ;;  %13904 = vmatmul.mubr.msk.f32.gmra.mrb[226].mxu0 %vm2533_vm5, %v2802_v11 }
 0x203   : > { %14174 = vmatmul.mubr.msk.f32.gmra.mrb[8].mxu1 %vm2533_vm5, %v4799_v13  ;;  %v2248_v8 = vsel %vm2125_vm7, %v2245_v60, %v2247_v14  ;;  %v1983_v15 = vmax.f32 %v1470_v35, %v1742_v16  ;;  %v1224_v21 = vpop.f32.mrb[136].mxu0 }
 0x204   : > { %v2491_v22 = vmax.f32 %v1981_v45, %v2248_v8  ;;  %v1743_v24 = vrot.slane %v1475_v17, 6  ;;  %v1225_v18 = vadd.f32 %v17475_v46, %v1224_v21  ;;  %v13766_v23 = vpop.f32.mrb[137].mxu0 }
 0x205   : > { %v2249_v28 = vrot.slane %v1983_v15, 1  ;;  %v17766_v23 = vld [vmem:[%s20636_s2] ss:$0 sm:$0xff] }
 0x206   : > { %2594 = vst.msk [vmem:[#allocation2 + $0x1e0] sm:$0xff] %vm2533_vm5, %v2491_v22  ;;  %v1744_v19 = vsel %vm1615_vm6, %v1741_v12, %v1743_v24  ;;  %v1476_v25 = vmax.f32 %v1225_v18, 0.0 }
 0x207   : > { %v2250_v26 = vsel %vm2125_vm7, %v2247_v14, %v2249_v28  ;;  %v1984_v31 = vmax.f32 %v1471_v30, %v1744_v19  ;;  %v1229_v32 = vpop.f32.mrb[138].mxu0 }
 0x208   : > { %v2492_v27 = vmax.f32 %v1982_v10, %v2250_v26  ;;  %v1745_v29 = vrot.slane %v1476_v25, 6  ;;  %v1230_v33 = vadd.f32 %v17475_v46, %v1229_v32  ;;  %v13769_v34 = vpop.f32.mrb[139].mxu0 }
 0x209   : > { %v2251_v35 = vrot.slane %v1984_v31, 1 }
 0x20a   : > { %2595 = vst.msk [vmem:[#allocation2 + $0x1e8] sm:$0xff] %vm2533_vm5, %v2492_v27  ;;  %v1746_v38 = vsel %vm1615_vm6, %v1743_v24, %v1745_v29  ;;  %v1477_v39 = vmax.f32 %v1230_v33, 0.0  ;;  %v11861_v27 = vld [vmem:[%s20637_s3 + $0x20] sm:$0xff]  ;;  %v11862_v29 = vld [vmem:[%s20637_s3 + $0x28] sm:$0xff] }
 0x20b   : > { %v2252_v36 = vsel %vm2125_vm7, %v2249_v28, %v2251_v35  ;;  %v1985_v40 = vmax.f32 %v1472_v51, %v1746_v38  ;;  %v1234_v42 = vpop.f32.mrb[140].mxu0  ;;  %v17783_v38 = vpack.c.bf16 %v11862_v29, %v11861_v27 }
 0x20c   : > { %v2493_v37 = vmax.f32 %v1983_v15, %v2252_v36  ;;  %v17737_v43 = vadd.f32 %v17475_v46, %v1234_v42  ;;  %v13772_v30 = vpop.f32.mrb[141].mxu0 }
 0x20d   : > { %v2253_v9 = vrot.slane %v1985_v40, 1  ;;  %15448 = vmatprep.subr.bf16.mxu0 %v17783_v38 }
 0x20e   : > { %2596 = vst.msk [vmem:[#allocation2 + $0x1f0] sm:$0xff] %vm2533_vm5, %v2493_v37  ;;  %v1478_v41 = vmax.f32 %v17737_v43, 0.0 }
 0x20f   : > { %v2254_v44 = vsel %vm2125_vm7, %v2251_v35, %v2253_v9  ;;  %v1239_v50 = vpop.f32.mrb[142].mxu0 }
 0x210   : > { %v2494_v49 = vmax.f32 %v1984_v31, %v2254_v44  ;;  %v1749_v48 = vrot.slane %v1478_v41, 6  ;;  %v17743_v52 = vadd.f32 %v17475_v46, %v1239_v50  ;;  %v13775_v51 = vpop.f32.mrb[143].mxu0 }
 0x211   : > { %v2720_v53 = vld [vmem:[#allocation2 + $0x1e0] ss:$2 sm:$0xff] }
 0x212   : > { %2597 = vst.msk [vmem:[#allocation2 + $0x1f8] sm:$0xff] %vm2533_vm5, %v2494_v49  ;;  %v1479_v54 = vmax.f32 %v17743_v52, 0.0  ;;  %2723 = vst.msk [vmem:[#allocation3 + $0x91] sm:$0xff] %vm2533_vm5, %v2720_v53 }
 0x213   : > { %v1244_v55 = vpop.f32.mrb[144].mxu0 }
 0x214   : > { %v1751_v56 = vrot.slane %v1479_v54, 6  ;;  %v1245_v59 = vadd.f32 %v17475_v46, %v1244_v55  ;;  %v13778_v61 = vpop.f32.mrb[145].mxu0 }
 0x216   : > { %v1752_v45 = vsel %vm1615_vm6, %v1749_v48, %v1751_v56  ;;  %v1480_v47 = vmax.f32 %v1245_v59, 0.0 }
 0x217   : > { %v1988_v62 = vmax.f32 %v1475_v17, %v1752_v45  ;;  %v1249_v63 = vpop.f32.mrb[146].mxu0 }
 0x218   : > { %v1753_v58 = vrot.slane %v1480_v47, 6  ;;  %v1250_v60 = vadd.f32 %v17475_v46, %v1249_v63  ;;  %v13781_v1 = vpop.f32.mrb[147].mxu0 }
 0x219   : > { %v2259_v6 = vrot.slane %v1988_v62, 1  ;;  %v2803_v7 = vld [vmem:[#allocation3 + $0x91] sm:$0xff]  ;;  %v2722_v10 = vld [vmem:[#allocation2 + $0x1f0] ss:$2 sm:$0x3f] }
 0x21a   : > { %v17753_v3 = vld [vmem:[#allocation3 + $0x90] sm:$0xff]  ;;  %v1754_v5 = vsel %vm1615_vm6, %v1751_v56, %v1753_v58  ;;  %v1481_v12 = vmax.f32 %v1250_v60, 0.0  ;;  %13906 = vmatprep.mubr.msk.f32.mxu0 %vm2533_vm5, %v2803_v7  ;;  %2724 = vst.msk [vmem:[#allocation3 + $0x99] sm:$0x3f] %vm2675_vm8, %v2722_v10 }
 0x21b   : > { %14176 = vmatprep.mubr.msk.f32.mxu1 %vm2533_vm5, %v17753_v3  ;;  %v1989_v57 = vmax.f32 %v1476_v25, %v1754_v5  ;;  %v1254_v0 = vpop.f32.mrb[148].mxu0 }
 0x21c   : > { %v1755_v14 = vrot.slane %v1481_v12, 6  ;;  %v1255_v11 = vadd.f32 %v17475_v46, %v1254_v0  ;;  %v13784_v13 = vpop.f32.mrb[149].mxu0  ;;  %v12011_v12 = vld [vmem:[%s20637_s3 + $0x70] sm:$0xff] }
 0x21d   : > { %v2261_v16 = vrot.slane %v1989_v57, 1 }
 0x21e   : > { %v1756_v17 = vsel %vm1615_vm6, %v1753_v58, %v1755_v14  ;;  %v1482_v8 = vmax.f32 %v1255_v11, 0.0 }
 0x21f   : > { %v2262_v15 = vsel %vm2125_vm7, %v2259_v6, %v2261_v16  ;;  %v1990_v21 = vmax.f32 %v1477_v39, %v1756_v17  ;;  %v1259_v22 = vpop.f32.mrb[150].mxu0 }
 0x220   : > { %v2498_v24 = vmax.f32 %v1988_v62, %v2262_v15  ;;  %v1757_v18 = vrot.slane %v1482_v8, 6  ;;  %v1260_v28 = vadd.f32 %v17766_v23, %v1259_v22  ;;  %v13787_v19 = vpop.f32.mrb[151].mxu0 }
 0x221   : > { %v2263_v46 = vrot.slane %v1990_v21, 1  ;;  %v2804_v25 = vld [vmem:[#allocation3 + $0x99] sm:$0xff] }
 0x222   : > { %v17769_v26 = vld [vmem:[#allocation3 + $0x98] sm:$0xff]  ;;  %2601 = vst.msk [vmem:[#allocation2 + $0x218] sm:$0xff] %vm2533_vm5, %v2498_v24  ;;  %v1758_v31 = vsel %vm1615_vm6, %v1755_v14, %v1757_v18  ;;  %v1483_v32 = vmax.f32 %v1260_v28, 0.0  ;;  %13907 = vmatmul.mubr.msk.f32.gmra.mrb[228].mxu0 %vm2533_vm5, %v2804_v25 }
 0x223   : > { %14177 = vmatmul.mubr.msk.f32.gmra.mrb[10].mxu1 %vm2533_vm5, %v17769_v26  ;;  %v2264_v33 = vsel %vm2125_vm7, %v2261_v16, %v2263_v46  ;;  %v1991_v34 = vmax.f32 %v1478_v41, %v1758_v31  ;;  %v1264_v35 = vpop.f32.mrb[152].mxu0 }
 0x224   : > { %v2499_v39 = vmax.f32 %v1989_v57, %v2264_v33  ;;  %v1759_v36 = vrot.slane %v1483_v32, 6  ;;  %v1265_v40 = vadd.f32 %v17766_v23, %v1264_v35  ;;  %v13790_v42 = vpop.f32.mrb[153].mxu0  ;;  %v12012_v57 = vld [vmem:[%s20637_s3 + $0x78] sm:$0xff] }
 0x225   : > { %v2265_v37 = vrot.slane %v1991_v34, 1  ;;  %v15467_v11 = vpack.c.bf16 %v12012_v57, %v12011_v12 }
 0x226   : > { %2602 = vst.msk [vmem:[#allocation2 + $0x220] sm:$0xff] %vm2533_vm5, %v2499_v39  ;;  %v1760_v43 = vsel %vm1615_vm6, %v1757_v18, %v1759_v36  ;;  %v1484_v30 = vmax.f32 %v1265_v40, 0.0 }
 0x227   : > { %v2266_v9 = vsel %vm2125_vm7, %v2263_v46, %v2265_v37  ;;  %v1992_v41 = vmax.f32 %v1479_v54, %v1760_v43  ;;  %v1269_v44 = vpop.f32.mrb[154].mxu0  ;;  %15468 = vmatprep.subr.bf16.mxu1 %v15467_v11 }
 0x228   : > { %v2500_v50 = vmax.f32 %v1990_v21, %v2266_v9  ;;  %v1270_v49 = vadd.f32 %v17766_v23, %v1269_v44  ;;  %v13793_v48 = vpop.f32.mrb[155].mxu0  ;;  %15470 = vmatpush3.bf16.msra.mxu1 %v15467_v11 }
 0x229   : > { %v2267_v51 = vrot.slane %v1992_v41, 1 }
 0x22a   : > { %2603 = vst.msk [vmem:[#allocation2 + $0x228] sm:$0xff] %vm2533_vm5, %v2500_v50  ;;  %v1485_v53 = vmax.f32 %v1270_v49, 0.0 }
 0x22b   : > { %v2268_v55 = vsel %vm2125_vm7, %v2265_v37, %v2267_v51  ;;  %v1274_v56 = vpop.f32.mrb[156].mxu0 }
 0x22c   : > { %v2501_v59 = vmax.f32 %v1991_v34, %v2268_v55  ;;  %v1275_v61 = vadd.f32 %v17766_v23, %v1274_v56  ;;  %v13796_v45 = vpop.f32.mrb[157].mxu0 }
 0x22e   : > { %2604 = vst.msk [vmem:[#allocation2 + $0x230] sm:$0xff] %vm2533_vm5, %v2501_v59  ;;  %v1486_v52 = vmax.f32 %v1275_v61, 0.0 }
 0x22f   : > { %v1279_v54 = vpop.f32.mrb[158].mxu0 }
 0x230   : > { %v1765_v47 = vrot.slane %v1486_v52, 6  ;;  %v17798_v62 = vadd.f32 %v17766_v23, %v1279_v54  ;;  %v13799_v63 = vpop.f32.mrb[159].mxu0 }
 0x231   : > { %v2726_v58 = vld [vmem:[#allocation2 + $0x21c] ss:$2 sm:$0xff] }
 0x232   : > { %v1487_v60 = vmax.f32 %v17798_v62, 0.0  ;;  %2729 = vst.msk [vmem:[#allocation3 + $0xa1] sm:$0xff] %vm2533_vm5, %v2726_v58 }
 0x233   : > { %v1284_v1 = vpop.f32.mrb[160].mxu0 }
 0x234   : > { %v1767_v6 = vrot.slane %v1487_v60, 6  ;;  %v1285_v7 = vadd.f32 %v17766_v23, %v1284_v1  ;;  %v13802_v10 = vpop.f32.mrb[161].mxu0 }
 0x235   : > { %v2728_v5 = vld [vmem:[#allocation2 + $0x22c] ss:$2 sm:$0x3f] }
 0x236   : > { %v1768_v0 = vsel %vm1615_vm6, %v1765_v47, %v1767_v6  ;;  %v1488_v14 = vmax.f32 %v1285_v7, 0.0  ;;  %2730 = vst.msk [vmem:[#allocation3 + $0xa9] sm:$0x3f] %vm2675_vm8, %v2728_v5 }
 0x237   : > { %v1996_v13 = vmax.f32 %v1483_v32, %v1768_v0  ;;  %v1289_v16 = vpop.f32.mrb[162].mxu0 }
 0x238   : > { %v1769_v17 = vrot.slane %v1488_v14, 6  ;;  %v1290_v8 = vadd.f32 %v17766_v23, %v1289_v16  ;;  %v13805_v15 = vpop.f32.mrb[163].mxu0 }
 0x239   : > { %v2275_v21 = vrot.slane %v1996_v13, 1  ;;  %v17814_v22 = vld [vmem:[#allocation3 + $0xa1] sm:$0xff] }
 0x23a   : > { %v17816_v24 = vld [vmem:[#allocation3 + $0xa0] sm:$0xff]  ;;  %v1770_v18 = vsel %vm1615_vm6, %v1767_v6, %v1769_v17  ;;  %v1489_v28 = vmax.f32 %v1290_v8, 0.0  ;;  %13909 = vmatprep.mubr.msk.f32.mxu0 %vm2533_vm5, %v17814_v22 }
 0x23b   : > { %14179 = vmatprep.mubr.msk.f32.mxu1 %vm2533_vm5, %v17816_v24  ;;  %v1997_v19 = vmax.f32 %v1484_v30, %v1770_v18  ;;  %v1294_v46 = vpop.f32.mrb[164].mxu0  ;;  %v18258_v4 = vld [vmem:[#allocation3 + $0x9a] sm:$0xff] }
 0x23c   : > { %v1771_v25 = vrot.slane %v1489_v28, 6  ;;  %v1295_v31 = vadd.f32 %v17766_v23, %v1294_v46  ;;  %v13808_v32 = vpop.f32.mrb[165].mxu0 }
 0x23d   : > { %v2277_v27 = vrot.slane %v1997_v19, 1  ;;  %v17824_v29 = vld [vmem:[#allocation3 + $0xa9] sm:$0xff] }
 0x23e   : > { %v17826_v33 = vld [vmem:[#allocation3 + $0xa8] sm:$0xff]  ;;  %v1772_v34 = vsel %vm1615_vm6, %v1769_v17, %v1771_v25  ;;  %v1490_v35 = vmax.f32 %v1295_v31, 0.0  ;;  %13910 = vmatmul.mubr.msk.f32.gmra.mrb[230].mxu0 %vm2533_vm5, %v17824_v29 }
 0x23f   : > { %14180 = vmatmul.mubr.msk.f32.gmra.mrb[12].mxu1 %vm2533_vm5, %v17826_v33  ;;  %v2278_v39 = vsel %vm2125_vm7, %v2275_v21, %v2277_v27  ;;  %v1998_v36 = vmax.f32 %v1485_v53, %v1772_v34  ;;  %v1299_v40 = vpop.f32.mrb[166].mxu0 }
 0x240   : > { %v2506_v42 = vmax.f32 %v1996_v13, %v2278_v39  ;;  %v1773_v37 = vrot.slane %v1490_v35, 6  ;;  %v1300_v43 = vadd.f32 %v17766_v23, %v1299_v40  ;;  %v13811_v30 = vpop.f32.mrb[167].mxu0 }
 0x241   : > { %v2279_v9 = vrot.slane %v1998_v36, 1 }
 0x242   : > { %2609 = vst.msk [vmem:[#allocation2 + $0x258] sm:$0xff] %vm2533_vm5, %v2506_v42  ;;  %v1774_v41 = vsel %vm1615_vm6, %v1771_v25, %v1773_v37  ;;  %v1491_v44 = vmax.f32 %v1300_v43, 0.0 }
 0x243   : > { %v2280_v50 = vsel %vm2125_vm7, %v2277_v27, %v2279_v9  ;;  %v1999_v49 = vmax.f32 %v1486_v52, %v1774_v41  ;;  %v1304_v48 = vpop.f32.mrb[168].mxu0 }
 0x244   : > { %v2507_v51 = vmax.f32 %v1997_v19, %v2280_v50  ;;  %v1775_v55 = vrot.slane %v1491_v44, 6  ;;  %v1305_v53 = vadd.f32 %v17766_v23, %v1304_v48  ;;  %v13814_v56 = vpop.f32.mrb[169].mxu0 }
 0x245   : > { %v2281_v59 = vrot.slane %v1999_v49, 1 }
 0x246   : > { %2610 = vst.msk [vmem:[#allocation2 + $0x260] sm:$0xff] %vm2533_vm5, %v2507_v51  ;;  %v1776_v61 = vsel %vm1615_vm6, %v1773_v37, %v1775_v55  ;;  %v1492_v45 = vmax.f32 %v1305_v53, 0.0 }
 0x247   : > { %v2282_v54 = vsel %vm2125_vm7, %v2279_v9, %v2281_v59  ;;  %v2000_v47 = vmax.f32 %v1487_v60, %v1776_v61  ;;  %v1309_v63 = vpop.f32.mrb[170].mxu0 }
 0x248   : > { %v2508_v58 = vmax.f32 %v1998_v36, %v2282_v54  ;;  %v1310_v52 = vadd.f32 %v17766_v23, %v1309_v63  ;;  %v13817_v1 = vpop.f32.mrb[171].mxu0 }
 0x249   : > { %v2283_v6 = vrot.slane %v2000_v47, 1 }
 0x24a   : > { %2611 = vst.msk [vmem:[#allocation2 + $0x268] sm:$0xff] %vm2533_vm5, %v2508_v58  ;;  %v1493_v7 = vmax.f32 %v1310_v52, 0.0 }
 0x24b   : > { %v2284_v10 = vsel %vm2125_vm7, %v2281_v59, %v2283_v6  ;;  %v1314_v5 = vpop.f32.mrb[172].mxu0 }
 0x24c   : > { %v2509_v12 = vmax.f32 %v1999_v49, %v2284_v10  ;;  %v1779_v57 = vrot.slane %v1493_v7, 6  ;;  %v1315_v0 = vadd.f32 %v17766_v23, %v1314_v5  ;;  %v13820_v14 = vpop.f32.mrb[173].mxu0 }
 0x24d   : > { %v2732_v11 = vld [vmem:[#allocation2 + $0x258] ss:$2 sm:$0xff] }
 0x24e   : > { %2612 = vst.msk [vmem:[#allocation2 + $0x270] sm:$0xff] %vm2533_vm5, %v2509_v12  ;;  %v1494_v62 = vmax.f32 %v1315_v0, 0.0  ;;  %2735 = vst.msk [vmem:[#allocation3 + $0xb1] sm:$0xff] %vm2533_vm5, %v2732_v11 }
 0x24f   : > { %v1319_v60 = vpop.f32.mrb[174].mxu0 }
 0x250   : > { %v1781_v13 = vrot.slane %v1494_v62, 6  ;;  %v1320_v16 = vadd.f32 %v17766_v23, %v1319_v60  ;;  %v13823_v17 = vpop.f32.mrb[175].mxu0 }
 0x252   : > { %v1782_v8 = vsel %vm1615_vm6, %v1779_v57, %v1781_v13  ;;  %v1495_v15 = vmax.f32 %v1320_v16, 0.0 }
 0x253   : > { %v2003_v21 = vmax.f32 %v1490_v35, %v1782_v8  ;;  %v1324_v18 = vpop.f32.mrb[176].mxu0 }
 0x254   : > { %v1783_v28 = vrot.slane %v1495_v15, 6  ;;  %v1325_v19 = vadd.f32 %v17766_v23, %v1324_v18  ;;  %v13826_v46 = vpop.f32.mrb[177].mxu0 }
 0x255   : > { %v2289_v25 = vrot.slane %v2003_v21, 1  ;;  %v17853_v31 = vld [vmem:[#allocation3 + $0xb1] sm:$0xff] }
 0x256   : > { %v17855_v32 = vld [vmem:[#allocation3 + $0xb0] sm:$0xff]  ;;  %v2734_v27 = vld [vmem:[#allocation2 + $0x268] ss:$2 sm:$0x3f]  ;;  %v1784_v34 = vsel %vm1615_vm6, %v1781_v13, %v1783_v28  ;;  %v1496_v39 = vmax.f32 %v1325_v19, 0.0  ;;  %13912 = vmatprep.mubr.msk.f32.mxu0 %vm2533_vm5, %v17853_v31 }
 0x257   : > { %14182 = vmatprep.mubr.msk.f32.mxu1 %vm2533_vm5, %v17855_v32  ;;  %2736 = vst.msk [vmem:[#allocation3 + $0xb9] sm:$0x3f] %vm2675_vm8, %v2734_v27  ;;  %v2004_v35 = vmax.f32 %v1491_v44, %v1784_v34  ;;  %v1329_v36 = vpop.f32.mrb[178].mxu0  ;;  %v12041_v34 = vld [vmem:[%s20637_s3 + $0x80] sm:$0xff] }
 0x258   : > { %v1785_v40 = vrot.slane %v1496_v39, 6  ;;  %v1330_v42 = vadd.f32 %v17766_v23, %v1329_v36  ;;  %v13829_v37 = vpop.f32.mrb[179].mxu0  ;;  %v12042_v39 = vld [vmem:[%s20637_s3 + $0x88] sm:$0xff] }
 0x259   : > { %v2291_v43 = vrot.slane %v2004_v35, 1  ;;  %v17898_v36 = vpack.c.bf16 %v12042_v39, %v12041_v34 }
 0x25a   : > { %v1786_v30 = vsel %vm1615_vm6, %v1783_v28, %v1785_v40  ;;  %v1497_v9 = vmax.f32 %v1330_v42, 0.0 }
 0x25b   : > { %v2292_v41 = vsel %vm2125_vm7, %v2289_v25, %v2291_v43  ;;  %v2005_v50 = vmax.f32 %v1492_v45, %v1786_v30  ;;  %v1334_v49 = vpop.f32.mrb[180].mxu0  ;;  %15472 = vmatprep.subr.bf16.mxu1 %v17898_v36 }
 0x25c   : > { %v2513_v48 = vmax.f32 %v2003_v21, %v2292_v41  ;;  %v1787_v51 = vrot.slane %v1497_v9, 6  ;;  %v1335_v55 = vadd.f32 %v17766_v23, %v1334_v49  ;;  %v13832_v53 = vpop.f32.mrb[181].mxu0 }
 0x25d   : > { %v2293_v56 = vrot.slane %v2005_v50, 1 }
 0x25e   : > { %v17867_v44 = vld [vmem:[#allocation3 + $0xb9] sm:$0xff]  ;;  %2616 = vst.msk [vmem:[#allocation2 + $0x290] sm:$0xff] %vm2533_vm5, %v2513_v48  ;;  %v1788_v61 = vsel %vm1615_vm6, %v1785_v40, %v1787_v51  ;;  %v1498_v54 = vmax.f32 %v1335_v55, 0.0 }
 0x25f   : > { %v17869_v59 = vld [vmem:[#allocation3 + $0xb8] sm:$0xff]  ;;  %13913 = vmatmul.mubr.msk.f32.gmra.mrb[232].mxu0 %vm2533_vm5, %v17867_v44  ;;  %v2294_v45 = vsel %vm2125_vm7, %v2291_v43, %v2293_v56  ;;  %v2006_v47 = vmax.f32 %v1493_v7, %v1788_v61  ;;  %v1339_v63 = vpop.f32.mrb[182].mxu0 }
 0x260   : > { %14183 = vmatmul.mubr.msk.f32.gmra.mrb[14].mxu1 %vm2533_vm5, %v17869_v59  ;;  %v2514_v58 = vmax.f32 %v2004_v35, %v2294_v45  ;;  %v1789_v52 = vrot.slane %v1498_v54, 6  ;;  %v1340_v1 = vadd.f32 %v17766_v23, %v1339_v63  ;;  %v13835_v6 = vpop.f32.mrb[183].mxu0 }
 0x261   : > { %v2295_v10 = vrot.slane %v2006_v47, 1 }
 0x262   : > { %2617 = vst.msk [vmem:[#allocation2 + $0x298] sm:$0xff] %vm2533_vm5, %v2514_v58  ;;  %v1790_v5 = vsel %vm1615_vm6, %v1787_v51, %v1789_v52  ;;  %v1499_v12 = vmax.f32 %v1340_v1, 0.0 }
 0x263   : > { %v2296_v57 = vsel %vm2125_vm7, %v2293_v56, %v2295_v10  ;;  %v2007_v0 = vmax.f32 %v1494_v62, %v1790_v5  ;;  %v1344_v14 = vpop.f32.mrb[184].mxu0 }
 0x264   : > { %v2515_v11 = vmax.f32 %v2005_v50, %v2296_v57  ;;  %v1345_v60 = vadd.f32 %v17766_v23, %v1344_v14  ;;  %v13838_v7 = vpop.f32.mrb[185].mxu0 }
 0x265   : > { %v2297_v13 = vrot.slane %v2007_v0, 1 }
 0x266   : > { %2618 = vst.msk [vmem:[#allocation2 + $0x2a0] sm:$0xff] %vm2533_vm5, %v2515_v11  ;;  %v1500_v16 = vmax.f32 %v1345_v60, 0.0 }
 0x267   : > { %v2298_v17 = vsel %vm2125_vm7, %v2295_v10, %v2297_v13  ;;  %v1349_v8 = vpop.f32.mrb[186].mxu0 }
 0x268   : > { %v2516_v15 = vmax.f32 %v2006_v47, %v2298_v17  ;;  %v1350_v21 = vadd.f32 %v17766_v23, %v1349_v8  ;;  %v13841_v18 = vpop.f32.mrb[187].mxu0 }
 0x26a   : > { %2619 = vst.msk [vmem:[#allocation2 + $0x2a8] sm:$0xff] %vm2533_vm5, %v2516_v15  ;;  %v1501_v28 = vmax.f32 %v1350_v21, 0.0 }
 0x26b   : > { %v1354_v62 = vpop.f32.mrb[188].mxu0 }
 0x26c   : > { %v1795_v19 = vrot.slane %v1501_v28, 6  ;;  %v17888_v46 = vadd.f32 %v17766_v23, %v1354_v62  ;;  %v13844_v25 = vpop.f32.mrb[189].mxu0 }
 0x26d   : > { %v2738_v27 = vld [vmem:[#allocation2 + $0x294] ss:$2 sm:$0xff] }
 0x26e   : > { %v1502_v35 = vmax.f32 %v17888_v46, 0.0  ;;  %2741 = vst.msk [vmem:[#allocation3 + $0xc1] sm:$0xff] %vm2533_vm5, %v2738_v27 }
 0x26f   : > { %v1359_v40 = vpop.f32.mrb[190].mxu0 }
 0x270   : > { %v1797_v42 = vrot.slane %v1502_v35, 6  ;;  %v1360_v37 = vadd.f32 %v17766_v23, %v1359_v40  ;;  %v13847_v43 = vpop.f32.mrb[191].mxu0 }
 0x271   : > { %v2740_v30 = vld [vmem:[#allocation2 + $0x2a4] ss:$2 sm:$0x3f] }
 0x272   : > { %v1798_v9 = vsel %vm1615_vm6, %v1795_v19, %v1797_v42  ;;  %v1503_v41 = vmax.f32 %v1360_v37, 0.0  ;;  %2742 = vst.msk [vmem:[#allocation3 + $0xc9] sm:$0x3f] %vm2675_vm8, %v2740_v30 }
 0x273   : > { %v2011_v50 = vmax.f32 %v1498_v54, %v1798_v9  ;;  %v1364_v49 = vpop.f32.mrb[192].mxu0 }
 0x274   : > { %v1799_v48 = vrot.slane %v1503_v41, 6  ;;  %v1365_v51 = vadd.f32 %v17766_v23, %v1364_v49  ;;  %v13850_v55 = vpop.f32.mrb[193].mxu0 }
 0x275   : > { %v2305_v53 = vrot.slane %v2011_v50, 1  ;;  %v17905_v56 = vld [vmem:[#allocation3 + $0xc1] sm:$0xff] }
 0x276   : > { %v17907_v61 = vld [vmem:[#allocation3 + $0xc0] sm:$0xff]  ;;  %v1800_v45 = vsel %vm1615_vm6, %v1797_v42, %v1799_v48  ;;  %v1504_v47 = vmax.f32 %v1365_v51, 0.0  ;;  %13915 = vmatprep.mubr.msk.f32.mxu0 %vm2533_vm5, %v17905_v56 }
 0x277   : > { %14185 = vmatprep.mubr.msk.f32.mxu1 %vm2533_vm5, %v17907_v61  ;;  %v2012_v54 = vmax.f32 %v1499_v12, %v1800_v45  ;;  %v1369_v63 = vpop.f32.mrb[194].mxu0 }
 0x278   : > { %v1801_v58 = vrot.slane %v1504_v47, 6  ;;  %v1370_v52 = vadd.f32 %v17766_v23, %v1369_v63  ;;  %v13853_v1 = vpop.f32.mrb[195].mxu0 }
 0x279   : > { %v2307_v6 = vrot.slane %v2012_v54, 1  ;;  %v17915_v10 = vld [vmem:[#allocation3 + $0xc9] sm:$0xff] }
 0x27a   : > { %v17917_v5 = vld [vmem:[#allocation3 + $0xc8] sm:$0xff]  ;;  %v1802_v57 = vsel %vm1615_vm6, %v1799_v48, %v1801_v58  ;;  %v1505_v0 = vmax.f32 %v1370_v52, 0.0  ;;  %13916 = vmatmul.mubr.msk.f32.gmra.mrb[234].mxu0 %vm2533_vm5, %v17915_v10 }
 0x27b   : > { %14186 = vmatmul.mubr.msk.f32.gmra.mrb[16].mxu1 %vm2533_vm5, %v17917_v5  ;;  %v2308_v12 = vsel %vm2125_vm7, %v2305_v53, %v2307_v6  ;;  %v2013_v14 = vmax.f32 %v1500_v16, %v1802_v57  ;;  %v1374_v11 = vpop.f32.mrb[196].mxu0 }
 0x27c   : > { %v2521_v60 = vmax.f32 %v2011_v50, %v2308_v12  ;;  %v1803_v7 = vrot.slane %v1505_v0, 6  ;;  %v1375_v13 = vadd.f32 %v17766_v23, %v1374_v11  ;;  %v13856_v17 = vpop.f32.mrb[197].mxu0 }
 0x27d   : > { %v2309_v8 = vrot.slane %v2013_v14, 1 }
 0x27e   : > { %2624 = vst.msk [vmem:[#allocation2 + $0x2d0] sm:$0xff] %vm2533_vm5, %v2521_v60  ;;  %v1804_v15 = vsel %vm1615_vm6, %v1801_v58, %v1803_v7  ;;  %v1506_v21 = vmax.f32 %v1375_v13, 0.0 }
 0x27f   : > { %v2310_v18 = vsel %vm2125_vm7, %v2307_v6, %v2309_v8  ;;  %v2014_v62 = vmax.f32 %v1501_v28, %v1804_v15  ;;  %v1379_v19 = vpop.f32.mrb[198].mxu0 }
 0x280   : > { %v2522_v46 = vmax.f32 %v2012_v54, %v2310_v18  ;;  %v1805_v25 = vrot.slane %v1506_v21, 6  ;;  %v1380_v16 = vadd.f32 %v17766_v23, %v1379_v19  ;;  %v13859_v27 = vpop.f32.mrb[199].mxu0 }
 0x281   : > { %v2311_v34 = vrot.slane %v2014_v62, 1 }
 0x282   : > { %2625 = vst.msk [vmem:[#allocation2 + $0x2d8] sm:$0xff] %vm2533_vm5, %v2522_v46  ;;  %v1806_v39 = vsel %vm1615_vm6, %v1803_v7, %v1805_v25  ;;  %v1507_v40 = vmax.f32 %v1380_v16, 0.0 }
 0x283   : > { %v2312_v42 = vsel %vm2125_vm7, %v2309_v8, %v2311_v34  ;;  %v2015_v37 = vmax.f32 %v1502_v35, %v1806_v39  ;;  %v1384_v43 = vpop.f32.mrb[200].mxu0 }
 0x284   : > { %v2523_v30 = vmax.f32 %v2013_v14, %v2312_v42  ;;  %v1385_v9 = vadd.f32 %v17766_v23, %v1384_v43  ;;  %v13862_v28 = vpop.f32.mrb[201].mxu0 }
 0x285   : > { %v2313_v41 = vrot.slane %v2015_v37, 1 }
 0x286   : > { %2626 = vst.msk [vmem:[#allocation2 + $0x2e0] sm:$0xff] %vm2533_vm5, %v2523_v30  ;;  %v1508_v50 = vmax.f32 %v1385_v9, 0.0  ;;  %v2755_v30 = vld [vmem:[#allocation3] sm:$0xff] }
 0x287   : > { %v2314_v49 = vsel %vm2125_vm7, %v2311_v34, %v2313_v41  ;;  %v1389_v48 = vpop.f32.mrb[202].mxu0  ;;  %v11891_v9 = vld [vmem:[%s20637_s3 + $0x30] sm:$0xff] }
 0x288   : > { %v2524_v51 = vmax.f32 %v2014_v62, %v2314_v49  ;;  %v1809_v55 = vrot.slane %v1508_v50, 6  ;;  %v1390_v53 = vadd.f32 %v17766_v23, %v1389_v48  ;;  %v13865_v45 = vpop.f32.mrb[203].mxu0 }
 0x289   : > { %v2744_v47 = vld [vmem:[#allocation2 + $0x2d0] ss:$2 sm:$0xff] }
 0x28a   : > { %2627 = vst.msk [vmem:[#allocation2 + $0x2e8] sm:$0xff] %vm2533_vm5, %v2524_v51  ;;  %v1509_v35 = vmax.f32 %v1390_v53, 0.0  ;;  %2747 = vst.msk [vmem:[#allocation3 + $0xd1] sm:$0xff] %vm2533_vm5, %v2744_v47 }
 0x28b   : > { %v1394_v54 = vpop.f32.mrb[204].mxu0 }
 0x28c   : > { %v1811_v63 = vrot.slane %v1509_v35, 6  ;;  %v1395_v58 = vadd.f32 %v17766_v23, %v1394_v54  ;;  %v13868_v52 = vpop.f32.mrb[205].mxu0 }
 0x28e   : > { %v1812_v1 = vsel %vm1615_vm6, %v1809_v55, %v1811_v63  ;;  %v1510_v6 = vmax.f32 %v1395_v58, 0.0  ;;  %v2756_v55 = vld [vmem:[#allocation3 + $0x8] sm:$0xff] }
 0x28f   : > { %v2018_v57 = vmax.f32 %v1505_v0, %v1812_v1  ;;  %v1399_v12 = vpop.f32.mrb[206].mxu0  ;;  %v17985_v1 = vld [vmem:[#allocation3 + $0x18] sm:$0xff] }
 0x290   : > { %v1813_v14 = vrot.slane %v1510_v6, 6  ;;  %v1400_v11 = vadd.f32 %v17766_v23, %v1399_v12  ;;  %v13871_v60 = vpop.f32.mrb[207].mxu0  ;;  %v17991_v6 = vld [vmem:[#allocation3 + $0x20] sm:$0xff]  ;;  %v18003_v12 = vld [vmem:[#allocation3 + $0x38] sm:$0xff] }
 0x291   : > { %v2319_v7 = vrot.slane %v2018_v57, 1  ;;  %v17942_v13 = vld [vmem:[#allocation3 + $0xd1] sm:$0xff]  ;;  %v18007_v60 = vld [vmem:[#allocation3 + $0x40] sm:$0xff] }
 0x292   : > { %v17944_v17 = vld [vmem:[#allocation3 + $0xd0] sm:$0xff]  ;;  %v1814_v15 = vsel %vm1615_vm6, %v1811_v63, %v1813_v14  ;;  %v1511_v18 = vmax.f32 %v1400_v11, 0.0  ;;  %13918 = vmatprep.mubr.msk.f32.mxu0 %vm2533_vm5, %v17942_v13 }
 0x293   : > { %v2746_v8 = vld [vmem:[#allocation2 + $0x2e0] ss:$2 sm:$0x3f]  ;;  %14188 = vmatprep.mubr.msk.f32.mxu1 %vm2533_vm5, %v17944_v17  ;;  %v2019_v0 = vmax.f32 %v1506_v21, %v1814_v15  ;;  %v1404_v62 = vpop.f32.mrb[208].mxu0 }
 0x294   : > { %2748 = vst.msk [vmem:[#allocation3 + $0xd9] sm:$0x3f] %vm2675_vm8, %v2746_v8  ;;  %v1815_v19 = vrot.slane %v1511_v18, 6  ;;  %v1405_v46 = vadd.f32 %v17766_v23, %v1404_v62  ;;  %v13874_v25 = vpop.f32.mrb[209].mxu0  ;;  %v11892_v23 = vld [vmem:[%s20637_s3 + $0x38] sm:$0xff]  ;;  %v18017_v8 = vld [vmem:[#allocation3 + $0x50] sm:$0xff] }
 0x295   : > { %v2321_v16 = vrot.slane %v2019_v0, 1  ;;  %v17973_v47 = vpack.c.bf16 %v11892_v23, %v11891_v9  ;;  %v18021_v15 = vld [vmem:[#allocation3 + $0x58] sm:$0xff]  ;;  %v4812_v62 = vld [vmem:[#allocation3 + $0xf0] sm:$0xff]  ;;  %v18038_v25 = vld [vmem:[#allocation3 + $0x68] sm:$0xff] }
 0x296   : > { %v1816_v27 = vsel %vm1615_vm6, %v1813_v14, %v1815_v19  ;;  %v1512_v34 = vmax.f32 %v1405_v46, 0.0  ;;  %v4813_v46 = vld [vmem:[#allocation3 + $0xf8] sm:$0xff]  ;;  %v18079_v9 = vld [vmem:[#allocation3 + $0x41] sm:$0xff] }
 0x297   : > { %v2322_v39 = vsel %vm2125_vm7, %v2319_v7, %v2321_v16  ;;  %v2020_v42 = vmax.f32 %v1507_v40, %v1816_v27  ;;  %v18013_v7 = vld [vmem:[#allocation3 + $0x48] sm:$0xff] }
 0x298   : > { %v2528_v37 = vmax.f32 %v2018_v57, %v2322_v39  ;;  %v1817_v43 = vrot.slane %v1512_v34, 6  ;;  %v17999_v57 = vld [vmem:[#allocation3 + $0x30] sm:$0xff]  ;;  %v18047_v27 = vld [vmem:[#allocation3 + $0x21] sm:$0xff]  ;;  %v18051_v34 = vld [vmem:[#allocation3 + $0x78] sm:$0xff] }
 0x299   : > { %v2323_v21 = vrot.slane %v2020_v42, 1  ;;  %v18055_v39 = vld [vmem:[#allocation3 + $0x80] sm:$0xff] }
 0x29a   : > { %2631 = vst.msk [vmem:[#allocation2 + $0x308] sm:$0xff] %vm2533_vm5, %v2528_v37  ;;  %v1818_v40 = vsel %vm1615_vm6, %v1815_v19, %v1817_v43  ;;  %v2022_v49 = vmax.f32 %v1509_v35, %v1817_v43  ;;  %v17977_v35 = vld [vmem:[#allocation3 + $0x10] sm:$0xff]  ;;  %v18031_v19 = vld [vmem:[#allocation3 + $0x60] sm:$0xff]  ;;  %v18068_v43 = vld [vmem:[#allocation3 + $0x88] sm:$0xff] }
 0x29b   : > { %v17958_v28 = vld [vmem:[#allocation3 + $0xd9] sm:$0xff]  ;;  %v2324_v48 = vsel %vm2125_vm7, %v2321_v16, %v2323_v21  ;;  %v2021_v51 = vmax.f32 %v1508_v50, %v1818_v40  ;;  %v18042_v16 = vld [vmem:[#allocation3 + $0x70] sm:$0xff]  ;;  %v18127_v23 = vld [vmem:[#allocation3 + $0x81] sm:$0xff] }
 0x29c   : > { %v17960_v41 = vld [vmem:[#allocation3 + $0xd8] sm:$0xff]  ;;  %13919 = vmatmul.mubr.msk.f32.gmra.mrb[236].mxu0 %vm2533_vm5, %v17958_v28  ;;  %v2529_v53 = vmax.f32 %v2019_v0, %v2324_v48  ;;  %v2327_v45 = vrot.slane %v2022_v49, 1  ;;  %v3394_v40 = vld [vmem:[#allocation3 + $0x2] sm:$0xff]  ;;  %v11921_v49 = vld [vmem:[%s20637_s3 + $0x40] sm:$0xff] }
 0x29d   : > { %14189 = vmatmul.mubr.msk.f32.gmra.mrb[18].mxu1 %vm2533_vm5, %v17960_v41  ;;  %13925 = vmatprep.mubr.msk.f32.mxu0 %vm2533_vm5, %v2755_v30  ;;  %v2325_v54 = vrot.slane %v2021_v51, 1  ;;  %v18063_v37 = vld [vmem:[#allocation3 + $0x31] sm:$0xff]  ;;  %v18073_v30 = vld [vmem:[#allocation3 + $0x39] sm:$0xff] }
 0x29e   : > { %2632 = vst.msk [vmem:[#allocation2 + $0x310] sm:$0xff] %vm2533_vm5, %v2529_v53  ;;  %v11922_v48 = vld [vmem:[%s20637_s3 + $0x48] sm:$0xff] }
 0x29f   : > { %v2326_v63 = vsel %vm2125_vm7, %v2323_v21, %v2325_v54  ;;  %v2328_v58 = vsel %vm2125_vm7, %v2325_v54, %v2327_v45  ;;  %v18097_v21 = vld [vmem:[#allocation3 + $0x59] sm:$0xff]  ;;  %v18148_v53 = vpack.c.bf16 %v11922_v48, %v11921_v49  ;;  %v3395_v45 = vld [vmem:[#allocation3 + $0xa] sm:$0xff] }
 0x2a0   : > { %13926 = vmatmul.mubr.msk.f32.vlgmr.msra.gmra.mrb[210].mxu0 %vm2533_vm5, %v2756_v55  ;;  %v2530_v50 = vmax.f32 %v2020_v42, %v2326_v63  ;;  %v2531_v52 = vmax.f32 %v2021_v51, %v2328_v58  ;;  %v18057_v42 = vld [vmem:[#allocation3 + $0x29] sm:$0xff]  ;;  %v18143_v55 = vld [vmem:[#allocation3 + $0x91] sm:$0xff]  ;;  %v16592_v63 = vld [vmem:[#allocation3 + $0x99] sm:$0xff] }
 0x2a1   : > { %15450 = vmatpush3.bf16.msra.mxu0 %v17783_v38  ;;  %13928 = vmatprep.mubr.msk.f32.mxu0 %vm2533_vm5, %v17977_v35  ;;  %v17995_v38 = vld [vmem:[#allocation3 + $0x28] sm:$0xff]  ;;  %v18151_v54 = vld [vmem:[#allocation3 + $0x12] sm:$0xff]  ;;  %v18160_v58 = vld [vmem:[#allocation3 + $0x1a] sm:$0xff] }
 0x2a2   : > { %15452 = vmatprep.subr.bf16.mxu0 %v17973_v47  ;;  %2633 = vst.msk [vmem:[#allocation2 + $0x318] sm:$0xff] %vm2533_vm5, %v2530_v50  ;;  %2634 = vst.msk [vmem:[#allocation2 + $0x320] sm:$0xff] %vm2533_vm5, %v2531_v52  ;;  %v18139_v51 = vld [vmem:[#allocation3 + $0x89] sm:$0xff]  ;;  %v18200_v52 = vld [vmem:[#allocation3 + $0x52] sm:$0xff] }
 0x2a3   : > { %v18164_v50 = vld [vmem:[#allocation3 + $0x22] sm:$0xff]  ;;  %20670 = vst [vmem:[#allocation14_spill] sm:$0xff] %v18200_v52  ;;  %v18222_v49 = vld [vmem:[#allocation3 + $0x6a] sm:$0xff]  ;;  %v5161_v48 = vld [vmem:[#allocation3 + $0xf9] sm:$0xff] }
 0x2a4   : > { %13929 = vmatmul.mubr.msk.f32.gmra.mrb[212].mxu0 %vm2533_vm5, %v17985_v1  ;;  %20673 = vst [vmem:[#allocation17_spill] sm:$0xff] %v18222_v49 }
 0x2a5   : > { %13931 = vmatprep.mubr.msk.f32.mxu0 %vm2533_vm5, %v17991_v6 }
 0x2a8   : > { %13932 = vmatmul.mubr.msk.f32.gmra.mrb[214].mxu0 %vm2533_vm5, %v17995_v38 }
 0x2a9   : > { %13934 = vmatprep.mubr.msk.f32.mxu0 %vm2533_vm5, %v17999_v57  ;;  %v2750_v14 = vld [vmem:[#allocation2 + $0x30c] ss:$2 sm:$0xff]  ;;  %v2752_v11 = vld [vmem:[#allocation2 + $0x31c] ss:$2 sm:$0x3f] }
 0x2aa   : > { %2753 = vst.msk [vmem:[#allocation3 + $0xe1] sm:$0xff] %vm2533_vm5, %v2750_v14 }
 0x2ab   : > { %2754 = vst.msk [vmem:[#allocation3 + $0xe9] sm:$0x3f] %vm2675_vm8, %v2752_v11  ;;  %v18210_v11 = vld [vmem:[#allocation3 + $0x5a] sm:$0xff] }
 0x2ac   : > { %13935 = vmatmul.mubr.msk.f32.gmra.mrb[216].mxu0 %vm2533_vm5, %v18003_v12  ;;  %20671 = vst [vmem:[#allocation15_spill] sm:$0xff] %v18210_v11 }
 0x2ad   : > { %13937 = vmatprep.mubr.msk.f32.mxu0 %vm2533_vm5, %v18007_v60 }
 0x2b0   : > { %13938 = vmatmul.mubr.msk.f32.gmra.mrb[218].mxu0 %vm2533_vm5, %v18013_v7 }
 0x2b1   : > { %13940 = vmatprep.mubr.msk.f32.mxu0 %vm2533_vm5, %v18017_v8  ;;  %v18023_v18 = vld [vmem:[#allocation3 + $0xe0] sm:$0xff] }
 0x2b2   : > { %v18025_v0 = vld [vmem:[#allocation3 + $0xe8] sm:$0xff]  ;;  %14191 = vmatprep.mubr.msk.f32.mxu1 %vm2533_vm5, %v18023_v18 }
 0x2b3   : > { %14192 = vmatmul.mubr.msk.f32.gmra.mrb[20].mxu1 %vm2533_vm5, %v18025_v0  ;;  %v18206_v14 = vld [vmem:[#allocation3 + $0xe1] sm:$0xff] }
 0x2b4   : > { %13941 = vmatmul.mubr.msk.f32.gmra.mrb[220].mxu0 %vm2533_vm5, %v18021_v15  ;;  %14194 = vmatprep.mubr.msk.f32.mxu1 %vm2533_vm5, %v4812_v62  ;;  %v18212_v62 = vld [vmem:[#allocation3 + $0xe9] sm:$0xff] }
 0x2b5   : > { %13943 = vmatprep.mubr.msk.f32.mxu0 %vm2533_vm5, %v18031_v19 }
 0x2b7   : > { %14195 = vmatmul.mubr.msk.f32.gmra.mrb[22].mxu1 %vm2533_vm5, %v4813_v46  ;;  %v18216_v46 = vld [vmem:[#allocation3 + $0x62] sm:$0xff] }
 0x2b8   : > { %13944 = vmatmul.mubr.msk.f32.gmra.mrb[222].mxu0 %vm2533_vm5, %v18038_v25  ;;  %14201 = vmatprep.mubr.msk.f32.mxu1 %vm2533_vm5, %v18047_v27  ;;  %20672 = vst [vmem:[#allocation16_spill] sm:$0xff] %v18216_v46 }
 0x2b9   : > { %13946 = vmatprep.mubr.msk.f32.mxu0 %vm2533_vm5, %v18042_v16 }
 0x2bb   : > { %14202 = vmatmul.mubr.msk.f32.vlgmr.msra.gmra.mrb[24].mxu1 %vm2533_vm5, %v18057_v42 }
 0x2bc   : > { %13947 = vmatmul.mubr.msk.f32.gmra.mrb[224].mxu0 %vm2533_vm5, %v18051_v34  ;;  %14204 = vmatprep.mubr.msk.f32.mxu1 %vm2533_vm5, %v18063_v37 }
 0x2bd   : > { %13949 = vmatprep.mubr.msk.f32.mxu0 %vm2533_vm5, %v18055_v39  ;;  %15474 = vmatpush3.bf16.msra.mxu1 %v17898_v36  ;;  %v18085_v36 = vld [vmem:[#allocation3 + $0x49] sm:$0xff] }
 0x2be   : > { %15547 = vmatprep.subr.bf16.mxu1 %v20646_v2  ;;  %v18250_v2 = vld [vmem:[#allocation3 + $0x92] sm:$0xff] }
 0x2bf   : > { %14205 = vmatmul.mubr.msk.f32.gmra.mrb[26].mxu1 %vm2533_vm5, %v18073_v30 }
 0x2c0   : > { %13950 = vmatmul.mubr.msk.f32.gmra.mrb[226].mxu0 %vm2533_vm5, %v18068_v43  ;;  %14207 = vmatprep.mubr.msk.f32.mxu1 %vm2533_vm5, %v18079_v9 }
 0x2c1   : > { %13952 = vmatprep.mubr.msk.f32.mxu0 %vm2533_vm5, %v17753_v3  ;;  %v18091_v3 = vld [vmem:[#allocation3 + $0x51] sm:$0xff] }
 0x2c3   : > { %14208 = vmatmul.mubr.msk.f32.gmra.mrb[0].mxu1 %vm2533_vm5, %v18085_v36 }
 0x2c4   : > { %13953 = vmatmul.mubr.msk.f32.gmra.mrb[228].mxu0 %vm2533_vm5, %v17769_v26  ;;  %14210 = vmatprep.mubr.msk.f32.mxu1 %vm2533_vm5, %v18091_v3  ;;  %v18103_v26 = vld [vmem:[#allocation3 + $0x61] sm:$0xff] }
 0x2c5   : > { %13955 = vmatprep.mubr.msk.f32.mxu0 %vm2533_vm5, %v17816_v24  ;;  %v18109_v24 = vld [vmem:[#allocation3 + $0x69] sm:$0xff] }
 0x2c7   : > { %14211 = vmatmul.mubr.msk.f32.gmra.mrb[2].mxu1 %vm2533_vm5, %v18097_v21 }
 0x2c8   : > { %13956 = vmatmul.mubr.msk.f32.gmra.mrb[230].mxu0 %vm2533_vm5, %v17826_v33  ;;  %14213 = vmatprep.mubr.msk.f32.mxu1 %vm2533_vm5, %v18103_v26  ;;  %v18115_v33 = vld [vmem:[#allocation3 + $0x71] sm:$0xff] }
 0x2c9   : > { %13958 = vmatprep.mubr.msk.f32.mxu0 %vm2533_vm5, %v17855_v32  ;;  %v18121_v32 = vld [vmem:[#allocation3 + $0x79] sm:$0xff] }
 0x2cb   : > { %14214 = vmatmul.mubr.msk.f32.gmra.mrb[4].mxu1 %vm2533_vm5, %v18109_v24 }
 0x2cc   : > { %13959 = vmatmul.mubr.msk.f32.gmra.mrb[232].mxu0 %vm2533_vm5, %v17869_v59  ;;  %14216 = vmatprep.mubr.msk.f32.mxu1 %vm2533_vm5, %v18115_v33 }
 0x2cd   : > { %13961 = vmatprep.mubr.msk.f32.mxu0 %vm2533_vm5, %v17907_v61 }
 0x2cf   : > { %14217 = vmatmul.mubr.msk.f32.gmra.mrb[6].mxu1 %vm2533_vm5, %v18121_v32 }
 0x2d0   : > { %13962 = vmatmul.mubr.msk.f32.gmra.mrb[234].mxu0 %vm2533_vm5, %v17917_v5  ;;  %14219 = vmatprep.mubr.msk.f32.mxu1 %vm2533_vm5, %v18127_v23 }
 0x2d1   : > { %13964 = vmatprep.mubr.msk.f32.mxu0 %vm2533_vm5, %v17944_v17 }
 0x2d3   : > { %14220 = vmatmul.mubr.msk.f32.gmra.mrb[8].mxu1 %vm2533_vm5, %v18139_v51 }
 0x2d4   : > { %13965 = vmatmul.mubr.msk.f32.gmra.mrb[236].mxu0 %vm2533_vm5, %v17960_v41  ;;  %14222 = vmatprep.mubr.msk.f32.mxu1 %vm2533_vm5, %v18143_v55 }
 0x2d5   : > { %13971 = vmatprep.mubr.msk.f32.mxu0 %vm2533_vm5, %v3394_v40  ;;  %v5160_v40 = vld [vmem:[#allocation3 + $0xf1] sm:$0xff] }
 0x2d7   : > { %14223 = vmatmul.mubr.msk.f32.gmra.mrb[10].mxu1 %vm2533_vm5, %v16592_v63  ;;  %v18234_v63 = vld [vmem:[#allocation3 + $0x7a] sm:$0xff] }
 0x2d8   : > { %13972 = vmatmul.mubr.msk.f32.vlgmr.msra.gmra.mrb[210].mxu0 %vm2533_vm5, %v3395_v45  ;;  %14225 = vmatprep.mubr.msk.f32.mxu1 %vm2533_vm5, %v17814_v22  ;;  %v18176_v22 = vld [vmem:[#allocation3 + $0x32] sm:$0xff] }
 0x2d9   : > { %15454 = vmatpush3.bf16.msra.mxu0 %v17973_v47  ;;  %13974 = vmatprep.mubr.msk.f32.mxu0 %vm2533_vm5, %v18151_v54  ;;  %v18172_v47 = vld [vmem:[#allocation3 + $0x2a] sm:$0xff]  ;;  %20666 = vst [vmem:[#allocation10_spill] sm:$0xff] %v18176_v22  ;;  %v18227_v45 = vld [vmem:[#allocation3 + $0x72] sm:$0xff] }
 0x2da   : > { %15456 = vmatprep.subr.bf16.mxu0 %v18148_v53  ;;  %20665 = vst [vmem:[#allocation9_spill] sm:$0xff] %v18172_v47  ;;  %20674 = vst [vmem:[#allocation18_spill] sm:$0xff] %v18227_v45 }
 0x2db   : > { %14226 = vmatmul.mubr.msk.f32.gmra.mrb[12].mxu1 %vm2533_vm5, %v17824_v29  ;;  %v18184_v29 = vld [vmem:[#allocation3 + $0x3a] sm:$0xff] }
 0x2dc   : > { %13975 = vmatmul.mubr.msk.f32.gmra.mrb[212].mxu0 %vm2533_vm5, %v18160_v58  ;;  %14228 = vmatprep.mubr.msk.f32.mxu1 %vm2533_vm5, %v17853_v31  ;;  %20667 = vst [vmem:[#allocation11_spill] sm:$0xff] %v18184_v29  ;;  %v18188_v31 = vld [vmem:[#allocation3 + $0x42] sm:$0xff] }
 0x2dd   : > { %13977 = vmatprep.mubr.msk.f32.mxu0 %vm2533_vm5, %v18164_v50  ;;  %20668 = vst [vmem:[#allocation12_spill] sm:$0xff] %v18188_v31 }
 0x2df   : > { %14229 = vmatmul.mubr.msk.f32.gmra.mrb[14].mxu1 %vm2533_vm5, %v17867_v44  ;;  %v18196_v44 = vld [vmem:[#allocation3 + $0x4a] sm:$0xff] }
 0x2e0   : > { %13978 = vmatmul.mubr.msk.f32.gmra.mrb[214].mxu0 %vm2533_vm5, %v18172_v47  ;;  %14231 = vmatprep.mubr.msk.f32.mxu1 %vm2533_vm5, %v17905_v56  ;;  %20669 = vst [vmem:[#allocation13_spill] sm:$0xff] %v18196_v44 }
 0x2e1   : > { %13980 = vmatprep.mubr.msk.f32.mxu0 %vm2533_vm5, %v18176_v22 }
 0x2e3   : > { %14232 = vmatmul.mubr.msk.f32.gmra.mrb[16].mxu1 %vm2533_vm5, %v17915_v10 }
 0x2e4   : > { %13981 = vmatmul.mubr.msk.f32.gmra.mrb[216].mxu0 %vm2533_vm5, %v18184_v29  ;;  %14234 = vmatprep.mubr.msk.f32.mxu1 %vm2533_vm5, %v17942_v13 }
 0x2e5   : > { %13983 = vmatprep.mubr.msk.f32.mxu0 %vm2533_vm5, %v18188_v31 }
 0x2e7   : > { %14235 = vmatmul.mubr.msk.f32.gmra.mrb[18].mxu1 %vm2533_vm5, %v17958_v28 }
 0x2e8   : > { %13984 = vmatmul.mubr.msk.f32.gmra.mrb[218].mxu0 %vm2533_vm5, %v18196_v44  ;;  %14237 = vmatprep.mubr.msk.f32.mxu1 %vm2533_vm5, %v18206_v14 }
 0x2e9   : > { %13986 = vmatprep.mubr.msk.f32.mxu0 %vm2533_vm5, %v18200_v52 }
 0x2eb   : > { %14238 = vmatmul.mubr.msk.f32.gmra.mrb[20].mxu1 %vm2533_vm5, %v18212_v62 }
 0x2ec   : > { %13987 = vmatmul.mubr.msk.f32.gmra.mrb[220].mxu0 %vm2533_vm5, %v18210_v11  ;;  %14240 = vmatprep.mubr.msk.f32.mxu1 %vm2533_vm5, %v5160_v40  ;;  %v18238_v40 = vld [vmem:[#allocation3 + $0x82] sm:$0xff] }
 0x2ed   : > { %13989 = vmatprep.mubr.msk.f32.mxu0 %vm2533_vm5, %v18216_v46  ;;  %20675 = vst [vmem:[#allocation19_spill] sm:$0xff] %v18238_v40 }
 0x2ef   : > { %14241 = vmatmul.mubr.msk.f32.gmra.mrb[22].mxu1 %vm2533_vm5, %v5161_v48  ;;  %v18246_v48 = vld [vmem:[#allocation3 + $0x8a] sm:$0xff] }
 0x2f0   : > { %13990 = vmatmul.mubr.msk.f32.gmra.mrb[222].mxu0 %vm2533_vm5, %v18222_v49  ;;  %14247 = vmatprep.mubr.msk.f32.mxu1 %vm2533_vm5, %v18164_v50 }
 0x2f1   : > { %13992 = vmatprep.mubr.msk.f32.mxu0 %vm2533_vm5, %v18227_v45 }
 0x2f3   : > { %14248 = vmatmul.mubr.msk.f32.vlgmr.msra.gmra.mrb[24].mxu1 %vm2533_vm5, %v18172_v47  ;;  %v11952_v47 = vld [vmem:[%s20637_s3 + $0x58] sm:$0xff] }
 0x2f4   : > { %13993 = vmatmul.mubr.msk.f32.gmra.mrb[224].mxu0 %vm2533_vm5, %v18234_v63  ;;  %14250 = vmatprep.mubr.msk.f32.mxu1 %vm2533_vm5, %v18176_v22  ;;  %v18262_v22 = vld [vmem:[#allocation3 + $0xa2] sm:$0xff] }
 0x2f5   : > { %13995 = vmatprep.mubr.msk.f32.mxu0 %vm2533_vm5, %v18238_v40 }
 0x2f7   : > { %14251 = vmatmul.mubr.msk.f32.gmra.mrb[26].mxu1 %vm2533_vm5, %v18184_v29  ;;  %v18270_v29 = vld [vmem:[#allocation3 + $0xaa] sm:$0xff] }
 0x2f8   : > { %13996 = vmatmul.mubr.msk.f32.gmra.mrb[226].mxu0 %vm2533_vm5, %v18246_v48  ;;  %14253 = vmatprep.mubr.msk.f32.mxu1 %vm2533_vm5, %v18188_v31  ;;  %v18274_v31 = vld [vmem:[#allocation3 + $0xb2] sm:$0xff] }
 0x2f9   : > { %13998 = vmatprep.mubr.msk.f32.mxu0 %vm2533_vm5, %v18250_v2 }
 0x2fb   : > { %14254 = vmatmul.mubr.msk.f32.gmra.mrb[0].mxu1 %vm2533_vm5, %v18196_v44  ;;  %v18282_v44 = vld [vmem:[#allocation3 + $0xba] sm:$0xff] }
 0x2fc   : > { %13999 = vmatmul.mubr.msk.f32.gmra.mrb[228].mxu0 %vm2533_vm5, %v18258_v4  ;;  %14256 = vmatprep.mubr.msk.f32.mxu1 %vm2533_vm5, %v18200_v52  ;;  %v18286_v52 = vld [vmem:[#allocation3 + $0xc2] sm:$0xff] }
 0x2fd   : > { %14001 = vmatprep.mubr.msk.f32.mxu0 %vm2533_vm5, %v18262_v22 }
 0x2ff   : > { %14257 = vmatmul.mubr.msk.f32.gmra.mrb[2].mxu1 %vm2533_vm5, %v18210_v11  ;;  %v18294_v11 = vld [vmem:[#allocation3 + $0xca] sm:$0xff] }
 0x300   : > { %14002 = vmatmul.mubr.msk.f32.gmra.mrb[230].mxu0 %vm2533_vm5, %v18270_v29  ;;  %14259 = vmatprep.mubr.msk.f32.mxu1 %vm2533_vm5, %v18216_v46  ;;  %v18298_v46 = vld [vmem:[#allocation3 + $0xd2] sm:$0xff] }
 0x301   : > { %14004 = vmatprep.mubr.msk.f32.mxu0 %vm2533_vm5, %v18274_v31 }
 0x303   : > { %14260 = vmatmul.mubr.msk.f32.gmra.mrb[4].mxu1 %vm2533_vm5, %v18222_v49  ;;  %v18306_v49 = vld [vmem:[#allocation3 + $0xda] sm:$0xff] }
 0x304   : > { %14005 = vmatmul.mubr.msk.f32.gmra.mrb[232].mxu0 %vm2533_vm5, %v18282_v44  ;;  %14262 = vmatprep.mubr.msk.f32.mxu1 %vm2533_vm5, %v18227_v45  ;;  %v11951_v45 = vld [vmem:[%s20637_s3 + $0x50] sm:$0xff] }
 0x305   : > { %14007 = vmatprep.mubr.msk.f32.mxu0 %vm2533_vm5, %v18286_v52 }
 0x307   : > { %14263 = vmatmul.mubr.msk.f32.gmra.mrb[6].mxu1 %vm2533_vm5, %v18234_v63 }
 0x308   : > { %14008 = vmatmul.mubr.msk.f32.gmra.mrb[234].mxu0 %vm2533_vm5, %v18294_v11  ;;  %14265 = vmatprep.mubr.msk.f32.mxu1 %vm2533_vm5, %v18238_v40  ;;  %v15459_v40 = vpack.c.bf16 %v11952_v47, %v11951_v45  ;;  %v12075_v45 = vld [vmem:[%s20639_s5 + $0x38] sm:$0xff] }
 0x309   : > { %14010 = vmatprep.mubr.msk.f32.mxu0 %vm2533_vm5, %v18298_v46 }
 0x30b   : > { %14266 = vmatmul.mubr.msk.f32.gmra.mrb[8].mxu1 %vm2533_vm5, %v18246_v48 }
 0x30c   : > { %14011 = vmatmul.mubr.msk.f32.gmra.mrb[236].mxu0 %vm2533_vm5, %v18306_v49  ;;  %14268 = vmatprep.mubr.msk.f32.mxu1 %vm2533_vm5, %v18250_v2 }
 0x30d   : > { %14017 = vmatprep.mubr.msk.f32.mxu0 %vm2533_vm5, %v17977_v35  ;;  %v18361_v35 = vld [vmem:[#allocation3 + $0xe2] sm:$0xff] }
 0x30f   : > { %14269 = vmatmul.mubr.msk.f32.gmra.mrb[10].mxu1 %vm2533_vm5, %v18258_v4 }
 0x310   : > { %14018 = vmatmul.mubr.msk.f32.vlgmr.msra.gmra.mrb[210].mxu0 %vm2533_vm5, %v17985_v1  ;;  %14271 = vmatprep.mubr.msk.f32.mxu1 %vm2533_vm5, %v18262_v22  ;;  %v5508_v1 = vld [vmem:[#allocation3 + $0xf2] sm:$0xff] }
 0x311   : > { %15458 = vmatpush3.bf16.msra.mxu0 %v18148_v53  ;;  %14020 = vmatprep.mubr.msk.f32.mxu0 %vm2533_vm5, %v17991_v6 }
 0x312   : > { %15460 = vmatprep.subr.bf16.mxu0 %v15459_v40 }
 0x313   : > { %14272 = vmatmul.mubr.msk.f32.gmra.mrb[12].mxu1 %vm2533_vm5, %v18270_v29 }
 0x314   : > { %14021 = vmatmul.mubr.msk.f32.gmra.mrb[212].mxu0 %vm2533_vm5, %v17995_v38  ;;  %14274 = vmatprep.mubr.msk.f32.mxu1 %vm2533_vm5, %v18274_v31 }
 0x315   : > { %14023 = vmatprep.mubr.msk.f32.mxu0 %vm2533_vm5, %v17999_v57 }
 0x317   : > { %14275 = vmatmul.mubr.msk.f32.gmra.mrb[14].mxu1 %vm2533_vm5, %v18282_v44 }
 0x318   : > { %14024 = vmatmul.mubr.msk.f32.gmra.mrb[214].mxu0 %vm2533_vm5, %v18003_v12  ;;  %14277 = vmatprep.mubr.msk.f32.mxu1 %vm2533_vm5, %v18286_v52 }
 0x319   : > { %14026 = vmatprep.mubr.msk.f32.mxu0 %vm2533_vm5, %v18007_v60  ;;  %v18369_v60 = vld [vmem:[#allocation3 + $0xea] sm:$0xff] }
 0x31b   : > { %14278 = vmatmul.mubr.msk.f32.gmra.mrb[16].mxu1 %vm2533_vm5, %v18294_v11 }
 0x31c   : > { %14027 = vmatmul.mubr.msk.f32.gmra.mrb[216].mxu0 %vm2533_vm5, %v18013_v7  ;;  %14280 = vmatprep.mubr.msk.f32.mxu1 %vm2533_vm5, %v18298_v46  ;;  %v5509_v7 = vld [vmem:[#allocation3 + $0xfa] sm:$0xff] }
 0x31d   : > { %14029 = vmatprep.mubr.msk.f32.mxu0 %vm2533_vm5, %v18017_v8  ;;  %v20676_v8 = vmov 0.0  }
 0x31e   : > { %6076 = vst.msk [vmem:[#allocation5] sm:$0xff] %vm6048_vm9, %v20676_v8  ;;  %6077 = vst.msk [vmem:[#allocation5 + $0x8] sm:$0xff] %vm6048_vm9, %v20676_v8 }
 0x31f   : > { %14281 = vmatmul.mubr.msk.f32.gmra.mrb[18].mxu1 %vm2533_vm5, %v18306_v49  ;;  %6078 = vst.msk [vmem:[#allocation5 + $0x10] sm:$0xff] %vm6048_vm9, %v20676_v8  ;;  %6079 = vst.msk [vmem:[#allocation5 + $0x18] sm:$0xff] %vm6048_vm9, %v20676_v8 }
 0x320   : > { %14030 = vmatmul.mubr.msk.f32.gmra.mrb[218].mxu0 %vm2533_vm5, %v18021_v15  ;;  %14283 = vmatprep.mubr.msk.f32.mxu1 %vm2533_vm5, %v18361_v35  ;;  %v3758_v15 = vld [vmem:[#allocation3 + $0x90] sm:$0xff]  ;;  %6080 = vst.msk [vmem:[#allocation5 + $0x20] sm:$0xff] %vm6048_vm9, %v20676_v8  ;;  %6081 = vst.msk [vmem:[#allocation5 + $0x28] sm:$0xff] %vm6048_vm9, %v20676_v8 }
 0x321   : > { %14032 = vmatprep.mubr.msk.f32.mxu0 %vm2533_vm5, %v18031_v19  ;;  %v3759_v19 = vld [vmem:[#allocation3 + $0x98] sm:$0xff]  ;;  %6082 = vst.msk [vmem:[#allocation5 + $0x30] sm:$0xff] %vm6048_vm9, %v20676_v8  ;;  %6083 = vst.msk [vmem:[#allocation5 + $0x38] sm:$0xff] %vm6048_vm9, %v20676_v8 }
 0x322   : > { %6084 = vst.msk [vmem:[#allocation5 + $0x40] sm:$0xff] %vm6048_vm9, %v20676_v8  ;;  %6085 = vst.msk [vmem:[#allocation5 + $0x48] sm:$0xff] %vm6048_vm9, %v20676_v8 }
 0x323   : > { %14284 = vmatmul.mubr.msk.f32.gmra.mrb[20].mxu1 %vm2533_vm5, %v18369_v60  ;;  %6086 = vst.msk [vmem:[#allocation5 + $0x50] sm:$0xff] %vm6048_vm9, %v20676_v8 }
 0x324   : > { %14033 = vmatmul.mubr.msk.f32.gmra.mrb[220].mxu0 %vm2533_vm5, %v18038_v25  ;;  %14286 = vmatprep.mubr.msk.f32.mxu1 %vm2533_vm5, %v5508_v1  ;;  %v3760_v25 = vld [vmem:[#allocation3 + $0xa0] sm:$0xff] }
 0x325   : > { %14035 = vmatprep.mubr.msk.f32.mxu0 %vm2533_vm5, %v18042_v16  ;;  %v3761_v16 = vld [vmem:[#allocation3 + $0xa8] sm:$0xff] }
 0x327   : > { %14287 = vmatmul.mubr.msk.f32.gmra.mrb[22].mxu1 %vm2533_vm5, %v5509_v7 }
 0x328   : > { %14036 = vmatmul.mubr.msk.f32.gmra.mrb[222].mxu0 %vm2533_vm5, %v18051_v34  ;;  %14485 = vmatprep.mubr.msk.f32.mxu1 %vm16659_vm3, %v20676_v8  ;;  %v3762_v34 = vld [vmem:[#allocation3 + $0xb0] sm:$0xff] }
 0x329   : > { %14038 = vmatprep.mubr.msk.f32.mxu0 %vm2533_vm5, %v18055_v39  ;;  %v4090_v39 = vld [vmem:[#allocation3 + $0x11] sm:$0xff] }
 0x32c   : > { %14039 = vmatmul.mubr.msk.f32.gmra.mrb[224].mxu0 %vm2533_vm5, %v18068_v43  ;;  %v20686_v43 = vld [vmem:[#allocation18_spill] sm:$0xff] }
 0x32d   : > { %14041 = vmatprep.mubr.msk.f32.mxu0 %vm2533_vm5, %v3758_v15 }
 0x330   : > { %14042 = vmatmul.mubr.msk.f32.gmra.mrb[226].mxu0 %vm2533_vm5, %v3759_v19  ;;  %v18612_v19 = vld [vmem:[%s20638_s4] ss:$0 sm:$0xff] }
 0x331   : > { %14044 = vmatprep.mubr.msk.f32.mxu0 %vm2533_vm5, %v3760_v25 }
 0x334   : > { %14045 = vmatmul.mubr.msk.f32.gmra.mrb[228].mxu0 %vm2533_vm5, %v3761_v16 }
 0x335   : > { %14047 = vmatprep.mubr.msk.f32.mxu0 %vm2533_vm5, %v3762_v34 }
 0x338   : > { %14048 = vmatmul.mubr.msk.f32.gmra.mrb[230].mxu0 %vm2533_vm5, %v17869_v59  ;;  %v4091_v59 = vld [vmem:[#allocation3 + $0x19] sm:$0xff] }
 0x339   : > { %14050 = vmatprep.mubr.msk.f32.mxu0 %vm2533_vm5, %v17907_v61  ;;  %v4107_v61 = vld [vmem:[#allocation3 + $0x99] sm:$0xff] }
 0x33c   : > { %14051 = vmatmul.mubr.msk.f32.gmra.mrb[232].mxu0 %vm2533_vm5, %v17917_v5  ;;  %v4108_v5 = vld [vmem:[#allocation3 + $0xa1] sm:$0xff] }
 0x33d   : > { %14053 = vmatprep.mubr.msk.f32.mxu0 %vm2533_vm5, %v17944_v17  ;;  %v4109_v17 = vld [vmem:[#allocation3 + $0xa9] sm:$0xff] }
 0x340   : > { %14054 = vmatmul.mubr.msk.f32.gmra.mrb[234].mxu0 %vm2533_vm5, %v17960_v41  ;;  %v4110_v41 = vld [vmem:[#allocation3 + $0xb1] sm:$0xff] }
 0x341   : > { %14056 = vmatprep.mubr.msk.f32.mxu0 %vm2533_vm5, %v18023_v18  ;;  %v4111_v18 = vld [vmem:[#allocation3 + $0xb9] sm:$0xff] }
 0x344   : > { %14057 = vmatmul.mubr.msk.f32.gmra.mrb[236].mxu0 %vm2533_vm5, %v18025_v0  ;;  %v20681_v0 = vld [vmem:[#allocation13_spill] sm:$0xff] }
 0x345   : > { %14063 = vmatprep.mubr.msk.f32.mxu0 %vm2533_vm5, %v4090_v39 }
 0x348   : > { %14064 = vmatmul.mubr.msk.f32.vlgmr.msra.gmra.mrb[210].mxu0 %vm2533_vm5, %v4091_v59 }
 0x349   : > { %15462 = vmatpush3.bf16.msra.mxu0 %v15459_v40  ;;  %14066 = vmatprep.mubr.msk.f32.mxu0 %vm2533_vm5, %v18047_v27  ;;  %v20682_v27 = vld [vmem:[#allocation14_spill] sm:$0xff] }
 0x34a   : > { %15464 = vmatprep.subr.bf16.mxu0 %v17106_v20 }
 0x34c   : > { %14067 = vmatmul.mubr.msk.f32.gmra.mrb[212].mxu0 %vm2533_vm5, %v18057_v42  ;;  %v20684_v42 = vld [vmem:[#allocation16_spill] sm:$0xff] }
 0x34d   : > { %14069 = vmatprep.mubr.msk.f32.mxu0 %vm2533_vm5, %v18063_v37  ;;  %v20685_v37 = vld [vmem:[#allocation17_spill] sm:$0xff] }
 0x350   : > { %14070 = vmatmul.mubr.msk.f32.gmra.mrb[214].mxu0 %vm2533_vm5, %v18073_v30  ;;  %v20687_v30 = vld [vmem:[#allocation19_spill] sm:$0xff] }
 0x351   : > { %14072 = vmatprep.mubr.msk.f32.mxu0 %vm2533_vm5, %v18079_v9 }
 0x354   : > { %14073 = vmatmul.mubr.msk.f32.gmra.mrb[216].mxu0 %vm2533_vm5, %v18085_v36 }
 0x355   : > { %14075 = vmatprep.mubr.msk.f32.mxu0 %vm2533_vm5, %v18091_v3 }
 0x358   : > { %14076 = vmatmul.mubr.msk.f32.gmra.mrb[218].mxu0 %vm2533_vm5, %v18097_v21 }
 0x359   : > { %14078 = vmatprep.mubr.msk.f32.mxu0 %vm2533_vm5, %v18103_v26 }
 0x35c   : > { %14079 = vmatmul.mubr.msk.f32.gmra.mrb[220].mxu0 %vm2533_vm5, %v18109_v24 }
 0x35d   : > { %14081 = vmatprep.mubr.msk.f32.mxu0 %vm2533_vm5, %v18115_v33 }
 0x360   : > { %14082 = vmatmul.mubr.msk.f32.gmra.mrb[222].mxu0 %vm2533_vm5, %v18121_v32 }
 0x361   : > { %14084 = vmatprep.mubr.msk.f32.mxu0 %vm2533_vm5, %v18127_v23 }
 0x364   : > { %14085 = vmatmul.mubr.msk.f32.gmra.mrb[224].mxu0 %vm2533_vm5, %v18139_v51 }
 0x365   : > { %14087 = vmatprep.mubr.msk.f32.mxu0 %vm2533_vm5, %v18143_v55 }
 0x368   : > { %14088 = vmatmul.mubr.msk.f32.gmra.mrb[226].mxu0 %vm2533_vm5, %v4107_v61 }
 0x369   : > { %14090 = vmatprep.mubr.msk.f32.mxu0 %vm2533_vm5, %v4108_v5 }
 0x36c   : > { %14091 = vmatmul.mubr.msk.f32.gmra.mrb[228].mxu0 %vm2533_vm5, %v4109_v17 }
 0x36d   : > { %14093 = vmatprep.mubr.msk.f32.mxu0 %vm2533_vm5, %v4110_v41 }
 0x370   : > { %14094 = vmatmul.mubr.msk.f32.gmra.mrb[230].mxu0 %vm2533_vm5, %v4111_v18 }
 0x371   : > { %14096 = vmatprep.mubr.msk.f32.mxu0 %vm2533_vm5, %v17905_v56  ;;  %v20677_v56 = vld [vmem:[#allocation9_spill] sm:$0xff] }
 0x374   : > { %14097 = vmatmul.mubr.msk.f32.gmra.mrb[232].mxu0 %vm2533_vm5, %v17915_v10  ;;  %v20678_v10 = vld [vmem:[#allocation10_spill] sm:$0xff] }
 0x375   : > { %14099 = vmatprep.mubr.msk.f32.mxu0 %vm2533_vm5, %v17942_v13  ;;  %v20679_v13 = vld [vmem:[#allocation11_spill] sm:$0xff] }
 0x378   : > { %14100 = vmatmul.mubr.msk.f32.gmra.mrb[234].mxu0 %vm2533_vm5, %v17958_v28  ;;  %v20680_v28 = vld [vmem:[#allocation12_spill] sm:$0xff] }
 0x379   : > { %14102 = vmatprep.mubr.msk.f32.mxu0 %vm2533_vm5, %v18206_v14 }
 0x37c   : > { %14103 = vmatmul.mubr.msk.f32.gmra.mrb[236].mxu0 %vm2533_vm5, %v18212_v62  ;;  %v12073_v62 = vld [vmem:[%s20639_s5 + $0x28] sm:$0xff] }
 0x37d   : > { %14109 = vmatprep.mubr.msk.f32.mxu0 %vm2533_vm5, %v18151_v54 }
 0x380   : > { %14110 = vmatmul.mubr.msk.f32.vlgmr.msra.gmra.mrb[210].mxu0 %vm2533_vm5, %v18160_v58 }
 0x381   : > { %15466 = vmatpush3.bf16.msra.mxu0 %v17106_v20  ;;  %14112 = vmatprep.mubr.msk.f32.mxu0 %vm2533_vm5, %v18164_v50  ;;  %v20683_v20 = vld [vmem:[#allocation15_spill] sm:$0xff] }
 0x384   : > { %14113 = vmatmul.mubr.msk.f32.gmra.mrb[212].mxu0 %vm2533_vm5, %v20677_v56 }
 0x385   : > { %14115 = vmatprep.mubr.msk.f32.mxu0 %vm2533_vm5, %v20678_v10 }
 0x388   : > { %14116 = vmatmul.mubr.msk.f32.gmra.mrb[214].mxu0 %vm2533_vm5, %v20679_v13 }
 0x389   : > { %14118 = vmatprep.mubr.msk.f32.mxu0 %vm2533_vm5, %v20680_v28 }
 0x38c   : > { %14119 = vmatmul.mubr.msk.f32.gmra.mrb[216].mxu0 %vm2533_vm5, %v20681_v0 }
 0x38d   : > { %14121 = vmatprep.mubr.msk.f32.mxu0 %vm2533_vm5, %v20682_v27 }
 0x390   : > { %14122 = vmatmul.mubr.msk.f32.gmra.mrb[218].mxu0 %vm2533_vm5, %v20683_v20 }
 0x391   : > { %14124 = vmatprep.mubr.msk.f32.mxu0 %vm2533_vm5, %v20684_v42 }
 0x394   : > { %14125 = vmatmul.mubr.msk.f32.gmra.mrb[220].mxu0 %vm2533_vm5, %v20685_v37 }
 0x395   : > { %14127 = vmatprep.mubr.msk.f32.mxu0 %vm2533_vm5, %v20686_v43 }
 0x398   : > { %14128 = vmatmul.mubr.msk.f32.gmra.mrb[222].mxu0 %vm2533_vm5, %v18234_v63  ;;  %v6121_v63 = vld [vmem:[#allocation5 + $0x1] sm:$0xff] }
 0x399   : > { %14130 = vmatprep.mubr.msk.f32.mxu0 %vm2533_vm5, %v20687_v30 }
 0x39c   : > { %14131 = vmatmul.mubr.msk.f32.gmra.mrb[224].mxu0 %vm2533_vm5, %v18246_v48  ;;  %v6117_v48 = vld [vmem:[%s20639_s5] sm:$0xff] }
 0x39d   : > { %14133 = vmatprep.mubr.msk.f32.mxu0 %vm2533_vm5, %v18250_v2 }
 0x3a0   : > { %14134 = vmatmul.mubr.msk.f32.gmra.mrb[226].mxu0 %vm2533_vm5, %v18258_v4 }
 0x3a1   : > { %14136 = vmatprep.mubr.msk.f32.mxu0 %vm2533_vm5, %v18262_v22 }
 0x3a4   : > { %14137 = vmatmul.mubr.msk.f32.gmra.mrb[228].mxu0 %vm2533_vm5, %v18270_v29 }
 0x3a5   : > { %14139 = vmatprep.mubr.msk.f32.mxu0 %vm2533_vm5, %v18274_v31 }
 0x3a8   : > { %14140 = vmatmul.mubr.msk.f32.gmra.mrb[230].mxu0 %vm2533_vm5, %v18282_v44 }
 0x3a9   : > { %14142 = vmatprep.mubr.msk.f32.mxu0 %vm2533_vm5, %v18286_v52 }
 0x3ac   : > { %14143 = vmatmul.mubr.msk.f32.gmra.mrb[232].mxu0 %vm2533_vm5, %v18294_v11  ;;  %v12072_v11 = vld [vmem:[%s20639_s5 + $0x20] sm:$0xff] }
 0x3ad   : > { %14145 = vmatprep.mubr.msk.f32.mxu0 %vm2533_vm5, %v18298_v46  ;;  %v15475_v46 = vpack.c.bf16 %v12073_v62, %v12072_v11 }
 0x3af   : > { %15476 = vmatprep.subr.bf16.mxu0 %v15475_v46 }
 0x3b0   : > { %14146 = vmatmul.mubr.msk.f32.gmra.mrb[234].mxu0 %vm2533_vm5, %v18306_v49  ;;  %v12074_v49 = vld [vmem:[%s20639_s5 + $0x30] sm:$0xff] }
 0x3b1   : > { %14148 = vmatprep.mubr.msk.f32.mxu0 %vm2533_vm5, %v18361_v35  ;;  %v15479_v40 = vpack.c.bf16 %v12075_v45, %v12074_v49  ;;  %v6118_v35 = vld [vmem:[%s20639_s5 + $0x8] sm:$0xff] }
 0x3b2   : > { %v18606_v1 = vpack.c.bf16 %v6118_v35, %v6117_v48 }
 0x3b4   : > { %14149 = vmatmul.mubr.msk.f32.gmra.mrb[236].mxu0 %vm2533_vm5, %v18369_v60 }
 0x3b5   : > { %14155 = vmatprep.mubr.msk.f32.mxu0 %vm2533_vm5, %v17991_v6 }
 0x3b8   : > { %14156 = vmatmul.mubr.msk.f32.vlgmr.msra.gmra.mrb[210].mxu0 %vm2533_vm5, %v17995_v38 }
 0x3b9   : > { %14158 = vmatprep.mubr.msk.f32.mxu0 %vm2533_vm5, %v17999_v57  ;;  %15478 = vmatpush3.bf16.msra.mxu0 %v15475_v46 }
 0x3ba   : > { %15480 = vmatprep.subr.bf16.mxu0 %v15479_v40 }
 0x3bc   : > { %14159 = vmatmul.mubr.msk.f32.gmra.mrb[212].mxu0 %vm2533_vm5, %v18003_v12 }
 0x3bd   : > { %14297 = vmatprep.mubr.msk.f32.mxu0 %vm6048_vm9, %v6121_v63  ;;  %15482 = vmatpush3.bf16.msra.mxu0 %v15479_v40 }
 0x3be   : > { %15484 = vmatprep.subr.bf16.mxu0 %v18606_v1 }
 0x3c6   : > { %v18517_v2 = vpop.f32.mrb[24].mxu1 }
 0x3c7   : > { %v18519_v4 = vpop.f32.mrb[25].mxu1 }
 0x3ca   : > { %v18521_v9 = vpop.f32.mrb[26].mxu1 }
 0x3cb   : > { %v18523_v36 = vpop.f32.mrb[27].mxu1 }
 0x3ce   : > { %v14255_v3 = vpop.f32.mrb[0].mxu1 }
 0x3cf   : > { %v5683_v21 = vpop.f32.mrb[1].mxu1 }
 0x3d2   : > { %v14258_v6 = vpop.f32.mrb[2].mxu1 }
 0x3d3   : > { %v5693_v26 = vpop.f32.mrb[3].mxu1 }
 0x3d6   : > { %v18525_v24 = vpop.f32.mrb[4].mxu1 }
 0x3d7   : > { %v18527_v38 = vpop.f32.mrb[5].mxu1 }
 0x3da   : > { %v18529_v57 = vpop.f32.mrb[6].mxu1 }
 0x3db   : > { %v18531_v33 = vpop.f32.mrb[7].mxu1 }
 0x3de   : > { %v18533_v12 = vpop.f32.mrb[8].mxu1 }
 0x3df   : > { %v18535_v32 = vpop.f32.mrb[9].mxu1 }
 0x3e2   : > { %v18537_v23 = vpop.f32.mrb[10].mxu1 }
 0x3e3   : > { %v18539_v51 = vpop.f32.mrb[11].mxu1 }
 0x3e6   : > { %v18541_v55 = vpop.f32.mrb[12].mxu1 }
 0x3e7   : > { %v18543_v53 = vpop.f32.mrb[13].mxu1 }
 0x3ea   : > { %v18545_v54 = vpop.f32.mrb[14].mxu1 }
 0x3eb   : > { %v18569_v58 = vpop.f32.mrb[15].mxu1 }
 0x3ee   : > { %v18571_v50 = vpop.f32.mrb[16].mxu1 }
 0x3ef   : > { %v18573_v47 = vpop.f32.mrb[17].mxu1 }
 0x3f2   : > { %v18575_v22 = vpop.f32.mrb[18].mxu1 }
 0x3f3   : > { %v18577_v29 = vpop.f32.mrb[19].mxu1 }
 0x3f6   : > { %v18579_v31 = vpop.f32.mrb[20].mxu1 }
 0x3f7   : > { %v18581_v44 = vpop.f32.mrb[21].mxu1 }
 0x3fa   : > { %v18583_v52 = vpop.f32.mrb[22].mxu1 }
 0x3fb   : > { %v18585_v14 = vpop.f32.mrb[23].mxu1 }
 0x45b   : > { %v14117_v60 = vpop.f32.mrb[214].mxu0 }
 0x45c   : > { %v16165_v7 = vadd.f32 %v14255_v3, %v14117_v60  ;;  %v4639_v15 = vpop.f32.mrb[215].mxu0 }
 0x45d   : > { %v16166_v25 = vadd.f32 %v5683_v21, %v4639_v15 }
 0x45e   : > { %v5842_v34 = vadd.f32 %v16165_v7, %v18612_v19 }
 0x45f   : > { %v14120_v16 = vpop.f32.mrb[216].mxu0  ;;  %v18616_v61 = vadd.f32 %v16166_v25, %v18612_v19 }
 0x460   : > { %v16167_v39 = vadd.f32 %v14258_v6, %v14120_v16  ;;  %v4649_v59 = vpop.f32.mrb[217].mxu0  ;;  %v5870_v56 = vmax.f32 %v5842_v34, 0.0 }
 0x461   : > { %v16168_v5 = vadd.f32 %v5693_v26, %v4649_v59  ;;  %v5869_v0 = vmax.f32 %v18616_v61, 0.0 }
 0x462   : > { %v5844_v17 = vadd.f32 %v16167_v39, %v18612_v19 }
 0x463   : > { %v5843_v41 = vadd.f32 %v16168_v5, %v18612_v19  ;;  %v14123_v18 = vpop.f32.mrb[218].mxu0 }
 0x464   : > { %v5872_v10 = vmax.f32 %v5844_v17, 0.0  ;;  %v16169_v13 = vadd.f32 %v18525_v24, %v14123_v18  ;;  %v4659_v28 = vpop.f32.mrb[219].mxu0 }
 0x465   : > { %v5871_v27 = vmax.f32 %v5843_v41, 0.0  ;;  %v16170_v20 = vadd.f32 %v18527_v38, %v4659_v28 }
 0x466   : > { %v5898_v42 = vmax.f32 %v5870_v56, %v5872_v10  ;;  %v5846_v37 = vadd.f32 %v16169_v13, %v18612_v19 }
 0x467   : > { %v5897_v43 = vmax.f32 %v5869_v0, %v5871_v27  ;;  %v5845_v30 = vadd.f32 %v16170_v20, %v18612_v19  ;;  %v14126_v3 = vpop.f32.mrb[220].mxu0 }
 0x468   : > { %v5954_v21 = vrot.slane %v5898_v42, 1  ;;  %v5874_v6 = vmax.f32 %v5846_v37, 0.0  ;;  %v16171_v26 = vadd.f32 %v18529_v57, %v14126_v3  ;;  %v4669_v24 = vpop.f32.mrb[221].mxu0 }
 0x469   : > { %v5952_v11 = vrot.slane %v5897_v43, 1  ;;  %v5873_v62 = vmax.f32 %v5845_v30, 0.0  ;;  %v16172_v46 = vadd.f32 %v18531_v33, %v4669_v24 }
 0x46a   : > { %v5848_v38 = vadd.f32 %v16171_v26, %v18612_v19 }
 0x46b   : > { %v5955_v49 = vsel %vm2125_vm7, %v5952_v11, %v5954_v21  ;;  %v5899_v45 = vmax.f32 %v5871_v27, %v5873_v62  ;;  %v5847_v63 = vadd.f32 %v16172_v46, %v18612_v19  ;;  %v14129_v40 = vpop.f32.mrb[222].mxu0 }
 0x46c   : > { %v6026_v48 = vmax.f32 %v5897_v43, %v5955_v49  ;;  %v5876_v35 = vmax.f32 %v5848_v38, 0.0  ;;  %v16173_v60 = vadd.f32 %v18533_v12, %v14129_v40  ;;  %v4679_v7 = vpop.f32.mrb[223].mxu0 }
 0x46d   : > { %v5956_v15 = vrot.slane %v5899_v45, 1  ;;  %v5875_v57 = vmax.f32 %v5847_v63, 0.0  ;;  %v16174_v25 = vadd.f32 %v18535_v32, %v4679_v7 }
 0x46e   : > { %6053 = vst.msk [vmem:[#allocation4 + $0x20] sm:$0xff] %vm6048_vm9, %v6026_v48  ;;  %v5902_v33 = vmax.f32 %v5874_v6, %v5876_v35  ;;  %v5850_v16 = vadd.f32 %v16173_v60, %v18612_v19 }
 0x46f   : > { %v5957_v34 = vsel %vm2125_vm7, %v5954_v21, %v5956_v15  ;;  %v5901_v39 = vmax.f32 %v5873_v62, %v5875_v57  ;;  %v5849_v59 = vadd.f32 %v16174_v25, %v18612_v19  ;;  %v14132_v5 = vpop.f32.mrb[224].mxu0 }
 0x470   : > { %v6027_v17 = vmax.f32 %v5898_v42, %v5957_v34  ;;  %v5962_v41 = vrot.slane %v5902_v33, 1  ;;  %v5878_v18 = vmax.f32 %v5850_v16, 0.0  ;;  %v4689_v12 = vpop.f32.mrb[225].mxu0  ;;  %v16175_v13 = vadd.f32 %v18537_v23, %v14132_v5 }
 0x471   : > { %v5960_v56 = vrot.slane %v5901_v39, 1  ;;  %v5877_v10 = vmax.f32 %v5849_v59, 0.0  ;;  %v16176_v32 = vadd.f32 %v18539_v51, %v4689_v12 }
 0x472   : > { %6054 = vst.msk [vmem:[#allocation4 + $0x28] sm:$0xff] %vm6048_vm9, %v6027_v17  ;;  %v5852_v20 = vadd.f32 %v16175_v13, %v18612_v19 }
 0x473   : > { %v5963_v28 = vsel %vm2125_vm7, %v5960_v56, %v5962_v41  ;;  %v5903_v27 = vmax.f32 %v5875_v57, %v5877_v10  ;;  %v14135_v37 = vpop.f32.mrb[226].mxu0  ;;  %v5851_v42 = vadd.f32 %v16176_v32, %v18612_v19 }
 0x474   : > { %v6030_v43 = vmax.f32 %v5901_v39, %v5963_v28  ;;  %v4699_v30 = vpop.f32.mrb[227].mxu0  ;;  %v5880_v21 = vmax.f32 %v5852_v20, 0.0  ;;  %v16177_v6 = vadd.f32 %v18541_v55, %v14135_v37 }
 0x475   : > { %v5964_v3 = vrot.slane %v5903_v27, 1  ;;  %v16178_v23 = vadd.f32 %v18543_v53, %v4699_v30  ;;  %v5879_v51 = vmax.f32 %v5851_v42, 0.0 }
 0x476   : > { %6057 = vst.msk [vmem:[#allocation4 + $0x40] sm:$0xff] %vm6048_vm9, %v6030_v43  ;;  %v5906_v24 = vmax.f32 %v5878_v18, %v5880_v21  ;;  %v5854_v11 = vadd.f32 %v16177_v6, %v18612_v19 }
 0x477   : > { %v5965_v26 = vsel %vm2125_vm7, %v5962_v41, %v5964_v3  ;;  %v14138_v62 = vpop.f32.mrb[228].mxu0  ;;  %v5905_v38 = vmax.f32 %v5877_v10, %v5879_v51  ;;  %v5853_v49 = vadd.f32 %v16178_v23, %v18612_v19 }
 0x478   : > { %v6031_v46 = vmax.f32 %v5902_v33, %v5965_v26  ;;  %v4709_v45 = vpop.f32.mrb[229].mxu0  ;;  %v5970_v63 = vrot.slane %v5906_v24, 1  ;;  %v5882_v40 = vmax.f32 %v5854_v11, 0.0  ;;  %v16179_v55 = vadd.f32 %v18545_v54, %v14138_v62 }
 0x479   : > { %v16180_v53 = vadd.f32 %v18569_v58, %v4709_v45  ;;  %v6092_v48 = vld [vmem:[#allocation4 + $0x20] ss:$2 sm:$0x7f]  ;;  %v5968_v35 = vrot.slane %v5905_v38, 1  ;;  %v5881_v60 = vmax.f32 %v5853_v49, 0.0 }
 0x47a   : > { %6058 = vst.msk [vmem:[#allocation4 + $0x48] sm:$0xff] %vm6048_vm9, %v6031_v46  ;;  %v5856_v7 = vadd.f32 %v16179_v55, %v18612_v19 }
 0x47b   : > { %6093 = vst.msk [vmem:[#allocation5 + $0x13] sm:$0x7f] %vm6074_vm10, %v6092_v48  ;;  %v5855_v15 = vadd.f32 %v16180_v53, %v18612_v19  ;;  %v14141_v57 = vpop.f32.mrb[230].mxu0  ;;  %v5971_v25 = vsel %vm2125_vm7, %v5968_v35, %v5970_v63  ;;  %v5907_v33 = vmax.f32 %v5879_v51, %v5881_v60 }
 0x47c   : > { %v16181_v16 = vadd.f32 %v18571_v50, %v14141_v57  ;;  %v4719_v54 = vpop.f32.mrb[231].mxu0  ;;  %v6034_v34 = vmax.f32 %v5905_v38, %v5971_v25  ;;  %v5884_v58 = vmax.f32 %v5856_v7, 0.0 }
 0x47d   : > { %v5972_v39 = vrot.slane %v5907_v33, 1  ;;  %v5883_v59 = vmax.f32 %v5855_v15, 0.0  ;;  %v16182_v17 = vadd.f32 %v18573_v47, %v4719_v54 }
 0x47e   : > { %v5858_v5 = vadd.f32 %v16181_v16, %v18612_v19  ;;  %6061 = vst.msk [vmem:[#allocation4 + $0x60] sm:$0xff] %vm6048_vm9, %v6034_v34  ;;  %v5910_v41 = vmax.f32 %v5882_v40, %v5884_v58 }
 0x47f   : > { %v14144_v18 = vpop.f32.mrb[232].mxu0  ;;  %v5973_v12 = vsel %vm2125_vm7, %v5970_v63, %v5972_v39  ;;  %v5909_v56 = vmax.f32 %v5881_v60, %v5883_v59  ;;  %v5857_v28 = vadd.f32 %v16182_v17, %v18612_v19 }
 0x480   : > { %v5886_v10 = vmax.f32 %v5858_v5, 0.0  ;;  %v4729_v13 = vpop.f32.mrb[233].mxu0  ;;  %v6035_v32 = vmax.f32 %v5906_v24, %v5973_v12  ;;  %v5978_v50 = vrot.slane %v5910_v41, 1  ;;  %v16183_v37 = vadd.f32 %v18575_v22, %v14144_v18 }
 0x481   : > { %v6095_v27 = vld [vmem:[#allocation4 + $0x40] ss:$2 sm:$0x7f]  ;;  %v5976_v20 = vrot.slane %v5909_v56, 1  ;;  %v16184_v43 = vadd.f32 %v18577_v29, %v4729_v13  ;;  %v5885_v47 = vmax.f32 %v5857_v28, 0.0 }
 0x482   : > { %6096 = vst.msk [vmem:[#allocation5 + $0x1c] sm:$0x7f] %vm6074_vm10, %v6095_v27  ;;  %v5860_v3 = vadd.f32 %v16183_v37, %v18612_v19 }
 0x483   : > { %6062 = vst.msk [vmem:[#allocation4 + $0x68] sm:$0xff] %vm6048_vm9, %v6035_v32  ;;  %v14147_v42 = vpop.f32.mrb[234].mxu0  ;;  %v5979_v30 = vsel %vm2125_vm7, %v5976_v20, %v5978_v50  ;;  %v5911_v23 = vmax.f32 %v5883_v59, %v5885_v47  ;;  %v5859_v51 = vadd.f32 %v16184_v43, %v18612_v19 }
 0x484   : > { %v4739_v21 = vpop.f32.mrb[235].mxu0  ;;  %v6038_v6 = vmax.f32 %v5909_v56, %v5979_v30  ;;  %v5888_v26 = vmax.f32 %v5860_v3, 0.0  ;;  %v16185_v22 = vadd.f32 %v18579_v31, %v14147_v42 }
 0x485   : > { %v16186_v29 = vadd.f32 %v18581_v44, %v4739_v21  ;;  %v5980_v24 = vrot.slane %v5911_v23, 1  ;;  %v5887_v11 = vmax.f32 %v5859_v51, 0.0 }
 0x486   : > { %6065 = vst.msk [vmem:[#allocation4 + $0x80] sm:$0xff] %vm6048_vm9, %v6038_v6  ;;  %v5914_v46 = vmax.f32 %v5886_v10, %v5888_v26  ;;  %v5862_v38 = vadd.f32 %v16185_v22, %v18612_v19 }
 0x487   : > { %v14150_v62 = vpop.f32.mrb[236].mxu0  ;;  %v5861_v49 = vadd.f32 %v16186_v29, %v18612_v19  ;;  %v5981_v40 = vsel %vm2125_vm7, %v5978_v50, %v5980_v24  ;;  %v5913_v55 = vmax.f32 %v5885_v47, %v5887_v11 }
 0x488   : > { %v16187_v45 = vadd.f32 %v18583_v52, %v14150_v62  ;;  %v4749_v63 = vpop.f32.mrb[237].mxu0  ;;  %v6039_v53 = vmax.f32 %v5910_v41, %v5981_v40  ;;  %v5986_v44 = vrot.slane %v5914_v46, 1  ;;  %v5890_v48 = vmax.f32 %v5862_v38, 0.0  ;;  %v18723_v40 = vld [vmem:[#allocation5 + $0x11] sm:$0xff] }
 0x489   : > { %v16188_v31 = vadd.f32 %v18585_v14, %v4749_v63  ;;  %v5984_v60 = vrot.slane %v5913_v55, 1  ;;  %v5889_v7 = vmax.f32 %v5861_v49, 0.0  ;;  %v12093_v63 = vld [vmem:[%s20639_s5 + $0x48] sm:$0xff] }
 0x48a   : > { %v6098_v35 = vld [vmem:[#allocation4 + $0x60] ss:$2 sm:$0x7f]  ;;  %v5864_v15 = vadd.f32 %v16187_v45, %v18612_v19  ;;  %6066 = vst.msk [vmem:[#allocation4 + $0x88] sm:$0xff] %vm6048_vm9, %v6039_v53 }
 0x48b   : > { %v5863_v57 = vadd.f32 %v16188_v31, %v18612_v19  ;;  %v14157_v25 = vpop.f32.mrb[210].mxu0  ;;  %6099 = vst.msk [vmem:[#allocation5 + $0x25] sm:$0x7f] %vm6074_vm10, %v6098_v35  ;;  %v5987_v14 = vsel %vm2125_vm7, %v5984_v60, %v5986_v44  ;;  %v5915_v16 = vmax.f32 %v5887_v11, %v5889_v7  ;;  %v12092_v45 = vld [vmem:[%s20639_s5 + $0x40] sm:$0xff]  ;;  %v18728_v31 = vld [vmem:[#allocation5 + $0x19] sm:$0xff] }
 0x48c   : > { %v16161_v52 = vadd.f32 %v18517_v2, %v14157_v25  ;;  %v4967_v33 = vpop.f32.mrb[211].mxu0  ;;  %v5892_v54 = vmax.f32 %v5864_v15, 0.0  ;;  %v6042_v34 = vmax.f32 %v5913_v55, %v5987_v14  ;;  %v15491_v55 = vpack.c.bf16 %v12093_v63, %v12092_v45  ;;  %v12094_v60 = vld [vmem:[%s20639_s5 + $0x50] sm:$0xff]  ;;  %v7466_v15 = vld [vmem:[%s20641_s7] sm:$0xff] }
 0x48d   : > { %v5891_v58 = vmax.f32 %v5863_v57, 0.0  ;;  %v5988_v39 = vrot.slane %v5915_v16, 1  ;;  %v16162_v5 = vadd.f32 %v18519_v4, %v4967_v33  ;;  %v7467_v57 = vld [vmem:[%s20641_s7 + $0x8] sm:$0xff]  ;;  %v7468_v25 = vld [vmem:[%s20641_s7 + $0x10] sm:$0xff]  ;;  %v7469_v33 = vld [vmem:[%s20641_s7 + $0x18] sm:$0xff] }
 0x48e   : > { %v5918_v59 = vmax.f32 %v5890_v48, %v5892_v54  ;;  %6069 = vst.msk [vmem:[#allocation4 + $0xa0] sm:$0xff] %vm6048_vm9, %v6042_v34  ;;  %v5838_v18 = vadd.f32 %v16161_v52, %v18612_v19  ;;  %v6109_v48 = vld [vmem:[#allocation5] sm:$0xff]  ;;  %v15548_v52 = vpack.c.bf16 %v7467_v57, %v7466_v15  ;;  %v12104_v54 = vld [vmem:[%s20639_s5 + $0x60] sm:$0xff]  ;;  %v12105_v34 = vld [vmem:[%s20639_s5 + $0x68] sm:$0xff] }
 0x48f   : > { %v14160_v17 = vpop.f32.mrb[212].mxu0  ;;  %v5917_v41 = vmax.f32 %v5889_v7, %v5891_v58  ;;  %v5989_v56 = vsel %vm2125_vm7, %v5986_v44, %v5988_v39  ;;  %v5837_v28 = vadd.f32 %v16162_v5, %v18612_v19  ;;  %v12095_v7 = vld [vmem:[%s20639_s5 + $0x58] sm:$0xff]  ;;  %v15551_v58 = vpack.c.bf16 %v7469_v33, %v7468_v25  ;;  %v7470_v5 = vld [vmem:[%s20641_s7 + $0x20] sm:$0xff] }
 0x490   : > { %v16163_v12 = vadd.f32 %v18521_v9, %v14160_v17  ;;  %v4977_v2 = vpop.f32.mrb[213].mxu0  ;;  %v5994_v10 = vrot.slane %v5918_v59, 1  ;;  %v6043_v13 = vmax.f32 %v5914_v46, %v5989_v56  ;;  %v5866_v43 = vmax.f32 %v5838_v18, 0.0  ;;  %v6120_v46 = vld [vmem:[%s20639_s5 + $0x18] sm:$0xff]  ;;  %15549 = vmatpush3.bf16.msra.mxu1 %v15548_v52  ;;  %v7471_v17 = vld [vmem:[%s20641_s7 + $0x28] sm:$0xff]  ;;  %v7472_v56 = vld [vmem:[%s20641_s7 + $0x30] sm:$0xff] }
 0x491   : > { %v5992_v32 = vrot.slane %v5917_v41, 1  ;;  %v16164_v4 = vadd.f32 %v18523_v36, %v4977_v2  ;;  %v6101_v20 = vld [vmem:[#allocation4 + $0x80] ss:$2 sm:$0x7f]  ;;  %v5865_v30 = vmax.f32 %v5837_v28, 0.0  ;;  %v15495_v14 = vpack.c.bf16 %v12095_v7, %v12094_v60  ;;  %v6392_v28 = vld [vmem:[#allocation5 + $0x2] sm:$0xff] }
 0x492   : > { %v6047_v50 = vmax.f32 %v5918_v59, %v5994_v10  ;;  %v5840_v27 = vadd.f32 %v16163_v12, %v18612_v19  ;;  %6070 = vst.msk [vmem:[#allocation4 + $0xa8] sm:$0xff] %vm6048_vm9, %v6043_v13  ;;  %v18732_v53 = vld [vmem:[#allocation5 + $0x21] sm:$0xff]  ;;  %v20688_v59 = vmov 0.0|0.0   ;;  %v6112_v18 = vld [vmem:[#allocation5 + $0x18] sm:$0xff]  ;;  %v15554_v12 = vpack.c.bf16 %v7471_v17, %v7470_v5  ;;  %v6999_v17 = vld [vmem:[#allocation5 + $0x4a] sm:$0x7f] }
 0x493   : > { %v5995_v37 = vsel %vm2125_vm7, %v5992_v32, %v5994_v10  ;;  %6102 = vst.msk [vmem:[#allocation5 + $0x2e] sm:$0x7f] %vm6074_vm10, %v6101_v20  ;;  %v5839_v42 = vadd.f32 %v16164_v4, %v18612_v19  ;;  %15550 = vmatprep.subr.bf16.mxu1 %v20688_v59  ;;  %v6113_v2 = vld [vmem:[#allocation5 + $0x20] sm:$0xff]  ;;  %v7473_v10 = vld [vmem:[%s20641_s7 + $0x38] sm:$0xff] }
 0x494   : > { %6075 = vst.msk [vmem:[#allocation4 + $0xc8] sm:$0x7f] %vm6074_vm10, %v6047_v50  ;;  %v6046_v9 = vmax.f32 %v5917_v41, %v5995_v37  ;;  %v5868_v47 = vmax.f32 %v5840_v27, 0.0  ;;  %v15499_v41 = vpack.c.bf16 %v12105_v34, %v12104_v54  ;;  %15552 = vmatpush3.bf16.msra.mxu1 %v15551_v58  ;;  %v15557_v32 = vpack.c.bf16 %v7473_v10, %v7472_v56  ;;  %v12106_v4 = vld [vmem:[%s20639_s5 + $0x70] sm:$0xff]  ;;  %v12107_v20 = vld [vmem:[%s20639_s5 + $0x78] sm:$0xff]  ;;  %v12164_v34 = vld [vmem:[%s20639_s5 + $0x100] sm:$0xff] }
 0x495   : > { %v5867_v21 = vmax.f32 %v5839_v42, 0.0  ;;  %15553 = vmatprep.subr.bf16.mxu1 %v20688_v59  ;;  %v15503_v37 = vpack.c.bf16 %v12107_v20, %v12106_v4  ;;  %v18807_v42 = vld [vmem:[#allocation5 + $0x12] sm:$0xff]  ;;  %v6844_v60 = vld [vmem:[#allocation5 + $0x1b] sm:$0xff]  ;;  %v6845_v15 = vld [vmem:[#allocation5 + $0x23] sm:$0xff] }
 0x496   : > { %6073 = vst.msk [vmem:[#allocation4 + $0xc0] sm:$0xff] %vm6048_vm9, %v6046_v9  ;;  %v5894_v3 = vmax.f32 %v5866_v43, %v5868_v47  ;;  %v12116_v9 = vld [vmem:[%s20639_s5 + $0x80] sm:$0xff]  ;;  %v12117_v47 = vld [vmem:[%s20639_s5 + $0x88] sm:$0xff] }
 0x497   : > { %v5893_v6 = vmax.f32 %v5865_v30, %v5867_v21  ;;  %v5895_v23 = vmax.f32 %v5867_v21, %v5869_v0  ;;  %v6119_v0 = vld [vmem:[%s20639_s5 + $0x10] sm:$0xff]  ;;  %v15507_v30 = vpack.c.bf16 %v12117_v47, %v12116_v9  ;;  %v12165_v58 = vld [vmem:[%s20639_s5 + $0x108] sm:$0xff]  ;;  %v7149_v56 = vld [vmem:[#allocation5 + $0x4b] sm:$0x7f] }
 0x498   : > { %v5946_v36 = vrot.slane %v5894_v3, 1  ;;  %v15487_v38 = vpack.c.bf16 %v6120_v46, %v6119_v0  ;;  %15555 = vmatpush3.bf16.msra.mxu1 %v15554_v12  ;;  %v18815_v21 = vld [vmem:[#allocation5 + $0x22] sm:$0xff]  ;;  %v7292_v10 = vld [vmem:[#allocation5 + $0x14] sm:$0xff]  ;;  %v7299_v20 = vld [vmem:[#allocation5 + $0x4c] sm:$0x7f] }
 0x499   : > { %v5945_v51 = vrot.slane %v5893_v6, 1  ;;  %v5948_v26 = vrot.slane %v5895_v23, 1  ;;  %v6104_v22 = vld [vmem:[#allocation4 + $0xa0] ss:$2 sm:$0x7f]  ;;  %15556 = vmatprep.subr.bf16.mxu1 %v20688_v59  ;;  %v12131_v0 = vld [vmem:[%s20639_s5 + $0xb8] sm:$0xff] }
 0x49a   : > { %6105 = vst.msk [vmem:[#allocation5 + $0x37] sm:$0x7f] %vm6074_vm10, %v6104_v22  ;;  %v18736_v44 = vld [vmem:[#allocation5 + $0x29] sm:$0xff]  ;;  %v12179_v47 = vld [vmem:[%s20641_s7 + $0x48] sm:$0xff] }
 0x49b   : > { %v5947_v29 = vsel %vm2125_vm7, %v5945_v51, %v5946_v36  ;;  %v5949_v24 = vsel %vm2125_vm7, %v5946_v36, %v5948_v26  ;;  %v6114_v13 = vld [vmem:[#allocation5 + $0x28] sm:$0xff]  ;;  %v12118_v51 = vld [vmem:[%s20639_s5 + $0x90] sm:$0xff]  ;;  %v12178_v9 = vld [vmem:[%s20641_s7 + $0x40] sm:$0xff] }
 0x49c   : > { %v6022_v19 = vmax.f32 %v5893_v6, %v5947_v29  ;;  %v6023_v11 = vmax.f32 %v5894_v3, %v5949_v24  ;;  %15558 = vmatpush3.bf16.msra.mxu1 %v15557_v32  ;;  %v18811_v3 = vld [vmem:[#allocation5 + $0x1a] sm:$0xff]  ;;  %v18819_v36 = vld [vmem:[#allocation5 + $0x2a] sm:$0xff] }
 0x49d   : > { %v6107_v62 = vld [vmem:[#allocation4 + $0xc0] ss:$2 sm:$0x7f]  ;;  %15559 = vmatprep.subr.bf16.mxu1 %v20688_v59  ;;  %v12119_v26 = vld [vmem:[%s20639_s5 + $0x98] sm:$0xff] }
 0x49e   : > { %6108 = vst.msk [vmem:[#allocation5 + $0x40] sm:$0x7f] %vm6074_vm10, %v6107_v62  ;;  %v15511_v22 = vpack.c.bf16 %v12119_v26, %v12118_v51  ;;  %v12128_v29 = vld [vmem:[%s20639_s5 + $0xa0] sm:$0xff]  ;;  %v12129_v24 = vld [vmem:[%s20639_s5 + $0xa8] sm:$0xff]  ;;  %v7294_v32 = vld [vmem:[#allocation5 + $0x24] sm:$0xff] }
 0x49f   : > { %6049 = vst.msk [vmem:[#allocation4] sm:$0xff] %vm6048_vm9, %v6022_v19  ;;  %6050 = vst.msk [vmem:[#allocation4 + $0x8] sm:$0xff] %vm6048_vm9, %v6023_v11  ;;  %v15515_v19 = vpack.c.bf16 %v12129_v24, %v12128_v29  ;;  %v6846_v57 = vld [vmem:[#allocation5 + $0x2b] sm:$0xff] }
 0x4a0   : > { %v12181_v51 = vld [vmem:[%s20641_s7 + $0x58] sm:$0xff] }
 0x4a1   : > { %v6128_v35 = vld [vmem:[#allocation5 + $0x39] sm:$0x7f]  ;;  %v6115_v50 = vld [vmem:[#allocation5 + $0x30] sm:$0xff] }
 0x4a2   : > { %v6116_v27 = vld [vmem:[#allocation5 + $0x38] sm:$0x7f] }
 0x4a3   : > { %v18823_v6 = vld [vmem:[#allocation5 + $0x32] sm:$0xff] }
 0x4a4   : > { %v6847_v25 = vld [vmem:[#allocation5 + $0x33] sm:$0xff] }
 0x4a5   : > { %v6399_v23 = vld [vmem:[#allocation5 + $0x3a] sm:$0x7f]  ;;  %v6549_v62 = vld [vmem:[#allocation5 + $0x41] sm:$0x7f] }
 0x4a6   : > { %v6089_v61 = vld [vmem:[#allocation4] ss:$2 sm:$0x7f]  ;;  %v6849_v33 = vld [vmem:[#allocation5 + $0x43] sm:$0x7f] }
 0x4a7   : > { %6090 = vst.msk [vmem:[#allocation5 + $0xa] sm:$0x7f] %vm6074_vm10, %v6089_v61  ;;  %v6548_v11 = vld [vmem:[#allocation5 + $0x39] sm:$0xff]  ;;  %v6998_v5 = vld [vmem:[#allocation5 + $0x42] sm:$0xff] }
 0x4a8   : > { %v12130_v61 = vld [vmem:[%s20639_s5 + $0xb0] sm:$0xff] }
 0x4a9   : > { %v15519_v46 = vpack.c.bf16 %v12131_v0, %v12130_v61  ;;  %v6698_v63 = vld [vmem:[#allocation5 + $0x3a] sm:$0xff]  ;;  %v7298_v4 = vld [vmem:[#allocation5 + $0x44] sm:$0xff] }
 0x4aa   : > { %v6848_v52 = vld [vmem:[#allocation5 + $0x3b] sm:$0xff] }
 0x4ae   : > { %v18713_v49 = vld [vmem:[#allocation5 + $0x9] sm:$0xff] }
 0x4af   : > { %14298 = vmatmul.mubr.msk.f32.vlgmr.msra.gmra.mrb[238].mxu0 %vm6048_vm9, %v18713_v49  ;;  %v6110_v16 = vld [vmem:[#allocation5 + $0x8] sm:$0xff]  ;;  %v6111_v39 = vld [vmem:[#allocation5 + $0x10] sm:$0xff] }
 0x4b0   : > { %15486 = vmatpush3.bf16.msra.mxu0 %v18606_v1  ;;  %14300 = vmatprep.mubr.msk.f32.mxu0 %vm6048_vm9, %v18723_v40  ;;  %v18740_v1 = vld [vmem:[#allocation5 + $0x31] sm:$0xff] }
 0x4b1   : > { %15488 = vmatprep.subr.bf16.mxu0 %v15487_v38  ;;  %v6393_v43 = vld [vmem:[#allocation5 + $0xa] sm:$0xff] }
 0x4b3   : > { %14301 = vmatmul.mubr.msk.f32.gmra.mrb[240].mxu0 %vm6048_vm9, %v18728_v31 }
 0x4b4   : > { %14303 = vmatprep.mubr.msk.f32.mxu0 %vm6048_vm9, %v18732_v53  ;;  %15490 = vmatpush3.bf16.msra.mxu0 %v15487_v38  ;;  %v12140_v38 = vld [vmem:[%s20639_s5 + $0xc0] sm:$0xff] }
 0x4b5   : > { %15492 = vmatprep.subr.bf16.mxu0 %v15491_v55 }
 0x4b7   : > { %14304 = vmatmul.mubr.msk.f32.gmra.mrb[242].mxu0 %vm6048_vm9, %v18736_v44 }
 0x4b8   : > { %14306 = vmatprep.mubr.msk.f32.mxu0 %vm6048_vm9, %v18740_v1 }
 0x4bb   : > { %14307 = vmatmul.mubr.msk.f32.gmra.mrb[244].mxu0 %vm6048_vm9, %v6128_v35  ;;  %v12153_v35 = vld [vmem:[%s20639_s5 + $0xe8] sm:$0xff] }
 0x4bc   : > { %14317 = vmatprep.mubr.msk.f32.mxu0 %vm6048_vm9, %v6109_v48  ;;  %v12152_v48 = vld [vmem:[%s20639_s5 + $0xe0] sm:$0xff] }
 0x4bd   : > { %v15531_v7 = vpack.c.bf16 %v12153_v35, %v12152_v48 }
 0x4bf   : > { %14318 = vmatmul.mubr.msk.f32.vlgmr.msra.gmra.mrb[238].mxu0 %vm6048_vm9, %v6110_v16  ;;  %v12155_v16 = vld [vmem:[%s20639_s5 + $0xf8] sm:$0xff] }
 0x4c0   : > { %15494 = vmatpush3.bf16.msra.mxu0 %v15491_v55  ;;  %14320 = vmatprep.mubr.msk.f32.mxu0 %vm6048_vm9, %v6111_v39  ;;  %v12142_v55 = vld [vmem:[%s20639_s5 + $0xd0] sm:$0xff]  ;;  %v15539_v39 = vpack.c.bf16 %v12165_v58, %v12164_v34  ;;  %v12197_v34 = vld [vmem:[%s20641_s7 + $0xc8] sm:$0xff] }
 0x4c1   : > { %15496 = vmatprep.subr.bf16.mxu0 %v15495_v14 }
 0x4c3   : > { %14321 = vmatmul.mubr.msk.f32.gmra.mrb[240].mxu0 %vm6048_vm9, %v6112_v18  ;;  %v12167_v18 = vld [vmem:[%s20639_s5 + $0x118] sm:$0xff] }
 0x4c4   : > { %14323 = vmatprep.mubr.msk.f32.mxu0 %vm6048_vm9, %v6113_v2  ;;  %15498 = vmatpush3.bf16.msra.mxu0 %v15495_v14  ;;  %v12154_v14 = vld [vmem:[%s20639_s5 + $0xf0] sm:$0xff] }
 0x4c5   : > { %15500 = vmatprep.subr.bf16.mxu0 %v15499_v41  ;;  %v15535_v54 = vpack.c.bf16 %v12155_v16, %v12154_v14  ;;  %v7148_v2 = vld [vmem:[#allocation5 + $0x43] sm:$0xff] }
 0x4c6   : > { %v12194_v14 = vld [vmem:[%s20641_s7 + $0xb8] sm:$0xff] }
 0x4c7   : > { %14324 = vmatmul.mubr.msk.f32.gmra.mrb[242].mxu0 %vm6048_vm9, %v6114_v13  ;;  %v7293_v13 = vld [vmem:[#allocation5 + $0x1c] sm:$0xff] }
 0x4c8   : > { %14326 = vmatprep.mubr.msk.f32.mxu0 %vm6048_vm9, %v6115_v50  ;;  %v7295_v50 = vld [vmem:[#allocation5 + $0x2c] sm:$0xff] }
 0x4cb   : > { %14327 = vmatmul.mubr.msk.f32.gmra.mrb[244].mxu0 %vm6048_vm9, %v6116_v27  ;;  %v7297_v27 = vld [vmem:[#allocation5 + $0x3c] sm:$0xff] }
 0x4cc   : > { %14337 = vmatprep.mubr.msk.f32.mxu0 %vm6048_vm9, %v6392_v28  ;;  %v7296_v28 = vld [vmem:[#allocation5 + $0x34] sm:$0xff] }
 0x4cf   : > { %14338 = vmatmul.mubr.msk.f32.vlgmr.msra.gmra.mrb[238].mxu0 %vm6048_vm9, %v6393_v43 }
 0x4d0   : > { %15502 = vmatpush3.bf16.msra.mxu0 %v15499_v41  ;;  %14340 = vmatprep.mubr.msk.f32.mxu0 %vm6048_vm9, %v18807_v42  ;;  %v12166_v41 = vld [vmem:[%s20639_s5 + $0x110] sm:$0xff] }
 0x4d1   : > { %15504 = vmatprep.subr.bf16.mxu0 %v15503_v37  ;;  %v15543_v12 = vpack.c.bf16 %v12167_v18, %v12166_v41  ;;  %v12200_v18 = vld [vmem:[%s20641_s7 + $0xe0] sm:$0xff] }
 0x4d3   : > { %14341 = vmatmul.mubr.msk.f32.gmra.mrb[240].mxu0 %vm6048_vm9, %v18811_v3 }
 0x4d4   : > { %14343 = vmatprep.mubr.msk.f32.mxu0 %vm6048_vm9, %v18815_v21  ;;  %15506 = vmatpush3.bf16.msra.mxu0 %v15503_v37  ;;  %v12176_v37 = vld [vmem:[%s20640_s6] ss:$0 sm:$0xff] }
 0x4d5   : > { %15508 = vmatprep.subr.bf16.mxu0 %v15507_v30 }
 0x4d7   : > { %14344 = vmatmul.mubr.msk.f32.gmra.mrb[242].mxu0 %vm6048_vm9, %v18819_v36 }
 0x4d8   : > { %14346 = vmatprep.mubr.msk.f32.mxu0 %vm6048_vm9, %v18823_v6 }
 0x4db   : > { %14347 = vmatmul.mubr.msk.f32.gmra.mrb[244].mxu0 %vm6048_vm9, %v6399_v23  ;;  %v12180_v23 = vld [vmem:[%s20641_s7 + $0x50] sm:$0xff] }
 0x4dc   : > { %14357 = vmatprep.mubr.msk.f32.mxu0 %vm6048_vm9, %v18713_v49  ;;  %v12141_v49 = vld [vmem:[%s20639_s5 + $0xc8] sm:$0xff]  ;;  %v15563_v24 = vpack.c.bf16 %v12181_v51, %v12180_v23 }
 0x4dd   : > { %v15523_v45 = vpack.c.bf16 %v12141_v49, %v12140_v38  ;;  %v12215_v23 = vld [vmem:[%s20641_s7 + $0x148] sm:$0xff] }
 0x4df   : > { %14358 = vmatmul.mubr.msk.f32.vlgmr.msra.gmra.mrb[238].mxu0 %vm6048_vm9, %v18723_v40  ;;  %v6699_v40 = vld [vmem:[#allocation5 + $0x42] sm:$0x7f] }
 0x4e0   : > { %15510 = vmatpush3.bf16.msra.mxu0 %v15507_v30  ;;  %14360 = vmatprep.mubr.msk.f32.mxu0 %vm6048_vm9, %v18728_v31  ;;  %v12143_v31 = vld [vmem:[%s20639_s5 + $0xd8] sm:$0xff] }
 0x4e1   : > { %15512 = vmatprep.subr.bf16.mxu0 %v15511_v22 }
 0x4e3   : > { %14361 = vmatmul.mubr.msk.f32.gmra.mrb[240].mxu0 %vm6048_vm9, %v18732_v53  ;;  %v6842_v53 = vld [vmem:[#allocation5 + $0xb] sm:$0xff] }
 0x4e4   : > { %14363 = vmatprep.mubr.msk.f32.mxu0 %vm6048_vm9, %v18736_v44  ;;  %15514 = vmatpush3.bf16.msra.mxu0 %v15511_v22  ;;  %v15527_v44 = vpack.c.bf16 %v12143_v31, %v12142_v55 }
 0x4e5   : > { %15516 = vmatprep.subr.bf16.mxu0 %v15515_v19 }
 0x4e7   : > { %14364 = vmatmul.mubr.msk.f32.gmra.mrb[242].mxu0 %vm6048_vm9, %v18740_v1  ;;  %v6843_v1 = vld [vmem:[#allocation5 + $0x13] sm:$0xff] }
 0x4e8   : > { %14366 = vmatprep.mubr.msk.f32.mxu0 %vm6048_vm9, %v6548_v11  ;;  %v12182_v11 = vld [vmem:[%s20641_s7 + $0x60] sm:$0xff] }
 0x4eb   : > { %14367 = vmatmul.mubr.msk.f32.gmra.mrb[244].mxu0 %vm6048_vm9, %v6549_v62  ;;  %v12183_v62 = vld [vmem:[%s20641_s7 + $0x68] sm:$0xff] }
 0x4ec   : > { %14377 = vmatprep.mubr.msk.f32.mxu0 %vm6048_vm9, %v6393_v43  ;;  %v15566_v38 = vpack.c.bf16 %v12183_v62, %v12182_v11  ;;  %v12218_v62 = vld [vmem:[%s20641_s7 + $0x160] sm:$0xff] }
 0x4ef   : > { %14378 = vmatmul.mubr.msk.f32.vlgmr.msra.gmra.mrb[238].mxu0 %vm6048_vm9, %v18807_v42 }
 0x4f0   : > { %15518 = vmatpush3.bf16.msra.mxu0 %v15515_v19  ;;  %14380 = vmatprep.mubr.msk.f32.mxu0 %vm6048_vm9, %v18811_v3 }
 0x4f1   : > { %15520 = vmatprep.subr.bf16.mxu0 %v15519_v46 }
 0x4f3   : > { %14381 = vmatmul.mubr.msk.f32.gmra.mrb[240].mxu0 %vm6048_vm9, %v18815_v21 }
 0x4f4   : > { %14383 = vmatprep.mubr.msk.f32.mxu0 %vm6048_vm9, %v18819_v36  ;;  %15522 = vmatpush3.bf16.msra.mxu0 %v15519_v46 }
 0x4f5   : > { %15524 = vmatprep.subr.bf16.mxu0 %v15523_v45 }
 0x4f7   : > { %14384 = vmatmul.mubr.msk.f32.gmra.mrb[242].mxu0 %vm6048_vm9, %v18823_v6 }
 0x4f8   : > { %14386 = vmatprep.mubr.msk.f32.mxu0 %vm6048_vm9, %v6698_v63 }
 0x4fb   : > { %14387 = vmatmul.mubr.msk.f32.gmra.mrb[244].mxu0 %vm6048_vm9, %v6699_v40 }
 0x4fc   : > { %14397 = vmatprep.mubr.msk.f32.mxu0 %vm6048_vm9, %v6842_v53 }
 0x4ff   : > { %14398 = vmatmul.mubr.msk.f32.vlgmr.msra.gmra.mrb[238].mxu0 %vm6048_vm9, %v6843_v1 }
 0x500   : > { %15526 = vmatpush3.bf16.msra.mxu0 %v15523_v45  ;;  %14400 = vmatprep.mubr.msk.f32.mxu0 %vm6048_vm9, %v6844_v60  ;;  %v12184_v45 = vld [vmem:[%s20641_s7 + $0x70] sm:$0xff] }
 0x501   : > { %15528 = vmatprep.subr.bf16.mxu0 %v15527_v44 }
 0x503   : > { %14401 = vmatmul.mubr.msk.f32.gmra.mrb[240].mxu0 %vm6048_vm9, %v6845_v15 }
 0x504   : > { %14403 = vmatprep.mubr.msk.f32.mxu0 %vm6048_vm9, %v6846_v57  ;;  %15530 = vmatpush3.bf16.msra.mxu0 %v15527_v44  ;;  %v12187_v44 = vld [vmem:[%s20641_s7 + $0x80] sm:$0xff] }
 0x505   : > { %15532 = vmatprep.subr.bf16.mxu0 %v15531_v7 }
 0x507   : > { %14404 = vmatmul.mubr.msk.f32.gmra.mrb[242].mxu0 %vm6048_vm9, %v6847_v25 }
 0x508   : > { %14406 = vmatprep.mubr.msk.f32.mxu0 %vm6048_vm9, %v6848_v52 }
 0x50b   : > { %14407 = vmatmul.mubr.msk.f32.gmra.mrb[244].mxu0 %vm6048_vm9, %v6849_v33  ;;  %v12193_v33 = vld [vmem:[%s20641_s7 + $0xb0] sm:$0xff] }
 0x50c   : > { %14417 = vmatprep.mubr.msk.f32.mxu0 %vm6048_vm9, %v18807_v42  ;;  %v15581_v16 = vpack.c.bf16 %v12194_v14, %v12193_v33  ;;  %v12232_v14 = vld [vmem:[%s20641_s7 + $0x1c0] sm:$0xff] }
 0x50f   : > { %14418 = vmatmul.mubr.msk.f32.vlgmr.msra.gmra.mrb[238].mxu0 %vm6048_vm9, %v18811_v3 }
 0x510   : > { %15534 = vmatpush3.bf16.msra.mxu0 %v15531_v7  ;;  %14420 = vmatprep.mubr.msk.f32.mxu0 %vm6048_vm9, %v18815_v21  ;;  %v15560_v21 = vpack.c.bf16 %v12179_v47, %v12178_v9  ;;  %v12190_v7 = vld [vmem:[%s20641_s7 + $0x98] sm:$0xff]  ;;  %v12210_v9 = vld [vmem:[%s20641_s7 + $0x128] sm:$0xff] }
 0x511   : > { %15536 = vmatprep.subr.bf16.mxu0 %v15535_v54 }
 0x513   : > { %14421 = vmatmul.mubr.msk.f32.gmra.mrb[240].mxu0 %vm6048_vm9, %v18819_v36 }
 0x514   : > { %14423 = vmatprep.mubr.msk.f32.mxu0 %vm6048_vm9, %v18823_v6  ;;  %15538 = vmatpush3.bf16.msra.mxu0 %v15535_v54  ;;  %v12196_v54 = vld [vmem:[%s20641_s7 + $0xc0] sm:$0xff] }
 0x515   : > { %15540 = vmatprep.subr.bf16.mxu0 %v15539_v39  ;;  %v15584_v58 = vpack.c.bf16 %v12197_v34, %v12196_v54 }
 0x517   : > { %14424 = vmatmul.mubr.msk.f32.gmra.mrb[242].mxu0 %vm6048_vm9, %v6698_v63  ;;  %v12185_v63 = vld [vmem:[%s20641_s7 + $0x78] sm:$0xff] }
 0x518   : > { %14426 = vmatprep.mubr.msk.f32.mxu0 %vm6048_vm9, %v6998_v5  ;;  %v15569_v53 = vpack.c.bf16 %v12185_v63, %v12184_v45  ;;  %v12198_v5 = vld [vmem:[%s20641_s7 + $0xd0] sm:$0xff]  ;;  %v12221_v45 = vld [vmem:[%s20641_s7 + $0x178] sm:$0xff] }
 0x51b   : > { %14427 = vmatmul.mubr.msk.f32.gmra.mrb[244].mxu0 %vm6048_vm9, %v6999_v17  ;;  %v12199_v17 = vld [vmem:[%s20641_s7 + $0xd8] sm:$0xff] }
 0x51c   : > { %14437 = vmatprep.mubr.msk.f32.mxu0 %vm6048_vm9, %v6843_v1  ;;  %v12188_v1 = vld [vmem:[%s20641_s7 + $0x88] sm:$0xff]  ;;  %v15587_v41 = vpack.c.bf16 %v12199_v17, %v12198_v5 }
 0x51d   : > { %v15572_v48 = vpack.c.bf16 %v12188_v1, %v12187_v44  ;;  %v12237_v17 = vld [vmem:[%s20641_s7 + $0x1e8] sm:$0xff] }
 0x51f   : > { %14438 = vmatmul.mubr.msk.f32.vlgmr.msra.gmra.mrb[238].mxu0 %vm6048_vm9, %v6844_v60  ;;  %v12189_v60 = vld [vmem:[%s20641_s7 + $0x90] sm:$0xff] }
 0x520   : > { %15542 = vmatpush3.bf16.msra.mxu0 %v15539_v39  ;;  %14440 = vmatprep.mubr.msk.f32.mxu0 %vm6048_vm9, %v6845_v15  ;;  %v15575_v15 = vpack.c.bf16 %v12190_v7, %v12189_v60  ;;  %v12227_v7 = vld [vmem:[%s20641_s7 + $0x1a0] sm:$0xff] }
 0x521   : > { %15544 = vmatprep.subr.bf16.mxu0 %v15543_v12 }
 0x523   : > { %14441 = vmatmul.mubr.msk.f32.gmra.mrb[240].mxu0 %vm6048_vm9, %v6846_v57  ;;  %v12191_v57 = vld [vmem:[%s20641_s7 + $0xa0] sm:$0xff] }
 0x524   : > { %14443 = vmatprep.mubr.msk.f32.mxu0 %vm6048_vm9, %v6847_v25  ;;  %15546 = vmatpush3.bf16.msra.mxu0 %v15543_v12  ;;  %v12192_v25 = vld [vmem:[%s20641_s7 + $0xa8] sm:$0xff] }
 0x525   : > { %16135 = vmatprep.subr.bf16.mxu0 %v20688_v59  ;;  %v12201_v12 = vld [vmem:[%s20641_s7 + $0xe8] sm:$0xff] }
 0x527   : > { %14444 = vmatmul.mubr.msk.f32.gmra.mrb[242].mxu0 %vm6048_vm9, %v6848_v52  ;;  %v15578_v52 = vpack.c.bf16 %v12192_v25, %v12191_v57  ;;  %v12229_v25 = vld [vmem:[%s20641_s7 + $0x1b0] sm:$0xff] }
 0x528   : > { %14446 = vmatprep.mubr.msk.f32.mxu0 %vm6048_vm9, %v7148_v2  ;;  %v15590_v2 = vpack.c.bf16 %v12201_v12, %v12200_v18  ;;  %v12238_v18 = vld [vmem:[%s20641_s7 + $0x1f0] sm:$0xff]  ;;  %v12239_v12 = vld [vmem:[%s20641_s7 + $0x1f8] sm:$0xff] }
 0x52b   : > { %14447 = vmatmul.mubr.msk.f32.gmra.mrb[244].mxu0 %vm6048_vm9, %v7149_v56  ;;  %v12202_v56 = vld [vmem:[%s20641_s7 + $0xf0] sm:$0xff] }
 0x52c   : > { %14457 = vmatprep.mubr.msk.f32.mxu0 %vm6048_vm9, %v7292_v10  ;;  %v12203_v10 = vld [vmem:[%s20641_s7 + $0xf8] sm:$0xff] }
 0x52f   : > { %14458 = vmatmul.mubr.msk.f32.vlgmr.msra.gmra.mrb[238].mxu0 %vm6048_vm9, %v7293_v13  ;;  %v15593_v13 = vpack.c.bf16 %v12203_v10, %v12202_v56  ;;  %v12241_v10 = vld [vmem:[%s20641_s7 + $0x200] sm:$0xff] }
 0x530   : > { %14460 = vmatprep.mubr.msk.f32.mxu0 %vm6048_vm9, %v7294_v32  ;;  %v12205_v32 = vld [vmem:[%s20641_s7 + $0x100] sm:$0xff] }
 0x533   : > { %14461 = vmatmul.mubr.msk.f32.gmra.mrb[240].mxu0 %vm6048_vm9, %v7295_v50  ;;  %v12206_v50 = vld [vmem:[%s20641_s7 + $0x108] sm:$0xff] }
 0x534   : > { %14463 = vmatprep.mubr.msk.f32.mxu0 %vm6048_vm9, %v7296_v28  ;;  %v15596_v28 = vpack.c.bf16 %v12206_v50, %v12205_v32 }
 0x537   : > { %14464 = vmatmul.mubr.msk.f32.gmra.mrb[242].mxu0 %vm6048_vm9, %v7297_v27 }
 0x538   : > { %14466 = vmatprep.mubr.msk.f32.mxu0 %vm6048_vm9, %v7298_v4  ;;  %v12207_v4 = vld [vmem:[%s20641_s7 + $0x110] sm:$0xff] }
 0x53b   : > { %14467 = vmatmul.mubr.msk.f32.gmra.mrb[244].mxu0 %vm6048_vm9, %v7299_v20  ;;  %v12208_v20 = vld [vmem:[%s20641_s7 + $0x118] sm:$0xff] }
 0x53c   : > { %15432 = vmatprep.mubr.msk.f32.mxu0 %vm16659_vm3, %v20676_v8 }
 0x602   : > { %v14459_v43 = vpop.f32.mrb[238].mxu0 }
 0x603   : > { %v18958_v42 = vadd.f32 %v14459_v43, %v12176_v37  ;;  %v7395_v30 = vpop.f32.mrb[239].mxu0  ;;  %v12209_v43 = vld [vmem:[%s20641_s7 + $0x120] sm:$0xff] }
 0x604   : > { %v7449_v3 = vadd.f32 %v12176_v37, %v7395_v30  ;;  %v15602_v47 = vpack.c.bf16 %v12210_v9, %v12209_v43  ;;  %v12211_v30 = vld [vmem:[%s20641_s7 + $0x130] sm:$0xff]  ;;  %v12248_v9 = vld [vmem:[%s20641_s7 + $0x238] sm:$0xff] }
 0x605   : > { %v19191_v56 = vmax.f32 %v18958_v42, 0.0  ;;  %v12243_v42 = vld [vmem:[%s20641_s7 + $0x210] sm:$0xff] }
 0x606   : > { %v18960_v36 = vmax.f32 %v7449_v3, 0.0  ;;  %v14462_v6 = vpop.f32.mrb[240].mxu0  ;;  %v12212_v3 = vld [vmem:[%s20641_s7 + $0x138] sm:$0xff]  ;;  %v12247_v43 = vld [vmem:[%s20641_s7 + $0x230] sm:$0xff] }
 0x607   : > { %v18968_v26 = vadd.f32 %v14462_v6, %v12176_v37  ;;  %v7405_v22 = vpop.f32.mrb[241].mxu0  ;;  %v12214_v6 = vld [vmem:[%s20641_s7 + $0x140] sm:$0xff]  ;;  %v8057_v50 = vrot.slane %v19191_v56, 1 }
 0x608   : > { %v18970_v29 = vadd.f32 %v12176_v37, %v7405_v22  ;;  %14486 = vmatmul.mubr.msk.f32.vlgmr.msra.gmra.mrb[28].mxu1 %vm7474_vm11, %v18960_v36  ;;  %v7558_v35 = vrot.slane %v18960_v36, 1  ;;  %v7641_v39 = vrot.slane %v18960_v36, 2  ;;  %v7724_v27 = vrot.slane %v18960_v36, 3 }
 0x609   : > { %15561 = vmatpush3.bf16.msra.mxu1 %v15560_v21  ;;  %14504 = vmatprep.mubr.msk.f32.mxu1 %vm16659_vm3, %v20676_v8  ;;  %v15605_v21 = vpack.c.bf16 %v12212_v3, %v12211_v30  ;;  %v15608_v51 = vpack.c.bf16 %v12215_v23, %v12214_v6  ;;  %v7807_v22 = vrot.slane %v18960_v36, 4  ;;  %v7890_v1 = vrot.slane %v18960_v36, 5  ;;  %v12250_v30 = vld [vmem:[%s20641_s7 + $0x240] sm:$0xff]  ;;  %v12251_v3 = vld [vmem:[%s20641_s7 + $0x248] sm:$0xff]  ;;  %v12252_v23 = vld [vmem:[%s20641_s7 + $0x250] sm:$0xff] }
 0x60a   : > { %v14465_v19 = vpop.f32.mrb[242].mxu0  ;;  %15562 = vmatprep.subr.bf16.mxu1 %v20688_v59  ;;  %v7973_v34 = vrot.slane %v18960_v36, 6  ;;  %v12236_v36 = vld [vmem:[%s20641_s7 + $0x1e0] sm:$0xff]  ;;  %v8140_v6 = vrot.slane %v19191_v56, 2 }
 0x60b   : > { %v18983_v61 = vadd.f32 %v14465_v19, %v12176_v37  ;;  %v7415_v0 = vpop.f32.mrb[243].mxu0  ;;  %v12217_v19 = vld [vmem:[%s20641_s7 + $0x158] sm:$0xff] }
 0x60c   : > { %v18985_v46 = vadd.f32 %v12176_v37, %v7415_v0  ;;  %v12219_v0 = vld [vmem:[%s20641_s7 + $0x168] sm:$0xff] }
 0x60d   : > { %15564 = vmatpush3.bf16.msra.mxu1 %v15563_v24  ;;  %v12216_v24 = vld [vmem:[%s20641_s7 + $0x150] sm:$0xff] }
 0x60e   : > { %v14468_v49 = vpop.f32.mrb[244].mxu0  ;;  %15565 = vmatprep.subr.bf16.mxu1 %v20688_v59  ;;  %v15611_v11 = vpack.c.bf16 %v12217_v19, %v12216_v24  ;;  %v12254_v24 = vld [vmem:[%s20641_s7 + $0x260] sm:$0xff]  ;;  %v12255_v19 = vld [vmem:[%s20641_s7 + $0x268] sm:$0xff] }
 0x60f   : > { %v18994_v40 = vadd.f32 %v14468_v49, %v12176_v37  ;;  %v7425_v55 = vpop.f32.mrb[245].mxu0  ;;  %v12220_v49 = vld [vmem:[%s20641_s7 + $0x170] sm:$0xff] }
 0x610   : > { %v18996_v31 = vadd.f32 %v12176_v37, %v7425_v55  ;;  %v15599_v37 = vpack.c.bf16 %v12208_v20, %v12207_v4  ;;  %v15617_v63 = vpack.c.bf16 %v12221_v45, %v12220_v49  ;;  %v12223_v55 = vld [vmem:[%s20641_s7 + $0x180] sm:$0xff]  ;;  %v12246_v20 = vld [vmem:[%s20641_s7 + $0x228] sm:$0xff] }
 0x611   : > { %15567 = vmatpush3.bf16.msra.mxu1 %v15566_v38  ;;  %v15614_v38 = vpack.c.bf16 %v12219_v0, %v12218_v62  ;;  %v12245_v4 = vld [vmem:[%s20641_s7 + $0x220] sm:$0xff]  ;;  %v12256_v62 = vld [vmem:[%s20641_s7 + $0x270] sm:$0xff]  ;;  %v12257_v0 = vld [vmem:[%s20641_s7 + $0x278] sm:$0xff] }
 0x612   : > { %15568 = vmatprep.subr.bf16.mxu1 %v20688_v59  ;;  %v12259_v49 = vld [vmem:[%s20641_s7 + $0x280] sm:$0xff]  ;;  %v12260_v45 = vld [vmem:[%s20641_s7 + $0x288] sm:$0xff] }
 0x615   : > { %15570 = vmatpush3.bf16.msra.mxu1 %v15569_v53  ;;  %v12224_v53 = vld [vmem:[%s20641_s7 + $0x188] sm:$0xff] }
 0x616   : > { %15571 = vmatprep.subr.bf16.mxu1 %v20688_v59  ;;  %v15620_v44 = vpack.c.bf16 %v12224_v53, %v12223_v55  ;;  %v8223_v55 = vrot.slane %v19191_v56, 3  ;;  %v12261_v53 = vld [vmem:[%s20641_s7 + $0x290] sm:$0xff] }
 0x618   : > { %14505 = vmatmul.mubr.msk.f32.vlgmr.msra.gmra.mrb[28].mxu1 %vm7474_vm11, %v7558_v35  ;;  %v12226_v35 = vld [vmem:[%s20641_s7 + $0x198] sm:$0xff] }
 0x619   : > { %15573 = vmatpush3.bf16.msra.mxu1 %v15572_v48  ;;  %14523 = vmatprep.mubr.msk.f32.mxu1 %vm16659_vm3, %v20676_v8  ;;  %v12225_v48 = vld [vmem:[%s20641_s7 + $0x190] sm:$0xff] }
 0x61a   : > { %15574 = vmatprep.subr.bf16.mxu1 %v20688_v59  ;;  %v15623_v60 = vpack.c.bf16 %v12226_v35, %v12225_v48  ;;  %v12263_v48 = vld [vmem:[%s20641_s7 + $0x2a0] sm:$0xff]  ;;  %v12264_v35 = vld [vmem:[%s20641_s7 + $0x2a8] sm:$0xff] }
 0x61d   : > { %15576 = vmatpush3.bf16.msra.mxu1 %v15575_v15  ;;  %v12228_v15 = vld [vmem:[%s20641_s7 + $0x1a8] sm:$0xff] }
 0x61e   : > { %15577 = vmatprep.subr.bf16.mxu1 %v20688_v59  ;;  %v15626_v57 = vpack.c.bf16 %v12228_v15, %v12227_v7  ;;  %v12265_v7 = vld [vmem:[%s20641_s7 + $0x2b0] sm:$0xff]  ;;  %v12266_v15 = vld [vmem:[%s20641_s7 + $0x2b8] sm:$0xff] }
 0x621   : > { %15579 = vmatpush3.bf16.msra.mxu1 %v15578_v52  ;;  %v12230_v52 = vld [vmem:[%s20641_s7 + $0x1b8] sm:$0xff] }
 0x622   : > { %15580 = vmatprep.subr.bf16.mxu1 %v20688_v59  ;;  %v15629_v33 = vpack.c.bf16 %v12230_v52, %v12229_v25  ;;  %v12268_v25 = vld [vmem:[%s20641_s7 + $0x2c0] sm:$0xff]  ;;  %v12269_v52 = vld [vmem:[%s20641_s7 + $0x2c8] sm:$0xff] }
 0x625   : > { %15582 = vmatpush3.bf16.msra.mxu1 %v15581_v16  ;;  %v12233_v16 = vld [vmem:[%s20641_s7 + $0x1c8] sm:$0xff] }
 0x626   : > { %15583 = vmatprep.subr.bf16.mxu1 %v20688_v59  ;;  %v15632_v54 = vpack.c.bf16 %v12233_v16, %v12232_v14  ;;  %v8306_v14 = vrot.slane %v19191_v56, 4  ;;  %v12270_v16 = vld [vmem:[%s20641_s7 + $0x2d0] sm:$0xff] }
 0x628   : > { %14524 = vmatmul.mubr.msk.f32.vlgmr.msra.gmra.mrb[28].mxu1 %vm7474_vm11, %v7641_v39  ;;  %v12235_v39 = vld [vmem:[%s20641_s7 + $0x1d8] sm:$0xff] }
 0x629   : > { %15585 = vmatpush3.bf16.msra.mxu1 %v15584_v58  ;;  %14542 = vmatprep.mubr.msk.f32.mxu1 %vm16659_vm3, %v20676_v8  ;;  %v12234_v58 = vld [vmem:[%s20641_s7 + $0x1d0] sm:$0xff] }
 0x62a   : > { %15586 = vmatprep.subr.bf16.mxu1 %v20688_v59  ;;  %v15635_v5 = vpack.c.bf16 %v12235_v39, %v12234_v58  ;;  %v12272_v58 = vld [vmem:[%s20641_s7 + $0x2e0] sm:$0xff]  ;;  %v12273_v39 = vld [vmem:[%s20641_s7 + $0x2e8] sm:$0xff] }
 0x62d   : > { %15588 = vmatpush3.bf16.msra.mxu1 %v15587_v41  ;;  %v15638_v41 = vpack.c.bf16 %v12237_v17, %v12236_v36  ;;  %v12274_v36 = vld [vmem:[%s20641_s7 + $0x2f0] sm:$0xff]  ;;  %v12275_v17 = vld [vmem:[%s20641_s7 + $0x2f8] sm:$0xff] }
 0x62e   : > { %15589 = vmatprep.subr.bf16.mxu1 %v20688_v59 }
 0x631   : > { %15591 = vmatpush3.bf16.msra.mxu1 %v15590_v2  ;;  %v15641_v2 = vpack.c.bf16 %v12239_v12, %v12238_v18  ;;  %v12277_v18 = vld [vmem:[%s20641_s7 + $0x300] sm:$0xff]  ;;  %v12278_v12 = vld [vmem:[%s20641_s7 + $0x308] sm:$0xff] }
 0x632   : > { %15592 = vmatprep.subr.bf16.mxu1 %v20688_v59 }
 0x635   : > { %15594 = vmatpush3.bf16.msra.mxu1 %v15593_v13  ;;  %v12242_v13 = vld [vmem:[%s20641_s7 + $0x208] sm:$0xff] }
 0x636   : > { %15595 = vmatprep.subr.bf16.mxu1 %v20688_v59  ;;  %v15644_v32 = vpack.c.bf16 %v12242_v13, %v12241_v10  ;;  %v8389_v10 = vrot.slane %v19191_v56, 5  ;;  %v12279_v13 = vld [vmem:[%s20641_s7 + $0x310] sm:$0xff] }
 0x638   : > { %14543 = vmatmul.mubr.msk.f32.vlgmr.msra.gmra.mrb[28].mxu1 %vm7474_vm11, %v7724_v27 }
 0x639   : > { %15597 = vmatpush3.bf16.msra.mxu1 %v15596_v28  ;;  %14561 = vmatprep.mubr.msk.f32.mxu1 %vm16659_vm3, %v20676_v8  ;;  %v12244_v28 = vld [vmem:[%s20641_s7 + $0x218] sm:$0xff] }
 0x63a   : > { %15598 = vmatprep.subr.bf16.mxu1 %v20688_v59  ;;  %v15647_v27 = vpack.c.bf16 %v12244_v28, %v12243_v42  ;;  %v12281_v42 = vld [vmem:[%s20641_s7 + $0x320] sm:$0xff]  ;;  %v12282_v28 = vld [vmem:[%s20641_s7 + $0x328] sm:$0xff] }
 0x63d   : > { %15600 = vmatpush3.bf16.msra.mxu1 %v15599_v37  ;;  %v15650_v37 = vpack.c.bf16 %v12246_v20, %v12245_v4  ;;  %v12283_v4 = vld [vmem:[%s20641_s7 + $0x330] sm:$0xff]  ;;  %v12284_v20 = vld [vmem:[%s20641_s7 + $0x338] sm:$0xff] }
 0x63e   : > { %15601 = vmatprep.subr.bf16.mxu1 %v20688_v59 }
 0x641   : > { %15603 = vmatpush3.bf16.msra.mxu1 %v15602_v47  ;;  %v15653_v47 = vpack.c.bf16 %v12248_v9, %v12247_v43  ;;  %v12286_v43 = vld [vmem:[%s20641_s7 + $0x340] sm:$0xff]  ;;  %v12287_v9 = vld [vmem:[%s20641_s7 + $0x348] sm:$0xff] }
 0x642   : > { %15604 = vmatprep.subr.bf16.mxu1 %v20688_v59 }
 0x645   : > { %15606 = vmatpush3.bf16.msra.mxu1 %v15605_v21  ;;  %v15656_v21 = vpack.c.bf16 %v12251_v3, %v12250_v30  ;;  %v8472_v30 = vrot.slane %v19191_v56, 6  ;;  %v12288_v3 = vld [vmem:[%s20641_s7 + $0x350] sm:$0xff] }
 0x646   : > { %15607 = vmatprep.subr.bf16.mxu1 %v20688_v59 }
 0x648   : > { %14562 = vmatmul.mubr.msk.f32.vlgmr.msra.gmra.mrb[28].mxu1 %vm7474_vm11, %v7807_v22 }
 0x649   : > { %15609 = vmatpush3.bf16.msra.mxu1 %v15608_v51  ;;  %14580 = vmatprep.mubr.msk.f32.mxu1 %vm16659_vm3, %v20676_v8  ;;  %v12253_v51 = vld [vmem:[%s20641_s7 + $0x258] sm:$0xff] }
 0x64a   : > { %15610 = vmatprep.subr.bf16.mxu1 %v20688_v59  ;;  %v15659_v22 = vpack.c.bf16 %v12253_v51, %v12252_v23  ;;  %v12290_v23 = vld [vmem:[%s20641_s7 + $0x360] sm:$0xff]  ;;  %v12291_v51 = vld [vmem:[%s20641_s7 + $0x368] sm:$0xff] }
 0x64d   : > { %15612 = vmatpush3.bf16.msra.mxu1 %v15611_v11  ;;  %v15662_v11 = vpack.c.bf16 %v12255_v19, %v12254_v24  ;;  %v12292_v24 = vld [vmem:[%s20641_s7 + $0x370] sm:$0xff]  ;;  %v12293_v19 = vld [vmem:[%s20641_s7 + $0x378] sm:$0xff] }
 0x64e   : > { %15613 = vmatprep.subr.bf16.mxu1 %v20688_v59 }
 0x651   : > { %15615 = vmatpush3.bf16.msra.mxu1 %v15614_v38  ;;  %v15665_v38 = vpack.c.bf16 %v12257_v0, %v12256_v62  ;;  %v12295_v62 = vld [vmem:[%s20641_s7 + $0x380] sm:$0xff]  ;;  %v12296_v0 = vld [vmem:[%s20641_s7 + $0x388] sm:$0xff] }
 0x652   : > { %15616 = vmatprep.subr.bf16.mxu1 %v20688_v59 }
 0x655   : > { %15618 = vmatpush3.bf16.msra.mxu1 %v15617_v63  ;;  %v15668_v63 = vpack.c.bf16 %v12260_v45, %v12259_v49  ;;  %v8555_v49 = vrot.slane %v19191_v56, 7  ;;  %v12297_v45 = vld [vmem:[%s20641_s7 + $0x390] sm:$0xff]  ;;  %v12299_v56 = vld [vmem:[%s20641_s7 + $0x3a0] sm:$0xff] }
 0x656   : > { %15619 = vmatprep.subr.bf16.mxu1 %v20688_v59 }
 0x658   : > { %14581 = vmatmul.mubr.msk.f32.vlgmr.msra.gmra.mrb[28].mxu1 %vm7474_vm11, %v7890_v1 }
 0x659   : > { %15621 = vmatpush3.bf16.msra.mxu1 %v15620_v44  ;;  %14599 = vmatprep.mubr.msk.f32.mxu1 %vm16659_vm3, %v20676_v8  ;;  %v12262_v44 = vld [vmem:[%s20641_s7 + $0x298] sm:$0xff] }
 0x65a   : > { %15622 = vmatprep.subr.bf16.mxu1 %v20688_v59  ;;  %v15671_v1 = vpack.c.bf16 %v12262_v44, %v12261_v53  ;;  %v12300_v53 = vld [vmem:[%s20641_s7 + $0x3a8] sm:$0xff] }
 0x65b   : > { %v15722_v44 = vpack.c.bf16 %v12300_v53, %v12299_v56  ;;  %v12338_v56 = vld [vmem:[%s20641_s7 + $0x4b8] sm:$0xff] }
 0x65d   : > { %15624 = vmatpush3.bf16.msra.mxu1 %v15623_v60  ;;  %v15674_v60 = vpack.c.bf16 %v12264_v35, %v12263_v48  ;;  %v12302_v48 = vld [vmem:[%s20641_s7 + $0x3b8] sm:$0xff] }
 0x65e   : > { %15625 = vmatprep.subr.bf16.mxu1 %v20688_v59 }
 0x661   : > { %15627 = vmatpush3.bf16.msra.mxu1 %v15626_v57  ;;  %v15677_v57 = vpack.c.bf16 %v12266_v15, %v12265_v7  ;;  %v12304_v7 = vld [vmem:[%s20641_s7 + $0x3c0] sm:$0xff]  ;;  %v12305_v15 = vld [vmem:[%s20641_s7 + $0x3c8] sm:$0xff] }
 0x662   : > { %15628 = vmatprep.subr.bf16.mxu1 %v20688_v59 }
 0x665   : > { %15630 = vmatpush3.bf16.msra.mxu1 %v15629_v33  ;;  %v15680_v33 = vpack.c.bf16 %v12269_v52, %v12268_v25  ;;  %v12307_v52 = vld [vmem:[%s20641_s7 + $0x3d8] sm:$0xff] }
 0x666   : > { %15631 = vmatprep.subr.bf16.mxu1 %v20688_v59 }
 0x668   : > { %14600 = vmatmul.mubr.msk.f32.vlgmr.msra.gmra.mrb[28].mxu1 %vm7474_vm11, %v7973_v34 }
 0x669   : > { %15633 = vmatpush3.bf16.msra.mxu1 %v15632_v54  ;;  %14618 = vmatprep.mubr.msk.f32.mxu1 %vm16659_vm3, %v20676_v8  ;;  %v12271_v54 = vld [vmem:[%s20641_s7 + $0x2d8] sm:$0xff] }
 0x66a   : > { %15634 = vmatprep.subr.bf16.mxu1 %v20688_v59  ;;  %v15683_v34 = vpack.c.bf16 %v12271_v54, %v12270_v16  ;;  %v12309_v16 = vld [vmem:[%s20641_s7 + $0x3e8] sm:$0xff] }
 0x66d   : > { %15636 = vmatpush3.bf16.msra.mxu1 %v15635_v5  ;;  %v15686_v5 = vpack.c.bf16 %v12273_v39, %v12272_v58  ;;  %v12311_v58 = vld [vmem:[%s20641_s7 + $0x3f8] sm:$0xff] }
 0x66e   : > { %15637 = vmatprep.subr.bf16.mxu1 %v20688_v59 }
 0x671   : > { %15639 = vmatpush3.bf16.msra.mxu1 %v15638_v41  ;;  %v15689_v41 = vpack.c.bf16 %v12275_v17, %v12274_v36  ;;  %v12314_v36 = vld [vmem:[%s20641_s7 + $0x408] sm:$0xff] }
 0x672   : > { %15640 = vmatprep.subr.bf16.mxu1 %v20688_v59 }
 0x675   : > { %15642 = vmatpush3.bf16.msra.mxu1 %v15641_v2  ;;  %v15692_v2 = vpack.c.bf16 %v12278_v12, %v12277_v18  ;;  %v12315_v18 = vld [vmem:[%s20641_s7 + $0x410] sm:$0xff]  ;;  %v12316_v12 = vld [vmem:[%s20641_s7 + $0x418] sm:$0xff] }
 0x676   : > { %15643 = vmatprep.subr.bf16.mxu1 %v20688_v59 }
 0x678   : > { %14619 = vmatmul.mubr.msk.f32.vlgmr.msra.gmra.mrb[28].mxu1 %vm7474_vm11, %v8057_v50 }
 0x679   : > { %15645 = vmatpush3.bf16.msra.mxu1 %v15644_v32  ;;  %14637 = vmatprep.mubr.msk.f32.mxu1 %vm16659_vm3, %v20676_v8  ;;  %v12280_v32 = vld [vmem:[%s20641_s7 + $0x318] sm:$0xff] }
 0x67a   : > { %15646 = vmatprep.subr.bf16.mxu1 %v20688_v59  ;;  %v15695_v50 = vpack.c.bf16 %v12280_v32, %v12279_v13  ;;  %v12318_v13 = vld [vmem:[%s20641_s7 + $0x428] sm:$0xff] }
 0x67d   : > { %15648 = vmatpush3.bf16.msra.mxu1 %v15647_v27  ;;  %v15698_v27 = vpack.c.bf16 %v12282_v28, %v12281_v42  ;;  %v12320_v42 = vld [vmem:[%s20641_s7 + $0x438] sm:$0xff] }
 0x67e   : > { %15649 = vmatprep.subr.bf16.mxu1 %v20688_v59 }
 0x681   : > { %15651 = vmatpush3.bf16.msra.mxu1 %v15650_v37  ;;  %v15701_v37 = vpack.c.bf16 %v12284_v20, %v12283_v4  ;;  %v12323_v4 = vld [vmem:[%s20641_s7 + $0x448] sm:$0xff] }
 0x682   : > { %15652 = vmatprep.subr.bf16.mxu1 %v20688_v59 }
 0x685   : > { %15654 = vmatpush3.bf16.msra.mxu1 %v15653_v47  ;;  %v15704_v47 = vpack.c.bf16 %v12287_v9, %v12286_v43  ;;  %v12324_v43 = vld [vmem:[%s20641_s7 + $0x450] sm:$0xff]  ;;  %v12325_v9 = vld [vmem:[%s20641_s7 + $0x458] sm:$0xff] }
 0x686   : > { %15655 = vmatprep.subr.bf16.mxu1 %v20688_v59 }
 0x688   : > { %14638 = vmatmul.mubr.msk.f32.vlgmr.msra.gmra.mrb[28].mxu1 %vm7474_vm11, %v8140_v6 }
 0x689   : > { %15657 = vmatpush3.bf16.msra.mxu1 %v15656_v21  ;;  %14656 = vmatprep.mubr.msk.f32.mxu1 %vm16659_vm3, %v20676_v8  ;;  %v12289_v21 = vld [vmem:[%s20641_s7 + $0x358] sm:$0xff] }
 0x68a   : > { %15658 = vmatprep.subr.bf16.mxu1 %v20688_v59  ;;  %v15707_v6 = vpack.c.bf16 %v12289_v21, %v12288_v3  ;;  %v12327_v3 = vld [vmem:[%s20641_s7 + $0x468] sm:$0xff] }
 0x68d   : > { %15660 = vmatpush3.bf16.msra.mxu1 %v15659_v22  ;;  %v15710_v22 = vpack.c.bf16 %v12291_v51, %v12290_v23  ;;  %v12329_v23 = vld [vmem:[%s20641_s7 + $0x478] sm:$0xff] }
 0x68e   : > { %15661 = vmatprep.subr.bf16.mxu1 %v20688_v59 }
 0x691   : > { %15663 = vmatpush3.bf16.msra.mxu1 %v15662_v11  ;;  %v15713_v11 = vpack.c.bf16 %v12293_v19, %v12292_v24  ;;  %v12332_v24 = vld [vmem:[%s20641_s7 + $0x488] sm:$0xff] }
 0x692   : > { %15664 = vmatprep.subr.bf16.mxu1 %v20688_v59 }
 0x695   : > { %15666 = vmatpush3.bf16.msra.mxu1 %v15665_v38  ;;  %v15716_v38 = vpack.c.bf16 %v12296_v0, %v12295_v62  ;;  %v12333_v62 = vld [vmem:[%s20641_s7 + $0x490] sm:$0xff]  ;;  %v12334_v0 = vld [vmem:[%s20641_s7 + $0x498] sm:$0xff] }
 0x696   : > { %15667 = vmatprep.subr.bf16.mxu1 %v20688_v59 }
 0x698   : > { %14657 = vmatmul.mubr.msk.f32.vlgmr.msra.gmra.mrb[28].mxu1 %vm7474_vm11, %v8223_v55 }
 0x699   : > { %15669 = vmatpush3.bf16.msra.mxu1 %v15668_v63  ;;  %14675 = vmatprep.mubr.msk.f32.mxu1 %vm16659_vm3, %v20676_v8  ;;  %v12298_v63 = vld [vmem:[%s20641_s7 + $0x398] sm:$0xff] }
 0x69a   : > { %15670 = vmatprep.subr.bf16.mxu1 %v20688_v59  ;;  %v15719_v55 = vpack.c.bf16 %v12298_v63, %v12297_v45  ;;  %v12336_v45 = vld [vmem:[%s20641_s7 + $0x4a8] sm:$0xff] }
 0x69d   : > { %15672 = vmatpush3.bf16.msra.mxu1 %v15671_v1  ;;  %v12301_v1 = vld [vmem:[%s20641_s7 + $0x3b0] sm:$0xff] }
 0x69e   : > { %15673 = vmatprep.subr.bf16.mxu1 %v20688_v59  ;;  %v15725_v35 = vpack.c.bf16 %v12302_v48, %v12301_v1  ;;  %v12341_v1 = vld [vmem:[%s20641_s7 + $0x4c8] sm:$0xff] }
 0x6a1   : > { %15675 = vmatpush3.bf16.msra.mxu1 %v15674_v60  ;;  %v19418_v60 = vmax.f32 %v18970_v29, 0.0  ;;  %v12306_v29 = vld [vmem:[%s20641_s7 + $0x3d0] sm:$0xff] }
 0x6a2   : > { %15676 = vmatprep.subr.bf16.mxu1 %v20688_v59 }
 0x6a3   : > { %v8639_v25 = vrot.slane %v19418_v60, 2 }
 0x6a5   : > { %15678 = vmatpush3.bf16.msra.mxu1 %v15677_v57  ;;  %v15728_v57 = vpack.c.bf16 %v12305_v15, %v12304_v7  ;;  %v12342_v7 = vld [vmem:[%s20641_s7 + $0x4d0] sm:$0xff]  ;;  %v12343_v15 = vld [vmem:[%s20641_s7 + $0x4d8] sm:$0xff] }
 0x6a6   : > { %15679 = vmatprep.subr.bf16.mxu1 %v20688_v59 }
 0x6a8   : > { %14676 = vmatmul.mubr.msk.f32.vlgmr.msra.gmra.mrb[28].mxu1 %vm7474_vm11, %v8306_v14  ;;  %v12308_v14 = vld [vmem:[%s20641_s7 + $0x3e0] sm:$0xff] }
 0x6a9   : > { %15681 = vmatpush3.bf16.msra.mxu1 %v15680_v33  ;;  %14694 = vmatprep.mubr.msk.f32.mxu1 %vm16659_vm3, %v20676_v8  ;;  %v15731_v33 = vpack.c.bf16 %v12307_v52, %v12306_v29  ;;  %v15734_v54 = vpack.c.bf16 %v12309_v16, %v12308_v14  ;;  %v12345_v29 = vld [vmem:[%s20641_s7 + $0x4e8] sm:$0xff]  ;;  %v12347_v14 = vld [vmem:[%s20641_s7 + $0x4f8] sm:$0xff] }
 0x6aa   : > { %15682 = vmatprep.subr.bf16.mxu1 %v20688_v59 }
 0x6ad   : > { %15684 = vmatpush3.bf16.msra.mxu1 %v15683_v34  ;;  %v12310_v34 = vld [vmem:[%s20641_s7 + $0x3f0] sm:$0xff] }
 0x6ae   : > { %15685 = vmatprep.subr.bf16.mxu1 %v20688_v59  ;;  %v15737_v39 = vpack.c.bf16 %v12311_v58, %v12310_v34  ;;  %v12350_v34 = vld [vmem:[%s20641_s7 + $0x508] sm:$0xff] }
 0x6b1   : > { %15687 = vmatpush3.bf16.msra.mxu1 %v15686_v5  ;;  %v12313_v5 = vld [vmem:[%s20641_s7 + $0x400] sm:$0xff] }
 0x6b2   : > { %15688 = vmatprep.subr.bf16.mxu1 %v20688_v59  ;;  %v15740_v17 = vpack.c.bf16 %v12314_v36, %v12313_v5  ;;  %v12351_v5 = vld [vmem:[%s20641_s7 + $0x510] sm:$0xff]  ;;  %v12352_v36 = vld [vmem:[%s20641_s7 + $0x518] sm:$0xff] }
 0x6b5   : > { %15690 = vmatpush3.bf16.msra.mxu1 %v15689_v41  ;;  %v8722_v41 = vrot.slane %v19418_v60, 3 }
 0x6b6   : > { %15691 = vmatprep.subr.bf16.mxu1 %v20688_v59 }
 0x6b8   : > { %14695 = vmatmul.mubr.msk.f32.vlgmr.msra.gmra.mrb[28].mxu1 %vm7474_vm11, %v8389_v10  ;;  %v12317_v10 = vld [vmem:[%s20641_s7 + $0x420] sm:$0xff] }
 0x6b9   : > { %15693 = vmatpush3.bf16.msra.mxu1 %v15692_v2  ;;  %14713 = vmatprep.mubr.msk.f32.mxu1 %vm16659_vm3, %v20676_v8  ;;  %v15743_v2 = vpack.c.bf16 %v12316_v12, %v12315_v18  ;;  %v15746_v32 = vpack.c.bf16 %v12318_v13, %v12317_v10  ;;  %v12355_v12 = vld [vmem:[%s20641_s7 + $0x530] sm:$0xff]  ;;  %v12358_v13 = vld [vmem:[%s20641_s7 + $0x540] sm:$0xff] }
 0x6ba   : > { %15694 = vmatprep.subr.bf16.mxu1 %v20688_v59 }
 0x6bd   : > { %15696 = vmatpush3.bf16.msra.mxu1 %v15695_v50  ;;  %v12319_v50 = vld [vmem:[%s20641_s7 + $0x430] sm:$0xff] }
 0x6be   : > { %15697 = vmatprep.subr.bf16.mxu1 %v20688_v59  ;;  %v15749_v28 = vpack.c.bf16 %v12320_v42, %v12319_v50  ;;  %v19620_v42 = vmax.f32 %v18968_v26, 0.0  ;;  %v12362_v26 = vld [vmem:[%s20641_s7 + $0x560] sm:$0xff] }
 0x6c1   : > { %15699 = vmatpush3.bf16.msra.mxu1 %v15698_v27  ;;  %v12322_v27 = vld [vmem:[%s20641_s7 + $0x440] sm:$0xff] }
 0x6c2   : > { %15700 = vmatprep.subr.bf16.mxu1 %v20688_v59  ;;  %v15752_v20 = vpack.c.bf16 %v12323_v4, %v12322_v27  ;;  %v12361_v27 = vld [vmem:[%s20641_s7 + $0x558] sm:$0xff] }
 0x6c5   : > { %15702 = vmatpush3.bf16.msra.mxu1 %v15701_v37  ;;  %v8805_v37 = vrot.slane %v19418_v60, 4 }
 0x6c6   : > { %15703 = vmatprep.subr.bf16.mxu1 %v20688_v59 }
 0x6c8   : > { %14714 = vmatmul.mubr.msk.f32.vlgmr.msra.gmra.mrb[28].mxu1 %vm7474_vm11, %v8472_v30  ;;  %v12326_v30 = vld [vmem:[%s20641_s7 + $0x460] sm:$0xff] }
 0x6c9   : > { %15705 = vmatpush3.bf16.msra.mxu1 %v15704_v47  ;;  %14732 = vmatprep.mubr.msk.f32.mxu1 %vm16659_vm3, %v20676_v8  ;;  %v15755_v47 = vpack.c.bf16 %v12325_v9, %v12324_v43  ;;  %v15758_v21 = vpack.c.bf16 %v12327_v3, %v12326_v30  ;;  %v12364_v43 = vld [vmem:[%s20641_s7 + $0x570] sm:$0xff]  ;;  %v12365_v9 = vld [vmem:[%s20641_s7 + $0x578] sm:$0xff]  ;;  %v12367_v30 = vld [vmem:[%s20641_s7 + $0x580] sm:$0xff] }
 0x6ca   : > { %15706 = vmatprep.subr.bf16.mxu1 %v20688_v59  ;;  %v12368_v3 = vld [vmem:[%s20641_s7 + $0x588] sm:$0xff] }
 0x6cd   : > { %15708 = vmatpush3.bf16.msra.mxu1 %v15707_v6  ;;  %v12328_v6 = vld [vmem:[%s20641_s7 + $0x470] sm:$0xff] }
 0x6ce   : > { %15709 = vmatprep.subr.bf16.mxu1 %v20688_v59  ;;  %v15761_v51 = vpack.c.bf16 %v12329_v23, %v12328_v6  ;;  %v9220_v6 = vrot.slane %v19620_v42, 3  ;;  %v12369_v23 = vld [vmem:[%s20641_s7 + $0x590] sm:$0xff] }
 0x6d1   : > { %15711 = vmatpush3.bf16.msra.mxu1 %v15710_v22  ;;  %v12331_v22 = vld [vmem:[%s20641_s7 + $0x480] sm:$0xff] }
 0x6d2   : > { %15712 = vmatprep.subr.bf16.mxu1 %v20688_v59  ;;  %v15764_v19 = vpack.c.bf16 %v12332_v24, %v12331_v22  ;;  %v12371_v24 = vld [vmem:[%s20641_s7 + $0x5a0] sm:$0xff] }
 0x6d5   : > { %15714 = vmatpush3.bf16.msra.mxu1 %v15713_v11  ;;  %v8888_v11 = vrot.slane %v19418_v60, 5 }
 0x6d6   : > { %15715 = vmatprep.subr.bf16.mxu1 %v20688_v59 }
 0x6d8   : > { %14733 = vmatmul.mubr.msk.f32.vlgmr.msra.gmra.mrb[28].mxu1 %vm7474_vm11, %v8555_v49  ;;  %v12335_v49 = vld [vmem:[%s20641_s7 + $0x4a0] sm:$0xff] }
 0x6d9   : > { %15717 = vmatpush3.bf16.msra.mxu1 %v15716_v38  ;;  %14751 = vmatprep.mubr.msk.f32.mxu1 %vm16659_vm3, %v20676_v8  ;;  %v15767_v38 = vpack.c.bf16 %v12334_v0, %v12333_v62  ;;  %v15770_v63 = vpack.c.bf16 %v12336_v45, %v12335_v49  ;;  %v12373_v62 = vld [vmem:[%s20641_s7 + $0x5b0] sm:$0xff]  ;;  %v12374_v0 = vld [vmem:[%s20641_s7 + $0x5b8] sm:$0xff]  ;;  %v12376_v49 = vld [vmem:[%s20641_s7 + $0x5c0] sm:$0xff] }
 0x6da   : > { %15718 = vmatprep.subr.bf16.mxu1 %v20688_v59  ;;  %v12377_v45 = vld [vmem:[%s20641_s7 + $0x5c8] sm:$0xff] }
 0x6dd   : > { %15720 = vmatpush3.bf16.msra.mxu1 %v15719_v55  ;;  %v12337_v55 = vld [vmem:[%s20641_s7 + $0x4b0] sm:$0xff] }
 0x6de   : > { %15721 = vmatprep.subr.bf16.mxu1 %v20688_v59  ;;  %v15773_v53 = vpack.c.bf16 %v12338_v56, %v12337_v55  ;;  %v9303_v55 = vrot.slane %v19620_v42, 4  ;;  %v12378_v56 = vld [vmem:[%s20641_s7 + $0x5d0] sm:$0xff] }
 0x6e1   : > { %15723 = vmatpush3.bf16.msra.mxu1 %v15722_v44  ;;  %v12340_v44 = vld [vmem:[%s20641_s7 + $0x4c0] sm:$0xff] }
 0x6e2   : > { %15724 = vmatprep.subr.bf16.mxu1 %v20688_v59  ;;  %v15776_v48 = vpack.c.bf16 %v12341_v1, %v12340_v44  ;;  %v12380_v1 = vld [vmem:[%s20641_s7 + $0x5e0] sm:$0xff] }
 0x6e5   : > { %15726 = vmatpush3.bf16.msra.mxu1 %v15725_v35  ;;  %v8971_v35 = vrot.slane %v19418_v60, 6 }
 0x6e6   : > { %15727 = vmatprep.subr.bf16.mxu1 %v20688_v59 }
 0x6e8   : > { %14752 = vmatmul.mubr.msk.f32.vlgmr.msra.gmra.mrb[28].mxu1 %vm7474_vm11, %v8639_v25  ;;  %v12344_v25 = vld [vmem:[%s20641_s7 + $0x4e0] sm:$0xff] }
 0x6e9   : > { %15729 = vmatpush3.bf16.msra.mxu1 %v15728_v57  ;;  %14770 = vmatprep.mubr.msk.f32.mxu1 %vm16659_vm3, %v20676_v8  ;;  %v15779_v57 = vpack.c.bf16 %v12343_v15, %v12342_v7  ;;  %v15782_v52 = vpack.c.bf16 %v12345_v29, %v12344_v25  ;;  %v12382_v7 = vld [vmem:[%s20641_s7 + $0x5f0] sm:$0xff]  ;;  %v12383_v15 = vld [vmem:[%s20641_s7 + $0x5f8] sm:$0xff]  ;;  %v12385_v25 = vld [vmem:[%s20641_s7 + $0x600] sm:$0xff] }
 0x6ea   : > { %15730 = vmatprep.subr.bf16.mxu1 %v20688_v59  ;;  %v12386_v29 = vld [vmem:[%s20641_s7 + $0x608] sm:$0xff] }
 0x6ed   : > { %15732 = vmatpush3.bf16.msra.mxu1 %v15731_v33  ;;  %v12346_v33 = vld [vmem:[%s20641_s7 + $0x4f0] sm:$0xff] }
 0x6ee   : > { %15733 = vmatprep.subr.bf16.mxu1 %v20688_v59  ;;  %v15785_v16 = vpack.c.bf16 %v12347_v14, %v12346_v33  ;;  %v9386_v33 = vrot.slane %v19620_v42, 5  ;;  %v12387_v14 = vld [vmem:[%s20641_s7 + $0x610] sm:$0xff] }
 0x6f1   : > { %15735 = vmatpush3.bf16.msra.mxu1 %v15734_v54  ;;  %v12349_v54 = vld [vmem:[%s20641_s7 + $0x500] sm:$0xff] }
 0x6f2   : > { %15736 = vmatprep.subr.bf16.mxu1 %v20688_v59  ;;  %v15788_v58 = vpack.c.bf16 %v12350_v34, %v12349_v54  ;;  %v12389_v34 = vld [vmem:[%s20641_s7 + $0x620] sm:$0xff] }
 0x6f5   : > { %15738 = vmatpush3.bf16.msra.mxu1 %v15737_v39  ;;  %v9054_v39 = vrot.slane %v19418_v60, 7  ;;  %v12353_v60 = vld [vmem:[%s20641_s7 + $0x520] sm:$0xff] }
 0x6f6   : > { %15739 = vmatprep.subr.bf16.mxu1 %v20688_v59 }
 0x6f8   : > { %14771 = vmatmul.mubr.msk.f32.vlgmr.msra.gmra.mrb[28].mxu1 %vm7474_vm11, %v8722_v41  ;;  %v12354_v41 = vld [vmem:[%s20641_s7 + $0x528] sm:$0xff] }
 0x6f9   : > { %15741 = vmatpush3.bf16.msra.mxu1 %v15740_v17  ;;  %14789 = vmatprep.mubr.msk.f32.mxu1 %vm16659_vm3, %v20676_v8  ;;  %v15791_v17 = vpack.c.bf16 %v12352_v36, %v12351_v5  ;;  %v15794_v18 = vpack.c.bf16 %v12354_v41, %v12353_v60  ;;  %v12391_v5 = vld [vmem:[%s20641_s7 + $0x630] sm:$0xff]  ;;  %v12392_v36 = vld [vmem:[%s20641_s7 + $0x638] sm:$0xff]  ;;  %v12394_v60 = vld [vmem:[%s20641_s7 + $0x640] sm:$0xff] }
 0x6fa   : > { %15742 = vmatprep.subr.bf16.mxu1 %v20688_v59  ;;  %v12395_v41 = vld [vmem:[%s20641_s7 + $0x648] sm:$0xff] }
 0x6fd   : > { %15744 = vmatpush3.bf16.msra.mxu1 %v15743_v2  ;;  %v12356_v2 = vld [vmem:[%s20641_s7 + $0x538] sm:$0xff] }
 0x6fe   : > { %15745 = vmatprep.subr.bf16.mxu1 %v20688_v59  ;;  %v15797_v10 = vpack.c.bf16 %v12356_v2, %v12355_v12  ;;  %v9469_v12 = vrot.slane %v19620_v42, 6  ;;  %v12396_v2 = vld [vmem:[%s20641_s7 + $0x650] sm:$0xff] }
 0x701   : > { %15747 = vmatpush3.bf16.msra.mxu1 %v15746_v32  ;;  %v12359_v32 = vld [vmem:[%s20641_s7 + $0x548] sm:$0xff] }
 0x702   : > { %15748 = vmatprep.subr.bf16.mxu1 %v20688_v59  ;;  %v15800_v50 = vpack.c.bf16 %v12359_v32, %v12358_v13  ;;  %v12398_v32 = vld [vmem:[%s20641_s7 + $0x660] sm:$0xff] }
 0x705   : > { %15750 = vmatpush3.bf16.msra.mxu1 %v15749_v28  ;;  %v12360_v28 = vld [vmem:[%s20641_s7 + $0x550] sm:$0xff] }
 0x706   : > { %15751 = vmatprep.subr.bf16.mxu1 %v20688_v59  ;;  %v15803_v4 = vpack.c.bf16 %v12361_v27, %v12360_v28  ;;  %v12400_v27 = vld [vmem:[%s20641_s7 + $0x670] sm:$0xff] }
 0x708   : > { %14790 = vmatmul.mubr.msk.f32.vlgmr.msra.gmra.mrb[28].mxu1 %vm7474_vm11, %v8805_v37 }
 0x709   : > { %15753 = vmatpush3.bf16.msra.mxu1 %v15752_v20  ;;  %14808 = vmatprep.mubr.msk.f32.mxu1 %vm16659_vm3, %v20676_v8  ;;  %v12363_v20 = vld [vmem:[%s20641_s7 + $0x568] sm:$0xff] }
 0x70a   : > { %15754 = vmatprep.subr.bf16.mxu1 %v20688_v59  ;;  %v15806_v37 = vpack.c.bf16 %v12363_v20, %v12362_v26  ;;  %v12403_v20 = vld [vmem:[%s20641_s7 + $0x680] sm:$0xff] }
 0x70d   : > { %15756 = vmatpush3.bf16.msra.mxu1 %v15755_v47  ;;  %v15809_v47 = vpack.c.bf16 %v12365_v9, %v12364_v43  ;;  %v9552_v9 = vrot.slane %v19620_v42, 7 }
 0x70e   : > { %15757 = vmatprep.subr.bf16.mxu1 %v20688_v59 }
 0x711   : > { %15759 = vmatpush3.bf16.msra.mxu1 %v15758_v21  ;;  %v15812_v21 = vpack.c.bf16 %v12368_v3, %v12367_v30  ;;  %v12406_v30 = vld [vmem:[%s20641_s7 + $0x698] sm:$0xff] }
 0x712   : > { %15760 = vmatprep.subr.bf16.mxu1 %v20688_v59 }
 0x715   : > { %15762 = vmatpush3.bf16.msra.mxu1 %v15761_v51  ;;  %v12370_v51 = vld [vmem:[%s20641_s7 + $0x598] sm:$0xff] }
 0x716   : > { %15763 = vmatprep.subr.bf16.mxu1 %v20688_v59  ;;  %v15815_v22 = vpack.c.bf16 %v12370_v51, %v12369_v23  ;;  %v12409_v23 = vld [vmem:[%s20641_s7 + $0x6b0] sm:$0xff]  ;;  %v12410_v51 = vld [vmem:[%s20641_s7 + $0x6b8] sm:$0xff] }
 0x718   : > { %14809 = vmatmul.mubr.msk.f32.vlgmr.msra.gmra.mrb[28].mxu1 %vm7474_vm11, %v8888_v11 }
 0x719   : > { %15765 = vmatpush3.bf16.msra.mxu1 %v15764_v19  ;;  %14827 = vmatprep.mubr.msk.f32.mxu1 %vm16659_vm3, %v20676_v8  ;;  %v12372_v19 = vld [vmem:[%s20641_s7 + $0x5a8] sm:$0xff] }
 0x71a   : > { %15766 = vmatprep.subr.bf16.mxu1 %v20688_v59  ;;  %v15818_v11 = vpack.c.bf16 %v12372_v19, %v12371_v24  ;;  %v12412_v24 = vld [vmem:[%s20641_s7 + $0x6c0] sm:$0xff]  ;;  %v12413_v19 = vld [vmem:[%s20641_s7 + $0x6c8] sm:$0xff] }
 0x71d   : > { %15768 = vmatpush3.bf16.msra.mxu1 %v15767_v38  ;;  %v15821_v38 = vpack.c.bf16 %v12374_v0, %v12373_v62  ;;  %v19815_v62 = vmax.f32 %v18985_v46, 0.0  ;;  %v12414_v0 = vld [vmem:[%s20641_s7 + $0x6d0] sm:$0xff]  ;;  %v12416_v46 = vld [vmem:[%s20641_s7 + $0x6e0] sm:$0xff] }
 0x71e   : > { %15769 = vmatprep.subr.bf16.mxu1 %v20688_v59 }
 0x721   : > { %15771 = vmatpush3.bf16.msra.mxu1 %v15770_v63  ;;  %v15824_v63 = vpack.c.bf16 %v12377_v45, %v12376_v49  ;;  %v12417_v45 = vld [vmem:[%s20641_s7 + $0x6e8] sm:$0xff] }
 0x722   : > { %15772 = vmatprep.subr.bf16.mxu1 %v20688_v59 }
 0x725   : > { %15774 = vmatpush3.bf16.msra.mxu1 %v15773_v53  ;;  %v12379_v53 = vld [vmem:[%s20641_s7 + $0x5d8] sm:$0xff] }
 0x726   : > { %15775 = vmatprep.subr.bf16.mxu1 %v20688_v59  ;;  %v15827_v44 = vpack.c.bf16 %v12379_v53, %v12378_v56  ;;  %v12419_v56 = vld [vmem:[%s20641_s7 + $0x6f8] sm:$0xff] }
 0x728   : > { %14828 = vmatmul.mubr.msk.f32.vlgmr.msra.gmra.mrb[28].mxu1 %vm7474_vm11, %v8971_v35 }
 0x729   : > { %15777 = vmatpush3.bf16.msra.mxu1 %v15776_v48  ;;  %14846 = vmatprep.mubr.msk.f32.mxu1 %vm16659_vm3, %v20676_v8  ;;  %v12381_v48 = vld [vmem:[%s20641_s7 + $0x5e8] sm:$0xff] }
 0x72a   : > { %15778 = vmatprep.subr.bf16.mxu1 %v20688_v59  ;;  %v15830_v35 = vpack.c.bf16 %v12381_v48, %v12380_v1  ;;  %v12422_v1 = vld [vmem:[%s20641_s7 + $0x708] sm:$0xff] }
 0x72d   : > { %15780 = vmatpush3.bf16.msra.mxu1 %v15779_v57  ;;  %v15833_v57 = vpack.c.bf16 %v12383_v15, %v12382_v7  ;;  %v12423_v7 = vld [vmem:[%s20641_s7 + $0x710] sm:$0xff]  ;;  %v12424_v15 = vld [vmem:[%s20641_s7 + $0x718] sm:$0xff] }
 0x72e   : > { %15781 = vmatprep.subr.bf16.mxu1 %v20688_v59 }
 0x731   : > { %15783 = vmatpush3.bf16.msra.mxu1 %v15782_v52  ;;  %v15836_v52 = vpack.c.bf16 %v12386_v29, %v12385_v25  ;;  %v12425_v25 = vld [vmem:[%s20641_s7 + $0x720] sm:$0xff]  ;;  %v12426_v29 = vld [vmem:[%s20641_s7 + $0x728] sm:$0xff] }
 0x732   : > { %15784 = vmatprep.subr.bf16.mxu1 %v20688_v59 }
 0x735   : > { %15786 = vmatpush3.bf16.msra.mxu1 %v15785_v16  ;;  %v12388_v16 = vld [vmem:[%s20641_s7 + $0x618] sm:$0xff] }
 0x736   : > { %15787 = vmatprep.subr.bf16.mxu1 %v20688_v59  ;;  %v15839_v54 = vpack.c.bf16 %v12388_v16, %v12387_v14  ;;  %v12428_v14 = vld [vmem:[%s20641_s7 + $0x738] sm:$0xff] }
 0x738   : > { %14847 = vmatmul.mubr.msk.f32.vlgmr.msra.gmra.mrb[28].mxu1 %vm7474_vm11, %v9054_v39 }
 0x739   : > { %15789 = vmatpush3.bf16.msra.mxu1 %v15788_v58  ;;  %14865 = vmatprep.mubr.msk.f32.mxu1 %vm16659_vm3, %v20676_v8  ;;  %v12390_v58 = vld [vmem:[%s20641_s7 + $0x628] sm:$0xff] }
 0x73a   : > { %15790 = vmatprep.subr.bf16.mxu1 %v20688_v59  ;;  %v15842_v39 = vpack.c.bf16 %v12390_v58, %v12389_v34  ;;  %v12431_v34 = vld [vmem:[%s20641_s7 + $0x748] sm:$0xff] }
 0x73d   : > { %15792 = vmatpush3.bf16.msra.mxu1 %v15791_v17  ;;  %v15845_v17 = vpack.c.bf16 %v12392_v36, %v12391_v5  ;;  %v12432_v5 = vld [vmem:[%s20641_s7 + $0x750] sm:$0xff]  ;;  %v12433_v36 = vld [vmem:[%s20641_s7 + $0x758] sm:$0xff] }
 0x73e   : > { %15793 = vmatprep.subr.bf16.mxu1 %v20688_v59 }
 0x741   : > { %15795 = vmatpush3.bf16.msra.mxu1 %v15794_v18  ;;  %v15848_v18 = vpack.c.bf16 %v12395_v41, %v12394_v60  ;;  %v12434_v60 = vld [vmem:[%s20641_s7 + $0x760] sm:$0xff]  ;;  %v12435_v41 = vld [vmem:[%s20641_s7 + $0x768] sm:$0xff] }
 0x742   : > { %15796 = vmatprep.subr.bf16.mxu1 %v20688_v59 }
 0x745   : > { %15798 = vmatpush3.bf16.msra.mxu1 %v15797_v10  ;;  %v12397_v10 = vld [vmem:[%s20641_s7 + $0x658] sm:$0xff] }
 0x746   : > { %15799 = vmatprep.subr.bf16.mxu1 %v20688_v59  ;;  %v15851_v13 = vpack.c.bf16 %v12397_v10, %v12396_v2  ;;  %v12437_v2 = vld [vmem:[%s20641_s7 + $0x778] sm:$0xff] }
 0x748   : > { %14866 = vmatmul.mubr.msk.f32.vlgmr.msra.gmra.mrb[28].mxu1 %vm7474_vm11, %v19620_v42  ;;  %v12407_v42 = vld [vmem:[%s20641_s7 + $0x6a0] sm:$0xff] }
 0x749   : > { %15801 = vmatpush3.bf16.msra.mxu1 %v15800_v50  ;;  %14884 = vmatprep.mubr.msk.f32.mxu1 %vm16659_vm3, %v20676_v8  ;;  %v12399_v50 = vld [vmem:[%s20641_s7 + $0x668] sm:$0xff] }
 0x74a   : > { %15802 = vmatprep.subr.bf16.mxu1 %v20688_v59  ;;  %v15854_v28 = vpack.c.bf16 %v12399_v50, %v12398_v32  ;;  %v12440_v32 = vld [vmem:[%s20641_s7 + $0x788] sm:$0xff] }
 0x74d   : > { %15804 = vmatpush3.bf16.msra.mxu1 %v15803_v4  ;;  %v12401_v4 = vld [vmem:[%s20641_s7 + $0x678] sm:$0xff] }
 0x74e   : > { %15805 = vmatprep.subr.bf16.mxu1 %v20688_v59  ;;  %v15857_v26 = vpack.c.bf16 %v12401_v4, %v12400_v27  ;;  %v12441_v27 = vld [vmem:[%s20641_s7 + $0x790] sm:$0xff]  ;;  %v12442_v4 = vld [vmem:[%s20641_s7 + $0x798] sm:$0xff] }
 0x751   : > { %15807 = vmatpush3.bf16.msra.mxu1 %v15806_v37  ;;  %v12404_v37 = vld [vmem:[%s20641_s7 + $0x688] sm:$0xff] }
 0x752   : > { %15808 = vmatprep.subr.bf16.mxu1 %v20688_v59  ;;  %v15860_v43 = vpack.c.bf16 %v12404_v37, %v12403_v20  ;;  %v12443_v20 = vld [vmem:[%s20641_s7 + $0x7a0] sm:$0xff]  ;;  %v12444_v37 = vld [vmem:[%s20641_s7 + $0x7a8] sm:$0xff] }
 0x755   : > { %15810 = vmatpush3.bf16.msra.mxu1 %v15809_v47  ;;  %v12405_v47 = vld [vmem:[%s20641_s7 + $0x690] sm:$0xff] }
 0x756   : > { %15811 = vmatprep.subr.bf16.mxu1 %v20688_v59  ;;  %v15863_v3 = vpack.c.bf16 %v12406_v30, %v12405_v47  ;;  %v12446_v47 = vld [vmem:[%s20641_s7 + $0x7b8] sm:$0xff] }
 0x758   : > { %14885 = vmatmul.mubr.msk.f32.vlgmr.msra.gmra.mrb[28].mxu1 %vm7474_vm11, %v9220_v6 }
 0x759   : > { %15813 = vmatpush3.bf16.msra.mxu1 %v15812_v21  ;;  %14903 = vmatprep.mubr.msk.f32.mxu1 %vm16659_vm3, %v20676_v8  ;;  %v12408_v21 = vld [vmem:[%s20641_s7 + $0x6a8] sm:$0xff] }
 0x75a   : > { %15814 = vmatprep.subr.bf16.mxu1 %v20688_v59  ;;  %v15866_v6 = vpack.c.bf16 %v12408_v21, %v12407_v42  ;;  %v12449_v42 = vld [vmem:[%s20641_s7 + $0x7c8] sm:$0xff] }
 0x75d   : > { %15816 = vmatpush3.bf16.msra.mxu1 %v15815_v22  ;;  %v15869_v22 = vpack.c.bf16 %v12410_v51, %v12409_v23  ;;  %v12450_v23 = vld [vmem:[%s20641_s7 + $0x7d0] sm:$0xff]  ;;  %v12451_v51 = vld [vmem:[%s20641_s7 + $0x7d8] sm:$0xff] }
 0x75e   : > { %15817 = vmatprep.subr.bf16.mxu1 %v20688_v59 }
 0x761   : > { %15819 = vmatpush3.bf16.msra.mxu1 %v15818_v11  ;;  %v15872_v11 = vpack.c.bf16 %v12413_v19, %v12412_v24  ;;  %v12452_v24 = vld [vmem:[%s20641_s7 + $0x7e0] sm:$0xff]  ;;  %v12453_v19 = vld [vmem:[%s20641_s7 + $0x7e8] sm:$0xff] }
 0x762   : > { %15820 = vmatprep.subr.bf16.mxu1 %v20688_v59 }
 0x765   : > { %15822 = vmatpush3.bf16.msra.mxu1 %v15821_v38  ;;  %v12415_v38 = vld [vmem:[%s20641_s7 + $0x6d8] sm:$0xff] }
 0x766   : > { %15823 = vmatprep.subr.bf16.mxu1 %v20688_v59  ;;  %v15875_v49 = vpack.c.bf16 %v12415_v38, %v12414_v0  ;;  %v12454_v0 = vld [vmem:[%s20641_s7 + $0x7f0] sm:$0xff]  ;;  %v12455_v38 = vld [vmem:[%s20641_s7 + $0x7f8] sm:$0xff] }
 0x768   : > { %14904 = vmatmul.mubr.msk.f32.vlgmr.msra.gmra.mrb[28].mxu1 %vm7474_vm11, %v9303_v55  ;;  %v12418_v55 = vld [vmem:[%s20641_s7 + $0x6f0] sm:$0xff] }
 0x769   : > { %15825 = vmatpush3.bf16.msra.mxu1 %v15824_v63  ;;  %14922 = vmatprep.mubr.msk.f32.mxu1 %vm16659_vm3, %v20676_v8  ;;  %v15878_v63 = vpack.c.bf16 %v12417_v45, %v12416_v46  ;;  %v15881_v53 = vpack.c.bf16 %v12419_v56, %v12418_v55  ;;  %v12457_v46 = vld [vmem:[%s20641_s7 + $0x800] sm:$0xff]  ;;  %v12458_v45 = vld [vmem:[%s20641_s7 + $0x808] sm:$0xff]  ;;  %v10050_v55 = vrot.slane %v19815_v62, 7  ;;  %v12459_v56 = vld [vmem:[%s20641_s7 + $0x810] sm:$0xff] }
 0x76a   : > { %15826 = vmatprep.subr.bf16.mxu1 %v20688_v59 }
 0x76d   : > { %15828 = vmatpush3.bf16.msra.mxu1 %v15827_v44  ;;  %v12421_v44 = vld [vmem:[%s20641_s7 + $0x700] sm:$0xff] }
 0x76e   : > { %15829 = vmatprep.subr.bf16.mxu1 %v20688_v59  ;;  %v15884_v48 = vpack.c.bf16 %v12422_v1, %v12421_v44  ;;  %v12462_v1 = vld [vmem:[%s20641_s7 + $0x828] sm:$0xff] }
 0x771   : > { %15831 = vmatpush3.bf16.msra.mxu1 %v15830_v35  ;;  %v9718_v35 = vrot.slane %v19815_v62, 1 }
 0x772   : > { %15832 = vmatprep.subr.bf16.mxu1 %v20688_v59 }
 0x775   : > { %15834 = vmatpush3.bf16.msra.mxu1 %v15833_v57  ;;  %v15887_v57 = vpack.c.bf16 %v12424_v15, %v12423_v7  ;;  %v12464_v7 = vld [vmem:[%s20641_s7 + $0x838] sm:$0xff] }
 0x776   : > { %15835 = vmatprep.subr.bf16.mxu1 %v20688_v59 }
 0x778   : > { %14923 = vmatmul.mubr.msk.f32.vlgmr.msra.gmra.mrb[28].mxu1 %vm7474_vm11, %v9386_v33  ;;  %v12427_v33 = vld [vmem:[%s20641_s7 + $0x730] sm:$0xff] }
 0x779   : > { %15837 = vmatpush3.bf16.msra.mxu1 %v15836_v52  ;;  %14941 = vmatprep.mubr.msk.f32.mxu1 %vm16659_vm3, %v20676_v8  ;;  %v15890_v52 = vpack.c.bf16 %v12426_v29, %v12425_v25  ;;  %v15893_v16 = vpack.c.bf16 %v12428_v14, %v12427_v33  ;;  %v12467_v25 = vld [vmem:[%s20641_s7 + $0x848] sm:$0xff]  ;;  %v12468_v33 = vld [vmem:[%s20641_s7 + $0x850] sm:$0xff]  ;;  %v12469_v14 = vld [vmem:[%s20641_s7 + $0x858] sm:$0xff] }
 0x77a   : > { %15838 = vmatprep.subr.bf16.mxu1 %v20688_v59 }
 0x77d   : > { %15840 = vmatpush3.bf16.msra.mxu1 %v15839_v54  ;;  %v12430_v54 = vld [vmem:[%s20641_s7 + $0x740] sm:$0xff] }
 0x77e   : > { %15841 = vmatprep.subr.bf16.mxu1 %v20688_v59  ;;  %v15896_v58 = vpack.c.bf16 %v12431_v34, %v12430_v54  ;;  %v12471_v54 = vld [vmem:[%s20641_s7 + $0x868] sm:$0xff] }
 0x781   : > { %15843 = vmatpush3.bf16.msra.mxu1 %v15842_v39  ;;  %v9801_v39 = vrot.slane %v19815_v62, 4 }
 0x782   : > { %15844 = vmatprep.subr.bf16.mxu1 %v20688_v59 }
 0x785   : > { %15846 = vmatpush3.bf16.msra.mxu1 %v15845_v17  ;;  %v15899_v17 = vpack.c.bf16 %v12433_v36, %v12432_v5  ;;  %v12475_v36 = vld [vmem:[%s20641_s7 + $0x880] sm:$0xff] }
 0x786   : > { %15847 = vmatprep.subr.bf16.mxu1 %v20688_v59 }
 0x788   : > { %14942 = vmatmul.mubr.msk.f32.vlgmr.msra.gmra.mrb[28].mxu1 %vm7474_vm11, %v9469_v12  ;;  %v12436_v12 = vld [vmem:[%s20641_s7 + $0x770] sm:$0xff] }
 0x789   : > { %15849 = vmatpush3.bf16.msra.mxu1 %v15848_v18  ;;  %14960 = vmatprep.mubr.msk.f32.mxu1 %vm16659_vm3, %v20676_v8  ;;  %v15902_v18 = vpack.c.bf16 %v12435_v41, %v12434_v60  ;;  %v15905_v10 = vpack.c.bf16 %v12437_v2, %v12436_v12  ;;  %v12478_v12 = vld [vmem:[%s20641_s7 + $0x898] sm:$0xff] }
 0x78a   : > { %15850 = vmatprep.subr.bf16.mxu1 %v20688_v59 }
 0x78d   : > { %15852 = vmatpush3.bf16.msra.mxu1 %v15851_v13  ;;  %v12439_v13 = vld [vmem:[%s20641_s7 + $0x780] sm:$0xff] }
 0x78e   : > { %15853 = vmatprep.subr.bf16.mxu1 %v20688_v59  ;;  %v15908_v50 = vpack.c.bf16 %v12440_v32, %v12439_v13  ;;  %v12480_v13 = vld [vmem:[%s20641_s7 + $0x8a8] sm:$0xff] }
 0x791   : > { %15855 = vmatpush3.bf16.msra.mxu1 %v15854_v28  ;;  %v9884_v28 = vrot.slane %v19815_v62, 5 }
 0x792   : > { %15856 = vmatprep.subr.bf16.mxu1 %v20688_v59 }
 0x795   : > { %15858 = vmatpush3.bf16.msra.mxu1 %v15857_v26  ;;  %v15911_v26 = vpack.c.bf16 %v12442_v4, %v12441_v27  ;;  %v12484_v4 = vld [vmem:[%s20641_s7 + $0x8c0] sm:$0xff] }
 0x796   : > { %15859 = vmatprep.subr.bf16.mxu1 %v20688_v59 }
 0x798   : > { %14961 = vmatmul.mubr.msk.f32.vlgmr.msra.gmra.mrb[28].mxu1 %vm7474_vm11, %v9552_v9  ;;  %v12445_v9 = vld [vmem:[%s20641_s7 + $0x7b0] sm:$0xff] }
 0x799   : > { %15861 = vmatpush3.bf16.msra.mxu1 %v15860_v43  ;;  %14979 = vmatprep.mubr.msk.f32.mxu1 %vm16659_vm3, %v20676_v8  ;;  %v15914_v43 = vpack.c.bf16 %v12444_v37, %v12443_v20  ;;  %v15917_v30 = vpack.c.bf16 %v12446_v47, %v12445_v9  ;;  %v12487_v9 = vld [vmem:[%s20641_s7 + $0x8d8] sm:$0xff] }
 0x79a   : > { %15862 = vmatprep.subr.bf16.mxu1 %v20688_v59 }
 0x79d   : > { %15864 = vmatpush3.bf16.msra.mxu1 %v15863_v3  ;;  %v12448_v3 = vld [vmem:[%s20641_s7 + $0x7c0] sm:$0xff] }
 0x79e   : > { %15865 = vmatprep.subr.bf16.mxu1 %v20688_v59  ;;  %v15920_v21 = vpack.c.bf16 %v12449_v42, %v12448_v3  ;;  %v12489_v3 = vld [vmem:[%s20641_s7 + $0x8e8] sm:$0xff] }
 0x7a1   : > { %15867 = vmatpush3.bf16.msra.mxu1 %v15866_v6  ;;  %v9967_v6 = vrot.slane %v19815_v62, 6 }
 0x7a2   : > { %15868 = vmatprep.subr.bf16.mxu1 %v20688_v59 }
 0x7a5   : > { %15870 = vmatpush3.bf16.msra.mxu1 %v15869_v22  ;;  %v15923_v22 = vpack.c.bf16 %v12451_v51, %v12450_v23  ;;  %v12493_v51 = vld [vmem:[%s20641_s7 + $0x900] sm:$0xff] }
 0x7a6   : > { %15871 = vmatprep.subr.bf16.mxu1 %v20688_v59 }
 0x7a8   : > { %14980 = vmatmul.mubr.msk.f32.vlgmr.msra.gmra.mrb[28].mxu1 %vm7474_vm11, %v19815_v62  ;;  %v12461_v62 = vld [vmem:[%s20641_s7 + $0x820] sm:$0xff] }
 0x7a9   : > { %15873 = vmatpush3.bf16.msra.mxu1 %v15872_v11  ;;  %14998 = vmatprep.mubr.msk.f32.mxu1 %vm16659_vm3, %v20676_v8  ;;  %v15926_v11 = vpack.c.bf16 %v12453_v19, %v12452_v24 }
 0x7aa   : > { %15874 = vmatprep.subr.bf16.mxu1 %v20688_v59 }
 0x7ad   : > { %15876 = vmatpush3.bf16.msra.mxu1 %v15875_v49  ;;  %v15929_v49 = vpack.c.bf16 %v12455_v38, %v12454_v0  ;;  %v12496_v0 = vld [vmem:[%s20641_s7 + $0x918] sm:$0xff] }
 0x7ae   : > { %15877 = vmatprep.subr.bf16.mxu1 %v20688_v59 }
 0x7b1   : > { %15879 = vmatpush3.bf16.msra.mxu1 %v15878_v63  ;;  %v15932_v63 = vpack.c.bf16 %v12458_v45, %v12457_v46  ;;  %v12498_v46 = vld [vmem:[%s20641_s7 + $0x928] sm:$0xff] }
 0x7b2   : > { %15880 = vmatprep.subr.bf16.mxu1 %v20688_v59 }
 0x7b5   : > { %15882 = vmatpush3.bf16.msra.mxu1 %v15881_v53  ;;  %v12460_v53 = vld [vmem:[%s20641_s7 + $0x818] sm:$0xff] }
 0x7b6   : > { %15883 = vmatprep.subr.bf16.mxu1 %v20688_v59  ;;  %v15935_v44 = vpack.c.bf16 %v12460_v53, %v12459_v56  ;;  %v12502_v53 = vld [vmem:[%s20641_s7 + $0x940] sm:$0xff] }
 0x7b8   : > { %14999 = vmatmul.mubr.msk.f32.vlgmr.msra.gmra.mrb[28].mxu1 %vm7474_vm11, %v9718_v35  ;;  %v12463_v35 = vld [vmem:[%s20641_s7 + $0x830] sm:$0xff] }
 0x7b9   : > { %15885 = vmatpush3.bf16.msra.mxu1 %v15884_v48  ;;  %15017 = vmatprep.mubr.msk.f32.mxu1 %vm16659_vm3, %v20676_v8  ;;  %v15938_v48 = vpack.c.bf16 %v12462_v1, %v12461_v62  ;;  %v15941_v15 = vpack.c.bf16 %v12464_v7, %v12463_v35  ;;  %v12505_v35 = vld [vmem:[%s20641_s7 + $0x958] sm:$0xff] }
 0x7ba   : > { %15886 = vmatprep.subr.bf16.mxu1 %v20688_v59 }
 0x7bd   : > { %15888 = vmatpush3.bf16.msra.mxu1 %v15887_v57  ;;  %v12466_v57 = vld [vmem:[%s20641_s7 + $0x840] sm:$0xff] }
 0x7be   : > { %15889 = vmatprep.subr.bf16.mxu1 %v20688_v59  ;;  %v15944_v29 = vpack.c.bf16 %v12467_v25, %v12466_v57  ;;  %v12507_v57 = vld [vmem:[%s20641_s7 + $0x968] sm:$0xff] }
 0x7c1   : > { %15891 = vmatpush3.bf16.msra.mxu1 %v15890_v52  ;;  %v20010_v52 = vmax.f32 %v18983_v61, 0.0  ;;  %v12470_v61 = vld [vmem:[%s20641_s7 + $0x860] sm:$0xff] }
 0x7c2   : > { %15892 = vmatprep.subr.bf16.mxu1 %v20688_v59  ;;  %v15950_v34 = vpack.c.bf16 %v12471_v54, %v12470_v61  ;;  %v12512_v61 = vld [vmem:[%s20641_s7 + $0x988] sm:$0xff] }
 0x7c3   : > { %v10216_v41 = vrot.slane %v20010_v52, 1  ;;  %v10299_v37 = vrot.slane %v20010_v52, 2  ;;  %v10382_v19 = vrot.slane %v20010_v52, 5  ;;  %v10465_v1 = vrot.slane %v20010_v52, 6 }
 0x7c5   : > { %15894 = vmatpush3.bf16.msra.mxu1 %v15893_v16  ;;  %v15947_v16 = vpack.c.bf16 %v12469_v14, %v12468_v33  ;;  %v12509_v33 = vld [vmem:[%s20641_s7 + $0x978] sm:$0xff] }
 0x7c6   : > { %15895 = vmatprep.subr.bf16.mxu1 %v20688_v59 }
 0x7c8   : > { %15018 = vmatmul.mubr.msk.f32.vlgmr.msra.gmra.mrb[28].mxu1 %vm7474_vm11, %v9801_v39  ;;  %v12473_v39 = vld [vmem:[%s20641_s7 + $0x878] sm:$0xff] }
 0x7c9   : > { %15897 = vmatpush3.bf16.msra.mxu1 %v15896_v58  ;;  %15036 = vmatprep.mubr.msk.f32.mxu1 %vm16659_vm3, %v20676_v8  ;;  %v12472_v58 = vld [vmem:[%s20641_s7 + $0x870] sm:$0xff] }
 0x7ca   : > { %15898 = vmatprep.subr.bf16.mxu1 %v20688_v59  ;;  %v15953_v5 = vpack.c.bf16 %v12473_v39, %v12472_v58  ;;  %v12513_v58 = vld [vmem:[%s20641_s7 + $0x990] sm:$0xff]  ;;  %v12514_v39 = vld [vmem:[%s20641_s7 + $0x998] sm:$0xff] }
 0x7cd   : > { %15900 = vmatpush3.bf16.msra.mxu1 %v15899_v17  ;;  %v12476_v17 = vld [vmem:[%s20641_s7 + $0x888] sm:$0xff] }
 0x7ce   : > { %15901 = vmatprep.subr.bf16.mxu1 %v20688_v59  ;;  %v15956_v60 = vpack.c.bf16 %v12476_v17, %v12475_v36  ;;  %v12516_v36 = vld [vmem:[%s20641_s7 + $0x9a8] sm:$0xff] }
 0x7d1   : > { %15903 = vmatpush3.bf16.msra.mxu1 %v15902_v18  ;;  %v12477_v18 = vld [vmem:[%s20641_s7 + $0x890] sm:$0xff] }
 0x7d2   : > { %15904 = vmatprep.subr.bf16.mxu1 %v20688_v59  ;;  %v15959_v2 = vpack.c.bf16 %v12478_v12, %v12477_v18  ;;  %v12520_v12 = vld [vmem:[%s20641_s7 + $0x9c0] sm:$0xff] }
 0x7d5   : > { %15906 = vmatpush3.bf16.msra.mxu1 %v15905_v10  ;;  %v12479_v10 = vld [vmem:[%s20641_s7 + $0x8a0] sm:$0xff] }
 0x7d6   : > { %15907 = vmatprep.subr.bf16.mxu1 %v20688_v59  ;;  %v15962_v32 = vpack.c.bf16 %v12480_v13, %v12479_v10  ;;  %v20205_v13 = vmax.f32 %v18996_v31, 0.0  ;;  %v12524_v31 = vld [vmem:[%s20641_s7 + $0x9e0] sm:$0xff] }
 0x7d8   : > { %15037 = vmatmul.mubr.msk.f32.vlgmr.msra.gmra.mrb[28].mxu1 %vm7474_vm11, %v9884_v28  ;;  %v12482_v28 = vld [vmem:[%s20641_s7 + $0x8b8] sm:$0xff] }
 0x7d9   : > { %15909 = vmatpush3.bf16.msra.mxu1 %v15908_v50  ;;  %15055 = vmatprep.mubr.msk.f32.mxu1 %vm16659_vm3, %v20676_v8  ;;  %v12481_v50 = vld [vmem:[%s20641_s7 + $0x8b0] sm:$0xff] }
 0x7da   : > { %15910 = vmatprep.subr.bf16.mxu1 %v20688_v59  ;;  %v15965_v27 = vpack.c.bf16 %v12482_v28, %v12481_v50  ;;  %v12523_v50 = vld [vmem:[%s20641_s7 + $0x9d8] sm:$0xff] }
 0x7dd   : > { %15912 = vmatpush3.bf16.msra.mxu1 %v15911_v26  ;;  %v12485_v26 = vld [vmem:[%s20641_s7 + $0x8c8] sm:$0xff] }
 0x7de   : > { %15913 = vmatprep.subr.bf16.mxu1 %v20688_v59  ;;  %v15968_v20 = vpack.c.bf16 %v12485_v26, %v12484_v4  ;;  %v12526_v26 = vld [vmem:[%s20641_s7 + $0x9f0] sm:$0xff] }
 0x7e1   : > { %15915 = vmatpush3.bf16.msra.mxu1 %v15914_v43  ;;  %v12486_v43 = vld [vmem:[%s20641_s7 + $0x8d0] sm:$0xff] }
 0x7e2   : > { %15916 = vmatprep.subr.bf16.mxu1 %v20688_v59  ;;  %v15971_v47 = vpack.c.bf16 %v12487_v9, %v12486_v43  ;;  %v12529_v43 = vld [vmem:[%s20641_s7 + $0xa00] sm:$0xff]  ;;  %v12530_v9 = vld [vmem:[%s20641_s7 + $0xa08] sm:$0xff] }
 0x7e5   : > { %15918 = vmatpush3.bf16.msra.mxu1 %v15917_v30  ;;  %v12488_v30 = vld [vmem:[%s20641_s7 + $0x8e0] sm:$0xff] }
 0x7e6   : > { %15919 = vmatprep.subr.bf16.mxu1 %v20688_v59  ;;  %v15974_v42 = vpack.c.bf16 %v12489_v3, %v12488_v30  ;;  %v10714_v30 = vrot.slane %v20205_v13, 1  ;;  %v12531_v3 = vld [vmem:[%s20641_s7 + $0xa10] sm:$0xff] }
 0x7e8   : > { %15056 = vmatmul.mubr.msk.f32.vlgmr.msra.gmra.mrb[28].mxu1 %vm7474_vm11, %v9967_v6  ;;  %v12491_v6 = vld [vmem:[%s20641_s7 + $0x8f8] sm:$0xff] }
 0x7e9   : > { %15921 = vmatpush3.bf16.msra.mxu1 %v15920_v21  ;;  %15074 = vmatprep.mubr.msk.f32.mxu1 %vm16659_vm3, %v20676_v8  ;;  %v12490_v21 = vld [vmem:[%s20641_s7 + $0x8f0] sm:$0xff] }
 0x7ea   : > { %15922 = vmatprep.subr.bf16.mxu1 %v20688_v59  ;;  %v15977_v23 = vpack.c.bf16 %v12491_v6, %v12490_v21  ;;  %v12533_v6 = vld [vmem:[%s20641_s7 + $0xa20] sm:$0xff] }
 0x7ed   : > { %15924 = vmatpush3.bf16.msra.mxu1 %v15923_v22  ;;  %v12494_v22 = vld [vmem:[%s20641_s7 + $0x908] sm:$0xff] }
 0x7ee   : > { %15925 = vmatprep.subr.bf16.mxu1 %v20688_v59  ;;  %v15980_v24 = vpack.c.bf16 %v12494_v22, %v12493_v51  ;;  %v12535_v22 = vld [vmem:[%s20641_s7 + $0xa30] sm:$0xff] }
 0x7f1   : > { %15927 = vmatpush3.bf16.msra.mxu1 %v15926_v11  ;;  %v12495_v11 = vld [vmem:[%s20641_s7 + $0x910] sm:$0xff] }
 0x7f2   : > { %15928 = vmatprep.subr.bf16.mxu1 %v20688_v59  ;;  %v15983_v38 = vpack.c.bf16 %v12496_v0, %v12495_v11  ;;  %v12538_v11 = vld [vmem:[%s20641_s7 + $0xa40] sm:$0xff]  ;;  %v12539_v0 = vld [vmem:[%s20641_s7 + $0xa48] sm:$0xff] }
 0x7f5   : > { %15930 = vmatpush3.bf16.msra.mxu1 %v15929_v49  ;;  %v12497_v49 = vld [vmem:[%s20641_s7 + $0x920] sm:$0xff] }
 0x7f6   : > { %15931 = vmatprep.subr.bf16.mxu1 %v20688_v59  ;;  %v15986_v45 = vpack.c.bf16 %v12498_v46, %v12497_v49  ;;  %v10797_v49 = vrot.slane %v20205_v13, 2  ;;  %v12540_v46 = vld [vmem:[%s20641_s7 + $0xa50] sm:$0xff] }
 0x7f8   : > { %15075 = vmatmul.mubr.msk.f32.vlgmr.msra.gmra.mrb[28].mxu1 %vm7474_vm11, %v10050_v55  ;;  %v12500_v55 = vld [vmem:[%s20641_s7 + $0x938] sm:$0xff] }
 0x7f9   : > { %15933 = vmatpush3.bf16.msra.mxu1 %v15932_v63  ;;  %15093 = vmatprep.mubr.msk.f32.mxu1 %vm16659_vm3, %v20676_v8  ;;  %v12499_v63 = vld [vmem:[%s20641_s7 + $0x930] sm:$0xff] }
 0x7fa   : > { %15934 = vmatprep.subr.bf16.mxu1 %v20688_v59  ;;  %v15989_v56 = vpack.c.bf16 %v12500_v55, %v12499_v63  ;;  %v11535_v63 = vld [vmem:[%s20643_s9] sm:$0xff]  ;;  %v11536_v55 = vld [vmem:[%s20643_s9 + $0x8] sm:$0xff] }
 0x7fd   : > { %15936 = vmatpush3.bf16.msra.mxu1 %v15935_v44  ;;  %v12503_v44 = vld [vmem:[%s20641_s7 + $0x948] sm:$0xff] }
 0x7fe   : > { %15937 = vmatprep.subr.bf16.mxu1 %v20688_v59  ;;  %v15992_v62 = vpack.c.bf16 %v12503_v44, %v12502_v53  ;;  %v16136_v44 = vpack.c.bf16 %v11536_v55, %v11535_v63  ;;  %v12570_v55 = vld [vmem:[%s20641_s7 + $0xb28] sm:$0xff] }
 0x800   : > { %16137 = vmatpush3.bf16.msra.mxu0 %v16136_v44  ;;  %v12572_v44 = vld [vmem:[%s20641_s7 + $0xb38] sm:$0xff] }
 0x801   : > { %15939 = vmatpush3.bf16.msra.mxu1 %v15938_v48  ;;  %v12504_v48 = vld [vmem:[%s20641_s7 + $0x950] sm:$0xff]  ;;  %16138 = vmatprep.subr.bf16.mxu0 %v20688_v59 }
 0x802   : > { %15940 = vmatprep.subr.bf16.mxu1 %v20688_v59  ;;  %v15995_v7 = vpack.c.bf16 %v12505_v35, %v12504_v48  ;;  %v12543_v48 = vld [vmem:[%s20641_s7 + $0xa68] sm:$0xff] }
 0x805   : > { %15942 = vmatpush3.bf16.msra.mxu1 %v15941_v15  ;;  %v12506_v15 = vld [vmem:[%s20641_s7 + $0x960] sm:$0xff] }
 0x806   : > { %15943 = vmatprep.subr.bf16.mxu1 %v20688_v59  ;;  %v15998_v25 = vpack.c.bf16 %v12507_v57, %v12506_v15  ;;  %v11540_v15 = vld [vmem:[%s20643_s9 + $0x28] sm:$0xff] }
 0x808   : > { %15094 = vmatmul.mubr.msk.f32.vlgmr.msra.gmra.mrb[28].mxu1 %vm7474_vm11, %v20010_v52 }
 0x809   : > { %15945 = vmatpush3.bf16.msra.mxu1 %v15944_v29  ;;  %15112 = vmatprep.mubr.msk.f32.mxu1 %vm16659_vm3, %v20676_v8  ;;  %v12508_v29 = vld [vmem:[%s20641_s7 + $0x970] sm:$0xff] }
 0x80a   : > { %15946 = vmatprep.subr.bf16.mxu1 %v20688_v59  ;;  %v16001_v14 = vpack.c.bf16 %v12509_v33, %v12508_v29  ;;  %v12545_v29 = vld [vmem:[%s20641_s7 + $0xa78] sm:$0xff] }
 0x80d   : > { %15948 = vmatpush3.bf16.msra.mxu1 %v15947_v16  ;;  %v12511_v16 = vld [vmem:[%s20641_s7 + $0x980] sm:$0xff] }
 0x80e   : > { %15949 = vmatprep.subr.bf16.mxu1 %v20688_v59  ;;  %v16004_v54 = vpack.c.bf16 %v12512_v61, %v12511_v16  ;;  %v11542_v16 = vld [vmem:[%s20643_s9 + $0x38] sm:$0xff] }
 0x811   : > { %15951 = vmatpush3.bf16.msra.mxu1 %v15950_v34  ;;  %v10548_v34 = vrot.slane %v20010_v52, 7  ;;  %v12515_v52 = vld [vmem:[%s20641_s7 + $0x9a0] sm:$0xff] }
 0x812   : > { %15952 = vmatprep.subr.bf16.mxu1 %v20688_v59  ;;  %v16010_v17 = vpack.c.bf16 %v12516_v36, %v12515_v52  ;;  %v10880_v36 = vrot.slane %v20205_v13, 3 }
 0x815   : > { %15954 = vmatpush3.bf16.msra.mxu1 %v15953_v5  ;;  %v16007_v5 = vpack.c.bf16 %v12514_v39, %v12513_v58  ;;  %v11543_v39 = vld [vmem:[%s20643_s9 + $0x40] sm:$0xff] }
 0x816   : > { %15955 = vmatprep.subr.bf16.mxu1 %v20688_v59 }
 0x818   : > { %15113 = vmatmul.mubr.msk.f32.vlgmr.msra.gmra.mrb[28].mxu1 %vm7474_vm11, %v10216_v41  ;;  %v12518_v41 = vld [vmem:[%s20641_s7 + $0x9b8] sm:$0xff] }
 0x819   : > { %15957 = vmatpush3.bf16.msra.mxu1 %v15956_v60  ;;  %15131 = vmatprep.mubr.msk.f32.mxu1 %vm16659_vm3, %v20676_v8  ;;  %v12517_v60 = vld [vmem:[%s20641_s7 + $0x9b0] sm:$0xff] }
 0x81a   : > { %15958 = vmatprep.subr.bf16.mxu1 %v20688_v59  ;;  %v16013_v18 = vpack.c.bf16 %v12518_v41, %v12517_v60  ;;  %v12550_v60 = vld [vmem:[%s20641_s7 + $0xa98] sm:$0xff] }
 0x81d   : > { %15960 = vmatpush3.bf16.msra.mxu1 %v15959_v2  ;;  %v12521_v2 = vld [vmem:[%s20641_s7 + $0x9c8] sm:$0xff] }
 0x81e   : > { %15961 = vmatprep.subr.bf16.mxu1 %v20688_v59  ;;  %v16016_v10 = vpack.c.bf16 %v12521_v2, %v12520_v12  ;;  %v11546_v12 = vld [vmem:[%s20643_s9 + $0x58] sm:$0xff] }
 0x821   : > { %15963 = vmatpush3.bf16.msra.mxu1 %v15962_v32  ;;  %v12522_v32 = vld [vmem:[%s20641_s7 + $0x9d0] sm:$0xff] }
 0x822   : > { %15964 = vmatprep.subr.bf16.mxu1 %v20688_v59  ;;  %v16019_v28 = vpack.c.bf16 %v12523_v50, %v12522_v32  ;;  %v12552_v32 = vld [vmem:[%s20641_s7 + $0xaa8] sm:$0xff] }
 0x825   : > { %15966 = vmatpush3.bf16.msra.mxu1 %v15965_v27  ;;  %v12525_v27 = vld [vmem:[%s20641_s7 + $0x9e8] sm:$0xff] }
 0x826   : > { %15967 = vmatprep.subr.bf16.mxu1 %v20688_v59  ;;  %v16022_v4 = vpack.c.bf16 %v12525_v27, %v12524_v31  ;;  %v11548_v31 = vld [vmem:[%s20643_s9 + $0x68] sm:$0xff] }
 0x828   : > { %15132 = vmatmul.mubr.msk.f32.vlgmr.msra.gmra.mrb[28].mxu1 %vm7474_vm11, %v10299_v37 }
 0x829   : > { %15969 = vmatpush3.bf16.msra.mxu1 %v15968_v20  ;;  %15150 = vmatprep.mubr.msk.f32.mxu1 %vm16659_vm3, %v20676_v8  ;;  %v12527_v20 = vld [vmem:[%s20641_s7 + $0x9f8] sm:$0xff] }
 0x82a   : > { %15970 = vmatprep.subr.bf16.mxu1 %v20688_v59  ;;  %v16025_v37 = vpack.c.bf16 %v12527_v20, %v12526_v26  ;;  %v12554_v26 = vld [vmem:[%s20641_s7 + $0xab8] sm:$0xff] }
 0x82d   : > { %15972 = vmatpush3.bf16.msra.mxu1 %v15971_v47  ;;  %v16028_v47 = vpack.c.bf16 %v12530_v9, %v12529_v43  ;;  %v12556_v43 = vld [vmem:[%s20641_s7 + $0xac0] sm:$0xff]  ;;  %v12557_v9 = vld [vmem:[%s20641_s7 + $0xac8] sm:$0xff] }
 0x82e   : > { %15973 = vmatprep.subr.bf16.mxu1 %v20688_v59 }
 0x831   : > { %15975 = vmatpush3.bf16.msra.mxu1 %v15974_v42  ;;  %v12532_v42 = vld [vmem:[%s20641_s7 + $0xa18] sm:$0xff] }
 0x832   : > { %15976 = vmatprep.subr.bf16.mxu1 %v20688_v59  ;;  %v16031_v21 = vpack.c.bf16 %v12532_v42, %v12531_v3  ;;  %v12558_v3 = vld [vmem:[%s20641_s7 + $0xad0] sm:$0xff]  ;;  %v12559_v42 = vld [vmem:[%s20641_s7 + $0xad8] sm:$0xff] }
 0x835   : > { %15978 = vmatpush3.bf16.msra.mxu1 %v15977_v23  ;;  %v12534_v23 = vld [vmem:[%s20641_s7 + $0xa28] sm:$0xff] }
 0x836   : > { %15979 = vmatprep.subr.bf16.mxu1 %v20688_v59  ;;  %v16034_v51 = vpack.c.bf16 %v12534_v23, %v12533_v6  ;;  %v12560_v6 = vld [vmem:[%s20641_s7 + $0xae0] sm:$0xff]  ;;  %v12561_v23 = vld [vmem:[%s20641_s7 + $0xae8] sm:$0xff] }
 0x838   : > { %15151 = vmatmul.mubr.msk.f32.vlgmr.msra.gmra.mrb[28].mxu1 %vm7474_vm11, %v10382_v19 }
 0x839   : > { %15981 = vmatpush3.bf16.msra.mxu1 %v15980_v24  ;;  %15169 = vmatprep.mubr.msk.f32.mxu1 %vm16659_vm3, %v20676_v8  ;;  %v12536_v24 = vld [vmem:[%s20641_s7 + $0xa38] sm:$0xff] }
 0x83a   : > { %15982 = vmatprep.subr.bf16.mxu1 %v20688_v59  ;;  %v16037_v19 = vpack.c.bf16 %v12536_v24, %v12535_v22  ;;  %v12562_v22 = vld [vmem:[%s20641_s7 + $0xaf0] sm:$0xff]  ;;  %v12563_v24 = vld [vmem:[%s20641_s7 + $0xaf8] sm:$0xff] }
 0x83d   : > { %15984 = vmatpush3.bf16.msra.mxu1 %v15983_v38  ;;  %v16040_v38 = vpack.c.bf16 %v12539_v0, %v12538_v11  ;;  %v12565_v11 = vld [vmem:[%s20641_s7 + $0xb00] sm:$0xff]  ;;  %v12566_v0 = vld [vmem:[%s20641_s7 + $0xb08] sm:$0xff] }
 0x83e   : > { %15985 = vmatprep.subr.bf16.mxu1 %v20688_v59 }
 0x841   : > { %15987 = vmatpush3.bf16.msra.mxu1 %v15986_v45  ;;  %v12541_v45 = vld [vmem:[%s20641_s7 + $0xa58] sm:$0xff] }
 0x842   : > { %15988 = vmatprep.subr.bf16.mxu1 %v20688_v59  ;;  %v16043_v53 = vpack.c.bf16 %v12541_v45, %v12540_v46  ;;  %v12567_v46 = vld [vmem:[%s20641_s7 + $0xb10] sm:$0xff]  ;;  %v12568_v45 = vld [vmem:[%s20641_s7 + $0xb18] sm:$0xff] }
 0x843   : > { %v16079_v63 = vpack.c.bf16 %v12568_v45, %v12567_v46  ;;  %v11550_v46 = vld [vmem:[%s20643_s9 + $0x78] sm:$0xff] }
 0x845   : > { %15990 = vmatpush3.bf16.msra.mxu1 %v15989_v56  ;;  %v11537_v56 = vld [vmem:[%s20643_s9 + $0x10] sm:$0xff] }
 0x846   : > { %15991 = vmatprep.subr.bf16.mxu1 %v20688_v59 }
 0x848   : > { %15170 = vmatmul.mubr.msk.f32.vlgmr.msra.gmra.mrb[28].mxu1 %vm7474_vm11, %v10465_v1  ;;  %v12542_v1 = vld [vmem:[%s20641_s7 + $0xa60] sm:$0xff] }
 0x849   : > { %15993 = vmatpush3.bf16.msra.mxu1 %v15992_v62  ;;  %15188 = vmatprep.mubr.msk.f32.mxu1 %vm16659_vm3, %v20676_v8  ;;  %v11538_v62 = vld [vmem:[%s20643_s9 + $0x18] sm:$0xff]  ;;  %v16046_v57 = vpack.c.bf16 %v12543_v48, %v12542_v1  ;;  %v12574_v1 = vld [vmem:[%s20641_s7 + $0xb40] sm:$0xff]  ;;  %v12575_v48 = vld [vmem:[%s20641_s7 + $0xb48] sm:$0xff] }
 0x84a   : > { %15994 = vmatprep.subr.bf16.mxu1 %v20688_v59  ;;  %v16139_v35 = vpack.c.bf16 %v11538_v62, %v11537_v56 }
 0x84c   : > { %16140 = vmatpush3.bf16.msra.mxu0 %v16139_v35  ;;  %v16088_v35 = vpack.c.bf16 %v12575_v48, %v12574_v1 }
 0x84d   : > { %15996 = vmatpush3.bf16.msra.mxu1 %v15995_v7  ;;  %v11539_v7 = vld [vmem:[%s20643_s9 + $0x20] sm:$0xff]  ;;  %16141 = vmatprep.subr.bf16.mxu0 %v20688_v59 }
 0x84e   : > { %15997 = vmatprep.subr.bf16.mxu1 %v20688_v59  ;;  %v16142_v33 = vpack.c.bf16 %v11540_v15, %v11539_v7  ;;  %v20449_v7 = vmax.f32 %v18994_v40, 0.0  ;;  %v12576_v15 = vld [vmem:[%s20641_s7 + $0xb50] sm:$0xff]  ;;  %v12578_v40 = vld [vmem:[%s20641_s7 + $0xb60] sm:$0xff] }
 0x850   : > { %16143 = vmatpush3.bf16.msra.mxu0 %v16142_v33 }
 0x851   : > { %15999 = vmatpush3.bf16.msra.mxu1 %v15998_v25  ;;  %v12544_v25 = vld [vmem:[%s20641_s7 + $0xa70] sm:$0xff]  ;;  %16144 = vmatprep.subr.bf16.mxu0 %v20688_v59 }
 0x852   : > { %16000 = vmatprep.subr.bf16.mxu1 %v20688_v59  ;;  %v16049_v61 = vpack.c.bf16 %v12545_v29, %v12544_v25  ;;  %v12579_v29 = vld [vmem:[%s20641_s7 + $0xb68] sm:$0xff] }
 0x853   : > { %v16094_v33 = vpack.c.bf16 %v12579_v29, %v12578_v40 }
 0x855   : > { %16002 = vmatpush3.bf16.msra.mxu1 %v16001_v14  ;;  %v11541_v14 = vld [vmem:[%s20643_s9 + $0x30] sm:$0xff] }
 0x856   : > { %16003 = vmatprep.subr.bf16.mxu1 %v20688_v59  ;;  %v16145_v58 = vpack.c.bf16 %v11542_v16, %v11541_v14  ;;  %v12580_v14 = vld [vmem:[%s20641_s7 + $0xb70] sm:$0xff]  ;;  %v12581_v16 = vld [vmem:[%s20641_s7 + $0xb78] sm:$0xff] }
 0x858   : > { %15189 = vmatmul.mubr.msk.f32.vlgmr.msra.gmra.mrb[28].mxu1 %vm7474_vm11, %v10548_v34  ;;  %v12548_v34 = vld [vmem:[%s20641_s7 + $0xa88] sm:$0xff]  ;;  %16146 = vmatpush3.bf16.msra.mxu0 %v16145_v58 }
 0x859   : > { %16005 = vmatpush3.bf16.msra.mxu1 %v16004_v54  ;;  %15207 = vmatprep.mubr.msk.f32.mxu1 %vm16659_vm3, %v20676_v8  ;;  %v12547_v54 = vld [vmem:[%s20641_s7 + $0xa80] sm:$0xff] }
 0x85a   : > { %16006 = vmatprep.subr.bf16.mxu1 %v20688_v59  ;;  %v16052_v52 = vpack.c.bf16 %v12548_v34, %v12547_v54  ;;  %16147 = vmatprep.subr.bf16.mxu0 %v20688_v59  ;;  %v12583_v54 = vld [vmem:[%s20641_s7 + $0xb80] sm:$0xff]  ;;  %v12584_v34 = vld [vmem:[%s20641_s7 + $0xb88] sm:$0xff] }
 0x85b   : > { %v16100_v58 = vpack.c.bf16 %v12584_v34, %v12583_v54 }
 0x85d   : > { %16008 = vmatpush3.bf16.msra.mxu1 %v16007_v5  ;;  %v11544_v5 = vld [vmem:[%s20643_s9 + $0x48] sm:$0xff] }
 0x85e   : > { %16009 = vmatprep.subr.bf16.mxu1 %v20688_v59  ;;  %v16148_v41 = vpack.c.bf16 %v11544_v5, %v11543_v39  ;;  %v11212_v39 = vrot.slane %v20449_v7, 1  ;;  %v12585_v5 = vld [vmem:[%s20641_s7 + $0xb90] sm:$0xff] }
 0x860   : > { %16149 = vmatpush3.bf16.msra.mxu0 %v16148_v41 }
 0x861   : > { %16011 = vmatpush3.bf16.msra.mxu1 %v16010_v17  ;;  %v12549_v17 = vld [vmem:[%s20641_s7 + $0xa90] sm:$0xff]  ;;  %16150 = vmatprep.subr.bf16.mxu0 %v20688_v59 }
 0x862   : > { %16012 = vmatprep.subr.bf16.mxu1 %v20688_v59  ;;  %v16055_v2 = vpack.c.bf16 %v12550_v60, %v12549_v17  ;;  %v12587_v17 = vld [vmem:[%s20641_s7 + $0xba0] sm:$0xff]  ;;  %v12588_v60 = vld [vmem:[%s20641_s7 + $0xba8] sm:$0xff] }
 0x863   : > { %v16106_v41 = vpack.c.bf16 %v12588_v60, %v12587_v17 }
 0x865   : > { %16014 = vmatpush3.bf16.msra.mxu1 %v16013_v18  ;;  %v11545_v18 = vld [vmem:[%s20643_s9 + $0x50] sm:$0xff] }
 0x866   : > { %16015 = vmatprep.subr.bf16.mxu1 %v20688_v59  ;;  %v16151_v50 = vpack.c.bf16 %v11546_v12, %v11545_v18  ;;  %v12589_v18 = vld [vmem:[%s20641_s7 + $0xbb0] sm:$0xff]  ;;  %v12590_v12 = vld [vmem:[%s20641_s7 + $0xbb8] sm:$0xff] }
 0x868   : > { %15208 = vmatmul.mubr.msk.f32.vlgmr.msra.gmra.mrb[28].mxu1 %vm7474_vm11, %v20205_v13  ;;  %16152 = vmatpush3.bf16.msra.mxu0 %v16151_v50 }
 0x869   : > { %16017 = vmatpush3.bf16.msra.mxu1 %v16016_v10  ;;  %15226 = vmatprep.mubr.msk.f32.mxu1 %vm16659_vm3, %v20676_v8  ;;  %v12551_v10 = vld [vmem:[%s20641_s7 + $0xaa0] sm:$0xff] }
 0x86a   : > { %16018 = vmatprep.subr.bf16.mxu1 %v20688_v59  ;;  %v16058_v27 = vpack.c.bf16 %v12552_v32, %v12551_v10  ;;  %16153 = vmatprep.subr.bf16.mxu0 %v20688_v59  ;;  %v12592_v10 = vld [vmem:[%s20641_s7 + $0xbc0] sm:$0xff]  ;;  %v12593_v32 = vld [vmem:[%s20641_s7 + $0xbc8] sm:$0xff] }
 0x86b   : > { %v16112_v50 = vpack.c.bf16 %v12593_v32, %v12592_v10 }
 0x86d   : > { %16020 = vmatpush3.bf16.msra.mxu1 %v16019_v28  ;;  %v11547_v28 = vld [vmem:[%s20643_s9 + $0x60] sm:$0xff] }
 0x86e   : > { %16021 = vmatprep.subr.bf16.mxu1 %v20688_v59  ;;  %v16154_v20 = vpack.c.bf16 %v11548_v31, %v11547_v28  ;;  %v11295_v28 = vrot.slane %v20449_v7, 2  ;;  %v12594_v31 = vld [vmem:[%s20641_s7 + $0xbd0] sm:$0xff] }
 0x870   : > { %16155 = vmatpush3.bf16.msra.mxu0 %v16154_v20  ;;  %v12597_v20 = vld [vmem:[%s20641_s7 + $0xbe8] sm:$0xff] }
 0x871   : > { %16023 = vmatpush3.bf16.msra.mxu1 %v16022_v4  ;;  %v12553_v4 = vld [vmem:[%s20641_s7 + $0xab0] sm:$0xff]  ;;  %16156 = vmatprep.subr.bf16.mxu0 %v20688_v59 }
 0x872   : > { %16024 = vmatprep.subr.bf16.mxu1 %v20688_v59 }
 0x875   : > { %16026 = vmatpush3.bf16.msra.mxu1 %v16025_v37  ;;  %v16061_v37 = vpack.c.bf16 %v12554_v26, %v12553_v4  ;;  %v12596_v26 = vld [vmem:[%s20641_s7 + $0xbe0] sm:$0xff] }
 0x876   : > { %16027 = vmatprep.subr.bf16.mxu1 %v20688_v59 }
 0x878   : > { %15227 = vmatmul.mubr.msk.f32.vlgmr.msra.gmra.mrb[28].mxu1 %vm7474_vm11, %v10714_v30  ;;  %v10963_v30 = vrot.slane %v20205_v13, 6 }
 0x879   : > { %16029 = vmatpush3.bf16.msra.mxu1 %v16028_v47  ;;  %15245 = vmatprep.mubr.msk.f32.mxu1 %vm16659_vm3, %v20676_v8  ;;  %v16064_v47 = vpack.c.bf16 %v12557_v9, %v12556_v43  ;;  %v12598_v43 = vld [vmem:[%s20641_s7 + $0xbf0] sm:$0xff]  ;;  %v12599_v9 = vld [vmem:[%s20641_s7 + $0xbf8] sm:$0xff] }
 0x87a   : > { %16030 = vmatprep.subr.bf16.mxu1 %v20688_v59 }
 0x87d   : > { %16032 = vmatpush3.bf16.msra.mxu1 %v16031_v21  ;;  %v16067_v21 = vpack.c.bf16 %v12559_v42, %v12558_v3  ;;  %v12602_v3 = vld [vmem:[%s20641_s7 + $0xc08] sm:$0xff] }
 0x87e   : > { %16033 = vmatprep.subr.bf16.mxu1 %v20688_v59 }
 0x881   : > { %16035 = vmatpush3.bf16.msra.mxu1 %v16034_v51  ;;  %v16070_v51 = vpack.c.bf16 %v12561_v23, %v12560_v6  ;;  %v12603_v6 = vld [vmem:[%s20641_s7 + $0xc10] sm:$0xff]  ;;  %v12604_v23 = vld [vmem:[%s20641_s7 + $0xc18] sm:$0xff] }
 0x882   : > { %16036 = vmatprep.subr.bf16.mxu1 %v20688_v59 }
 0x885   : > { %16038 = vmatpush3.bf16.msra.mxu1 %v16037_v19  ;;  %v16073_v19 = vpack.c.bf16 %v12563_v24, %v12562_v22  ;;  %v12605_v22 = vld [vmem:[%s20641_s7 + $0xc20] sm:$0xff]  ;;  %v12606_v24 = vld [vmem:[%s20641_s7 + $0xc28] sm:$0xff] }
 0x886   : > { %16039 = vmatprep.subr.bf16.mxu1 %v20688_v59 }
 0x888   : > { %15246 = vmatmul.mubr.msk.f32.vlgmr.msra.gmra.mrb[28].mxu1 %vm7474_vm11, %v10797_v49  ;;  %v11046_v49 = vrot.slane %v20205_v13, 7  ;;  %v12569_v13 = vld [vmem:[%s20641_s7 + $0xb20] sm:$0xff] }
 0x889   : > { %16041 = vmatpush3.bf16.msra.mxu1 %v16040_v38  ;;  %15264 = vmatprep.mubr.msk.f32.mxu1 %vm16659_vm3, %v20676_v8  ;;  %v16076_v38 = vpack.c.bf16 %v12566_v0, %v12565_v11  ;;  %v16082_v56 = vpack.c.bf16 %v12570_v55, %v12569_v13  ;;  %v12607_v11 = vld [vmem:[%s20641_s7 + $0xc30] sm:$0xff] }
 0x88a   : > { %16042 = vmatprep.subr.bf16.mxu1 %v20688_v59 }
 0x88d   : > { %16044 = vmatpush3.bf16.msra.mxu1 %v16043_v53  ;;  %v12571_v53 = vld [vmem:[%s20641_s7 + $0xb30] sm:$0xff] }
 0x88e   : > { %16045 = vmatprep.subr.bf16.mxu1 %v20688_v59  ;;  %v16085_v62 = vpack.c.bf16 %v12572_v44, %v12571_v53 }
 0x891   : > { %16047 = vmatpush3.bf16.msra.mxu1 %v16046_v57  ;;  %v12577_v57 = vld [vmem:[%s20641_s7 + $0xb58] sm:$0xff] }
 0x892   : > { %16048 = vmatprep.subr.bf16.mxu1 %v20688_v59  ;;  %v16091_v25 = vpack.c.bf16 %v12577_v57, %v12576_v15 }
 0x895   : > { %16050 = vmatpush3.bf16.msra.mxu1 %v16049_v61  ;;  %v16097_v61 = vpack.c.bf16 %v12581_v16, %v12580_v14 }
 0x896   : > { %16051 = vmatprep.subr.bf16.mxu1 %v20688_v59 }
 0x898   : > { %15265 = vmatmul.mubr.msk.f32.vlgmr.msra.gmra.mrb[28].mxu1 %vm7474_vm11, %v10880_v36 }
 0x899   : > { %16053 = vmatpush3.bf16.msra.mxu1 %v16052_v52  ;;  %15283 = vmatprep.mubr.msk.f32.mxu1 %vm16659_vm3, %v20676_v8  ;;  %v12586_v52 = vld [vmem:[%s20641_s7 + $0xb98] sm:$0xff] }
 0x89a   : > { %16054 = vmatprep.subr.bf16.mxu1 %v20688_v59  ;;  %v16103_v36 = vpack.c.bf16 %v12586_v52, %v12585_v5 }
 0x89d   : > { %16056 = vmatpush3.bf16.msra.mxu1 %v16055_v2  ;;  %v16109_v2 = vpack.c.bf16 %v12590_v12, %v12589_v18 }
 0x89e   : > { %16057 = vmatprep.subr.bf16.mxu1 %v20688_v59 }
 0x8a1   : > { %16059 = vmatpush3.bf16.msra.mxu1 %v16058_v27  ;;  %v12595_v27 = vld [vmem:[%s20641_s7 + $0xbd8] sm:$0xff] }
 0x8a2   : > { %16060 = vmatprep.subr.bf16.mxu1 %v20688_v59  ;;  %v16115_v4 = vpack.c.bf16 %v12595_v27, %v12594_v31 }
 0x8a5   : > { %16062 = vmatpush3.bf16.msra.mxu1 %v16061_v37  ;;  %v16118_v37 = vpack.c.bf16 %v12597_v20, %v12596_v26 }
 0x8a6   : > { %16063 = vmatprep.subr.bf16.mxu1 %v20688_v59 }
 0x8a8   : > { %15284 = vmatmul.mubr.msk.f32.vlgmr.msra.gmra.mrb[28].mxu1 %vm7474_vm11, %v10963_v30  ;;  %v12601_v30 = vld [vmem:[%s20641_s7 + $0xc00] sm:$0xff] }
 0x8a9   : > { %16065 = vmatpush3.bf16.msra.mxu1 %v16064_v47  ;;  %15302 = vmatprep.mubr.msk.f32.mxu1 %vm16659_vm3, %v20676_v8  ;;  %v16121_v47 = vpack.c.bf16 %v12599_v9, %v12598_v43  ;;  %v16124_v42 = vpack.c.bf16 %v12602_v3, %v12601_v30 }
 0x8aa   : > { %16066 = vmatprep.subr.bf16.mxu1 %v20688_v59 }
 0x8ad   : > { %16068 = vmatpush3.bf16.msra.mxu1 %v16067_v21  ;;  %v11378_v21 = vrot.slane %v20449_v7, 3 }
 0x8ae   : > { %16069 = vmatprep.subr.bf16.mxu1 %v20688_v59 }
 0x8b1   : > { %16071 = vmatpush3.bf16.msra.mxu1 %v16070_v51  ;;  %v16127_v51 = vpack.c.bf16 %v12604_v23, %v12603_v6 }
 0x8b2   : > { %16072 = vmatprep.subr.bf16.mxu1 %v20688_v59 }
 0x8b5   : > { %16074 = vmatpush3.bf16.msra.mxu1 %v16073_v19  ;;  %v16130_v19 = vpack.c.bf16 %v12606_v24, %v12605_v22 }
 0x8b6   : > { %16075 = vmatprep.subr.bf16.mxu1 %v20688_v59 }
 0x8b8   : > { %15303 = vmatmul.mubr.msk.f32.vlgmr.msra.gmra.mrb[28].mxu1 %vm7474_vm11, %v11046_v49  ;;  %v11549_v49 = vld [vmem:[%s20643_s9 + $0x70] sm:$0xff] }
 0x8b9   : > { %16077 = vmatpush3.bf16.msra.mxu1 %v16076_v38  ;;  %15321 = vmatprep.mubr.msk.f32.mxu1 %vm16659_vm3, %v20676_v8  ;;  %v11461_v38 = vrot.slane %v20449_v7, 4  ;;  %v16157_v45 = vpack.c.bf16 %v11550_v46, %v11549_v49 }
 0x8ba   : > { %16078 = vmatprep.subr.bf16.mxu1 %v20688_v59 }
 0x8bb   : > { %16158 = vmatpush3.bf16.msra.mxu0 %v16157_v45 }
 0x8bd   : > { %16080 = vmatpush3.bf16.msra.mxu1 %v16079_v63  ;;  %v7465_v63 = vld [vmem:[%s20642_s8] sm:$0x1] }
 0x8be   : > { %16081 = vmatprep.subr.bf16.mxu1 %v20688_v59 }
 0x8c1   : > { %16083 = vmatpush3.bf16.msra.mxu1 %v16082_v56  ;;  %v11551_v56 = vld [vmem:[%s20644_s10] sm:$0x1] }
 0x8c2   : > { %16084 = vmatprep.subr.bf16.mxu1 %v20688_v59 }
 0x8c5   : > { %16086 = vmatpush3.bf16.msra.mxu1 %v16085_v62 }
 0x8c6   : > { %16087 = vmatprep.subr.bf16.mxu1 %v20688_v59 }
 0x8c8   : > { %15322 = vmatmul.mubr.msk.f32.vlgmr.msra.gmra.mrb[28].mxu1 %vm7474_vm11, %v20449_v7 }
 0x8c9   : > { %16089 = vmatpush3.bf16.msra.mxu1 %v16088_v35  ;;  %15340 = vmatprep.mubr.msk.f32.mxu1 %vm16659_vm3, %v20676_v8 }
 0x8ca   : > { %16090 = vmatprep.subr.bf16.mxu1 %v20688_v59 }
 0x8cd   : > { %16092 = vmatpush3.bf16.msra.mxu1 %v16091_v25 }
 0x8ce   : > { %16093 = vmatprep.subr.bf16.mxu1 %v20688_v59 }
 0x8d1   : > { %16095 = vmatpush3.bf16.msra.mxu1 %v16094_v33 }
 0x8d2   : > { %16096 = vmatprep.subr.bf16.mxu1 %v20688_v59 }
 0x8d5   : > { %16098 = vmatpush3.bf16.msra.mxu1 %v16097_v61 }
 0x8d6   : > { %16099 = vmatprep.subr.bf16.mxu1 %v20688_v59 }
 0x8d8   : > { %15341 = vmatmul.mubr.msk.f32.vlgmr.msra.gmra.mrb[28].mxu1 %vm7474_vm11, %v11212_v39 }
 0x8d9   : > { %16101 = vmatpush3.bf16.msra.mxu1 %v16100_v58  ;;  %15359 = vmatprep.mubr.msk.f32.mxu1 %vm16659_vm3, %v20676_v8 }
 0x8da   : > { %16102 = vmatprep.subr.bf16.mxu1 %v20688_v59 }
 0x8dd   : > { %16104 = vmatpush3.bf16.msra.mxu1 %v16103_v36 }
 0x8de   : > { %16105 = vmatprep.subr.bf16.mxu1 %v20688_v59 }
 0x8e1   : > { %16107 = vmatpush3.bf16.msra.mxu1 %v16106_v41 }
 0x8e2   : > { %16108 = vmatprep.subr.bf16.mxu1 %v20688_v59 }
 0x8e5   : > { %16110 = vmatpush3.bf16.msra.mxu1 %v16109_v2 }
 0x8e6   : > { %16111 = vmatprep.subr.bf16.mxu1 %v20688_v59 }
 0x8e8   : > { %15360 = vmatmul.mubr.msk.f32.vlgmr.msra.gmra.mrb[28].mxu1 %vm7474_vm11, %v11295_v28 }
 0x8e9   : > { %16113 = vmatpush3.bf16.msra.mxu1 %v16112_v50  ;;  %15378 = vmatprep.mubr.msk.f32.mxu1 %vm16659_vm3, %v20676_v8 }
 0x8ea   : > { %16114 = vmatprep.subr.bf16.mxu1 %v20688_v59 }
 0x8ed   : > { %16116 = vmatpush3.bf16.msra.mxu1 %v16115_v4 }
 0x8ee   : > { %16117 = vmatprep.subr.bf16.mxu1 %v20688_v59 }
 0x8f1   : > { %16119 = vmatpush3.bf16.msra.mxu1 %v16118_v37 }
 0x8f2   : > { %16120 = vmatprep.subr.bf16.mxu1 %v20688_v59 }
 0x8f5   : > { %16122 = vmatpush3.bf16.msra.mxu1 %v16121_v47 }
 0x8f6   : > { %16123 = vmatprep.subr.bf16.mxu1 %v20688_v59 }
 0x8f8   : > { %15379 = vmatmul.mubr.msk.f32.vlgmr.msra.gmra.mrb[28].mxu1 %vm7474_vm11, %v11378_v21 }
 0x8f9   : > { %16125 = vmatpush3.bf16.msra.mxu1 %v16124_v42  ;;  %15397 = vmatprep.mubr.msk.f32.mxu1 %vm16659_vm3, %v20676_v8  ;;  %v12608_v8 = vld [vmem:[%s20641_s7 + $0xc38] sm:$0xff] }
 0x8fa   : > { %16126 = vmatprep.subr.bf16.mxu1 %v20688_v59  ;;  %v16133_v0 = vpack.c.bf16 %v12608_v8, %v12607_v11 }
 0x8fd   : > { %16128 = vmatpush3.bf16.msra.mxu1 %v16127_v51 }
 0x8fe   : > { %16129 = vmatprep.subr.bf16.mxu1 %v20688_v59 }
 0x901   : > { %16131 = vmatpush3.bf16.msra.mxu1 %v16130_v19 }
 0x902   : > { %16132 = vmatprep.subr.bf16.mxu1 %v20688_v59 }
 0x905   : > { %16134 = vmatpush3.bf16.msra.mxu1 %v16133_v0 }
 0x908   : > { %15398 = vmatmul.mubr.msk.f32.vlgmr.msra.gmra.mrb[28].mxu1 %vm7474_vm11, %v11461_v38 }
 0x9db   : > { %v11530_v59 = vpop.f32.mrb[28].mxu1 }
 0x9dc   : > { %v16189_v13 = vadd.f32 %v11530_v59, %v7465_v63  ;;  %v15399_v55 = vpop.f32.mrb[29].mxu1 }
 0x9de   : > { %15433 = vmatmul.mubr.f32.vlgmr.msra.gmra.mrb[246].mxu0 %v16189_v13 }
 0xab1   : > { %v11618_v53 = vpop.f32.mrb[246].mxu0 }
 0xab2   : > { %v11619_v44 = vadd.f32 %v11618_v53, %v11551_v56  ;;  %v15434_v62 = vpop.f32.mrb[247].mxu0 }
 0xab4   : > { %11622 = vst [vmem:[%s378_s29] sm:$0x1] %v11619_v44 }
 0xab5   : > { %16606 = shalt.err (!%p16603_p3)
}
 0xab6   : > { %s16607_s15 = scalar_lea.hbm %s20592_s13, 16  ;;  %s16611_s24 = scalar_lea.hbm %s20645_s11, 32 }
 0xab7   : > { %p16608_p4 = scmp.ne.s32.totalorder %s20592_s13, %s16607_s15  ;;  %p16612_p9 = scmp.lt.u32.totalorder %s20592_s13, %s20645_s11 }
 0xab8   : > { %p16613_p10 = scmp.lt.u32.totalorder %s16611_s24, %s16607_s15  ;;  %p16615_p12 = scmp.lt.u32.totalorder %s16607_s15, %s20592_s13 }
 0xab9   : > { %p16609_p7 = pnand %p16608_p4, %p16760_p5 }
 0xaba   : > { %p16614_p11 = por %p16613_p10, %p16612_p9 }
 0xabb   : > { %p16610_p8 = pneg %p16609_p7 }
 0xabc   : > { %p16616_p13 = por %p16615_p12, %p16614_p11 }
 0xabe   : > { %p16617_p0 = pnand %p16616_p13, %p16610_p8 }
 0xac0   : > { %16620 = shalt.err (!%p16617_p0)
}
 0xac1   : > { %16547 = dma.vmem_to_hbm [thread:$0]  (%p16760_p5), %s20594_s30, 16, %s20592_s13, %s11624_s14  }
 0xac2 PF: > { %p16553_p1 = scmp.ge.s32.totalorder %s16655_s20, 2  ;;  %s11648_s0 = sand.u32 1, %s16643_s17  }
 0xac3   : > { %s11649_s16 = scalar_lea.sflag [#allocation7], %s11648_s0 }
 0xac4   : > { %p16550_p2 = pnand %p16553_p1, %p16764_p6 }
 0xac6   : > { %16638 = dma.done.wait (!%p16550_p2), %s11649_s16, 16  }
 0xac7   : > { %16640 = vsyncadd (!%p16550_p2), %s11649_s16, 4294967280  ;;  %p21_p3 = scmp.ge.s32.totalorder %s16747_s23, 4   ;;  %s20689_s17 = smov %s16647_s18 }
 0xac8   : > { %s20690_s18 = smov %s16651_s19  ;;  %s20691_s19 = smov %s16758_s26 }
 0xac9   : > { %s20692_s20 = smov %s16747_s23  ;;  %23 = sbr.rel (!%p21_p3) target bundleno = 5 (0x5), region = 196 }
 0xad0   :  { %11653 = vsyncpa [#allocation7], 1 }
 0xad1   :  { %11655 = vsyncpa [#allocation7 + $0x1], 1 }

</bundles_post_ra>
